<compile_context>
chip_gen: v7x
topology: tpu7x:2x2x1
jax: 0.10.0
libtpu: 0.0.40
codegen_flags: <defaults>
</compile_context>

<pallas_src>
import functools

import jax
import jax.numpy as jnp
from jax.experimental import pallas as pl
from jax.experimental.pallas import tpu as pltpu


def _moe_kernel(x_ref, gw_ref, gb_ref, w1_ref, b1_ref, w2_ref, b2_ref,
                out_ref, *, k: int):
    """One batch tile per grid step; all experts evaluated in-kernel.

    x_ref  : (TB, D_in)      f32
    gw_ref : (D_in, E)       f32   gate weight
    gb_ref : (1, E)          f32   gate bias
    w1_ref : (E, D_in, H)    f32   expert fc1 weights (VMEM-resident)
    b1_ref : (E, 1, H)       f32
    w2_ref : (E, H, D_out)   f32   expert fc2 weights (VMEM-resident)
    b2_ref : (E, 1, D_out)   f32
    out_ref: (TB, D_out)     f32
    """
    x = x_ref[...]                                              # (TB, D_in)
    num_experts = gw_ref.shape[-1]

    # ---- Gating: logits -> softmax -> top-k -> renormalized coefficients ---
    logits = (jnp.dot(x, gw_ref[...], preferred_element_type=jnp.float32)
              + gb_ref[...])                                    # (TB, E)
    mmax = jnp.max(logits, axis=-1, keepdims=True)
    p = jnp.exp(logits - mmax)
    gate = p / jnp.sum(p, axis=-1, keepdims=True)               # softmax

    lane_iota = jax.lax.broadcasted_iota(jnp.int32, gate.shape, 1)
    coeff = jnp.zeros_like(gate)
    remaining = gate
    wsum = jnp.zeros((gate.shape[0], 1), jnp.float32)
    for _ in range(k):                          # small static unroll (top-k)
        mx = jnp.max(remaining, axis=-1, keepdims=True)
        idx = jnp.min(jnp.where(remaining == mx, lane_iota, num_experts),
                      axis=-1, keepdims=True)   # lowest-index argmax
        sel = lane_iota == idx
        coeff = coeff + jnp.where(sel, mx, 0.0)
        remaining = jnp.where(sel, -jnp.inf, remaining)
        wsum = wsum + mx
    coeff = coeff / wsum            # (TB, E); nonzero only on selected experts

    # ---- Dense per-expert 2-layer MLP, weighted combine ---------------------
    acc = jnp.zeros((x.shape[0], w2_ref.shape[-1]), jnp.float32)
    for e in range(num_experts):                # weights already VMEM-resident
        h = (jnp.dot(x, w1_ref[e], preferred_element_type=jnp.float32)
             + b1_ref[e])
        h = jnp.maximum(h, 0.0)                                 # ReLU
        oe = (jnp.dot(h, w2_ref[e], preferred_element_type=jnp.float32)
              + b2_ref[e])
        ce = jnp.sum(jnp.where(lane_iota == e, coeff, 0.0),
                     axis=-1, keepdims=True)                    # (TB, 1)
        acc = acc + ce * oe

    out_ref[...] = acc.astype(out_ref.dtype)


def _pick_batch_tile(batch):
    """Largest tile (<=1024) that keeps >=2 tiles (v7x dual-TC balance)."""
    for t in (1024, 512, 256, 128):
        if batch >= 2 * t:
            return t
    if batch < 128:
        return max(8, ((batch + 7) // 8) * 8)
    return 128


def _default_vmem_limit_bytes():
    """~85% of physical VMEM (v5e/v6e: 128 MiB, v7x: 64 MiB), safe fallback."""
    try:
        cap = int(pltpu.get_tpu_info().vmem_capacity_bytes)
    except Exception:
        cap = 64 * 1024 * 1024
    return int(cap * 0.85)


def moe_forward(x, gate_w, gate_b, w1, b1, w2, b2, *, k=2, batch_tile=None,
                vmem_limit_bytes=None):
    """x: (B, D_in).  gate_w: (D_in, E).  w1: (E, D_in, H).  w2: (E, H, D_out).

    Weights are stored (in, out)-major so the kernel computes y = x @ W + b.
    """
    batch, d_in = x.shape
    num_experts, _, hidden = w1.shape
    d_out = w2.shape[2]
    assert 1 <= k <= num_experts, "k must satisfy 1 <= k <= num_experts"

    if batch_tile is None:
        batch_tile = _pick_batch_tile(batch)
    assert batch_tile % 8 == 0, "batch_tile must be a multiple of 8 (sublanes)"

    if vmem_limit_bytes is None:
        vmem_limit_bytes = _default_vmem_limit_bytes()

    # VMEM budget check for the resident-weight design (f32 = 4 bytes).
    resident_bytes = 4 * (num_experts * (d_in * hidden + hidden * d_out)
                          + d_in * num_experts
                          + num_experts * (2 + hidden + d_out))
    tile_bytes = 4 * 2 * batch_tile * (d_in + d_out)   # double-buffered x/out
    if resident_bytes + tile_bytes > vmem_limit_bytes:
        raise ValueError(
            "Expert stack does not fit VMEM with this tiling; see "
            "TODO(synk) about streamed / hidden-dim-tiled experts.")

    # Pad batch up to a multiple of the tile; extra rows sliced off at the end.
    n_tiles = pl.cdiv(batch, batch_tile)
    padded = n_tiles * batch_tile
    if padded != batch:
        x = jnp.pad(x, ((0, padded - batch), (0, 0)))

    x_c = x.astype(jnp.float32)
    gw_c = gate_w.astype(jnp.float32)
    gb2 = gate_b.reshape(1, num_experts).astype(jnp.float32)
    w1_c = w1.astype(jnp.float32)
    b1_3 = b1.reshape(num_experts, 1, hidden).astype(jnp.float32)
    w2_c = w2.astype(jnp.float32)
    b2_3 = b2.reshape(num_experts, 1, d_out).astype(jnp.float32)

    kernel = functools.partial(_moe_kernel, k=k)

    flops = 2 * padded * (d_in * num_experts
                          + num_experts * (d_in * hidden + hidden * d_out))
    bytes_accessed = 4 * (padded * d_in                          # x
                          + padded * d_out                       # out
                          + num_experts * (d_in * hidden + hidden * d_out)
                          + d_in * num_experts
                          + num_experts * (1 + hidden + d_out))
    cost = pl.CostEstimate(flops=int(flops),
                           transcendentals=int(padded * num_experts),
                           bytes_accessed=int(bytes_accessed))

    out = pl.pallas_call(
        kernel,
        out_shape=jax.ShapeDtypeStruct((padded, d_out), jnp.float32),
        grid=(n_tiles,),
        in_specs=[
            pl.BlockSpec((batch_tile, d_in), lambda i: (i, 0)),
            pl.BlockSpec((d_in, num_experts), lambda i: (0, 0)),
            pl.BlockSpec((1, num_experts), lambda i: (0, 0)),
            pl.BlockSpec((num_experts, d_in, hidden), lambda i: (0, 0, 0)),
            pl.BlockSpec((num_experts, 1, hidden), lambda i: (0, 0, 0)),
            pl.BlockSpec((num_experts, hidden, d_out), lambda i: (0, 0, 0)),
            pl.BlockSpec((num_experts, 1, d_out), lambda i: (0, 0, 0)),
        ],
        out_specs=pl.BlockSpec((batch_tile, d_out), lambda i: (i, 0)),
        compiler_params=pltpu.CompilerParams(
            dimension_semantics=("parallel",),
            vmem_limit_bytes=int(vmem_limit_bytes)),
        cost_estimate=cost,
    )(x_c, gw_c, gb2, w1_c, b1_3, w2_c, b2_3)
    return out[:batch]


def moe_reference(x, gate_w, gate_b, w1, b1, w2, b2, *, k=2):
    """Plain-JAX (f32) reference mirroring the PyTorch forward."""
    logits = jnp.dot(x, gate_w) + gate_b
    gate = jax.nn.softmax(logits, axis=-1)
    topk_w, topk_idx = jax.lax.top_k(gate, k)
    topk_w = topk_w / jnp.sum(topk_w, axis=-1, keepdims=True)
    h = jnp.maximum(jnp.einsum("bd,edh->beh", x, w1) + b1[None], 0.0)
    expert_out = jnp.einsum("beh,eho->beo", h, w2) + b2[None]
    gathered = jnp.take_along_axis(expert_out, topk_idx[..., None], axis=1)
    return jnp.sum(gathered * topk_w[..., None], axis=1)


if __name__ == "__main__":
    # Lane-aligned shapes (feature dims multiples of 128); batch splits into
    # two tiles so the "parallel" batch axis can shard across both v7x TCs.
    batch = 256
    input_dim = 128
    num_experts = 8
    hidden_dim = 128
    output_dim = 128
    k = 2

    key = jax.random.PRNGKey(0)
    ks = jax.random.split(key, 7)
    x = jax.random.normal(ks[0], (batch, input_dim), jnp.float32)
    gate_w = jax.random.normal(ks[1], (input_dim, num_experts), jnp.float32) * 0.1
    gate_b = jax.random.normal(ks[2], (num_experts,), jnp.float32) * 0.1
    w1 = jax.random.normal(ks[3], (num_experts, input_dim, hidden_dim), jnp.float32) * 0.1
    b1 = jax.random.normal(ks[4], (num_experts, hidden_dim), jnp.float32) * 0.1
    w2 = jax.random.normal(ks[5], (num_experts, hidden_dim, output_dim), jnp.float32) * 0.1
    b2 = jax.random.normal(ks[6], (num_experts, output_dim), jnp.float32) * 0.1

    out = moe_forward(x, gate_w, gate_b, w1, b1, w2, b2, k=k)
    out = jax.block_until_ready(out)

    ref = moe_reference(x, gate_w, gate_b, w1, b1, w2, b2, k=k)
    assert out.shape == (batch, output_dim)
    max_err = float(jnp.max(jnp.abs(out - ref)))
    assert jnp.allclose(out, ref, atol=2e-3, rtol=2e-3), (
        f"mismatch vs reference (max abs err {max_err})")

    print("KERNEL_OK")
</pallas_src>

<mosaic_0001>
module attributes {stable_mosaic.version = 11 : i64} {
  func.func @_moe_kernel(%arg0: i32, %arg1: memref<128x128xf32, #tpu.memory_space<vmem>>, %arg2: memref<128x8xf32, #tpu.memory_space<vmem>>, %arg3: memref<1x8xf32, #tpu.memory_space<vmem>>, %arg4: memref<8x128x128xf32, #tpu.memory_space<vmem>>, %arg5: memref<8x1x128xf32, #tpu.memory_space<vmem>>, %arg6: memref<8x128x128xf32, #tpu.memory_space<vmem>>, %arg7: memref<8x1x128xf32, #tpu.memory_space<vmem>>, %arg8: memref<128x128xf32, #tpu.memory_space<vmem>>) attributes {dimension_semantics = [#tpu.dimension_semantics<parallel>], iteration_bounds = array<i64: 2>, scalar_prefetch = 0 : i64, scratch_operands = 0 : i64, tpu.core_type = #tpu.core_type<tc>, window_params = [{transform_indices = @transform_0, window_bounds = array<i64: 128, 128>}, {pipeline_mode = #tpu.pipeline_mode<synchronous>, transform_indices = @transform_1, window_bounds = array<i64: 128, 8>}, {pipeline_mode = #tpu.pipeline_mode<synchronous>, transform_indices = @transform_2, window_bounds = array<i64: 1, 8>}, {pipeline_mode = #tpu.pipeline_mode<synchronous>, transform_indices = @transform_3, window_bounds = array<i64: 8, 128, 128>}, {pipeline_mode = #tpu.pipeline_mode<synchronous>, transform_indices = @transform_4, window_bounds = array<i64: 8, 1, 128>}, {pipeline_mode = #tpu.pipeline_mode<synchronous>, transform_indices = @transform_5, window_bounds = array<i64: 8, 128, 128>}, {pipeline_mode = #tpu.pipeline_mode<synchronous>, transform_indices = @transform_6, window_bounds = array<i64: 8, 1, 128>}, {transform_indices = @transform_7, window_bounds = array<i64: 128, 128>}]} {
    %c0 = arith.constant 0 : index
    %c0_0 = arith.constant 0 : index
    %0 = vector.load %arg1[%c0, %c0_0] : memref<128x128xf32, #tpu.memory_space<vmem>>, vector<128x128xf32>
    %c0_1 = arith.constant 0 : index
    %c0_2 = arith.constant 0 : index
    %1 = vector.load %arg2[%c0_1, %c0_2] : memref<128x8xf32, #tpu.memory_space<vmem>>, vector<128x8xf32>
    %cst = arith.constant dense<0.000000e+00> : vector<128x8xf32>
    %2 = tpu.matmul %0, %1, %cst {dimension_numbers = #tpu.dot_dimension_numbers<[1], [0], [0], [1], [0, 0, 1, 1], [], []>} : vector<128x128xf32>, vector<128x8xf32>, vector<128x8xf32> -> vector<128x8xf32>
    %c0_3 = arith.constant 0 : index
    %c0_4 = arith.constant 0 : index
    %3 = vector.load %arg3[%c0_3, %c0_4] : memref<1x8xf32, #tpu.memory_space<vmem>>, vector<1x8xf32>
    %4 = vector.broadcast %3 : vector<1x8xf32> to vector<128x8xf32>
    %5 = arith.addf %2, %4 : vector<128x8xf32>
    %cst_5 = arith.constant dense<0xFF800000> : vector<128xf32>
    %6 = vector.multi_reduction <maximumf>, %5, %cst_5 [1] : vector<128x8xf32> to vector<128xf32>
    %7 = vector.shape_cast %6 : vector<128xf32> to vector<128x1xf32>
    %8 = vector.broadcast %7 : vector<128x1xf32> to vector<128x8xf32>
    %9 = arith.subf %5, %8 : vector<128x8xf32>
    %10 = math.exp %9 : vector<128x8xf32>
    %cst_6 = arith.constant dense<0.000000e+00> : vector<128xf32>
    %11 = vector.multi_reduction <add>, %10, %cst_6 [1] : vector<128x8xf32> to vector<128xf32>
    %12 = vector.shape_cast %11 : vector<128xf32> to vector<128x1xf32>
    %13 = vector.broadcast %12 : vector<128x1xf32> to vector<128x8xf32>
    %14 = arith.divf %10, %13 : vector<128x8xf32>
    %15 = tpu.iota {dimensions = array<i32: 1>} : vector<128x8xi32>
    %cst_7 = arith.constant 0.000000e+00 : f32
    %16 = vector.broadcast %cst_7 : f32 to vector<128x8xf32>
    %cst_8 = arith.constant 0.000000e+00 : f32
    %17 = vector.broadcast %cst_8 : f32 to vector<128x1xf32>
    %cst_9 = arith.constant dense<0xFF800000> : vector<128xf32>
    %18 = vector.multi_reduction <maximumf>, %14, %cst_9 [1] : vector<128x8xf32> to vector<128xf32>
    %19 = vector.shape_cast %18 : vector<128xf32> to vector<128x1xf32>
    %20 = vector.broadcast %19 : vector<128x1xf32> to vector<128x8xf32>
    %21 = arith.cmpf oeq, %14, %20 : vector<128x8xf32>
    %c8_i32 = arith.constant 8 : i32
    %22 = vector.broadcast %c8_i32 : i32 to vector<128x8xi32>
    %23 = arith.select %21, %15, %22 : vector<128x8xi1>, vector<128x8xi32>
    %cst_10 = arith.constant dense<2147483647> : vector<128xi32>
    %24 = vector.multi_reduction <minsi>, %23, %cst_10 [1] : vector<128x8xi32> to vector<128xi32>
    %25 = vector.shape_cast %24 : vector<128xi32> to vector<128x1xi32>
    %26 = vector.broadcast %25 : vector<128x1xi32> to vector<128x8xi32>
    %27 = arith.cmpi eq, %15, %26 : vector<128x8xi32>
    %cst_11 = arith.constant 0.000000e+00 : f32
    %28 = vector.shape_cast %19 : vector<128x1xf32> to vector<128x1xf32>
    %29 = vector.broadcast %28 : vector<128x1xf32> to vector<128x8xf32>
    %30 = vector.broadcast %cst_11 : f32 to vector<128x8xf32>
    %31 = arith.select %27, %29, %30 : vector<128x8xi1>, vector<128x8xf32>
    %32 = arith.addf %16, %31 : vector<128x8xf32>
    %cst_12 = arith.constant 0xFF800000 : f32
    %33 = vector.broadcast %cst_12 : f32 to vector<128x8xf32>
    %34 = arith.select %27, %33, %14 : vector<128x8xi1>, vector<128x8xf32>
    %35 = arith.addf %17, %19 : vector<128x1xf32>
    %cst_13 = arith.constant dense<0xFF800000> : vector<128xf32>
    %36 = vector.multi_reduction <maximumf>, %34, %cst_13 [1] : vector<128x8xf32> to vector<128xf32>
    %37 = vector.shape_cast %36 : vector<128xf32> to vector<128x1xf32>
    %38 = vector.broadcast %37 : vector<128x1xf32> to vector<128x8xf32>
    %39 = arith.cmpf oeq, %34, %38 : vector<128x8xf32>
    %c8_i32_14 = arith.constant 8 : i32
    %40 = vector.broadcast %c8_i32_14 : i32 to vector<128x8xi32>
    %41 = arith.select %39, %15, %40 : vector<128x8xi1>, vector<128x8xi32>
    %cst_15 = arith.constant dense<2147483647> : vector<128xi32>
    %42 = vector.multi_reduction <minsi>, %41, %cst_15 [1] : vector<128x8xi32> to vector<128xi32>
    %43 = vector.shape_cast %42 : vector<128xi32> to vector<128x1xi32>
    %44 = vector.broadcast %43 : vector<128x1xi32> to vector<128x8xi32>
    %45 = arith.cmpi eq, %15, %44 : vector<128x8xi32>
    %cst_16 = arith.constant 0.000000e+00 : f32
    %46 = vector.shape_cast %37 : vector<128x1xf32> to vector<128x1xf32>
    %47 = vector.broadcast %46 : vector<128x1xf32> to vector<128x8xf32>
    %48 = vector.broadcast %cst_16 : f32 to vector<128x8xf32>
    %49 = arith.select %45, %47, %48 : vector<128x8xi1>, vector<128x8xf32>
    %50 = arith.addf %32, %49 : vector<128x8xf32>
    %51 = arith.addf %35, %37 : vector<128x1xf32>
    %52 = vector.broadcast %51 : vector<128x1xf32> to vector<128x8xf32>
    %53 = arith.divf %50, %52 : vector<128x8xf32>
    %cst_17 = arith.constant 0.000000e+00 : f32
    %54 = vector.broadcast %cst_17 : f32 to vector<128x128xf32>
    %c0_18 = arith.constant 0 : index
    %c0_19 = arith.constant 0 : index
    %c0_20 = arith.constant 0 : index
    %55 = vector.load %arg4[%c0_18, %c0_19, %c0_20] : memref<8x128x128xf32, #tpu.memory_space<vmem>>, vector<1x128x128xf32>
    %56 = vector.shape_cast %55 : vector<1x128x128xf32> to vector<128x128xf32>
    %cst_21 = arith.constant dense<0.000000e+00> : vector<128x128xf32>
    %57 = tpu.matmul %0, %56, %cst_21 {dimension_numbers = #tpu.dot_dimension_numbers<[1], [0], [0], [1], [0, 0, 1, 1], [], []>} : vector<128x128xf32>, vector<128x128xf32>, vector<128x128xf32> -> vector<128x128xf32>
    %c0_22 = arith.constant 0 : index
    %c0_23 = arith.constant 0 : index
    %c0_24 = arith.constant 0 : index
    %58 = vector.load %arg5[%c0_22, %c0_23, %c0_24] : memref<8x1x128xf32, #tpu.memory_space<vmem>>, vector<1x1x128xf32>
    %59 = vector.shape_cast %58 : vector<1x1x128xf32> to vector<1x128xf32>
    %60 = vector.broadcast %59 : vector<1x128xf32> to vector<128x128xf32>
    %61 = arith.addf %57, %60 : vector<128x128xf32>
    %cst_25 = arith.constant 0.000000e+00 : f32
    %62 = vector.broadcast %cst_25 : f32 to vector<128x128xf32>
    %63 = arith.maximumf %61, %62 : vector<128x128xf32>
    %c0_26 = arith.constant 0 : index
    %c0_27 = arith.constant 0 : index
    %c0_28 = arith.constant 0 : index
    %64 = vector.load %arg6[%c0_26, %c0_27, %c0_28] : memref<8x128x128xf32, #tpu.memory_space<vmem>>, vector<1x128x128xf32>
    %65 = vector.shape_cast %64 : vector<1x128x128xf32> to vector<128x128xf32>
    %cst_29 = arith.constant dense<0.000000e+00> : vector<128x128xf32>
    %66 = tpu.matmul %63, %65, %cst_29 {dimension_numbers = #tpu.dot_dimension_numbers<[1], [0], [0], [1], [0, 0, 1, 1], [], []>} : vector<128x128xf32>, vector<128x128xf32>, vector<128x128xf32> -> vector<128x128xf32>
    %c0_30 = arith.constant 0 : index
    %c0_31 = arith.constant 0 : index
    %c0_32 = arith.constant 0 : index
    %67 = vector.load %arg7[%c0_30, %c0_31, %c0_32] : memref<8x1x128xf32, #tpu.memory_space<vmem>>, vector<1x1x128xf32>
    %68 = vector.shape_cast %67 : vector<1x1x128xf32> to vector<1x128xf32>
    %69 = vector.broadcast %68 : vector<1x128xf32> to vector<128x128xf32>
    %70 = arith.addf %66, %69 : vector<128x128xf32>
    %c0_i32 = arith.constant 0 : i32
    %71 = vector.broadcast %c0_i32 : i32 to vector<128x8xi32>
    %72 = arith.cmpi eq, %15, %71 : vector<128x8xi32>
    %cst_33 = arith.constant 0.000000e+00 : f32
    %73 = vector.broadcast %cst_33 : f32 to vector<128x8xf32>
    %74 = arith.select %72, %53, %73 : vector<128x8xi1>, vector<128x8xf32>
    %cst_34 = arith.constant dense<0.000000e+00> : vector<128xf32>
    %75 = vector.multi_reduction <add>, %74, %cst_34 [1] : vector<128x8xf32> to vector<128xf32>
    %76 = vector.shape_cast %75 : vector<128xf32> to vector<128x1xf32>
    %77 = vector.broadcast %76 : vector<128x1xf32> to vector<128x128xf32>
    %78 = arith.mulf %77, %70 : vector<128x128xf32>
    %79 = arith.addf %54, %78 : vector<128x128xf32>
    %c1 = arith.constant 1 : index
    %c0_35 = arith.constant 0 : index
    %c0_36 = arith.constant 0 : index
    %80 = vector.load %arg4[%c1, %c0_35, %c0_36] : memref<8x128x128xf32, #tpu.memory_space<vmem>>, vector<1x128x128xf32>
    %81 = vector.shape_cast %80 : vector<1x128x128xf32> to vector<128x128xf32>
    %cst_37 = arith.constant dense<0.000000e+00> : vector<128x128xf32>
    %82 = tpu.matmul %0, %81, %cst_37 {dimension_numbers = #tpu.dot_dimension_numbers<[1], [0], [0], [1], [0, 0, 1, 1], [], []>} : vector<128x128xf32>, vector<128x128xf32>, vector<128x128xf32> -> vector<128x128xf32>
    %c1_38 = arith.constant 1 : index
    %c0_39 = arith.constant 0 : index
    %c0_40 = arith.constant 0 : index
    %83 = vector.load %arg5[%c1_38, %c0_39, %c0_40] : memref<8x1x128xf32, #tpu.memory_space<vmem>>, vector<1x1x128xf32>
    %84 = vector.shape_cast %83 : vector<1x1x128xf32> to vector<1x128xf32>
    %85 = vector.broadcast %84 : vector<1x128xf32> to vector<128x128xf32>
    %86 = arith.addf %82, %85 : vector<128x128xf32>
    %cst_41 = arith.constant 0.000000e+00 : f32
    %87 = vector.broadcast %cst_41 : f32 to vector<128x128xf32>
    %88 = arith.maximumf %86, %87 : vector<128x128xf32>
    %c1_42 = arith.constant 1 : index
    %c0_43 = arith.constant 0 : index
    %c0_44 = arith.constant 0 : index
    %89 = vector.load %arg6[%c1_42, %c0_43, %c0_44] : memref<8x128x128xf32, #tpu.memory_space<vmem>>, vector<1x128x128xf32>
    %90 = vector.shape_cast %89 : vector<1x128x128xf32> to vector<128x128xf32>
    %cst_45 = arith.constant dense<0.000000e+00> : vector<128x128xf32>
    %91 = tpu.matmul %88, %90, %cst_45 {dimension_numbers = #tpu.dot_dimension_numbers<[1], [0], [0], [1], [0, 0, 1, 1], [], []>} : vector<128x128xf32>, vector<128x128xf32>, vector<128x128xf32> -> vector<128x128xf32>
    %c1_46 = arith.constant 1 : index
    %c0_47 = arith.constant 0 : index
    %c0_48 = arith.constant 0 : index
    %92 = vector.load %arg7[%c1_46, %c0_47, %c0_48] : memref<8x1x128xf32, #tpu.memory_space<vmem>>, vector<1x1x128xf32>
    %93 = vector.shape_cast %92 : vector<1x1x128xf32> to vector<1x128xf32>
    %94 = vector.broadcast %93 : vector<1x128xf32> to vector<128x128xf32>
    %95 = arith.addf %91, %94 : vector<128x128xf32>
    %c1_i32 = arith.constant 1 : i32
    %96 = vector.broadcast %c1_i32 : i32 to vector<128x8xi32>
    %97 = arith.cmpi eq, %15, %96 : vector<128x8xi32>
    %cst_49 = arith.constant 0.000000e+00 : f32
    %98 = vector.broadcast %cst_49 : f32 to vector<128x8xf32>
    %99 = arith.select %97, %53, %98 : vector<128x8xi1>, vector<128x8xf32>
    %cst_50 = arith.constant dense<0.000000e+00> : vector<128xf32>
    %100 = vector.multi_reduction <add>, %99, %cst_50 [1] : vector<128x8xf32> to vector<128xf32>
    %101 = vector.shape_cast %100 : vector<128xf32> to vector<128x1xf32>
    %102 = vector.broadcast %101 : vector<128x1xf32> to vector<128x128xf32>
    %103 = arith.mulf %102, %95 : vector<128x128xf32>
    %104 = arith.addf %79, %103 : vector<128x128xf32>
    %c2 = arith.constant 2 : index
    %c0_51 = arith.constant 0 : index
    %c0_52 = arith.constant 0 : index
    %105 = vector.load %arg4[%c2, %c0_51, %c0_52] : memref<8x128x128xf32, #tpu.memory_space<vmem>>, vector<1x128x128xf32>
    %106 = vector.shape_cast %105 : vector<1x128x128xf32> to vector<128x128xf32>
    %cst_53 = arith.constant dense<0.000000e+00> : vector<128x128xf32>
    %107 = tpu.matmul %0, %106, %cst_53 {dimension_numbers = #tpu.dot_dimension_numbers<[1], [0], [0], [1], [0, 0, 1, 1], [], []>} : vector<128x128xf32>, vector<128x128xf32>, vector<128x128xf32> -> vector<128x128xf32>
    %c2_54 = arith.constant 2 : index
    %c0_55 = arith.constant 0 : index
    %c0_56 = arith.constant 0 : index
    %108 = vector.load %arg5[%c2_54, %c0_55, %c0_56] : memref<8x1x128xf32, #tpu.memory_space<vmem>>, vector<1x1x128xf32>
    %109 = vector.shape_cast %108 : vector<1x1x128xf32> to vector<1x128xf32>
    %110 = vector.broadcast %109 : vector<1x128xf32> to vector<128x128xf32>
    %111 = arith.addf %107, %110 : vector<128x128xf32>
    %cst_57 = arith.constant 0.000000e+00 : f32
    %112 = vector.broadcast %cst_57 : f32 to vector<128x128xf32>
    %113 = arith.maximumf %111, %112 : vector<128x128xf32>
    %c2_58 = arith.constant 2 : index
    %c0_59 = arith.constant 0 : index
    %c0_60 = arith.constant 0 : index
    %114 = vector.load %arg6[%c2_58, %c0_59, %c0_60] : memref<8x128x128xf32, #tpu.memory_space<vmem>>, vector<1x128x128xf32>
    %115 = vector.shape_cast %114 : vector<1x128x128xf32> to vector<128x128xf32>
    %cst_61 = arith.constant dense<0.000000e+00> : vector<128x128xf32>
    %116 = tpu.matmul %113, %115, %cst_61 {dimension_numbers = #tpu.dot_dimension_numbers<[1], [0], [0], [1], [0, 0, 1, 1], [], []>} : vector<128x128xf32>, vector<128x128xf32>, vector<128x128xf32> -> vector<128x128xf32>
    %c2_62 = arith.constant 2 : index
    %c0_63 = arith.constant 0 : index
    %c0_64 = arith.constant 0 : index
    %117 = vector.load %arg7[%c2_62, %c0_63, %c0_64] : memref<8x1x128xf32, #tpu.memory_space<vmem>>, vector<1x1x128xf32>
    %118 = vector.shape_cast %117 : vector<1x1x128xf32> to vector<1x128xf32>
    %119 = vector.broadcast %118 : vector<1x128xf32> to vector<128x128xf32>
    %120 = arith.addf %116, %119 : vector<128x128xf32>
    %c2_i32 = arith.constant 2 : i32
    %121 = vector.broadcast %c2_i32 : i32 to vector<128x8xi32>
    %122 = arith.cmpi eq, %15, %121 : vector<128x8xi32>
    %cst_65 = arith.constant 0.000000e+00 : f32
    %123 = vector.broadcast %cst_65 : f32 to vector<128x8xf32>
    %124 = arith.select %122, %53, %123 : vector<128x8xi1>, vector<128x8xf32>
    %cst_66 = arith.constant dense<0.000000e+00> : vector<128xf32>
    %125 = vector.multi_reduction <add>, %124, %cst_66 [1] : vector<128x8xf32> to vector<128xf32>
    %126 = vector.shape_cast %125 : vector<128xf32> to vector<128x1xf32>
    %127 = vector.broadcast %126 : vector<128x1xf32> to vector<128x128xf32>
    %128 = arith.mulf %127, %120 : vector<128x128xf32>
    %129 = arith.addf %104, %128 : vector<128x128xf32>
    %c3 = arith.constant 3 : index
    %c0_67 = arith.constant 0 : index
    %c0_68 = arith.constant 0 : index
    %130 = vector.load %arg4[%c3, %c0_67, %c0_68] : memref<8x128x128xf32, #tpu.memory_space<vmem>>, vector<1x128x128xf32>
    %131 = vector.shape_cast %130 : vector<1x128x128xf32> to vector<128x128xf32>
    %cst_69 = arith.constant dense<0.000000e+00> : vector<128x128xf32>
    %132 = tpu.matmul %0, %131, %cst_69 {dimension_numbers = #tpu.dot_dimension_numbers<[1], [0], [0], [1], [0, 0, 1, 1], [], []>} : vector<128x128xf32>, vector<128x128xf32>, vector<128x128xf32> -> vector<128x128xf32>
    %c3_70 = arith.constant 3 : index
    %c0_71 = arith.constant 0 : index
    %c0_72 = arith.constant 0 : index
    %133 = vector.load %arg5[%c3_70, %c0_71, %c0_72] : memref<8x1x128xf32, #tpu.memory_space<vmem>>, vector<1x1x128xf32>
    %134 = vector.shape_cast %133 : vector<1x1x128xf32> to vector<1x128xf32>
    %135 = vector.broadcast %134 : vector<1x128xf32> to vector<128x128xf32>
    %136 = arith.addf %132, %135 : vector<128x128xf32>
    %cst_73 = arith.constant 0.000000e+00 : f32
    %137 = vector.broadcast %cst_73 : f32 to vector<128x128xf32>
    %138 = arith.maximumf %136, %137 : vector<128x128xf32>
    %c3_74 = arith.constant 3 : index
    %c0_75 = arith.constant 0 : index
    %c0_76 = arith.constant 0 : index
    %139 = vector.load %arg6[%c3_74, %c0_75, %c0_76] : memref<8x128x128xf32, #tpu.memory_space<vmem>>, vector<1x128x128xf32>
    %140 = vector.shape_cast %139 : vector<1x128x128xf32> to vector<128x128xf32>
    %cst_77 = arith.constant dense<0.000000e+00> : vector<128x128xf32>
    %141 = tpu.matmul %138, %140, %cst_77 {dimension_numbers = #tpu.dot_dimension_numbers<[1], [0], [0], [1], [0, 0, 1, 1], [], []>} : vector<128x128xf32>, vector<128x128xf32>, vector<128x128xf32> -> vector<128x128xf32>
    %c3_78 = arith.constant 3 : index
    %c0_79 = arith.constant 0 : index
    %c0_80 = arith.constant 0 : index
    %142 = vector.load %arg7[%c3_78, %c0_79, %c0_80] : memref<8x1x128xf32, #tpu.memory_space<vmem>>, vector<1x1x128xf32>
    %143 = vector.shape_cast %142 : vector<1x1x128xf32> to vector<1x128xf32>
    %144 = vector.broadcast %143 : vector<1x128xf32> to vector<128x128xf32>
    %145 = arith.addf %141, %144 : vector<128x128xf32>
    %c3_i32 = arith.constant 3 : i32
    %146 = vector.broadcast %c3_i32 : i32 to vector<128x8xi32>
    %147 = arith.cmpi eq, %15, %146 : vector<128x8xi32>
    %cst_81 = arith.constant 0.000000e+00 : f32
    %148 = vector.broadcast %cst_81 : f32 to vector<128x8xf32>
    %149 = arith.select %147, %53, %148 : vector<128x8xi1>, vector<128x8xf32>
    %cst_82 = arith.constant dense<0.000000e+00> : vector<128xf32>
    %150 = vector.multi_reduction <add>, %149, %cst_82 [1] : vector<128x8xf32> to vector<128xf32>
    %151 = vector.shape_cast %150 : vector<128xf32> to vector<128x1xf32>
    %152 = vector.broadcast %151 : vector<128x1xf32> to vector<128x128xf32>
    %153 = arith.mulf %152, %145 : vector<128x128xf32>
    %154 = arith.addf %129, %153 : vector<128x128xf32>
    %c4 = arith.constant 4 : index
    %c0_83 = arith.constant 0 : index
    %c0_84 = arith.constant 0 : index
    %155 = vector.load %arg4[%c4, %c0_83, %c0_84] : memref<8x128x128xf32, #tpu.memory_space<vmem>>, vector<1x128x128xf32>
    %156 = vector.shape_cast %155 : vector<1x128x128xf32> to vector<128x128xf32>
    %cst_85 = arith.constant dense<0.000000e+00> : vector<128x128xf32>
    %157 = tpu.matmul %0, %156, %cst_85 {dimension_numbers = #tpu.dot_dimension_numbers<[1], [0], [0], [1], [0, 0, 1, 1], [], []>} : vector<128x128xf32>, vector<128x128xf32>, vector<128x128xf32> -> vector<128x128xf32>
    %c4_86 = arith.constant 4 : index
    %c0_87 = arith.constant 0 : index
    %c0_88 = arith.constant 0 : index
    %158 = vector.load %arg5[%c4_86, %c0_87, %c0_88] : memref<8x1x128xf32, #tpu.memory_space<vmem>>, vector<1x1x128xf32>
    %159 = vector.shape_cast %158 : vector<1x1x128xf32> to vector<1x128xf32>
    %160 = vector.broadcast %159 : vector<1x128xf32> to vector<128x128xf32>
    %161 = arith.addf %157, %160 : vector<128x128xf32>
    %cst_89 = arith.constant 0.000000e+00 : f32
    %162 = vector.broadcast %cst_89 : f32 to vector<128x128xf32>
    %163 = arith.maximumf %161, %162 : vector<128x128xf32>
    %c4_90 = arith.constant 4 : index
    %c0_91 = arith.constant 0 : index
    %c0_92 = arith.constant 0 : index
    %164 = vector.load %arg6[%c4_90, %c0_91, %c0_92] : memref<8x128x128xf32, #tpu.memory_space<vmem>>, vector<1x128x128xf32>
    %165 = vector.shape_cast %164 : vector<1x128x128xf32> to vector<128x128xf32>
    %cst_93 = arith.constant dense<0.000000e+00> : vector<128x128xf32>
    %166 = tpu.matmul %163, %165, %cst_93 {dimension_numbers = #tpu.dot_dimension_numbers<[1], [0], [0], [1], [0, 0, 1, 1], [], []>} : vector<128x128xf32>, vector<128x128xf32>, vector<128x128xf32> -> vector<128x128xf32>
    %c4_94 = arith.constant 4 : index
    %c0_95 = arith.constant 0 : index
    %c0_96 = arith.constant 0 : index
    %167 = vector.load %arg7[%c4_94, %c0_95, %c0_96] : memref<8x1x128xf32, #tpu.memory_space<vmem>>, vector<1x1x128xf32>
    %168 = vector.shape_cast %167 : vector<1x1x128xf32> to vector<1x128xf32>
    %169 = vector.broadcast %168 : vector<1x128xf32> to vector<128x128xf32>
    %170 = arith.addf %166, %169 : vector<128x128xf32>
    %c4_i32 = arith.constant 4 : i32
    %171 = vector.broadcast %c4_i32 : i32 to vector<128x8xi32>
    %172 = arith.cmpi eq, %15, %171 : vector<128x8xi32>
    %cst_97 = arith.constant 0.000000e+00 : f32
    %173 = vector.broadcast %cst_97 : f32 to vector<128x8xf32>
    %174 = arith.select %172, %53, %173 : vector<128x8xi1>, vector<128x8xf32>
    %cst_98 = arith.constant dense<0.000000e+00> : vector<128xf32>
    %175 = vector.multi_reduction <add>, %174, %cst_98 [1] : vector<128x8xf32> to vector<128xf32>
    %176 = vector.shape_cast %175 : vector<128xf32> to vector<128x1xf32>
    %177 = vector.broadcast %176 : vector<128x1xf32> to vector<128x128xf32>
    %178 = arith.mulf %177, %170 : vector<128x128xf32>
    %179 = arith.addf %154, %178 : vector<128x128xf32>
    %c5 = arith.constant 5 : index
    %c0_99 = arith.constant 0 : index
    %c0_100 = arith.constant 0 : index
    %180 = vector.load %arg4[%c5, %c0_99, %c0_100] : memref<8x128x128xf32, #tpu.memory_space<vmem>>, vector<1x128x128xf32>
    %181 = vector.shape_cast %180 : vector<1x128x128xf32> to vector<128x128xf32>
    %cst_101 = arith.constant dense<0.000000e+00> : vector<128x128xf32>
    %182 = tpu.matmul %0, %181, %cst_101 {dimension_numbers = #tpu.dot_dimension_numbers<[1], [0], [0], [1], [0, 0, 1, 1], [], []>} : vector<128x128xf32>, vector<128x128xf32>, vector<128x128xf32> -> vector<128x128xf32>
    %c5_102 = arith.constant 5 : index
    %c0_103 = arith.constant 0 : index
    %c0_104 = arith.constant 0 : index
    %183 = vector.load %arg5[%c5_102, %c0_103, %c0_104] : memref<8x1x128xf32, #tpu.memory_space<vmem>>, vector<1x1x128xf32>
    %184 = vector.shape_cast %183 : vector<1x1x128xf32> to vector<1x128xf32>
    %185 = vector.broadcast %184 : vector<1x128xf32> to vector<128x128xf32>
    %186 = arith.addf %182, %185 : vector<128x128xf32>
    %cst_105 = arith.constant 0.000000e+00 : f32
    %187 = vector.broadcast %cst_105 : f32 to vector<128x128xf32>
    %188 = arith.maximumf %186, %187 : vector<128x128xf32>
    %c5_106 = arith.constant 5 : index
    %c0_107 = arith.constant 0 : index
    %c0_108 = arith.constant 0 : index
    %189 = vector.load %arg6[%c5_106, %c0_107, %c0_108] : memref<8x128x128xf32, #tpu.memory_space<vmem>>, vector<1x128x128xf32>
    %190 = vector.shape_cast %189 : vector<1x128x128xf32> to vector<128x128xf32>
    %cst_109 = arith.constant dense<0.000000e+00> : vector<128x128xf32>
    %191 = tpu.matmul %188, %190, %cst_109 {dimension_numbers = #tpu.dot_dimension_numbers<[1], [0], [0], [1], [0, 0, 1, 1], [], []>} : vector<128x128xf32>, vector<128x128xf32>, vector<128x128xf32> -> vector<128x128xf32>
    %c5_110 = arith.constant 5 : index
    %c0_111 = arith.constant 0 : index
    %c0_112 = arith.constant 0 : index
    %192 = vector.load %arg7[%c5_110, %c0_111, %c0_112] : memref<8x1x128xf32, #tpu.memory_space<vmem>>, vector<1x1x128xf32>
    %193 = vector.shape_cast %192 : vector<1x1x128xf32> to vector<1x128xf32>
    %194 = vector.broadcast %193 : vector<1x128xf32> to vector<128x128xf32>
    %195 = arith.addf %191, %194 : vector<128x128xf32>
    %c5_i32 = arith.constant 5 : i32
    %196 = vector.broadcast %c5_i32 : i32 to vector<128x8xi32>
    %197 = arith.cmpi eq, %15, %196 : vector<128x8xi32>
    %cst_113 = arith.constant 0.000000e+00 : f32
    %198 = vector.broadcast %cst_113 : f32 to vector<128x8xf32>
    %199 = arith.select %197, %53, %198 : vector<128x8xi1>, vector<128x8xf32>
    %cst_114 = arith.constant dense<0.000000e+00> : vector<128xf32>
    %200 = vector.multi_reduction <add>, %199, %cst_114 [1] : vector<128x8xf32> to vector<128xf32>
    %201 = vector.shape_cast %200 : vector<128xf32> to vector<128x1xf32>
    %202 = vector.broadcast %201 : vector<128x1xf32> to vector<128x128xf32>
    %203 = arith.mulf %202, %195 : vector<128x128xf32>
    %204 = arith.addf %179, %203 : vector<128x128xf32>
    %c6 = arith.constant 6 : index
    %c0_115 = arith.constant 0 : index
    %c0_116 = arith.constant 0 : index
    %205 = vector.load %arg4[%c6, %c0_115, %c0_116] : memref<8x128x128xf32, #tpu.memory_space<vmem>>, vector<1x128x128xf32>
    %206 = vector.shape_cast %205 : vector<1x128x128xf32> to vector<128x128xf32>
    %cst_117 = arith.constant dense<0.000000e+00> : vector<128x128xf32>
    %207 = tpu.matmul %0, %206, %cst_117 {dimension_numbers = #tpu.dot_dimension_numbers<[1], [0], [0], [1], [0, 0, 1, 1], [], []>} : vector<128x128xf32>, vector<128x128xf32>, vector<128x128xf32> -> vector<128x128xf32>
    %c6_118 = arith.constant 6 : index
    %c0_119 = arith.constant 0 : index
    %c0_120 = arith.constant 0 : index
    %208 = vector.load %arg5[%c6_118, %c0_119, %c0_120] : memref<8x1x128xf32, #tpu.memory_space<vmem>>, vector<1x1x128xf32>
    %209 = vector.shape_cast %208 : vector<1x1x128xf32> to vector<1x128xf32>
    %210 = vector.broadcast %209 : vector<1x128xf32> to vector<128x128xf32>
    %211 = arith.addf %207, %210 : vector<128x128xf32>
    %cst_121 = arith.constant 0.000000e+00 : f32
    %212 = vector.broadcast %cst_121 : f32 to vector<128x128xf32>
    %213 = arith.maximumf %211, %212 : vector<128x128xf32>
    %c6_122 = arith.constant 6 : index
    %c0_123 = arith.constant 0 : index
    %c0_124 = arith.constant 0 : index
    %214 = vector.load %arg6[%c6_122, %c0_123, %c0_124] : memref<8x128x128xf32, #tpu.memory_space<vmem>>, vector<1x128x128xf32>
    %215 = vector.shape_cast %214 : vector<1x128x128xf32> to vector<128x128xf32>
    %cst_125 = arith.constant dense<0.000000e+00> : vector<128x128xf32>
    %216 = tpu.matmul %213, %215, %cst_125 {dimension_numbers = #tpu.dot_dimension_numbers<[1], [0], [0], [1], [0, 0, 1, 1], [], []>} : vector<128x128xf32>, vector<128x128xf32>, vector<128x128xf32> -> vector<128x128xf32>
    %c6_126 = arith.constant 6 : index
    %c0_127 = arith.constant 0 : index
    %c0_128 = arith.constant 0 : index
    %217 = vector.load %arg7[%c6_126, %c0_127, %c0_128] : memref<8x1x128xf32, #tpu.memory_space<vmem>>, vector<1x1x128xf32>
    %218 = vector.shape_cast %217 : vector<1x1x128xf32> to vector<1x128xf32>
    %219 = vector.broadcast %218 : vector<1x128xf32> to vector<128x128xf32>
    %220 = arith.addf %216, %219 : vector<128x128xf32>
    %c6_i32 = arith.constant 6 : i32
    %221 = vector.broadcast %c6_i32 : i32 to vector<128x8xi32>
    %222 = arith.cmpi eq, %15, %221 : vector<128x8xi32>
    %cst_129 = arith.constant 0.000000e+00 : f32
    %223 = vector.broadcast %cst_129 : f32 to vector<128x8xf32>
    %224 = arith.select %222, %53, %223 : vector<128x8xi1>, vector<128x8xf32>
    %cst_130 = arith.constant dense<0.000000e+00> : vector<128xf32>
    %225 = vector.multi_reduction <add>, %224, %cst_130 [1] : vector<128x8xf32> to vector<128xf32>
    %226 = vector.shape_cast %225 : vector<128xf32> to vector<128x1xf32>
    %227 = vector.broadcast %226 : vector<128x1xf32> to vector<128x128xf32>
    %228 = arith.mulf %227, %220 : vector<128x128xf32>
    %229 = arith.addf %204, %228 : vector<128x128xf32>
    %c7 = arith.constant 7 : index
    %c0_131 = arith.constant 0 : index
    %c0_132 = arith.constant 0 : index
    %230 = vector.load %arg4[%c7, %c0_131, %c0_132] : memref<8x128x128xf32, #tpu.memory_space<vmem>>, vector<1x128x128xf32>
    %231 = vector.shape_cast %230 : vector<1x128x128xf32> to vector<128x128xf32>
    %cst_133 = arith.constant dense<0.000000e+00> : vector<128x128xf32>
    %232 = tpu.matmul %0, %231, %cst_133 {dimension_numbers = #tpu.dot_dimension_numbers<[1], [0], [0], [1], [0, 0, 1, 1], [], []>} : vector<128x128xf32>, vector<128x128xf32>, vector<128x128xf32> -> vector<128x128xf32>
    %c7_134 = arith.constant 7 : index
    %c0_135 = arith.constant 0 : index
    %c0_136 = arith.constant 0 : index
    %233 = vector.load %arg5[%c7_134, %c0_135, %c0_136] : memref<8x1x128xf32, #tpu.memory_space<vmem>>, vector<1x1x128xf32>
    %234 = vector.shape_cast %233 : vector<1x1x128xf32> to vector<1x128xf32>
    %235 = vector.broadcast %234 : vector<1x128xf32> to vector<128x128xf32>
    %236 = arith.addf %232, %235 : vector<128x128xf32>
    %cst_137 = arith.constant 0.000000e+00 : f32
    %237 = vector.broadcast %cst_137 : f32 to vector<128x128xf32>
    %238 = arith.maximumf %236, %237 : vector<128x128xf32>
    %c7_138 = arith.constant 7 : index
    %c0_139 = arith.constant 0 : index
    %c0_140 = arith.constant 0 : index
    %239 = vector.load %arg6[%c7_138, %c0_139, %c0_140] : memref<8x128x128xf32, #tpu.memory_space<vmem>>, vector<1x128x128xf32>
    %240 = vector.shape_cast %239 : vector<1x128x128xf32> to vector<128x128xf32>
    %cst_141 = arith.constant dense<0.000000e+00> : vector<128x128xf32>
    %241 = tpu.matmul %238, %240, %cst_141 {dimension_numbers = #tpu.dot_dimension_numbers<[1], [0], [0], [1], [0, 0, 1, 1], [], []>} : vector<128x128xf32>, vector<128x128xf32>, vector<128x128xf32> -> vector<128x128xf32>
    %c7_142 = arith.constant 7 : index
    %c0_143 = arith.constant 0 : index
    %c0_144 = arith.constant 0 : index
    %242 = vector.load %arg7[%c7_142, %c0_143, %c0_144] : memref<8x1x128xf32, #tpu.memory_space<vmem>>, vector<1x1x128xf32>
    %243 = vector.shape_cast %242 : vector<1x1x128xf32> to vector<1x128xf32>
    %244 = vector.broadcast %243 : vector<1x128xf32> to vector<128x128xf32>
    %245 = arith.addf %241, %244 : vector<128x128xf32>
    %c7_i32 = arith.constant 7 : i32
    %246 = vector.broadcast %c7_i32 : i32 to vector<128x8xi32>
    %247 = arith.cmpi eq, %15, %246 : vector<128x8xi32>
    %cst_145 = arith.constant 0.000000e+00 : f32
    %248 = vector.broadcast %cst_145 : f32 to vector<128x8xf32>
    %249 = arith.select %247, %53, %248 : vector<128x8xi1>, vector<128x8xf32>
    %cst_146 = arith.constant dense<0.000000e+00> : vector<128xf32>
    %250 = vector.multi_reduction <add>, %249, %cst_146 [1] : vector<128x8xf32> to vector<128xf32>
    %251 = vector.shape_cast %250 : vector<128xf32> to vector<128x1xf32>
    %252 = vector.broadcast %251 : vector<128x1xf32> to vector<128x128xf32>
    %253 = arith.mulf %252, %245 : vector<128x128xf32>
    %254 = arith.addf %229, %253 : vector<128x128xf32>
    %c0_147 = arith.constant 0 : index
    %c0_148 = arith.constant 0 : index
    %255 = vector.load %arg8[%c0_147, %c0_148] : memref<128x128xf32, #tpu.memory_space<vmem>>, vector<128x128xf32>
    tpu.vector_store %arg8[%c0_147, %c0_148], %254 {strides = array<i32>} : memref<128x128xf32, #tpu.memory_space<vmem>>, vector<128x128xf32>,
    return
  }
  func.func @transform_0(%arg0: i32) -> (i32, i32) {
    %c0_i32 = arith.constant 0 : i32
    %c0_i32_0 = arith.constant 0 : i32
    return %arg0, %c0_i32 : i32, i32
  }
  func.func @transform_1(%arg0: i32) -> (i32, i32) {
    %c0_i32 = arith.constant 0 : i32
    %c0_i32_0 = arith.constant 0 : i32
    %c0_i32_1 = arith.constant 0 : i32
    return %c0_i32, %c0_i32_0 : i32, i32
  }
  func.func @transform_2(%arg0: i32) -> (i32, i32) {
    %c0_i32 = arith.constant 0 : i32
    %c0_i32_0 = arith.constant 0 : i32
    %c0_i32_1 = arith.constant 0 : i32
    return %c0_i32, %c0_i32_0 : i32, i32
  }
  func.func @transform_3(%arg0: i32) -> (i32, i32, i32) {
    %c0_i32 = arith.constant 0 : i32
    %c0_i32_0 = arith.constant 0 : i32
    %c0_i32_1 = arith.constant 0 : i32
    %c0_i32_2 = arith.constant 0 : i32
    return %c0_i32, %c0_i32_0, %c0_i32_1 : i32, i32, i32
  }
  func.func @transform_4(%arg0: i32) -> (i32, i32, i32) {
    %c0_i32 = arith.constant 0 : i32
    %c0_i32_0 = arith.constant 0 : i32
    %c0_i32_1 = arith.constant 0 : i32
    %c0_i32_2 = arith.constant 0 : i32
    return %c0_i32, %c0_i32_0, %c0_i32_1 : i32, i32, i32
  }
  func.func @transform_5(%arg0: i32) -> (i32, i32, i32) {
    %c0_i32 = arith.constant 0 : i32
    %c0_i32_0 = arith.constant 0 : i32
    %c0_i32_1 = arith.constant 0 : i32
    %c0_i32_2 = arith.constant 0 : i32
    return %c0_i32, %c0_i32_0, %c0_i32_1 : i32, i32, i32
  }
  func.func @transform_6(%arg0: i32) -> (i32, i32, i32) {
    %c0_i32 = arith.constant 0 : i32
    %c0_i32_0 = arith.constant 0 : i32
    %c0_i32_1 = arith.constant 0 : i32
    %c0_i32_2 = arith.constant 0 : i32
    return %c0_i32, %c0_i32_0, %c0_i32_1 : i32, i32, i32
  }
  func.func @transform_7(%arg0: i32) -> (i32, i32) {
    %c0_i32 = arith.constant 0 : i32
    %c0_i32_0 = arith.constant 0 : i32
    return %arg0, %c0_i32 : i32, i32
  }
}

</mosaic_0001>

<bundles_post_ra>
// kernel: tpu_custom_call.1
= control target key start
LH: loop header
LB: loop body
LE: loop exit
PB: predicated region body
PF: predicated region fallthrough
CT: control target
= control target key end

     0   :  { %12 = vsyncpa [#allocation3], 0  ;;  %s10906_s0 = inlined_call_operand.hbm [shape: f32[256,128], index: 0, kind: input, shape index: {}]   ;;  %s10907_s1 = inlined_call_operand.vmem [shape: f32[128,8], index: 1, kind: input, shape index: {}]   ;;  %s10908_s2 = inlined_call_operand.vmem [shape: f32[1,8], index: 2, kind: input, shape index: {}]   ;;  %s10909_s3 = inlined_call_operand.hbm [shape: f32[8,128,128], index: 3, kind: input, shape index: {}]   ;;  %s10910_s4 = inlined_call_operand.vmem [shape: f32[8,1,128], index: 4, kind: input, shape index: {}]   ;;  %s10911_s5 = inlined_call_operand.hbm [shape: f32[8,128,128], index: 5, kind: input, shape index: {}]   ;;  %s10912_s6 = inlined_call_operand.vmem [shape: f32[8,1,128], index: 6, kind: input, shape index: {}]   ;;  %s10913_s7 = inlined_call_operand.hbm [shape: f32[256,128], index: 7, kind: output, shape index: {}]  }
   0x1   :  { %14 = vsyncpa [#allocation3 + $0x1], 0 }
   0x2   :  { %15 = vsyncpa [#allocation6], 0 }
   0x3   :  { %16 = vsyncpa [#allocation4], 0 }
   0x4   :  { %18 = vsyncpa [#allocation4 + $0x1], 0  ;;  %s7767_s24 = smov 0   ;;  %s7769_s25 = smov 0  }
   0x5   :  { %s7771_s26 = smov 0   ;;  %s7773_s27 = smov 0  }
   0x6 LB: > { %s7788_s28 = sadd.s32 4294967295, %s7717_s27   ;;  %s5249_s29 = sadd.s32 4294967294, %s7717_s27   ;;  %s7717_s27 = sphi %s7773_s27, %s11381_s27   ;;  %s7713_s26 = sphi %s7771_s26, %s11380_s26   ;;  %s7709_s25 = sphi %s7769_s25, %s11379_s25   ;;  %s7705_s24 = sphi %s7767_s24, %s11378_s24  }
   0x7   : > { %p44_p0 = scmp.ne.s32.totalorder %s7709_s25, %s7705_s24  ;;  %p10914_p1 = scmp.eq.s32.totalorder %s7788_s28, 0 }
   0x8   : > { %p200_p3 = scmp.eq.s32.totalorder %s5249_s29, 1  ;;  %p5250_p5 = scmp.ge.s32.totalorder %s7717_s27, 1 }
   0x9   : > { %p7797_p4 = por %p10914_p1, %p44_p0  ;;  %p207_p7 = scmp.lt.s32.totalorder %s7717_s27, 3 }
   0xa   : > { %p7802_p6 = por %p200_p3, %p44_p0  ;;  %s7719_s10 = smov [#allocation5]  }
   0xb   : > { %s11030_s30 = scalar_select %p7797_p4, 1, 0 }
   0xc   : > { %s11031_s8 = scalar_select %p7802_p6, 1, 0 }
   0xd   : > { %p7807_p8 = pnand %p5250_p5, %p207_p7  ;;  %s225_s11 = sshll.u32 %s7719_s10, 4  ;;  %s7811_s11 = int_to_ptr.vmem [resolvable:$true] %s225_s11 }
   0xe   : > { %s7720_s13 = smov [#allocation7]   ;;  %s7561_s17 = scalar_lea.hbm %s10909_s3, 16384 }
   0xf   : > { %p7368_p9 = pneg %p7807_p8  ;;  %s241_s14 = sshll.u32 %s7720_s13, 4  ;;  %s7822_s14 = int_to_ptr.vmem [resolvable:$true] %s241_s14 }
  0x10   : > { %p7562_p12 = scmp.ne.s32.totalorder %s10909_s3, %s7561_s17  ;;  %p7568_p5 = scmp.lt.u32.totalorder %s7561_s17, %s10909_s3 }
  0x11   : > { %p7818_p11 = pnand %p7368_p9, %p10914_p1 }
  0x13   : > { %p7563_p13 = pneg %p7818_p11 }
  0x15   : > { %p7564_p0 = pnand %p7563_p13, %p7562_p12 }
  0x17   : > { %p7565_p3 = pneg %p7564_p0 }
  0x19   : > { %p7570_p7 = pnand %p7568_p5, %p7565_p3 }
  0x1b   : > { %7573 = shalt.err (!%p7570_p7)
}
  0x1c   : > { %s7574_s22 = scalar_lea.vmem %s7811_s11, 16384  ;;  %p7582_p2 = scmp.lt.s32.totalorder %s7811_s11, %s7811_s11 }
  0x1d   : > { %p7575_p9 = scmp.ne.s32.totalorder %s7811_s11, %s7574_s22  ;;  %p7583_p12 = scmp.lt.s32.totalorder %s7574_s22, %s7574_s22 }
  0x1f   : > { %p7577_p10 = pnand %p7575_p9, %p7563_p13  ;;  %p7584_p0 = por %p7583_p12, %p7582_p2 }
  0x21   : > { %p7578_p1 = pneg %p7577_p10 }
  0x23   : > { %p7585_p6 = pnand %p7584_p0, %p7578_p1 }
  0x25   : > { %7588 = shalt.err (!%p7585_p6)
}
  0x26   : > { %s10915_s23 = smov 128   ;;  %s7722_s29 = smov 8  }
  0x27   : > { %7371 = dma.hbm_to_vmem [thread:$0]  (!%p7818_p11), %s10909_s3, 16384, %s7811_s11, [#allocation6], %s10915_s23, %s10915_s23, %s7722_s29  }
  0x28   : > { %s7589_s17 = scalar_lea.hbm %s10911_s5, 16384 }
  0x29   : > { %p7590_p1 = scmp.ne.s32.totalorder %s10911_s5, %s7589_s17  ;;  %p7596_p10 = scmp.lt.u32.totalorder %s7589_s17, %s10911_s5 }
  0x2b   : > { %p7592_p2 = pnand %p7590_p1, %p7563_p13 }
  0x2d   : > { %p7593_p6 = pneg %p7592_p2 }
  0x2f   : > { %p7598_p3 = pnand %p7596_p10, %p7593_p6 }
  0x31   : > { %7601 = shalt.err (!%p7598_p3)
}
  0x32   : > { %s7602_s11 = scalar_lea.vmem %s7822_s14, 16384  ;;  %p7610_p12 = scmp.lt.s32.totalorder %s7822_s14, %s7822_s14 }
  0x33   : > { %p7603_p5 = scmp.ne.s32.totalorder %s7822_s14, %s7602_s11  ;;  %p7611_p0 = scmp.lt.s32.totalorder %s7602_s11, %s7602_s11 }
  0x35   : > { %p7605_p7 = pnand %p7603_p5, %p7563_p13  ;;  %p7612_p1 = por %p7611_p0, %p7610_p12 }
  0x37   : > { %p7606_p9 = pneg %p7605_p7 }
  0x39   : > { %p7613_p2 = pnand %p7612_p1, %p7606_p9 }
  0x3b   : > { %7616 = shalt.err (!%p7613_p2)
}
  0x3c   : > { %7374 = dma.hbm_to_vmem [thread:$0]  (!%p7818_p11), %s10911_s5, 16384, %s7822_s14, [#allocation6], %s10915_s23, %s10915_s23, %s7722_s29  }
  0x3d   : > { %s7883_s12 = sadd.s32 1, %s7717_s27   ;;  %s31_s13 = sadd.s32 1, %s7713_s26 }
  0x3e   : > { %s28_s15 = ssub.s32 %s7717_s27, %s7883_s12  ;;  %p38_p13 = scmp.ne.s32.totalorder %s7713_s26, %s7709_s25 }
  0x3f   : > { %p29_p6 = scmp.eq.s32.totalorder %s28_s15, 0  ;;  %p39_p10 = scmp.eq.s32.totalorder %s7717_s27, 0 }
  0x40   : > { %p11034_p3 = scmp.eq.s32.totalorder %s7788_s28, 1  ;;  %p7385_p7 = scmp.lt.s32.totalorder %s7717_s27, 2 }
  0x41   : > { %s7899_s17 = scalar_select %p29_p6, %s7713_s26, %s31_s13  }
  0x42   : > { %p7893_p5 = por %p11034_p3, %p38_p13  ;;  %p40_p9 = por %p39_p10, %p38_p13 }
  0x43   : > { %s258_s18 = sand.u32 1, %s7713_s26   ;;  %s5298_s14 = sshll.u32 %s7717_s27, 11 }
  0x44   : > { %s11035_s16 = scalar_select %p7893_p5, 1, 0 }
  0x45   : > { %s5254_s19 = sshll.u32 %s258_s18, 7  ;;  %s7906_s11 = scalar_lea.hbm %s10906_s0, %s5298_s14 }
  0x46   : > { %s262_s22 = scalar_lea.vmem [#allocation2], %s5254_s19  ;;  %p7910_p11 = pnand %p7385_p7, %p40_p9 }
  0x47   : > { %s269_s10 = sshll.u32 %s262_s22, 4  ;;  %s7914_s15 = scalar_lea.sflag [#allocation3], %s258_s18  ;;  %s7908_s10 = int_to_ptr.vmem [resolvable:$true] %s269_s10 }
  0x48   : > { %s7617_s23 = scalar_lea.hbm %s7906_s11, 2048  ;;  %p7619_p0 = pneg %p7910_p11 }
  0x49   : > { %p7618_p12 = scmp.ne.s32.totalorder %s7906_s11, %s7617_s23  ;;  %s7622_s20 = scalar_lea.hbm %s10906_s0, 4096 }
  0x4a   : > { %p7623_p13 = scmp.lt.u32.totalorder %s7906_s11, %s10906_s0  ;;  %p7624_p6 = scmp.lt.u32.totalorder %s7622_s20, %s7617_s23 }
  0x4b   : > { %p7620_p1 = pnand %p7619_p0, %p7618_p12  ;;  %p7626_p3 = scmp.lt.u32.totalorder %s7617_s23, %s7906_s11 }
  0x4c   : > { %p7625_p10 = por %p7624_p6, %p7623_p13 }
  0x4d   : > { %p7621_p2 = pneg %p7620_p1 }
  0x4e   : > { %p7627_p7 = por %p7626_p3, %p7625_p10 }
  0x50   : > { %p7628_p9 = pnand %p7627_p7, %p7621_p2 }
  0x52   : > { %7631 = shalt.err (!%p7628_p9)
}
  0x53   : > { %s7632_s18 = scalar_lea.vmem %s7908_s10, 2048  ;;  %s7723_s19 = smov [#allocation2]  }
  0x54   : > { %p7633_p12 = scmp.ne.s32.totalorder %s7908_s10, %s7632_s18  ;;  %s7637_s14 = sshll.u32 %s7723_s19, 4  ;;  %s7638_s14 = int_to_ptr.vmem [resolvable:$false] %s7637_s14 }
  0x55   : > { %s7639_s21 = scalar_lea.vmem %s7638_s14, 4096  ;;  %p7640_p4 = scmp.lt.s32.totalorder %s7908_s10, %s7638_s14 }
  0x56   : > { %p7635_p1 = pnand %p7633_p12, %p7619_p0  ;;  %p7641_p13 = scmp.lt.s32.totalorder %s7639_s21, %s7632_s18 }
  0x58   : > { %p7636_p5 = pneg %p7635_p1  ;;  %p7642_p6 = por %p7641_p13, %p7640_p4 }
  0x5a   : > { %p7643_p10 = pnand %p7642_p6, %p7636_p5 }
  0x5c   : > { %7646 = shalt.err (!%p7643_p10)
}
  0x5d   : > { %s11037_s23 = smov 128   ;;  %281 = sbr.rel (%p7807_p8) target bundleno = 1978 (0x7ba), region = 48 }
  0x5e   : > { %7378 = dma.hbm_to_vmem [thread:$0]  (!%p7910_p11), %s7906_s11, 2048, %s7908_s10, %s7914_s15, %s11037_s23, %s11037_s23, %s7722_s29  }
  0x64   : > { %s7948_s20 = sand.u32 1, %s7709_s25   ;;  %p11038_p4 = scmp.ne.s32.totalorder %s11030_s30, 0 }
  0x65   : > { %s5258_s22 = sshll.u32 %s7948_s20, 7  ;;  %s284_s18 = scalar_lea.sflag [#allocation3], %s7948_s20 }
  0x66   : > { %s7954_s13 = scalar_lea.vmem [#allocation2], %s5258_s22 }
  0x67   : > { %7692 = dma.done.wait (%p11038_p4), %s284_s18, 2048  }
  0x68   : > { %7694 = vsyncadd (%p11038_p4), %s284_s18, 4294965248  ;;  %p11039_p5 = scmp.eq.s32.totalorder %s7788_s28, 0 }
  0x6a   : > { %7696 = dma.done.wait (%p11039_p5), [#allocation6], 32768   ;;  %p11040_p8 = pmov %p11039_p5 }
  0x6b   : > { %v344_v0 = vld [vmem:[%s10907_s1] sm:$0xff]  ;;  %v345_v1 = vld [vmem:[%s10907_s1 + $0x8] sm:$0xff]  ;;  %v346_v2 = vld [vmem:[%s10907_s1 + $0x10] sm:$0xff]  ;;  %vm512_vm0 = vcmask 64512   ;;  %s10489_s30 = scalar_lea.vmem [#allocation8], %s5258_s22  ;;  %s5299_s21 = sshll.u32 %s7788_s28, 11 }
  0x6c   : > { %7698 = vsyncadd (%p11040_p8), [#allocation6], 4294934528  ;;  %v6796_v3 = vpack.c.bf16 %v345_v1, %v344_v0  ;;  %v347_v4 = vld [vmem:[%s10907_s1 + $0x18] sm:$0xff]  ;;  %v348_v6 = vld [vmem:[%s10907_s1 + $0x20] sm:$0xff]  ;;  %s5157_s23 = sshll.u32 %s10489_s30, 4  ;;  %s10859_s29 = scalar_lea.hbm %s10913_s7, %s5299_s21  ;;  %s10861_s23 = int_to_ptr.vmem [resolvable:$true] %s5157_s23 }
  0x6d   : > { %v6800_v5 = vpack.c.bf16 %v347_v4, %v346_v2  ;;  %v349_v7 = vld [vmem:[%s10907_s1 + $0x28] sm:$0xff]  ;;  %v328_v9 = vld [vmem:[%s7954_s13] sm:$0xff]  ;;  %v350_v10 = vld [vmem:[%s10907_s1 + $0x30] sm:$0xff]  ;;  %s5144_s11 = scalar_lea.sflag [#allocation4], %s7948_s20  ;;  %s7647_s10 = scalar_lea.vmem %s10861_s23, 2048 }
  0x6e   : > { %6797 = vmatprep.subr.bf16.mxu0 %v6796_v3  ;;  %v6804_v8 = vpack.c.bf16 %v349_v7, %v348_v6  ;;  %v351_v11 = vld [vmem:[%s10907_s1 + $0x38] sm:$0xff]  ;;  %5876 = vmatprep.mubr.f32.mxu0 %v328_v9  ;;  %v352_v13 = vld [vmem:[%s10907_s1 + $0x40] sm:$0xff]  ;;  %v353_v14 = vld [vmem:[%s10907_s1 + $0x48] sm:$0xff]  ;;  %p7648_p11 = scmp.ne.s32.totalorder %s10861_s23, %s7647_s10  ;;  %p11375_p0 = scmp.ne.s32.totalorder %s11035_s16, 0 }
  0x6f   : > { %6799 = vmatpush3.bf16.msra.mxu0 %v6796_v3  ;;  %5932 = vmatprep.mubr.f32.mxu1 %v328_v9  ;;  %v6808_v12 = vpack.c.bf16 %v351_v11, %v350_v10  ;;  %v6812_v15 = vpack.c.bf16 %v353_v14, %v352_v13  ;;  %v354_v16 = vld [vmem:[%s10907_s1 + $0x50] sm:$0xff]  ;;  %v355_v17 = vld [vmem:[%s10907_s1 + $0x58] sm:$0xff]  ;;  %v356_v19 = vld [vmem:[%s10907_s1 + $0x60] sm:$0xff]  ;;  %s7724_s28 = smov [#allocation8]  }
  0x70   : > { %6801 = vmatprep.subr.bf16.mxu0 %v6800_v5  ;;  %v6816_v18 = vpack.c.bf16 %v355_v17, %v354_v16  ;;  %v357_v20 = vld [vmem:[%s10907_s1 + $0x68] sm:$0xff]  ;;  %v358_v22 = vld [vmem:[%s10907_s1 + $0x70] sm:$0xff]  ;;  %v359_v23 = vld [vmem:[%s10907_s1 + $0x78] sm:$0xff]  ;;  %p7649_p2 = pnand %p7648_p11, %p11375_p0  ;;  %s7651_s15 = sshll.u32 %s7724_s28, 4  ;;  %s7652_s15 = int_to_ptr.vmem [resolvable:$false] %s7651_s15 }
  0x71   : > { %v6820_v21 = vpack.c.bf16 %v357_v20, %v356_v19  ;;  %v6824_v24 = vpack.c.bf16 %v359_v23, %v358_v22  ;;  %v8014_v25 = vld [vmem:[%s7954_s13 + $0x8] sm:$0xff]  ;;  %v8017_v26 = vld [vmem:[%s7954_s13 + $0x10] sm:$0xff]  ;;  %v8022_v27 = vld [vmem:[%s7954_s13 + $0x18] sm:$0xff]  ;;  %p7654_p7 = scmp.lt.s32.totalorder %s10861_s23, %s7652_s15 }
  0x72   : > { %v8025_v28 = vld [vmem:[%s7954_s13 + $0x20] sm:$0xff]  ;;  %v8030_v29 = vld [vmem:[%s7954_s13 + $0x28] sm:$0xff]  ;;  %v8033_v30 = vld [vmem:[%s7954_s13 + $0x30] sm:$0xff]  ;;  %p7650_p3 = pneg %p7649_p2 }
  0x73   : > { %6803 = vmatpush3.bf16.msra.mxu0 %v6800_v5  ;;  %v8038_v31 = vld [vmem:[%s7954_s13 + $0x38] sm:$0xff]  ;;  %v8041_v32 = vld [vmem:[%s7954_s13 + $0x40] sm:$0xff]  ;;  %v8046_v33 = vld [vmem:[%s7954_s13 + $0x48] sm:$0xff] }
  0x74   : > { %6805 = vmatprep.subr.bf16.mxu0 %v6804_v8  ;;  %v8049_v34 = vld [vmem:[%s7954_s13 + $0x50] sm:$0xff]  ;;  %v8054_v35 = vld [vmem:[%s7954_s13 + $0x58] sm:$0xff]  ;;  %v8057_v36 = vld [vmem:[%s7954_s13 + $0x60] sm:$0xff] }
  0x75   : > { %v8062_v37 = vld [vmem:[%s7954_s13 + $0x68] sm:$0xff]  ;;  %v8065_v38 = vld [vmem:[%s7954_s13 + $0x70] sm:$0xff]  ;;  %v8070_v39 = vld [vmem:[%s7954_s13 + $0x78] sm:$0xff] }
  0x76   : > { %v5262_v40 = vld [vmem:[%s10908_s2] ss:$0 sm:$0xff] }
  0x77   : > { %6807 = vmatpush3.bf16.msra.mxu0 %v6804_v8 }
  0x78   : > { %6809 = vmatprep.subr.bf16.mxu0 %v6808_v12 }
  0x7b   : > { %6811 = vmatpush3.bf16.msra.mxu0 %v6808_v12 }
  0x7c   : > { %6813 = vmatprep.subr.bf16.mxu0 %v6812_v15 }
  0x7f   : > { %6815 = vmatpush3.bf16.msra.mxu0 %v6812_v15 }
  0x80   : > { %6817 = vmatprep.subr.bf16.mxu0 %v6816_v18 }
  0x83   : > { %6819 = vmatpush3.bf16.msra.mxu0 %v6816_v18 }
  0x84   : > { %6821 = vmatprep.subr.bf16.mxu0 %v6820_v21 }
  0x87   : > { %6823 = vmatpush3.bf16.msra.mxu0 %v6820_v21 }
  0x88   : > { %6825 = vmatprep.subr.bf16.mxu0 %v6824_v24 }
  0x8b   : > { %6827 = vmatpush3.bf16.msra.mxu0 %v6824_v24 }
  0x8e   : > { %5877 = vmatmul.mubr.f32.vlgmr.msra.gmra.mrb[0].mxu0 %v8014_v25 }
  0x8f   : > { %5879 = vmatprep.mubr.f32.mxu0 %v8017_v26 }
  0x92   : > { %5880 = vmatmul.mubr.f32.gmra.mrb[2].mxu0 %v8022_v27 }
  0x93   : > { %5882 = vmatprep.mubr.f32.mxu0 %v8025_v28 }
  0x96   : > { %5883 = vmatmul.mubr.f32.gmra.mrb[4].mxu0 %v8030_v29 }
  0x97   : > { %5885 = vmatprep.mubr.f32.mxu0 %v8033_v30 }
  0x9a   : > { %5886 = vmatmul.mubr.f32.gmra.mrb[6].mxu0 %v8038_v31 }
  0x9b   : > { %5888 = vmatprep.mubr.f32.mxu0 %v8041_v32 }
  0x9e   : > { %5889 = vmatmul.mubr.f32.gmra.mrb[8].mxu0 %v8046_v33 }
  0x9f   : > { %5891 = vmatprep.mubr.f32.mxu0 %v8049_v34 }
  0xa2   : > { %5892 = vmatmul.mubr.f32.gmra.mrb[10].mxu0 %v8054_v35 }
  0xa3   : > { %5894 = vmatprep.mubr.f32.mxu0 %v8057_v36 }
  0xa6   : > { %5895 = vmatmul.mubr.f32.gmra.mrb[12].mxu0 %v8062_v37 }
  0xa7   : > { %5897 = vmatprep.mubr.f32.mxu0 %v8065_v38 }
  0xaa   : > { %5898 = vmatmul.mubr.f32.gmra.mrb[14].mxu0 %v8070_v39 }
 0x161   : > { %v5878_v41 = vpop.f32.mrb[0].mxu0 }
 0x162   : > { %v8076_v42 = vadd.f32 %v5878_v41, %v5262_v40  ;;  %v433_v43 = vpop.f32.mrb[1].mxu0 }
 0x163   : > { %v8078_v44 = vadd.f32 %v5262_v40, %v433_v43 }
 0x164   : > { %v516_v45 = vsel %vm512_vm0, %v8076_v42, -inf }
 0x165   : > { %517 = vmax.xlane.f32.xlu0 %v516_v45  ;;  %v5881_v46 = vpop.f32.mrb[2].mxu0  ;;  %v513_v51 = vsel %vm512_vm0, %v8078_v44, -inf }
 0x166   : > { %v8082_v47 = vadd.f32 %v5881_v46, %v5262_v40  ;;  %v443_v48 = vpop.f32.mrb[3].mxu0 }
 0x167   : > { %v8084_v49 = vadd.f32 %v5262_v40, %v443_v48 }
 0x168   : > { %v522_v50 = vsel %vm512_vm0, %v8082_v47, -inf }
 0x169   : > { %523 = vmax.xlane.f32.xlu1 %v522_v50  ;;  %v5884_v52 = vpop.f32.mrb[4].mxu0  ;;  %514 = vmax.xlane.f32.xlu0 %v513_v51  ;;  %v519_v55 = vsel %vm512_vm0, %v8084_v49, -inf }
 0x16a   : > { %v8090_v53 = vadd.f32 %v5884_v52, %v5262_v40  ;;  %v453_v54 = vpop.f32.mrb[5].mxu0 }
 0x16b   : > { %v8094_v56 = vadd.f32 %v5262_v40, %v453_v54 }
 0x16c   : > { %v528_v61 = vsel %vm512_vm0, %v8090_v53, -inf }
 0x16d   : > { %v5887_v57 = vpop.f32.mrb[6].mxu0  ;;  %520 = vmax.xlane.f32.xlu1 %v519_v55  ;;  %v525_v58 = vsel %vm512_vm0, %v8094_v56, -inf }
 0x16e   : > { %v8098_v59 = vadd.f32 %v5887_v57, %v5262_v40  ;;  %v463_v60 = vpop.f32.mrb[7].mxu0  ;;  %526 = vmax.xlane.f32.xlu0 %v525_v58 }
 0x16f   : > { %v8102_v62 = vadd.f32 %v5262_v40, %v463_v60 }
 0x170   : > { %v534_v3 = vsel %vm512_vm0, %v8098_v59, -inf }
 0x171   : > { %v5890_v63 = vpop.f32.mrb[8].mxu0  ;;  %529 = vmax.xlane.f32.xlu1 %v528_v61  ;;  %v531_v0 = vsel %vm512_vm0, %v8102_v62, -inf }
 0x172   : > { %v8106_v1 = vadd.f32 %v5890_v63, %v5262_v40  ;;  %v473_v2 = vpop.f32.mrb[9].mxu0  ;;  %532 = vmax.xlane.f32.xlu0 %v531_v0 }
 0x173   : > { %v8110_v4 = vadd.f32 %v5262_v40, %v473_v2 }
 0x174   : > { %v540_v9 = vsel %vm512_vm0, %v8106_v1, -inf }
 0x175   : > { %v5893_v5 = vpop.f32.mrb[10].mxu0  ;;  %535 = vmax.xlane.f32.xlu1 %v534_v3  ;;  %v537_v6 = vsel %vm512_vm0, %v8110_v4, -inf }
 0x176   : > { %v8114_v7 = vadd.f32 %v5893_v5, %v5262_v40  ;;  %v483_v8 = vpop.f32.mrb[11].mxu0  ;;  %538 = vmax.xlane.f32.xlu0 %v537_v6 }
 0x177   : > { %v8118_v10 = vadd.f32 %v5262_v40, %v483_v8 }
 0x178   : > { %v546_v15 = vsel %vm512_vm0, %v8114_v7, -inf }
 0x179   : > { %v5896_v11 = vpop.f32.mrb[12].mxu0  ;;  %541 = vmax.xlane.f32.xlu1 %v540_v9  ;;  %v543_v12 = vsel %vm512_vm0, %v8118_v10, -inf }
 0x17a   : > { %v8122_v13 = vadd.f32 %v5896_v11, %v5262_v40  ;;  %v493_v14 = vpop.f32.mrb[13].mxu0  ;;  %544 = vmax.xlane.f32.xlu0 %v543_v12 }
 0x17b   : > { %v8126_v16 = vadd.f32 %v5262_v40, %v493_v14 }
 0x17c   : > { %v552_v21 = vsel %vm512_vm0, %v8122_v13, -inf }
 0x17d   : > { %v5899_v17 = vpop.f32.mrb[14].mxu0  ;;  %547 = vmax.xlane.f32.xlu1 %v546_v15  ;;  %v549_v18 = vsel %vm512_vm0, %v8126_v16, -inf }
 0x17e   : > { %v8130_v19 = vadd.f32 %v5899_v17, %v5262_v40  ;;  %v503_v20 = vpop.f32.mrb[15].mxu0  ;;  %550 = vmax.xlane.f32.xlu0 %v549_v18 }
 0x17f   : > { %v8134_v22 = vadd.f32 %v5262_v40, %v503_v20 }
 0x180   : > { %v558_v24 = vsel %vm512_vm0, %v8130_v19, -inf }
 0x181   : > { %553 = vmax.xlane.f32.xlu1 %v552_v21  ;;  %v555_v23 = vsel %vm512_vm0, %v8134_v22, -inf }
 0x182   : > { %556 = vmax.xlane.f32.xlu0 %v555_v23 }
 0x185   : > { %559 = vmax.xlane.f32.xlu1 %v558_v24 }
 0x1f2   : > { %v518_v41 = vpop.xlane.xlu0 %517 }
 0x1f3   : > { %v562_v43 = vsub.f32 %v8076_v42, %v518_v41 }
 0x1f5   : > { %v579_v45 = vmul.f32 1.442695, %v562_v43 }
 0x1f6   : > { %v524_v46 = vpop.xlane.xlu1 %523  ;;  %v515_v48 = vpop.xlane.xlu0 %514 }
 0x1f7   : > { %7427 = vpow2.f32 %v579_v45  ;;  %v564_v50 = vsub.f32 %v8082_v47, %v524_v46  ;;  %v561_v40 = vsub.f32 %v8078_v44, %v515_v48 }
 0x1f9   : > { %v583_v51 = vmul.f32 1.442695, %v564_v50  ;;  %v577_v52 = vmul.f32 1.442695, %v561_v40 }
 0x1fa   : > { %v521_v54 = vpop.xlane.xlu1 %520 }
 0x1fb   : > { %7429 = vpow2.f32 %v583_v51  ;;  %v563_v55 = vsub.f32 %v8084_v49, %v521_v54  ;;  %v527_v57 = vpop.xlane.xlu0 %526 }
 0x1fc   : > { %7431 = vpow2.f32 %v577_v52  ;;  %v565_v58 = vsub.f32 %v8094_v56, %v527_v57 }
 0x1fd   : > { %v581_v60 = vmul.f32 1.442695, %v563_v55 }
 0x1fe   : > { %v585_v42 = vmul.f32 1.442695, %v565_v58  ;;  %v530_v61 = vpop.xlane.xlu1 %529 }
 0x1ff   : > { %7433 = vpow2.f32 %v581_v60  ;;  %v566_v63 = vsub.f32 %v8090_v53, %v530_v61  ;;  %v533_v0 = vpop.xlane.xlu0 %532 }
 0x200   : > { %v567_v47 = vsub.f32 %v8102_v62, %v533_v0  ;;  %7435 = vpow2.f32 %v585_v42 }
 0x201   : > { %v8147_v44 = vpop.eup %7427  ;;  %v587_v2 = vmul.f32 1.442695, %v566_v63 }
 0x202   : > { %v589_v3 = vmul.f32 1.442695, %v567_v47  ;;  %v536_v5 = vpop.xlane.xlu1 %535  ;;  %v612_v49 = vsel %vm512_vm0, %v8147_v44, 0.0 }
 0x203   : > { %7437 = vpow2.f32 %v587_v2  ;;  %v568_v56 = vsub.f32 %v8098_v59, %v536_v5  ;;  %613 = vadd.xlane.f32.xlu1 %v612_v49  ;;  %v539_v6 = vpop.xlane.xlu0 %538 }
 0x204   : > { %v569_v8 = vsub.f32 %v8110_v4, %v539_v6  ;;  %7439 = vpow2.f32 %v589_v3 }
 0x205   : > { %v8153_v53 = vpop.eup %7429  ;;  %v591_v9 = vmul.f32 1.442695, %v568_v56 }
 0x206   : > { %v8155_v62 = vpop.eup %7431  ;;  %v593_v11 = vmul.f32 1.442695, %v569_v8  ;;  %v542_v12 = vpop.xlane.xlu1 %541  ;;  %v618_v14 = vsel %vm512_vm0, %v8153_v53, 0.0 }
 0x207   : > { %7441 = vpow2.f32 %v591_v9  ;;  %v570_v15 = vsub.f32 %v8106_v1, %v542_v12  ;;  %619 = vadd.xlane.f32.xlu1 %v618_v14  ;;  %v609_v59 = vsel %vm512_vm0, %v8155_v62, 0.0  ;;  %v545_v17 = vpop.xlane.xlu0 %544 }
 0x208   : > { %610 = vadd.xlane.f32.xlu0 %v609_v59  ;;  %v571_v4 = vsub.f32 %v8118_v10, %v545_v17  ;;  %7443 = vpow2.f32 %v593_v11 }
 0x209   : > { %v8163_v18 = vpop.eup %7433  ;;  %v595_v20 = vmul.f32 1.442695, %v570_v15 }
 0x20a   : > { %v597_v21 = vmul.f32 1.442695, %v571_v4  ;;  %v548_v23 = vpop.xlane.xlu1 %547  ;;  %v615_v24 = vsel %vm512_vm0, %v8163_v18, 0.0  ;;  %v8168_v43 = vpop.eup %7435 }
 0x20b   : > { %7445 = vpow2.f32 %v595_v20  ;;  %v572_v1 = vsub.f32 %v8114_v7, %v548_v23  ;;  %v551_v41 = vpop.xlane.xlu0 %550  ;;  %v621_v7 = vsel %vm512_vm0, %v8168_v43, 0.0 }
 0x20c   : > { %616 = vadd.xlane.f32.xlu0 %v615_v24  ;;  %v573_v45 = vsub.f32 %v8126_v16, %v551_v41  ;;  %7447 = vpow2.f32 %v597_v21 }
 0x20d   : > { %v8171_v46 = vpop.eup %7437  ;;  %v599_v10 = vmul.f32 1.442695, %v572_v1 }
 0x20e   : > { %v601_v48 = vmul.f32 1.442695, %v573_v45  ;;  %v554_v50 = vpop.xlane.xlu1 %553  ;;  %v624_v40 = vsel %vm512_vm0, %v8171_v46, 0.0  ;;  %v8178_v54 = vpop.eup %7439 }
 0x20f   : > { %7449 = vpow2.f32 %v599_v10  ;;  %v574_v51 = vsub.f32 %v8122_v13, %v554_v50  ;;  %625 = vadd.xlane.f32.xlu1 %v624_v40  ;;  %v557_v52 = vpop.xlane.xlu0 %556  ;;  %v627_v61 = vsel %vm512_vm0, %v8178_v54, 0.0 }
 0x210   : > { %622 = vadd.xlane.f32.xlu0 %v621_v7  ;;  %v575_v16 = vsub.f32 %v8134_v22, %v557_v52  ;;  %7451 = vpow2.f32 %v601_v48 }
 0x211   : > { %v8181_v55 = vpop.eup %7441  ;;  %v603_v57 = vmul.f32 1.442695, %v574_v51 }
 0x212   : > { %v605_v58 = vmul.f32 1.442695, %v575_v16  ;;  %v560_v60 = vpop.xlane.xlu1 %559  ;;  %v630_v42 = vsel %vm512_vm0, %v8181_v55, 0.0  ;;  %v8188_v63 = vpop.eup %7443 }
 0x213   : > { %7453 = vpow2.f32 %v603_v57  ;;  %v576_v13 = vsub.f32 %v8130_v19, %v560_v60  ;;  %631 = vadd.xlane.f32.xlu1 %v630_v42  ;;  %v633_v2 = vsel %vm512_vm0, %v8188_v63, 0.0 }
 0x214   : > { %628 = vadd.xlane.f32.xlu0 %v627_v61  ;;  %7455 = vpow2.f32 %v605_v58 }
 0x215   : > { %v8190_v22 = vpop.eup %7445  ;;  %v607_v0 = vmul.f32 1.442695, %v576_v13 }
 0x216   : > { %v636_v47 = vsel %vm512_vm0, %v8190_v22, 0.0  ;;  %v8196_v19 = vpop.eup %7447 }
 0x217   : > { %7457 = vpow2.f32 %v607_v0  ;;  %637 = vadd.xlane.f32.xlu1 %v636_v47  ;;  %v639_v49 = vsel %vm512_vm0, %v8196_v19, 0.0 }
 0x218   : > { %634 = vadd.xlane.f32.xlu0 %v633_v2 }
 0x219   : > { %v8198_v3 = vpop.eup %7449 }
 0x21a   : > { %v642_v5 = vsel %vm512_vm0, %v8198_v3, 0.0  ;;  %v8204_v56 = vpop.eup %7451 }
 0x21b   : > { %643 = vadd.xlane.f32.xlu1 %v642_v5  ;;  %v645_v9 = vsel %vm512_vm0, %v8204_v56, 0.0 }
 0x21c   : > { %640 = vadd.xlane.f32.xlu0 %v639_v49 }
 0x21d   : > { %v8206_v6 = vpop.eup %7453 }
 0x21e   : > { %v648_v8 = vsel %vm512_vm0, %v8206_v6, 0.0  ;;  %v8212_v11 = vpop.eup %7455 }
 0x21f   : > { %649 = vadd.xlane.f32.xlu1 %v648_v8  ;;  %v651_v15 = vsel %vm512_vm0, %v8212_v11, 0.0 }
 0x220   : > { %646 = vadd.xlane.f32.xlu0 %v645_v9 }
 0x221   : > { %v8214_v12 = vpop.eup %7457 }
 0x222   : > { %v654_v14 = vsel %vm512_vm0, %v8214_v12, 0.0 }
 0x223   : > { %655 = vadd.xlane.f32.xlu1 %v654_v14 }
 0x224   : > { %652 = vadd.xlane.f32.xlu0 %v651_v15 }
 0x290   : > { %v614_v59 = vpop.xlane.xlu1 %613 }
 0x291   : > { %7459 = vrcp.f32 %v614_v59 }
 0x294   : > { %v620_v17 = vpop.xlane.xlu1 %619 }
 0x295   : > { %7461 = vrcp.f32 %v620_v17  ;;  %v611_v4 = vpop.xlane.xlu0 %610 }
 0x296   : > { %7463 = vrcp.f32 %v611_v4 }
 0x299   : > { %v617_v20 = vpop.xlane.xlu0 %616 }
 0x29a   : > { %7465 = vrcp.f32 %v617_v20 }
 0x29b   : > { %v7460_v21 = vpop.eup %7459 }
 0x29c   : > { %v626_v23 = vpop.xlane.xlu1 %625  ;;  %v8221_v24 = vmul.f32 %v7460_v21, %v8147_v44 }
 0x29d   : > { %7467 = vrcp.f32 %v626_v23  ;;  %v623_v1 = vpop.xlane.xlu0 %622 }
 0x29e   : > { %11041 = vst [vmem:[#allocation12_spill] sm:$0xff] %v8221_v24  ;;  %7469 = vrcp.f32 %v623_v1  ;;  %v694_v41 = vsel %vm512_vm0, %v8221_v24, -inf }
 0x29f   : > { %v7462_v45 = vpop.eup %7461  ;;  %695 = vmax.xlane.f32.xlu1 %v694_v41 }
 0x2a0   : > { %v7464_v10 = vpop.eup %7463  ;;  %v632_v48 = vpop.xlane.xlu1 %631  ;;  %v8226_v50 = vmul.f32 %v7462_v45, %v8153_v53 }
 0x2a1   : > { %7471 = vrcp.f32 %v632_v48  ;;  %v629_v40 = vpop.xlane.xlu0 %628  ;;  %v8229_v51 = vmul.f32 %v7464_v10, %v8155_v62 }
 0x2a2   : > { %11042 = vst [vmem:[#allocation13_spill] sm:$0xff] %v8226_v50  ;;  %7473 = vrcp.f32 %v629_v40  ;;  %v700_v44 = vsel %vm512_vm0, %v8226_v50, -inf }
 0x2a3   : > { %11043 = vst [vmem:[#allocation14_spill] sm:$0xff] %v8229_v51  ;;  %701 = vmax.xlane.f32.xlu1 %v700_v44  ;;  %v691_v7 = vsel %vm512_vm0, %v8229_v51, -inf }
 0x2a4   : > { %v7466_v52 = vpop.eup %7465  ;;  %692 = vmax.xlane.f32.xlu0 %v691_v7  ;;  %v638_v16 = vpop.xlane.xlu1 %637 }
 0x2a5   : > { %7475 = vrcp.f32 %v638_v16  ;;  %v635_v57 = vpop.xlane.xlu0 %634  ;;  %v8236_v53 = vmul.f32 %v7466_v52, %v8163_v18 }
 0x2a6   : > { %7477 = vrcp.f32 %v635_v57 }
 0x2a7   : > { %11044 = vst [vmem:[#allocation15_spill] sm:$0xff] %v8236_v53  ;;  %v7468_v58 = vpop.eup %7467  ;;  %v697_v62 = vsel %vm512_vm0, %v8236_v53, -inf }
 0x2a8   : > { %v7470_v60 = vpop.eup %7469  ;;  %698 = vmax.xlane.f32.xlu0 %v697_v62  ;;  %v644_v42 = vpop.xlane.xlu1 %643  ;;  %v8241_v13 = vmul.f32 %v7468_v58, %v8171_v46  ;;  %v689_v58 = vlaneseq }
 0x2a9   : > { %7479 = vrcp.f32 %v644_v42  ;;  %v641_v61 = vpop.xlane.xlu0 %640  ;;  %v8244_v0 = vmul.f32 %v7470_v60, %v8168_v43 }
 0x2aa   : > { %11045 = vst [vmem:[#allocation16_spill] sm:$0xff] %v8241_v13  ;;  %7481 = vrcp.f32 %v641_v61  ;;  %v706_v18 = vsel %vm512_vm0, %v8241_v13, -inf  ;;  %v8300_v62 = vand.u32 127, %v689_v58 }
 0x2ab   : > { %11046 = vst [vmem:[#allocation17_spill] sm:$0xff] %v8244_v0  ;;  %v7472_v47 = vpop.eup %7471  ;;  %707 = vmax.xlane.f32.xlu1 %v706_v18  ;;  %v703_v2 = vsel %vm512_vm0, %v8244_v0, -inf }
 0x2ac   : > { %v7474_v5 = vpop.eup %7473  ;;  %704 = vmax.xlane.f32.xlu0 %v703_v2  ;;  %v650_v49 = vpop.xlane.xlu1 %649  ;;  %v8251_v46 = vmul.f32 %v7472_v47, %v8181_v55  ;;  %11057 = vst [vmem:[#allocation28_spill] sm:$0xff] %v8300_v62 }
 0x2ad   : > { %7483 = vrcp.f32 %v650_v49  ;;  %v647_v8 = vpop.xlane.xlu0 %646  ;;  %v8254_v43 = vmul.f32 %v7474_v5, %v8178_v54 }
 0x2ae   : > { %11047 = vst [vmem:[#allocation18_spill] sm:$0xff] %v8251_v46  ;;  %7485 = vrcp.f32 %v647_v8  ;;  %v712_v9 = vsel %vm512_vm0, %v8251_v46, -inf }
 0x2af   : > { %11048 = vst [vmem:[#allocation19_spill] sm:$0xff] %v8254_v43  ;;  %v7476_v14 = vpop.eup %7475  ;;  %713 = vmax.xlane.f32.xlu1 %v712_v9  ;;  %v709_v15 = vsel %vm512_vm0, %v8254_v43, -inf }
 0x2b0   : > { %v7478_v59 = vpop.eup %7477  ;;  %710 = vmax.xlane.f32.xlu0 %v709_v15  ;;  %v656_v17 = vpop.xlane.xlu1 %655  ;;  %v8261_v55 = vmul.f32 %v7476_v14, %v8190_v22 }
 0x2b1   : > { %7487 = vrcp.f32 %v656_v17  ;;  %v653_v4 = vpop.xlane.xlu0 %652  ;;  %v8264_v54 = vmul.f32 %v7478_v59, %v8188_v63 }
 0x2b2   : > { %11049 = vst [vmem:[#allocation20_spill] sm:$0xff] %v8261_v55  ;;  %7489 = vrcp.f32 %v653_v4  ;;  %v718_v20 = vsel %vm512_vm0, %v8261_v55, -inf }
 0x2b3   : > { %11050 = vst [vmem:[#allocation21_spill] sm:$0xff] %v8264_v54  ;;  %v7480_v21 = vpop.eup %7479  ;;  %719 = vmax.xlane.f32.xlu1 %v718_v20  ;;  %v715_v23 = vsel %vm512_vm0, %v8264_v54, -inf }
 0x2b4   : > { %v7482_v1 = vpop.eup %7481  ;;  %716 = vmax.xlane.f32.xlu0 %v715_v23  ;;  %v8271_v41 = vmul.f32 %v7480_v21, %v8198_v3 }
 0x2b5   : > { %v8274_v22 = vmul.f32 %v7482_v1, %v8196_v19 }
 0x2b6   : > { %11051 = vst [vmem:[#allocation22_spill] sm:$0xff] %v8271_v41  ;;  %v724_v63 = vsel %vm512_vm0, %v8271_v41, -inf }
 0x2b7   : > { %11052 = vst [vmem:[#allocation23_spill] sm:$0xff] %v8274_v22  ;;  %v7484_v45 = vpop.eup %7483  ;;  %725 = vmax.xlane.f32.xlu1 %v724_v63  ;;  %v721_v10 = vsel %vm512_vm0, %v8274_v22, -inf }
 0x2b8   : > { %v7486_v48 = vpop.eup %7485  ;;  %722 = vmax.xlane.f32.xlu0 %v721_v10  ;;  %v8281_v40 = vmul.f32 %v7484_v45, %v8206_v6 }
 0x2b9   : > { %v8284_v44 = vmul.f32 %v7486_v48, %v8204_v56 }
 0x2ba   : > { %11053 = vst [vmem:[#allocation24_spill] sm:$0xff] %v8281_v40  ;;  %v730_v19 = vsel %vm512_vm0, %v8281_v40, -inf }
 0x2bb   : > { %11054 = vst [vmem:[#allocation25_spill] sm:$0xff] %v8284_v44  ;;  %v7488_v3 = vpop.eup %7487  ;;  %731 = vmax.xlane.f32.xlu1 %v730_v19  ;;  %v727_v7 = vsel %vm512_vm0, %v8284_v44, -inf }
 0x2bc   : > { %v7490_v52 = vpop.eup %7489  ;;  %728 = vmax.xlane.f32.xlu0 %v727_v7  ;;  %v8291_v16 = vmul.f32 %v7488_v3, %v8214_v12 }
 0x2bd   : > { %v8294_v57 = vmul.f32 %v7490_v52, %v8212_v11 }
 0x2be   : > { %11055 = vst [vmem:[#allocation26_spill] sm:$0xff] %v8291_v16  ;;  %v736_v56 = vsel %vm512_vm0, %v8291_v16, -inf }
 0x2bf   : > { %11056 = vst [vmem:[#allocation27_spill] sm:$0xff] %v8294_v57  ;;  %737 = vmax.xlane.f32.xlu1 %v736_v56  ;;  %v733_v6 = vsel %vm512_vm0, %v8294_v57, -inf }
 0x2c0   : > { %734 = vmax.xlane.f32.xlu0 %v733_v6 }
 0x32c   : > { %v8302_v60 = vpop.xlane.xlu1 %695 }
 0x32d   : > { %11058 = vst [vmem:[#allocation29_spill] sm:$0xff] %v8302_v60  ;;  %vm740_vm1 = vcmp.eq.f32.partialorder %v8221_v24, %v8302_v60  ;;  %v1517_v24 = vld [vmem:[#allocation5 + $0x50] sm:$0xff] }
 0x32e   : > { %v756_v12 = vsel %vm740_vm1, %v8300_v62, 8 }
 0x32f   : > { %v8308_v11 = vsel %vm512_vm0, %v756_v12, 2147483647 }
 0x330   : > { %v8310_v42 = vpop.xlane.xlu1 %701  ;;  %v788_v61 = vshra.s32 %v8308_v11, 16 }
 0x331   : > { %11059 = vst [vmem:[#allocation30_spill] sm:$0xff] %v8310_v42  ;;  %v8313_v18 = vpop.xlane.xlu0 %692  ;;  %vm742_vm2 = vcmp.eq.f32.partialorder %v8226_v50, %v8310_v42 }
 0x332   : > { %11060 = vst [vmem:[#allocation31_spill] sm:$0xff] %v8313_v18  ;;  %v8317_v47 = vcvt.s32.f32 %v788_v61  ;;  %v758_v2 = vsel %vm742_vm2, %v8300_v62, 8  ;;  %vm739_vm3 = vcmp.eq.f32.partialorder %v8229_v51, %v8313_v18  ;;  %v1516_v51 = vld [vmem:[#allocation5 + $0x48] sm:$0xff] }
 0x333   : > { %v8323_v5 = vsel %vm512_vm0, %v758_v2, 2147483647  ;;  %v755_v49 = vsel %vm739_vm3, %v8300_v62, 8 }
 0x334   : > { %791 = vmin.xlane.f32.xlu1 %v8317_v47  ;;  %v818_v8 = vshra.s32 %v8323_v5, 16  ;;  %v8329_v9 = vsel %vm512_vm0, %v755_v49, 2147483647 }
 0x335   : > { %v8331_v14 = vpop.xlane.xlu0 %698  ;;  %v773_v15 = vshra.s32 %v8329_v9, 16 }
 0x336   : > { %11061 = vst [vmem:[#allocation32_spill] sm:$0xff] %v8331_v14  ;;  %v8334_v59 = vcvt.s32.f32 %v818_v8  ;;  %vm741_vm4 = vcmp.eq.f32.partialorder %v8236_v53, %v8331_v14  ;;  %v1515_v53 = vld [vmem:[#allocation5 + $0x40] sm:$0xff] }
 0x337   : > { %v8338_v17 = vcvt.s32.f32 %v773_v15  ;;  %v757_v4 = vsel %vm741_vm4, %v8300_v62, 8  ;;  %v6844_v50 = vpack.c.bf16 %v1516_v51, %v1515_v53  ;;  %v1959_v53 = vld [vmem:[#allocation5 + $0x90] sm:$0xff] }
 0x338   : > { %821 = vmin.xlane.f32.xlu1 %v8334_v59  ;;  %v8342_v20 = vpop.xlane.xlu1 %707  ;;  %v8345_v21 = vsel %vm512_vm0, %v757_v4, 2147483647 }
 0x339   : > { %11062 = vst [vmem:[#allocation33_spill] sm:$0xff] %v8342_v20  ;;  %776 = vmin.xlane.f32.xlu0 %v8338_v17  ;;  %v8348_v23 = vpop.xlane.xlu0 %704  ;;  %v803_v1 = vshra.s32 %v8345_v21, 16  ;;  %vm744_vm5 = vcmp.eq.f32.partialorder %v8241_v13, %v8342_v20  ;;  %v1514_v13 = vld [vmem:[#allocation5 + $0x38] sm:$0xff] }
 0x33a   : > { %11063 = vst [vmem:[#allocation34_spill] sm:$0xff] %v8348_v23  ;;  %v760_v63 = vsel %vm744_vm5, %v8300_v62, 8  ;;  %vm743_vm6 = vcmp.eq.f32.partialorder %v8244_v0, %v8348_v23 }
 0x33b   : > { %v8356_v45 = vcvt.s32.f32 %v803_v1  ;;  %v8359_v10 = vsel %vm512_vm0, %v760_v63, 2147483647  ;;  %v759_v48 = vsel %vm743_vm6, %v8300_v62, 8 }
 0x33c   : > { %v8362_v19 = vpop.xlane.xlu1 %713  ;;  %v848_v3 = vshra.s32 %v8359_v10, 16  ;;  %v8366_v7 = vsel %vm512_vm0, %v759_v48, 2147483647 }
 0x33d   : > { %11064 = vst [vmem:[#allocation35_spill] sm:$0xff] %v8362_v19  ;;  %806 = vmin.xlane.f32.xlu0 %v8356_v45  ;;  %v8369_v52 = vpop.xlane.xlu0 %710  ;;  %v833_v56 = vshra.s32 %v8366_v7, 16  ;;  %vm746_vm7 = vcmp.eq.f32.partialorder %v8251_v46, %v8362_v19  ;;  %v1512_v46 = vld [vmem:[#allocation5 + $0x28] sm:$0xff] }
 0x33e   : > { %11065 = vst [vmem:[#allocation36_spill] sm:$0xff] %v8369_v52  ;;  %v8374_v6 = vcvt.s32.f32 %v848_v3  ;;  %v762_v58 = vsel %vm746_vm7, %v8300_v62, 8  ;;  %vm745_vm8 = vcmp.eq.f32.partialorder %v8254_v43, %v8369_v52 }
 0x33f   : > { %v8379_v12 = vcvt.s32.f32 %v833_v56  ;;  %v8382_v61 = vsel %vm512_vm0, %v762_v58, 2147483647  ;;  %v761_v2 = vsel %vm745_vm8, %v8300_v62, 8 }
 0x340   : > { %851 = vmin.xlane.f32.xlu1 %v8374_v6  ;;  %v8386_v49 = vpop.xlane.xlu1 %719  ;;  %v878_v8 = vshra.s32 %v8382_v61, 16  ;;  %v8390_v15 = vsel %vm512_vm0, %v761_v2, 2147483647 }
 0x341   : > { %11066 = vst [vmem:[#allocation37_spill] sm:$0xff] %v8386_v49  ;;  %836 = vmin.xlane.f32.xlu0 %v8379_v12  ;;  %v8393_v4 = vpop.xlane.xlu0 %716  ;;  %v863_v1 = vshra.s32 %v8390_v15, 16  ;;  %vm748_vm9 = vcmp.eq.f32.partialorder %v8261_v55, %v8386_v49  ;;  %v1510_v55 = vld [vmem:[#allocation5 + $0x18] sm:$0xff] }
 0x342   : > { %11067 = vst [vmem:[#allocation38_spill] sm:$0xff] %v8393_v4  ;;  %v8398_v63 = vcvt.s32.f32 %v878_v8  ;;  %v764_v48 = vsel %vm748_vm9, %v8300_v62, 8  ;;  %vm747_vm10 = vcmp.eq.f32.partialorder %v8264_v54, %v8393_v4 }
 0x343   : > { %v8403_v3 = vcvt.s32.f32 %v863_v1  ;;  %v8406_v56 = vsel %vm512_vm0, %v764_v48, 2147483647  ;;  %v763_v58 = vsel %vm747_vm10, %v8300_v62, 8 }
 0x344   : > { %881 = vmin.xlane.f32.xlu1 %v8398_v63  ;;  %v8410_v2 = vpop.xlane.xlu1 %725  ;;  %v908_v49 = vshra.s32 %v8406_v56, 16  ;;  %v8414_v8 = vsel %vm512_vm0, %v763_v58, 2147483647 }
 0x345   : > { %11068 = vst [vmem:[#allocation39_spill] sm:$0xff] %v8410_v2  ;;  %866 = vmin.xlane.f32.xlu0 %v8403_v3  ;;  %v8417_v52 = vpop.xlane.xlu0 %722  ;;  %v893_v1 = vshra.s32 %v8414_v8, 16  ;;  %vm750_vm11 = vcmp.eq.f32.partialorder %v8271_v41, %v8410_v2 }
 0x346   : > { %11069 = vst [vmem:[#allocation40_spill] sm:$0xff] %v8417_v52  ;;  %v8422_v48 = vcvt.s32.f32 %v908_v49  ;;  %v766_v4 = vsel %vm750_vm11, %v8300_v62, 8  ;;  %vm749_vm12 = vcmp.eq.f32.partialorder %v8274_v22, %v8417_v52 }
 0x347   : > { %v8427_v19 = vcvt.s32.f32 %v893_v1  ;;  %v8430_v58 = vsel %vm512_vm0, %v766_v4, 2147483647  ;;  %v765_v23 = vsel %vm749_vm12, %v8300_v62, 8 }
 0x348   : > { %911 = vmin.xlane.f32.xlu1 %v8422_v48  ;;  %v8434_v20 = vpop.xlane.xlu1 %731  ;;  %v938_v2 = vshra.s32 %v8430_v58, 16  ;;  %v8438_v49 = vsel %vm512_vm0, %v765_v23, 2147483647 }
 0x349   : > { %11070 = vst [vmem:[#allocation41_spill] sm:$0xff] %v8434_v20  ;;  %896 = vmin.xlane.f32.xlu0 %v8427_v19  ;;  %v8441_v14 = vpop.xlane.xlu0 %728  ;;  %v923_v1 = vshra.s32 %v8438_v49, 16  ;;  %vm752_vm13 = vcmp.eq.f32.partialorder %v8281_v40, %v8434_v20 }
 0x34a   : > { %11071 = vst [vmem:[#allocation42_spill] sm:$0xff] %v8441_v14  ;;  %v8446_v4 = vcvt.s32.f32 %v938_v2  ;;  %v768_v52 = vsel %vm752_vm13, %v8300_v62, 8  ;;  %vm751_vm14 = vcmp.eq.f32.partialorder %v8284_v44, %v8441_v14 }
 0x34b   : > { %v8451_v42 = vcvt.s32.f32 %v923_v1  ;;  %v8454_v23 = vsel %vm512_vm0, %v768_v52, 2147483647  ;;  %v767_v18 = vsel %vm751_vm14, %v8300_v62, 8 }
 0x34c   : > { %941 = vmin.xlane.f32.xlu1 %v8446_v4  ;;  %v8458_v60 = vpop.xlane.xlu1 %737  ;;  %v968_v20 = vshra.s32 %v8454_v23, 16  ;;  %v8462_v2 = vsel %vm512_vm0, %v767_v18, 2147483647 }
 0x34d   : > { %11072 = vst [vmem:[#allocation43_spill] sm:$0xff] %v8458_v60  ;;  %926 = vmin.xlane.f32.xlu0 %v8451_v42  ;;  %v8465_v40 = vpop.xlane.xlu0 %734  ;;  %v953_v1 = vshra.s32 %v8462_v2, 16  ;;  %vm754_vm15 = vcmp.eq.f32.partialorder %v8291_v16, %v8458_v60 }
 0x34e   : > { %11073 = vst [vmem:[#allocation44_spill] sm:$0xff] %v8465_v40  ;;  %v8470_v52 = vcvt.s32.f32 %v968_v20  ;;  %v770_v14 = vsel %vm754_vm15, %v8300_v62, 8  ;;  %vm753_vm1 = vcmp.eq.f32.partialorder %v8294_v57, %v8465_v40  ;;  %v1508_v40 = vld [vmem:[#allocation5 + $0x8] sm:$0xff]  ;;  %v1509_v57 = vld [vmem:[#allocation5 + $0x10] sm:$0xff] }
 0x34f   : > { %v8475_v44 = vcvt.s32.f32 %v953_v1  ;;  %v8478_v18 = vsel %vm512_vm0, %v770_v14, 2147483647  ;;  %v769_v22 = vsel %vm753_vm1, %v8300_v62, 8  ;;  %v1507_v14 = vld [vmem:[#allocation5] sm:$0xff]  ;;  %v6832_v43 = vpack.c.bf16 %v1510_v55, %v1509_v57 }
 0x350   : > { %971 = vmin.xlane.f32.xlu1 %v8470_v52  ;;  %v998_v41 = vshra.s32 %v8478_v18, 16  ;;  %v8484_v60 = vsel %vm512_vm0, %v769_v22, 2147483647  ;;  %v6828_v54 = vpack.c.bf16 %v1508_v40, %v1507_v14  ;;  %v1511_v22 = vld [vmem:[#allocation5 + $0x20] sm:$0xff]  ;;  %v1518_v40 = vld [vmem:[#allocation5 + $0x58] sm:$0xff]  ;;  %v1520_v14 = vld [vmem:[#allocation5 + $0x68] sm:$0xff] }
 0x351   : > { %956 = vmin.xlane.f32.xlu0 %v8475_v44  ;;  %v983_v20 = vshra.s32 %v8484_v60, 16  ;;  %v6836_v0 = vpack.c.bf16 %v1512_v46, %v1511_v22  ;;  %v6848_v55 = vpack.c.bf16 %v1518_v40, %v1517_v24  ;;  %v1519_v57 = vld [vmem:[#allocation5 + $0x60] sm:$0xff]  ;;  %v1522_v22 = vld [vmem:[#allocation5 + $0x78] sm:$0xff]  ;;  %v1962_v40 = vld [vmem:[#allocation5 + $0xa8] sm:$0xff] }
 0x352   : > { %v8488_v16 = vcvt.s32.f32 %v998_v41  ;;  %6829 = vmatprep.subr.bf16.mxu1 %v6828_v54  ;;  %v1513_v41 = vld [vmem:[#allocation5 + $0x30] sm:$0xff]  ;;  %v6852_v46 = vpack.c.bf16 %v1520_v14, %v1519_v57  ;;  %v1964_v57 = vld [vmem:[#allocation5 + $0xb8] sm:$0xff] }
 0x353   : > { %v8490_v1 = vcvt.s32.f32 %v983_v20  ;;  %6831 = vmatpush3.bf16.msra.mxu1 %v6828_v54  ;;  %v6840_v20 = vpack.c.bf16 %v1514_v13, %v1513_v41  ;;  %v1521_v54 = vld [vmem:[#allocation5 + $0x70] sm:$0xff]  ;;  %v1958_v41 = vld [vmem:[#allocation5 + $0x88] sm:$0xff] }
 0x354   : > { %1001 = vmin.xlane.f32.xlu1 %v8488_v16  ;;  %6833 = vmatprep.subr.bf16.mxu1 %v6832_v43  ;;  %v6856_v13 = vpack.c.bf16 %v1522_v22, %v1521_v54  ;;  %v1966_v54 = vld [vmem:[#allocation5 + $0xc8] sm:$0xff]  ;;  %v1968_v22 = vld [vmem:[#allocation5 + $0xd8] sm:$0xff] }
 0x355   : > { %986 = vmin.xlane.f32.xlu0 %v8490_v1 }
 0x357   : > { %6835 = vmatpush3.bf16.msra.mxu1 %v6832_v43  ;;  %v1957_v43 = vld [vmem:[#allocation5 + $0x80] sm:$0xff] }
 0x358   : > { %6837 = vmatprep.subr.bf16.mxu1 %v6836_v0  ;;  %v6892_v51 = vpack.c.bf16 %v1958_v41, %v1957_v43  ;;  %v1971_v41 = vld [vmem:[#allocation5 + $0xf0] sm:$0xff] }
 0x35b   : > { %6839 = vmatpush3.bf16.msra.mxu1 %v6836_v0  ;;  %v1960_v0 = vld [vmem:[#allocation5 + $0x98] sm:$0xff] }
 0x35c   : > { %6841 = vmatprep.subr.bf16.mxu1 %v6840_v20  ;;  %v6896_v24 = vpack.c.bf16 %v1960_v0, %v1959_v53  ;;  %v8510_v0 = vld [vmem:[%s7954_s13] sm:$0xff] }
 0x35f   : > { %6843 = vmatpush3.bf16.msra.mxu1 %v6840_v20  ;;  %v1961_v20 = vld [vmem:[#allocation5 + $0xa0] sm:$0xff] }
 0x360   : > { %6845 = vmatprep.subr.bf16.mxu1 %v6844_v50 }
 0x363   : > { %6847 = vmatpush3.bf16.msra.mxu1 %v6844_v50  ;;  %v6900_v50 = vpack.c.bf16 %v1962_v40, %v1961_v20  ;;  %v8518_v20 = vld [vmem:[%s7954_s13 + $0x10] sm:$0xff]  ;;  %v8522_v40 = vld [vmem:[%s7954_s13 + $0x18] sm:$0xff] }
 0x364   : > { %6849 = vmatprep.subr.bf16.mxu1 %v6848_v55 }
 0x367   : > { %6851 = vmatpush3.bf16.msra.mxu1 %v6848_v55  ;;  %v1963_v55 = vld [vmem:[#allocation5 + $0xb0] sm:$0xff] }
 0x368   : > { %6853 = vmatprep.subr.bf16.mxu1 %v6852_v46  ;;  %v6904_v14 = vpack.c.bf16 %v1964_v57, %v1963_v55  ;;  %v787_v55 = vand.u32 65535, %v8308_v11 }
 0x36b   : > { %6855 = vmatpush3.bf16.msra.mxu1 %v6852_v46  ;;  %v1965_v46 = vld [vmem:[#allocation5 + $0xc0] sm:$0xff] }
 0x36c   : > { %6857 = vmatprep.subr.bf16.mxu1 %v6856_v13 }
 0x36f   : > { %6859 = vmatpush3.bf16.msra.mxu1 %v6856_v13  ;;  %v1970_v13 = vld [vmem:[#allocation5 + $0xe8] sm:$0xff] }
 0x370   : > { %6893 = vmatprep.subr.bf16.mxu1 %v6892_v51 }
 0x372   : > { %5933 = vmatmul.mubr.f32.vlgmr.msra.gmra.mrb[0].mxu1 %v8014_v25  ;;  %v6908_v25 = vpack.c.bf16 %v1966_v54, %v1965_v46  ;;  %v862_v54 = vand.u32 65535, %v8390_v15  ;;  %v892_v15 = vand.u32 65535, %v8414_v8 }
 0x373   : > { %6895 = vmatpush3.bf16.msra.mxu1 %v6892_v51  ;;  %5935 = vmatprep.mubr.f32.mxu1 %v8017_v26  ;;  %v1967_v26 = vld [vmem:[#allocation5 + $0xd0] sm:$0xff]  ;;  %v1972_v51 = vld [vmem:[#allocation5 + $0xf8] sm:$0xff] }
 0x374   : > { %6897 = vmatprep.subr.bf16.mxu1 %v6896_v24  ;;  %v6920_v53 = vpack.c.bf16 %v1972_v51, %v1971_v41  ;;  %v2412_v41 = vld [vmem:[#allocation5 + $0x110] sm:$0xff]  ;;  %v2413_v51 = vld [vmem:[#allocation5 + $0x118] sm:$0xff]  ;;  %v894_v8 = vcvt.s32.f32 %v892_v15  ;;  %v2422_v15 = vld [vmem:[#allocation5 + $0x160] sm:$0xff] }
 0x376   : > { %5936 = vmatmul.mubr.f32.gmra.mrb[2].mxu1 %v8022_v27  ;;  %v6912_v27 = vpack.c.bf16 %v1968_v22, %v1967_v26  ;;  %v2411_v26 = vld [vmem:[#allocation5 + $0x108] sm:$0xff] }
 0x377   : > { %6899 = vmatpush3.bf16.msra.mxu1 %v6896_v24  ;;  %5938 = vmatprep.mubr.f32.mxu1 %v8025_v28  ;;  %v1969_v28 = vld [vmem:[#allocation5 + $0xe0] sm:$0xff]  ;;  %v8514_v24 = vld [vmem:[%s7954_s13 + $0x8] sm:$0xff] }
 0x378   : > { %6901 = vmatprep.subr.bf16.mxu1 %v6900_v50  ;;  %v6916_v43 = vpack.c.bf16 %v1970_v13, %v1969_v28 }
 0x37a   : > { %5939 = vmatmul.mubr.f32.gmra.mrb[4].mxu1 %v8030_v29 }
 0x37b   : > { %6903 = vmatpush3.bf16.msra.mxu1 %v6900_v50  ;;  %5941 = vmatprep.mubr.f32.mxu1 %v8033_v30  ;;  %v8526_v50 = vld [vmem:[%s7954_s13 + $0x20] sm:$0xff] }
 0x37c   : > { %6905 = vmatprep.subr.bf16.mxu1 %v6904_v14 }
 0x37e   : > { %5942 = vmatmul.mubr.f32.gmra.mrb[6].mxu1 %v8038_v31 }
 0x37f   : > { %6907 = vmatpush3.bf16.msra.mxu1 %v6904_v14  ;;  %5944 = vmatprep.mubr.f32.mxu1 %v8041_v32 }
 0x380   : > { %6909 = vmatprep.subr.bf16.mxu1 %v6908_v25 }
 0x382   : > { %5945 = vmatmul.mubr.f32.gmra.mrb[8].mxu1 %v8046_v33 }
 0x383   : > { %6911 = vmatpush3.bf16.msra.mxu1 %v6908_v25  ;;  %5947 = vmatprep.mubr.f32.mxu1 %v8049_v34 }
 0x384   : > { %6913 = vmatprep.subr.bf16.mxu1 %v6912_v27 }
 0x386   : > { %5948 = vmatmul.mubr.f32.gmra.mrb[10].mxu1 %v8054_v35 }
 0x387   : > { %6915 = vmatpush3.bf16.msra.mxu1 %v6912_v27  ;;  %5950 = vmatprep.mubr.f32.mxu1 %v8057_v36  ;;  %v907_v27 = vand.u32 65535, %v8406_v56 }
 0x388   : > { %6917 = vmatprep.subr.bf16.mxu1 %v6916_v43 }
 0x38a   : > { %5951 = vmatmul.mubr.f32.gmra.mrb[12].mxu1 %v8062_v37 }
 0x38b   : > { %6919 = vmatpush3.bf16.msra.mxu1 %v6916_v43  ;;  %5953 = vmatprep.mubr.f32.mxu1 %v8065_v38 }
 0x38c   : > { %6921 = vmatprep.subr.bf16.mxu1 %v6920_v53 }
 0x38e   : > { %5954 = vmatmul.mubr.f32.gmra.mrb[14].mxu1 %v8070_v39 }
 0x38f   : > { %6923 = vmatpush3.bf16.msra.mxu1 %v6920_v53  ;;  %6044 = vmatprep.mubr.f32.mxu1 %v8510_v0  ;;  %v909_v53 = vcvt.s32.f32 %v907_v27  ;;  %v2420_v27 = vld [vmem:[#allocation5 + $0x150] sm:$0xff] }
 0x392   : > { %6045 = vmatmul.mubr.f32.vlgmr.msra.gmra.mrb[16].mxu1 %v8514_v24 }
 0x393   : > { %6047 = vmatprep.mubr.f32.mxu1 %v8518_v20 }
 0x396   : > { %6048 = vmatmul.mubr.f32.gmra.mrb[18].mxu1 %v8522_v40 }
 0x397   : > { %6050 = vmatprep.mubr.f32.mxu1 %v8526_v50 }
 0x39a   : > { %6051 = vmatmul.mubr.f32.gmra.mrb[20].mxu1 %v8030_v29  ;;  %v789_v29 = vcvt.s32.f32 %v787_v55  ;;  %v937_v55 = vand.u32 65535, %v8430_v58 }
 0x39b   : > { %6053 = vmatprep.mubr.f32.mxu1 %v8033_v30  ;;  %v817_v30 = vand.u32 65535, %v8323_v5 }
 0x39e   : > { %6054 = vmatmul.mubr.f32.gmra.mrb[22].mxu1 %v8038_v31  ;;  %v772_v31 = vand.u32 65535, %v8329_v9  ;;  %v832_v9 = vand.u32 65535, %v8366_v7  ;;  %v2410_v7 = vld [vmem:[#allocation5 + $0x100] sm:$0xff] }
 0x39f   : > { %6056 = vmatprep.mubr.f32.mxu1 %v8041_v32  ;;  %v6956_v28 = vpack.c.bf16 %v2411_v26, %v2410_v7 }
 0x3a1   : > { %6957 = vmatprep.subr.bf16.mxu1 %v6956_v28 }
 0x3a2   : > { %6057 = vmatmul.mubr.f32.gmra.mrb[24].mxu1 %v8046_v33 }
 0x3a3   : > { %6059 = vmatprep.mubr.f32.mxu1 %v8049_v34  ;;  %v819_v34 = vcvt.s32.f32 %v817_v30  ;;  %6959 = vmatpush3.bf16.msra.mxu1 %v6956_v28  ;;  %v2421_v28 = vld [vmem:[#allocation5 + $0x158] sm:$0xff] }
 0x3a6   : > { %6060 = vmatmul.mubr.f32.gmra.mrb[26].mxu1 %v8054_v35 }
 0x3a7   : > { %6062 = vmatprep.mubr.f32.mxu1 %v8057_v36  ;;  %v774_v36 = vcvt.s32.f32 %v772_v31 }
 0x3aa   : > { %6063 = vmatmul.mubr.f32.gmra.mrb[28].mxu1 %v8062_v37  ;;  %v802_v37 = vand.u32 65535, %v8345_v21 }
 0x3ab   : > { %6065 = vmatprep.mubr.f32.mxu1 %v8065_v38 }
 0x3ac   : > { %v804_v5 = vcvt.s32.f32 %v802_v37  ;;  %v967_v37 = vand.u32 65535, %v8454_v23 }
 0x3ae   : > { %6066 = vmatmul.mubr.f32.gmra.mrb[30].mxu1 %v8070_v39  ;;  %v847_v39 = vand.u32 65535, %v8359_v10  ;;  %v834_v10 = vcvt.s32.f32 %v832_v9  ;;  %v2417_v9 = vld [vmem:[#allocation5 + $0x138] sm:$0xff] }
 0x3af   : > { %6156 = vmatprep.mubr.f32.mxu1 %v8510_v0 }
 0x3b0   : > { %v849_v14 = vcvt.s32.f32 %v847_v39 }
 0x3c1   : > { %v8539_v57 = vpop.xlane.xlu1 %791 }
 0x3c2   : > { %vm793_vm2 = vcmp.eq.f32.partialorder %v8317_v47, %v8539_v57 }
 0x3c3   : > { %v794_v32 = vsel %vm793_vm2, %v789_v29, inf }
 0x3c4   : > { %795 = vmin.xlane.f32.xlu1 %v794_v32  ;;  %v2414_v32 = vld [vmem:[#allocation5 + $0x120] sm:$0xff] }
 0x3c5   : > { %v8547_v33 = vpop.xlane.xlu1 %821 }
 0x3c6   : > { %v8550_v35 = vpop.xlane.xlu0 %776  ;;  %vm823_vm3 = vcmp.eq.f32.partialorder %v8334_v59, %v8547_v33 }
 0x3c7   : > { %v824_v38 = vsel %vm823_vm3, %v819_v34, inf  ;;  %vm778_vm4 = vcmp.eq.f32.partialorder %v8338_v17, %v8550_v35  ;;  %v877_v17 = vand.u32 65535, %v8382_v61  ;;  %v2415_v34 = vld [vmem:[#allocation5 + $0x128] sm:$0xff] }
 0x3c8   : > { %825 = vmin.xlane.f32.xlu1 %v824_v38  ;;  %v779_v11 = vsel %vm778_vm4, %v774_v36, inf  ;;  %v939_v36 = vcvt.s32.f32 %v937_v55 }
 0x3c9   : > { %780 = vmin.xlane.f32.xlu0 %v779_v11  ;;  %v879_v61 = vcvt.s32.f32 %v877_v17 }
 0x3ca   : > { %v8558_v47 = vpop.xlane.xlu0 %806 }
 0x3cb   : > { %vm808_vm5 = vcmp.eq.f32.partialorder %v8356_v45, %v8558_v47 }
 0x3cc   : > { %v809_v59 = vsel %vm808_vm5, %v804_v5, inf  ;;  %v2416_v5 = vld [vmem:[#allocation5 + $0x130] sm:$0xff] }
 0x3cd   : > { %810 = vmin.xlane.f32.xlu0 %v809_v59  ;;  %v8563_v21 = vpop.xlane.xlu1 %851  ;;  %v969_v59 = vcvt.s32.f32 %v967_v37  ;;  %v2871_v37 = vld [vmem:[#allocation5 + $0x1c0] sm:$0xff] }
 0x3ce   : > { %v8566_v46 = vpop.xlane.xlu0 %836  ;;  %vm853_vm6 = vcmp.eq.f32.partialorder %v8374_v6, %v8563_v21  ;;  %v864_v6 = vcvt.s32.f32 %v862_v54 }
 0x3cf   : > { %v854_v25 = vsel %vm853_vm6, %v849_v14, inf  ;;  %vm838_vm7 = vcmp.eq.f32.partialorder %v8379_v12, %v8566_v46  ;;  %v997_v14 = vand.u32 65535, %v8478_v18 }
 0x3d0   : > { %855 = vmin.xlane.f32.xlu1 %v854_v25  ;;  %v839_v45 = vsel %vm838_vm7, %v834_v10, inf  ;;  %v2418_v25 = vld [vmem:[#allocation5 + $0x140] sm:$0xff] }
 0x3d1   : > { %840 = vmin.xlane.f32.xlu0 %v839_v45  ;;  %v8573_v22 = vpop.xlane.xlu1 %881  ;;  %v2419_v45 = vld [vmem:[#allocation5 + $0x148] sm:$0xff]  ;;  %v999_v7 = vcvt.s32.f32 %v997_v14  ;;  %v8638_v14 = vld [vmem:[%s7954_s13 + $0x40] sm:$0xff] }
 0x3d2   : > { %v8576_v13 = vpop.xlane.xlu0 %866  ;;  %vm883_vm8 = vcmp.eq.f32.partialorder %v8398_v63, %v8573_v22  ;;  %v6960_v63 = vpack.c.bf16 %v2413_v51, %v2412_v41  ;;  %v6972_v26 = vpack.c.bf16 %v2419_v45, %v2418_v25  ;;  %v2425_v41 = vld [vmem:[#allocation5 + $0x178] sm:$0xff]  ;;  %v2877_v45 = vld [vmem:[#allocation5 + $0x1f0] sm:$0xff] }
 0x3d3   : > { %v884_v12 = vsel %vm883_vm8, %v879_v61, inf  ;;  %vm868_vm9 = vcmp.eq.f32.partialorder %v8403_v3, %v8576_v13  ;;  %v922_v3 = vand.u32 65535, %v8438_v49 }
 0x3d4   : > { %885 = vmin.xlane.f32.xlu1 %v884_v12  ;;  %v869_v43 = vsel %vm868_vm9, %v864_v6, inf  ;;  %6961 = vmatprep.subr.bf16.mxu1 %v6960_v63  ;;  %v6976_v6 = vpack.c.bf16 %v2421_v28, %v2420_v27  ;;  %v2423_v12 = vld [vmem:[#allocation5 + $0x168] sm:$0xff] }
 0x3d5   : > { %870 = vmin.xlane.f32.xlu0 %v869_v43  ;;  %v8583_v56 = vpop.xlane.xlu1 %911  ;;  %6963 = vmatpush3.bf16.msra.mxu1 %v6960_v63  ;;  %v924_v49 = vcvt.s32.f32 %v922_v3  ;;  %v6980_v43 = vpack.c.bf16 %v2423_v12, %v2422_v15  ;;  %v2865_v63 = vld [vmem:[#allocation5 + $0x190] sm:$0xff]  ;;  %v3317_v27 = vld [vmem:[#allocation5 + $0x208] sm:$0xff] }
 0x3d6   : > { %v8586_v29 = vpop.xlane.xlu0 %896  ;;  %vm913_vm10 = vcmp.eq.f32.partialorder %v8422_v48, %v8583_v56  ;;  %v6964_v48 = vpack.c.bf16 %v2415_v34, %v2414_v32  ;;  %v2869_v34 = vld [vmem:[#allocation5 + $0x1b0] sm:$0xff]  ;;  %v8658_v28 = vld [vmem:[%s7954_s13 + $0x68] sm:$0xff] }
 0x3d7   : > { %v914_v30 = vsel %vm913_vm10, %v909_v53, inf  ;;  %vm898_vm11 = vcmp.eq.f32.partialorder %v8427_v19, %v8586_v29  ;;  %v952_v19 = vand.u32 65535, %v8462_v2  ;;  %v2864_v53 = vld [vmem:[#allocation5 + $0x188] sm:$0xff]  ;;  %v3318_v12 = vld [vmem:[#allocation5 + $0x210] sm:$0xff] }
 0x3d8   : > { %915 = vmin.xlane.f32.xlu1 %v914_v30  ;;  %v899_v31 = vsel %vm898_vm11, %v894_v8, inf  ;;  %6965 = vmatprep.subr.bf16.mxu1 %v6964_v48  ;;  %v2866_v8 = vld [vmem:[#allocation5 + $0x198] sm:$0xff]  ;;  %v2867_v30 = vld [vmem:[#allocation5 + $0x1a0] sm:$0xff] }
 0x3d9   : > { %900 = vmin.xlane.f32.xlu0 %v899_v31  ;;  %v8593_v58 = vpop.xlane.xlu1 %941  ;;  %6967 = vmatpush3.bf16.msra.mxu1 %v6964_v48  ;;  %v954_v2 = vcvt.s32.f32 %v952_v19  ;;  %v7024_v3 = vpack.c.bf16 %v2866_v8, %v2865_v63  ;;  %v2868_v31 = vld [vmem:[#allocation5 + $0x1a8] sm:$0xff]  ;;  %v3323_v63 = vld [vmem:[#allocation5 + $0x238] sm:$0xff] }
 0x3da   : > { %v8596_v38 = vpop.xlane.xlu0 %926  ;;  %vm943_vm12 = vcmp.eq.f32.partialorder %v8446_v4, %v8593_v58  ;;  %v6968_v4 = vpack.c.bf16 %v2417_v9, %v2416_v5  ;;  %v7028_v32 = vpack.c.bf16 %v2868_v31, %v2867_v30  ;;  %v8626_v48 = vld [vmem:[%s7954_s13 + $0x28] sm:$0xff]  ;;  %v2873_v5 = vld [vmem:[#allocation5 + $0x1d0] sm:$0xff]  ;;  %v2874_v9 = vld [vmem:[#allocation5 + $0x1d8] sm:$0xff] }
 0x3db   : > { %v944_v11 = vsel %vm943_vm12, %v939_v36, inf  ;;  %vm928_vm13 = vcmp.eq.f32.partialorder %v8451_v42, %v8596_v38  ;;  %v982_v42 = vand.u32 65535, %v8484_v60  ;;  %v2870_v36 = vld [vmem:[#allocation5 + $0x1b8] sm:$0xff]  ;;  %v2872_v19 = vld [vmem:[#allocation5 + $0x1c8] sm:$0xff] }
 0x3dc   : > { %945 = vmin.xlane.f32.xlu1 %v944_v11  ;;  %v929_v39 = vsel %vm928_vm13, %v924_v49, inf  ;;  %6969 = vmatprep.subr.bf16.mxu1 %v6968_v4  ;;  %v7032_v49 = vpack.c.bf16 %v2870_v36, %v2869_v34  ;;  %v8630_v11 = vld [vmem:[%s7954_s13 + $0x30] sm:$0xff]  ;;  %v3325_v30 = vld [vmem:[#allocation5 + $0x248] sm:$0xff]  ;;  %v3327_v34 = vld [vmem:[#allocation5 + $0x258] sm:$0xff] }
 0x3dd   : > { %930 = vmin.xlane.f32.xlu0 %v929_v39  ;;  %v8603_v23 = vpop.xlane.xlu1 %971  ;;  %6971 = vmatpush3.bf16.msra.mxu1 %v6968_v4  ;;  %v984_v60 = vcvt.s32.f32 %v982_v42  ;;  %v7036_v39 = vpack.c.bf16 %v2872_v19, %v2871_v37  ;;  %v7040_v4 = vpack.c.bf16 %v2874_v9, %v2873_v5  ;;  %v2876_v42 = vld [vmem:[#allocation5 + $0x1e8] sm:$0xff]  ;;  %v3328_v37 = vld [vmem:[#allocation5 + $0x260] sm:$0xff]  ;;  %v3331_v5 = vld [vmem:[#allocation5 + $0x278] sm:$0xff] }
 0x3de   : > { %v8606_v17 = vpop.xlane.xlu0 %956  ;;  %vm973_vm14 = vcmp.eq.f32.partialorder %v8470_v52, %v8603_v23  ;;  %6973 = vmatprep.subr.bf16.mxu1 %v6972_v26 }
 0x3df   : > { %v974_v10 = vsel %vm973_vm14, %v969_v59, inf  ;;  %vm958_vm15 = vcmp.eq.f32.partialorder %v8475_v44, %v8606_v17  ;;  %v8634_v59 = vld [vmem:[%s7954_s13 + $0x38] sm:$0xff] }
 0x3e0   : > { %975 = vmin.xlane.f32.xlu1 %v974_v10  ;;  %v959_v54 = vsel %vm958_vm15, %v954_v2, inf  ;;  %v2875_v2 = vld [vmem:[#allocation5 + $0x1e0] sm:$0xff]  ;;  %v8642_v10 = vld [vmem:[%s7954_s13 + $0x48] sm:$0xff] }
 0x3e1   : > { %960 = vmin.xlane.f32.xlu0 %v959_v54  ;;  %v8613_v18 = vpop.xlane.xlu1 %1001  ;;  %6975 = vmatpush3.bf16.msra.mxu1 %v6972_v26  ;;  %v8646_v54 = vld [vmem:[%s7954_s13 + $0x50] sm:$0xff]  ;;  %v7044_v25 = vpack.c.bf16 %v2876_v42, %v2875_v2  ;;  %v8650_v26 = vld [vmem:[%s7954_s13 + $0x58] sm:$0xff]  ;;  %v3770_v2 = vld [vmem:[#allocation5 + $0x288] sm:$0xff] }
 0x3e2   : > { %v8615_v61 = vpop.xlane.xlu0 %986  ;;  %vm1003_vm1 = vcmp.eq.f32.partialorder %v8488_v16, %v8613_v18  ;;  %6977 = vmatprep.subr.bf16.mxu1 %v6976_v6  ;;  %v2424_v16 = vld [vmem:[#allocation5 + $0x170] sm:$0xff] }
 0x3e3   : > { %v1004_v52 = vsel %vm1003_vm1, %v999_v7, inf  ;;  %vm988_vm2 = vcmp.eq.f32.partialorder %v8490_v1, %v8615_v61  ;;  %v6984_v51 = vpack.c.bf16 %v2425_v41, %v2424_v16  ;;  %v2863_v1 = vld [vmem:[#allocation5 + $0x180] sm:$0xff]  ;;  %v2878_v7 = vld [vmem:[#allocation5 + $0x1f8] sm:$0xff] }
 0x3e4   : > { %1005 = vmin.xlane.f32.xlu1 %v1004_v52  ;;  %v989_v44 = vsel %vm988_vm2, %v984_v60, inf  ;;  %v7020_v55 = vpack.c.bf16 %v2864_v53, %v2863_v1  ;;  %v8654_v60 = vld [vmem:[%s7954_s13 + $0x60] sm:$0xff]  ;;  %v7048_v52 = vpack.c.bf16 %v2878_v7, %v2877_v45  ;;  %v8666_v16 = vld [vmem:[%s7954_s13 + $0x78] sm:$0xff]  ;;  %v3321_v1 = vld [vmem:[#allocation5 + $0x228] sm:$0xff] }
 0x3e5   : > { %990 = vmin.xlane.f32.xlu0 %v989_v44  ;;  %6979 = vmatpush3.bf16.msra.mxu1 %v6976_v6  ;;  %v3316_v44 = vld [vmem:[#allocation5 + $0x200] sm:$0xff]  ;;  %v8662_v6 = vld [vmem:[%s7954_s13 + $0x70] sm:$0xff]  ;;  %v3772_v45 = vld [vmem:[#allocation5 + $0x298] sm:$0xff] }
 0x3e6   : > { %6981 = vmatprep.subr.bf16.mxu1 %v6980_v43  ;;  %v7084_v15 = vpack.c.bf16 %v3317_v27, %v3316_v44  ;;  %v3774_v44 = vld [vmem:[#allocation5 + $0x2a8] sm:$0xff] }
 0x3e9   : > { %6983 = vmatpush3.bf16.msra.mxu1 %v6980_v43  ;;  %v3319_v43 = vld [vmem:[#allocation5 + $0x218] sm:$0xff] }
 0x3ea   : > { %6985 = vmatprep.subr.bf16.mxu1 %v6984_v51  ;;  %v7088_v41 = vpack.c.bf16 %v3319_v43, %v3318_v12  ;;  %v3776_v12 = vld [vmem:[#allocation5 + $0x2b8] sm:$0xff] }
 0x3ed   : > { %6987 = vmatpush3.bf16.msra.mxu1 %v6984_v51  ;;  %v3320_v51 = vld [vmem:[#allocation5 + $0x220] sm:$0xff] }
 0x3ee   : > { %7021 = vmatprep.subr.bf16.mxu1 %v7020_v55  ;;  %v7092_v53 = vpack.c.bf16 %v3321_v1, %v3320_v51  ;;  %v3778_v51 = vld [vmem:[#allocation5 + $0x2c8] sm:$0xff] }
 0x3f0   : > { %6157 = vmatmul.mubr.f32.vlgmr.msra.gmra.mrb[32].mxu1 %v8514_v24 }
 0x3f1   : > { %7023 = vmatpush3.bf16.msra.mxu1 %v7020_v55  ;;  %6159 = vmatprep.mubr.f32.mxu1 %v8518_v20  ;;  %v3322_v55 = vld [vmem:[#allocation5 + $0x230] sm:$0xff] }
 0x3f2   : > { %7025 = vmatprep.subr.bf16.mxu1 %v7024_v3  ;;  %v7096_v8 = vpack.c.bf16 %v3323_v63, %v3322_v55  ;;  %v3780_v55 = vld [vmem:[#allocation5 + $0x2d8] sm:$0xff] }
 0x3f4   : > { %6160 = vmatmul.mubr.f32.gmra.mrb[34].mxu1 %v8522_v40 }
 0x3f5   : > { %7027 = vmatpush3.bf16.msra.mxu1 %v7024_v3  ;;  %6162 = vmatprep.mubr.f32.mxu1 %v8526_v50  ;;  %v3324_v3 = vld [vmem:[#allocation5 + $0x240] sm:$0xff] }
 0x3f6   : > { %7029 = vmatprep.subr.bf16.mxu1 %v7028_v32  ;;  %v7100_v31 = vpack.c.bf16 %v3325_v30, %v3324_v3  ;;  %v3782_v3 = vld [vmem:[#allocation5 + $0x2e8] sm:$0xff] }
 0x3f8   : > { %6163 = vmatmul.mubr.f32.gmra.mrb[36].mxu1 %v8626_v48 }
 0x3f9   : > { %7031 = vmatpush3.bf16.msra.mxu1 %v7028_v32  ;;  %6165 = vmatprep.mubr.f32.mxu1 %v8630_v11  ;;  %v3326_v32 = vld [vmem:[#allocation5 + $0x250] sm:$0xff] }
 0x3fa   : > { %7033 = vmatprep.subr.bf16.mxu1 %v7032_v49  ;;  %v7104_v36 = vpack.c.bf16 %v3327_v34, %v3326_v32  ;;  %v3784_v32 = vld [vmem:[#allocation5 + $0x2f8] sm:$0xff] }
 0x3fc   : > { %6166 = vmatmul.mubr.f32.gmra.mrb[38].mxu1 %v8634_v59 }
 0x3fd   : > { %7035 = vmatpush3.bf16.msra.mxu1 %v7032_v49  ;;  %6168 = vmatprep.mubr.f32.mxu1 %v8638_v14  ;;  %v3329_v49 = vld [vmem:[#allocation5 + $0x268] sm:$0xff] }
 0x3fe   : > { %7037 = vmatprep.subr.bf16.mxu1 %v7036_v39  ;;  %v7108_v19 = vpack.c.bf16 %v3329_v49, %v3328_v37  ;;  %v4223_v37 = vld [vmem:[#allocation5 + $0x308] sm:$0xff] }
 0x400   : > { %6169 = vmatmul.mubr.f32.gmra.mrb[40].mxu1 %v8642_v10 }
 0x401   : > { %7039 = vmatpush3.bf16.msra.mxu1 %v7036_v39  ;;  %6171 = vmatprep.mubr.f32.mxu1 %v8646_v54  ;;  %v3330_v39 = vld [vmem:[#allocation5 + $0x270] sm:$0xff] }
 0x402   : > { %7041 = vmatprep.subr.bf16.mxu1 %v7040_v4  ;;  %v7112_v9 = vpack.c.bf16 %v3331_v5, %v3330_v39  ;;  %v4224_v39 = vld [vmem:[#allocation5 + $0x310] sm:$0xff]  ;;  %v4225_v5 = vld [vmem:[#allocation5 + $0x318] sm:$0xff] }
 0x404   : > { %6172 = vmatmul.mubr.f32.gmra.mrb[42].mxu1 %v8650_v26 }
 0x405   : > { %7043 = vmatpush3.bf16.msra.mxu1 %v7040_v4  ;;  %6174 = vmatprep.mubr.f32.mxu1 %v8654_v60  ;;  %v3769_v4 = vld [vmem:[#allocation5 + $0x280] sm:$0xff] }
 0x406   : > { %7045 = vmatprep.subr.bf16.mxu1 %v7044_v25  ;;  %v7148_v42 = vpack.c.bf16 %v3770_v2, %v3769_v4  ;;  %v7216_v4 = vpack.c.bf16 %v4225_v5, %v4224_v39 }
 0x408   : > { %6175 = vmatmul.mubr.f32.gmra.mrb[44].mxu1 %v8658_v28 }
 0x409   : > { %7047 = vmatpush3.bf16.msra.mxu1 %v7044_v25  ;;  %6177 = vmatprep.mubr.f32.mxu1 %v8662_v6  ;;  %v3771_v25 = vld [vmem:[#allocation5 + $0x290] sm:$0xff] }
 0x40a   : > { %7049 = vmatprep.subr.bf16.mxu1 %v7048_v52  ;;  %v7152_v7 = vpack.c.bf16 %v3772_v45, %v3771_v25  ;;  %v4226_v45 = vld [vmem:[#allocation5 + $0x320] sm:$0xff] }
 0x40c   : > { %6178 = vmatmul.mubr.f32.gmra.mrb[46].mxu1 %v8666_v16 }
 0x40d   : > { %7051 = vmatpush3.bf16.msra.mxu1 %v7048_v52  ;;  %6268 = vmatprep.mubr.f32.mxu1 %v8510_v0  ;;  %v3773_v52 = vld [vmem:[#allocation5 + $0x2a0] sm:$0xff] }
 0x40e   : > { %7085 = vmatprep.subr.bf16.mxu1 %v7084_v15  ;;  %v7156_v27 = vpack.c.bf16 %v3774_v44, %v3773_v52  ;;  %v783_v52 = vcvt.f32.s32 %v8550_v35  ;;  %v4229_v35 = vld [vmem:[#allocation5 + $0x338] sm:$0xff] }
 0x410   : > { %6269 = vmatmul.mubr.f32.vlgmr.msra.gmra.mrb[48].mxu1 %v8514_v24 }
 0x411   : > { %7087 = vmatpush3.bf16.msra.mxu1 %v7084_v15  ;;  %6271 = vmatprep.mubr.f32.mxu1 %v8518_v20  ;;  %v3775_v15 = vld [vmem:[#allocation5 + $0x2b0] sm:$0xff] }
 0x412   : > { %7089 = vmatprep.subr.bf16.mxu1 %v7088_v41  ;;  %v7160_v43 = vpack.c.bf16 %v3776_v12, %v3775_v15  ;;  %v813_v15 = vcvt.f32.s32 %v8558_v47 }
 0x414   : > { %6272 = vmatmul.mubr.f32.gmra.mrb[50].mxu1 %v8522_v40 }
 0x415   : > { %7091 = vmatpush3.bf16.msra.mxu1 %v7088_v41  ;;  %6274 = vmatprep.mubr.f32.mxu1 %v8526_v50  ;;  %v3777_v41 = vld [vmem:[#allocation5 + $0x2c0] sm:$0xff] }
 0x416   : > { %7093 = vmatprep.subr.bf16.mxu1 %v7092_v53  ;;  %v7164_v1 = vpack.c.bf16 %v3778_v51, %v3777_v41  ;;  %v784_v41 = vshll.u32 %v783_v52, 16  ;;  %v11075_v51 = vld [vmem:[#allocation12_spill] sm:$0xff] }
 0x418   : > { %6275 = vmatmul.mubr.f32.gmra.mrb[52].mxu1 %v8626_v48 }
 0x419   : > { %7095 = vmatpush3.bf16.msra.mxu1 %v7092_v53  ;;  %6277 = vmatprep.mubr.f32.mxu1 %v8630_v11  ;;  %v3779_v53 = vld [vmem:[#allocation5 + $0x2d0] sm:$0xff] }
 0x41a   : > { %7097 = vmatprep.subr.bf16.mxu1 %v7096_v8  ;;  %v7168_v63 = vpack.c.bf16 %v3780_v55, %v3779_v53 }
 0x41c   : > { %6278 = vmatmul.mubr.f32.gmra.mrb[54].mxu1 %v8634_v59 }
 0x41d   : > { %7099 = vmatpush3.bf16.msra.mxu1 %v7096_v8  ;;  %6280 = vmatprep.mubr.f32.mxu1 %v8638_v14  ;;  %v3781_v8 = vld [vmem:[#allocation5 + $0x2e0] sm:$0xff] }
 0x41e   : > { %7101 = vmatprep.subr.bf16.mxu1 %v7100_v31  ;;  %v7172_v30 = vpack.c.bf16 %v3782_v3, %v3781_v8  ;;  %v858_v8 = vcvt.f32.s32 %v8563_v21 }
 0x420   : > { %6281 = vmatmul.mubr.f32.gmra.mrb[56].mxu1 %v8642_v10  ;;  %v859_v5 = vshll.u32 %v858_v8, 16  ;;  %v11086_v8 = vld [vmem:[#allocation17_spill] sm:$0xff] }
 0x421   : > { %7103 = vmatpush3.bf16.msra.mxu1 %v7100_v31  ;;  %6283 = vmatprep.mubr.f32.mxu1 %v8646_v54  ;;  %v3783_v31 = vld [vmem:[#allocation5 + $0x2f0] sm:$0xff] }
 0x422   : > { %7105 = vmatprep.subr.bf16.mxu1 %v7104_v36  ;;  %v7176_v34 = vpack.c.bf16 %v3784_v32, %v3783_v31  ;;  %v843_v31 = vcvt.f32.s32 %v8566_v46 }
 0x424   : > { %6284 = vmatmul.mubr.f32.gmra.mrb[58].mxu1 %v8650_v26 }
 0x425   : > { %7107 = vmatpush3.bf16.msra.mxu1 %v7104_v36  ;;  %6286 = vmatprep.mubr.f32.mxu1 %v8654_v60  ;;  %v4222_v36 = vld [vmem:[#allocation5 + $0x300] sm:$0xff] }
 0x426   : > { %7109 = vmatprep.subr.bf16.mxu1 %v7108_v19  ;;  %v7212_v49 = vpack.c.bf16 %v4223_v37, %v4222_v36  ;;  %v11079_v36 = vld [vmem:[#allocation14_spill] sm:$0xff] }
 0x428   : > { %6287 = vmatmul.mubr.f32.gmra.mrb[60].mxu1 %v8658_v28 }
 0x429   : > { %7111 = vmatpush3.bf16.msra.mxu1 %v7108_v19  ;;  %6289 = vmatprep.mubr.f32.mxu1 %v8662_v6  ;;  %v798_v19 = vcvt.f32.s32 %v8539_v57 }
 0x42a   : > { %7113 = vmatprep.subr.bf16.mxu1 %v7112_v9 }
 0x42b   : > { %v799_v2 = vshll.u32 %v798_v19, 16 }
 0x42c   : > { %6290 = vmatmul.mubr.f32.gmra.mrb[62].mxu1 %v8666_v16 }
 0x42d   : > { %7115 = vmatpush3.bf16.msra.mxu1 %v7112_v9  ;;  %6380 = vmatprep.mubr.f32.mxu1 %v8510_v0 }
 0x42e   : > { %7149 = vmatprep.subr.bf16.mxu1 %v7148_v42 }
 0x430   : > { %6381 = vmatmul.mubr.f32.vlgmr.msra.gmra.mrb[64].mxu1 %v8514_v24 }
 0x431   : > { %7151 = vmatpush3.bf16.msra.mxu1 %v7148_v42  ;;  %6383 = vmatprep.mubr.f32.mxu1 %v8518_v20  ;;  %v828_v42 = vcvt.f32.s32 %v8547_v33 }
 0x432   : > { %7153 = vmatprep.subr.bf16.mxu1 %v7152_v7 }
 0x434   : > { %6384 = vmatmul.mubr.f32.gmra.mrb[66].mxu1 %v8522_v40 }
 0x435   : > { %7155 = vmatpush3.bf16.msra.mxu1 %v7152_v7  ;;  %6386 = vmatprep.mubr.f32.mxu1 %v8526_v50  ;;  %v4227_v7 = vld [vmem:[#allocation5 + $0x328] sm:$0xff] }
 0x436   : > { %7157 = vmatprep.subr.bf16.mxu1 %v7156_v27 }
 0x438   : > { %6387 = vmatmul.mubr.f32.gmra.mrb[68].mxu1 %v8626_v48 }
 0x439   : > { %7159 = vmatpush3.bf16.msra.mxu1 %v7156_v27  ;;  %6389 = vmatprep.mubr.f32.mxu1 %v8630_v11  ;;  %v829_v27 = vshll.u32 %v828_v42, 16  ;;  %v4232_v42 = vld [vmem:[#allocation5 + $0x350] sm:$0xff] }
 0x43a   : > { %7161 = vmatprep.subr.bf16.mxu1 %v7160_v43 }
 0x43c   : > { %6390 = vmatmul.mubr.f32.gmra.mrb[70].mxu1 %v8634_v59 }
 0x43d   : > { %7163 = vmatpush3.bf16.msra.mxu1 %v7160_v43  ;;  %6392 = vmatprep.mubr.f32.mxu1 %v8638_v14  ;;  %v4228_v43 = vld [vmem:[#allocation5 + $0x330] sm:$0xff] }
 0x43e   : > { %7165 = vmatprep.subr.bf16.mxu1 %v7164_v1  ;;  %v7224_v55 = vpack.c.bf16 %v4229_v35, %v4228_v43  ;;  %v903_v35 = vcvt.f32.s32 %v8586_v29 }
 0x440   : > { %6393 = vmatmul.mubr.f32.gmra.mrb[72].mxu1 %v8642_v10 }
 0x441   : > { %7167 = vmatpush3.bf16.msra.mxu1 %v7164_v1  ;;  %6395 = vmatprep.mubr.f32.mxu1 %v8646_v54 }
 0x442   : > { %7169 = vmatprep.subr.bf16.mxu1 %v7168_v63 }
 0x444   : > { %6396 = vmatmul.mubr.f32.gmra.mrb[74].mxu1 %v8650_v26 }
 0x445   : > { %7171 = vmatpush3.bf16.msra.mxu1 %v7168_v63  ;;  %6398 = vmatprep.mubr.f32.mxu1 %v8654_v60  ;;  %v814_v63 = vshll.u32 %v813_v15, 16 }
 0x446   : > { %7173 = vmatprep.subr.bf16.mxu1 %v7172_v30 }
 0x448   : > { %6399 = vmatmul.mubr.f32.gmra.mrb[76].mxu1 %v8658_v28 }
 0x449   : > { %7175 = vmatpush3.bf16.msra.mxu1 %v7172_v30  ;;  %6401 = vmatprep.mubr.f32.mxu1 %v8662_v6  ;;  %v4231_v30 = vld [vmem:[#allocation5 + $0x348] sm:$0xff] }
 0x44a   : > { %7177 = vmatprep.subr.bf16.mxu1 %v7176_v34 }
 0x44c   : > { %6402 = vmatmul.mubr.f32.gmra.mrb[78].mxu1 %v8666_v16 }
 0x44d   : > { %7179 = vmatpush3.bf16.msra.mxu1 %v7176_v34  ;;  %6492 = vmatprep.mubr.f32.mxu1 %v8510_v0  ;;  %v7220_v0 = vpack.c.bf16 %v4227_v7, %v4226_v45  ;;  %v11078_v34 = vld [vmem:[#allocation13_spill] sm:$0xff]  ;;  %v844_v45 = vshll.u32 %v843_v31, 16  ;;  %v873_v7 = vcvt.f32.s32 %v8576_v13 }
 0x44e   : > { %7213 = vmatprep.subr.bf16.mxu1 %v7212_v49 }
 0x450   : > { %6493 = vmatmul.mubr.f32.vlgmr.msra.gmra.mrb[80].mxu1 %v8514_v24 }
 0x451   : > { %v796_v9 = vpop.xlane.xlu1 %795  ;;  %7215 = vmatpush3.bf16.msra.mxu1 %v7212_v49  ;;  %6495 = vmatprep.mubr.f32.mxu1 %v8518_v20 }
 0x452   : > { %v797_v25 = vcvt.f32.s32 %v796_v9  ;;  %7217 = vmatprep.subr.bf16.mxu1 %v7216_v4  ;;  %v888_v9 = vcvt.f32.s32 %v8573_v22 }
 0x454   : > { %v8706_v57 = vadd.s32 %v799_v2, %v797_v25  ;;  %6496 = vmatmul.mubr.f32.gmra.mrb[82].mxu1 %v8522_v40  ;;  %v4230_v40 = vld [vmem:[#allocation5 + $0x340] sm:$0xff]  ;;  %v4233_v25 = vld [vmem:[#allocation5 + $0x358] sm:$0xff]  ;;  %v889_v43 = vshll.u32 %v888_v9, 16 }
 0x455   : > { %v826_v44 = vpop.xlane.xlu1 %825  ;;  %7219 = vmatpush3.bf16.msra.mxu1 %v7216_v4  ;;  %6498 = vmatprep.mubr.f32.mxu1 %v8526_v50  ;;  %v7228_v39 = vpack.c.bf16 %v4231_v30, %v4230_v40 }
 0x456   : > { %11074 = vst [vmem:[#allocation45_spill] sm:$0xff] %v8706_v57  ;;  %v827_v12 = vcvt.f32.s32 %v826_v44  ;;  %v781_v33 = vpop.xlane.xlu0 %780  ;;  %vm1012_vm3 = vcmp.eq.s32.totalorder %v8300_v62, %v8706_v57  ;;  %7221 = vmatprep.subr.bf16.mxu1 %v7220_v0  ;;  %v4864_v57 = vld [vmem:[#allocation7 + $0x398] sm:$0xff] }
 0x457   : > { %v782_v24 = vcvt.f32.s32 %v781_v33  ;;  %v8716_v20 = vsel %vm1012_vm3, -inf, %v11075_v51  ;;  %v7232_v33 = vpack.c.bf16 %v4233_v25, %v4232_v42  ;;  %v874_v51 = vshll.u32 %v873_v7, 16  ;;  %v4234_v25 = vld [vmem:[#allocation5 + $0x360] sm:$0xff] }
 0x458   : > { %v8719_v1 = vadd.s32 %v829_v27, %v827_v12  ;;  %v1094_v47 = vsel %vm512_vm0, %v8716_v20, -inf  ;;  %6499 = vmatmul.mubr.f32.gmra.mrb[84].mxu1 %v8626_v48  ;;  %v918_v27 = vcvt.f32.s32 %v8583_v56  ;;  %v11084_v56 = vld [vmem:[#allocation16_spill] sm:$0xff] }
 0x459   : > { %v8724_v53 = vadd.s32 %v784_v41, %v782_v24  ;;  %1095 = vmax.xlane.f32.xlu1 %v1094_v47  ;;  %7223 = vmatpush3.bf16.msra.mxu1 %v7220_v0  ;;  %v11082_v0 = vld [vmem:[#allocation15_spill] sm:$0xff] }
 0x45a   : > { %11076 = vst [vmem:[#allocation12_spill] sm:$0xff] %v8719_v1  ;;  %v811_v3 = vpop.xlane.xlu0 %810  ;;  %vm1014_vm4 = vcmp.eq.s32.totalorder %v8300_v62, %v8719_v1  ;;  %6501 = vmatprep.mubr.f32.mxu1 %v8630_v11  ;;  %7225 = vmatprep.subr.bf16.mxu1 %v7224_v55  ;;  %v919_v40 = vshll.u32 %v918_v27, 16 }
 0x45b   : > { %11077 = vst [vmem:[#allocation46_spill] sm:$0xff] %v8724_v53  ;;  %v812_v32 = vcvt.f32.s32 %v811_v3  ;;  %v8734_v50 = vsel %vm1014_vm4, -inf, %v11078_v34  ;;  %vm1011_vm5 = vcmp.eq.s32.totalorder %v8300_v62, %v8724_v53  ;;  %v904_v34 = vshll.u32 %v903_v35, 16  ;;  %v1692_v35 = vld [vmem:[#allocation7 + $0x8] sm:$0xff] }
 0x45c   : > { %v1100_v21 = vsel %vm512_vm0, %v8734_v50, -inf  ;;  %v8745_v46 = vsel %vm1011_vm5, -inf, %v11079_v36  ;;  %6502 = vmatmul.mubr.f32.gmra.mrb[86].mxu1 %v8634_v59 }
 0x45d   : > { %v8748_v37 = vadd.s32 %v814_v63, %v812_v32  ;;  %1101 = vmax.xlane.f32.xlu1 %v1100_v21  ;;  %v856_v49 = vpop.xlane.xlu1 %855  ;;  %v1091_v19 = vsel %vm512_vm0, %v8745_v46, -inf  ;;  %7227 = vmatpush3.bf16.msra.mxu1 %v7224_v55  ;;  %v948_v21 = vcvt.f32.s32 %v8593_v58  ;;  %v978_v58 = vcvt.f32.s32 %v8603_v23 }
 0x45e   : > { %v857_v4 = vcvt.f32.s32 %v856_v49  ;;  %1092 = vmax.xlane.f32.xlu0 %v1091_v19  ;;  %v841_v2 = vpop.xlane.xlu0 %840  ;;  %6504 = vmatprep.mubr.f32.mxu1 %v8638_v14  ;;  %v933_v19 = vcvt.f32.s32 %v8596_v38  ;;  %v11090_v38 = vld [vmem:[#allocation19_spill] sm:$0xff] }
 0x45f   : > { %11080 = vst [vmem:[#allocation13_spill] sm:$0xff] %v8748_v37  ;;  %v842_v52 = vcvt.f32.s32 %v841_v2  ;;  %vm1013_vm6 = vcmp.eq.s32.totalorder %v8300_v62, %v8748_v37  ;;  %7229 = vmatprep.subr.bf16.mxu1 %v7228_v39  ;;  %v949_v27 = vshll.u32 %v948_v21, 16  ;;  %v3964_v37 = vld [vmem:[#allocation7 + $0x2c8] sm:$0xff] }
 0x460   : > { %v8757_v44 = vadd.s32 %v859_v5, %v857_v4  ;;  %v8763_v22 = vsel %vm1013_vm6, -inf, %v11082_v0  ;;  %6505 = vmatmul.mubr.f32.gmra.mrb[88].mxu1 %v8642_v10  ;;  %v11088_v5 = vld [vmem:[#allocation18_spill] sm:$0xff] }
 0x461   : > { %v8767_v13 = vadd.s32 %v844_v45, %v842_v52  ;;  %v886_v15 = vpop.xlane.xlu1 %885  ;;  %v1097_v12 = vsel %vm512_vm0, %v8763_v22, -inf  ;;  %7231 = vmatpush3.bf16.msra.mxu1 %v7228_v39  ;;  %6507 = vmatprep.mubr.f32.mxu1 %v8646_v54  ;;  %v4235_v45 = vld [vmem:[#allocation5 + $0x368] sm:$0xff] }
 0x462   : > { %11081 = vst [vmem:[#allocation14_spill] sm:$0xff] %v8757_v44  ;;  %v887_v41 = vcvt.f32.s32 %v886_v15  ;;  %1098 = vmax.xlane.f32.xlu0 %v1097_v12  ;;  %v871_v24 = vpop.xlane.xlu0 %870  ;;  %vm1016_vm7 = vcmp.eq.s32.totalorder %v8300_v62, %v8757_v44  ;;  %7233 = vmatprep.subr.bf16.mxu1 %v7232_v33  ;;  %v7236_v0 = vpack.c.bf16 %v4235_v45, %v4234_v25  ;;  %v963_v15 = vcvt.f32.s32 %v8606_v17  ;;  %v1694_v25 = vld [vmem:[#allocation7 + $0x18] sm:$0xff] }
 0x463   : > { %11083 = vst [vmem:[#allocation15_spill] sm:$0xff] %v8767_v13  ;;  %v872_v47 = vcvt.f32.s32 %v871_v24  ;;  %v8778_v55 = vsel %vm1016_vm7, -inf, %v11084_v56  ;;  %vm1015_vm8 = vcmp.eq.s32.totalorder %v8300_v62, %v8767_v13  ;;  %v979_v17 = vshll.u32 %v978_v58, 16 }
 0x464   : > { %v8783_v29 = vadd.s32 %v889_v43, %v887_v41  ;;  %v1106_v63 = vsel %vm512_vm0, %v8778_v55, -inf  ;;  %v8791_v3 = vsel %vm1015_vm8, -inf, %v11086_v8  ;;  %6508 = vmatmul.mubr.f32.gmra.mrb[90].mxu1 %v8650_v26  ;;  %v934_v41 = vshll.u32 %v933_v19, 16  ;;  %v11094_v8 = vld [vmem:[#allocation21_spill] sm:$0xff] }
 0x465   : > { %v8794_v30 = vadd.s32 %v874_v51, %v872_v47  ;;  %1107 = vmax.xlane.f32.xlu1 %v1106_v63  ;;  %v916_v31 = vpop.xlane.xlu1 %915  ;;  %v1103_v32 = vsel %vm512_vm0, %v8791_v3, -inf  ;;  %7235 = vmatpush3.bf16.msra.mxu1 %v7232_v33  ;;  %v1691_v33 = vld [vmem:[#allocation7] sm:$0xff]  ;;  %v993_v45 = vcvt.f32.s32 %v8615_v61 }
 0x466   : > { %11085 = vst [vmem:[#allocation16_spill] sm:$0xff] %v8783_v29  ;;  %v917_v36 = vcvt.f32.s32 %v916_v31  ;;  %1104 = vmax.xlane.f32.xlu0 %v1103_v32  ;;  %v901_v49 = vpop.xlane.xlu0 %900  ;;  %vm1018_vm9 = vcmp.eq.s32.totalorder %v8300_v62, %v8783_v29  ;;  %6510 = vmatprep.mubr.f32.mxu1 %v8654_v60  ;;  %v11092_v51 = vld [vmem:[#allocation20_spill] sm:$0xff]  ;;  %v4236_v31 = vld [vmem:[#allocation5 + $0x370] sm:$0xff]  ;;  %v4237_v32 = vld [vmem:[#allocation5 + $0x378] sm:$0xff] }
 0x467   : > { %11087 = vst [vmem:[#allocation17_spill] sm:$0xff] %v8794_v30  ;;  %v902_v39 = vcvt.f32.s32 %v901_v49  ;;  %v8806_v9 = vsel %vm1018_vm9, -inf, %v11088_v5  ;;  %vm1017_vm10 = vcmp.eq.s32.totalorder %v8300_v62, %v8794_v30  ;;  %7237 = vmatprep.subr.bf16.mxu1 %v7236_v0  ;;  %v6860_v49 = vpack.c.bf16 %v1692_v35, %v1691_v33 }
 0x468   : > { %v8812_v4 = vadd.s32 %v919_v40, %v917_v36  ;;  %v1112_v2 = vsel %vm512_vm0, %v8806_v9, -inf  ;;  %v8820_v42 = vsel %vm1017_vm10, -inf, %v11090_v38  ;;  %6511 = vmatmul.mubr.f32.gmra.mrb[92].mxu1 %v8658_v28  ;;  %v7240_v19 = vpack.c.bf16 %v4237_v32, %v4236_v31  ;;  %v1693_v38 = vld [vmem:[#allocation7 + $0x10] sm:$0xff]  ;;  %v8884_v31 = vld [vmem:[%s7954_s13] sm:$0xff] }
 0x469   : > { %v8823_v7 = vadd.s32 %v904_v34, %v902_v39  ;;  %1113 = vmax.xlane.f32.xlu1 %v1112_v2  ;;  %v946_v23 = vpop.xlane.xlu1 %945  ;;  %v1109_v52 = vsel %vm512_vm0, %v8820_v42, -inf  ;;  %7239 = vmatpush3.bf16.msra.mxu1 %v7236_v0  ;;  %v964_v39 = vshll.u32 %v963_v15, 16  ;;  %v1008_v5 = vcvt.f32.s32 %v8613_v18  ;;  %v11098_v15 = vld [vmem:[#allocation23_spill] sm:$0xff]  ;;  %v1695_v32 = vld [vmem:[#allocation7 + $0x20] sm:$0xff] }
 0x46a   : > { %11089 = vst [vmem:[#allocation18_spill] sm:$0xff] %v8812_v4  ;;  %v947_v12 = vcvt.f32.s32 %v946_v23  ;;  %1110 = vmax.xlane.f32.xlu0 %v1109_v52  ;;  %v931_v43 = vpop.xlane.xlu0 %930  ;;  %vm11027_vm11 = vcmp.eq.s32.totalorder %v8300_v62, %v8812_v4  ;;  %6513 = vmatprep.mubr.f32.mxu1 %v8662_v6  ;;  %v11096_v52 = vld [vmem:[#allocation22_spill] sm:$0xff] }
 0x46b   : > { %11091 = vst [vmem:[#allocation19_spill] sm:$0xff] %v8823_v7  ;;  %v932_v24 = vcvt.f32.s32 %v931_v43  ;;  %v8834_v47 = vsel %vm11027_vm11, -inf, %v11092_v51  ;;  %vm11026_vm12 = vcmp.eq.s32.totalorder %v8300_v62, %v8823_v7  ;;  %6861 = vmatprep.subr.bf16.mxu0 %v6860_v49  ;;  %7241 = vmatprep.subr.bf16.mxu1 %v7240_v19  ;;  %v4676_v43 = vld [vmem:[#allocation5 + $0x388] sm:$0xff] }
 0x46c   : > { %v8839_v56 = vadd.s32 %v949_v27, %v947_v12  ;;  %v1118_v63 = vsel %vm512_vm0, %v8834_v47, -inf  ;;  %v8847_v40 = vsel %vm11026_vm12, -inf, %v11094_v8  ;;  %6514 = vmatmul.mubr.f32.gmra.mrb[94].mxu1 %v8666_v16  ;;  %6863 = vmatpush3.bf16.msra.mxu0 %v6860_v49  ;;  %v4675_v12 = vld [vmem:[#allocation5 + $0x380] sm:$0xff] }
 0x46d   : > { %v8850_v34 = vadd.s32 %v934_v41, %v932_v24  ;;  %1119 = vmax.xlane.f32.xlu1 %v1118_v63  ;;  %v976_v21 = vpop.xlane.xlu1 %975  ;;  %v1115_v36 = vsel %vm512_vm0, %v8847_v40, -inf  ;;  %7243 = vmatpush3.bf16.msra.mxu1 %v7240_v19  ;;  %v6864_v24 = vpack.c.bf16 %v1694_v25, %v1693_v38  ;;  %v7276_v51 = vpack.c.bf16 %v4676_v43, %v4675_v12  ;;  %v8906_v25 = vld [vmem:[%s7954_s13 + $0x8] sm:$0xff]  ;;  %v8916_v43 = vld [vmem:[%s7954_s13 + $0x10] sm:$0xff] }
 0x46e   : > { %11093 = vst [vmem:[#allocation20_spill] sm:$0xff] %v8839_v56  ;;  %v977_v58 = vcvt.f32.s32 %v976_v21  ;;  %1116 = vmax.xlane.f32.xlu0 %v1115_v36  ;;  %v961_v2 = vpop.xlane.xlu0 %960  ;;  %vm11025_vm13 = vcmp.eq.s32.totalorder %v8300_v62, %v8839_v56  ;;  %6604 = vmatprep.mubr.f32.mxu1 %v8884_v31  ;;  %v1696_v21 = vld [vmem:[#allocation7 + $0x28] sm:$0xff]  ;;  %v994_v36 = vshll.u32 %v993_v45, 16  ;;  %v4677_v45 = vld [vmem:[#allocation5 + $0x390] sm:$0xff] }
 0x46f   : > { %11095 = vst [vmem:[#allocation21_spill] sm:$0xff] %v8850_v34  ;;  %v962_v23 = vcvt.f32.s32 %v961_v2  ;;  %v8862_v0 = vsel %vm11025_vm13, -inf, %v11096_v52  ;;  %vm11024_vm14 = vcmp.eq.s32.totalorder %v8300_v62, %v8850_v34  ;;  %6865 = vmatprep.subr.bf16.mxu0 %v6864_v24  ;;  %7277 = vmatprep.subr.bf16.mxu1 %v7276_v51  ;;  %v11102_v2 = vld [vmem:[#allocation25_spill] sm:$0xff]  ;;  %v3512_v56 = vld [vmem:[#allocation7 + $0x250] sm:$0xff] }
 0x470   : > { %v8867_v18 = vadd.s32 %v979_v17, %v977_v58  ;;  %v1124_v27 = vsel %vm512_vm0, %v8862_v0, -inf  ;;  %v8875_v61 = vsel %vm11024_vm14, -inf, %v11098_v15  ;;  %v1009_v17 = vshll.u32 %v1008_v5, 16  ;;  %6867 = vmatpush3.bf16.msra.mxu0 %v6864_v24  ;;  %6605 = vmatmul.mubr.f32.vlgmr.msra.gmra.mrb[96].mxu1 %v8906_v25  ;;  %v11104_v24 = vld [vmem:[#allocation26_spill] sm:$0xff] }
 0x471   : > { %v8877_v33 = vadd.s32 %v964_v39, %v962_v23  ;;  %1125 = vmax.xlane.f32.xlu1 %v1124_v27  ;;  %v1006_v35 = vpop.xlane.xlu1 %1005  ;;  %v1121_v41 = vsel %vm512_vm0, %v8875_v61, -inf  ;;  %v11100_v39 = vld [vmem:[#allocation24_spill] sm:$0xff]  ;;  %v4678_v23 = vld [vmem:[#allocation5 + $0x398] sm:$0xff]  ;;  %7279 = vmatpush3.bf16.msra.mxu1 %v7276_v51  ;;  %v6868_v15 = vpack.c.bf16 %v1696_v21, %v1695_v32 }
 0x472   : > { %11097 = vst [vmem:[#allocation22_spill] sm:$0xff] %v8867_v18  ;;  %v1007_v63 = vcvt.f32.s32 %v1006_v35  ;;  %1122 = vmax.xlane.f32.xlu0 %v1121_v41  ;;  %v991_v8 = vpop.xlane.xlu0 %990  ;;  %vm11021_vm15 = vcmp.eq.s32.totalorder %v8300_v62, %v8867_v18  ;;  %v7280_v12 = vpack.c.bf16 %v4678_v23, %v4677_v45  ;;  %6607 = vmatprep.mubr.f32.mxu1 %v8916_v43  ;;  %v1697_v35 = vld [vmem:[#allocation7 + $0x30] sm:$0xff]  ;;  %v1698_v41 = vld [vmem:[#allocation7 + $0x38] sm:$0xff]  ;;  %v1700_v45 = vld [vmem:[#allocation7 + $0x48] sm:$0xff] }
 0x473   : > { %11099 = vst [vmem:[#allocation23_spill] sm:$0xff] %v8877_v33  ;;  %v992_v49 = vcvt.f32.s32 %v991_v8  ;;  %v8891_v19 = vsel %vm11021_vm15, -inf, %v11100_v39  ;;  %vm10966_vm1 = vcmp.eq.s32.totalorder %v8300_v62, %v8877_v33  ;;  %6869 = vmatprep.subr.bf16.mxu0 %v6868_v15  ;;  %v6872_v51 = vpack.c.bf16 %v1698_v41, %v1697_v35  ;;  %v11105_v8 = vld [vmem:[#allocation27_spill] sm:$0xff]  ;;  %v8942_v23 = vld [vmem:[%s7954_s13 + $0x20] sm:$0xff] }
 0x474   : > { %v8895_v5 = vadd.s32 %v1009_v17, %v1007_v63  ;;  %v1130_v58 = vsel %vm512_vm0, %v8891_v19, -inf  ;;  %v8903_v38 = vsel %vm10966_vm1, -inf, %v11102_v2  ;;  %7281 = vmatprep.subr.bf16.mxu1 %v7280_v12  ;;  %6871 = vmatpush3.bf16.msra.mxu0 %v6868_v15  ;;  %v8936_v21 = vld [vmem:[%s7954_s13 + $0x18] sm:$0xff]  ;;  %v1699_v2 = vld [vmem:[#allocation7 + $0x40] sm:$0xff]  ;;  %v4681_v15 = vld [vmem:[#allocation5 + $0x3b0] sm:$0xff] }
 0x475   : > { %v8909_v52 = vadd.s32 %v994_v36, %v992_v49  ;;  %1131 = vmax.xlane.f32.xlu1 %v1130_v58  ;;  %v1127_v27 = vsel %vm512_vm0, %v8903_v38, -inf  ;;  %6608 = vmatmul.mubr.f32.gmra.mrb[98].mxu1 %v8936_v21  ;;  %v4679_v36 = vld [vmem:[#allocation5 + $0x3a0] sm:$0xff]  ;;  %v4680_v49 = vld [vmem:[#allocation5 + $0x3a8] sm:$0xff]  ;;  %v4682_v35 = vld [vmem:[#allocation5 + $0x3b8] sm:$0xff] }
 0x476   : > { %11101 = vst [vmem:[#allocation24_spill] sm:$0xff] %v8895_v5  ;;  %1128 = vmax.xlane.f32.xlu0 %v1127_v27  ;;  %vm10968_vm2 = vcmp.eq.s32.totalorder %v8300_v62, %v8895_v5  ;;  %7283 = vmatpush3.bf16.msra.mxu1 %v7280_v12  ;;  %v7284_v58 = vpack.c.bf16 %v4680_v49, %v4679_v36  ;;  %v1701_v12 = vld [vmem:[#allocation7 + $0x50] sm:$0xff]  ;;  %v4684_v36 = vld [vmem:[#allocation5 + $0x3c8] sm:$0xff] }
 0x477   : > { %11103 = vst [vmem:[#allocation25_spill] sm:$0xff] %v8909_v52  ;;  %v8923_v17 = vsel %vm10968_vm2, -inf, %v11104_v24  ;;  %vm10967_vm1 = vcmp.eq.s32.totalorder %v8300_v62, %v8909_v52  ;;  %6873 = vmatprep.subr.bf16.mxu0 %v6872_v51  ;;  %6610 = vmatprep.mubr.f32.mxu1 %v8942_v23  ;;  %v6876_v27 = vpack.c.bf16 %v1700_v45, %v1699_v2  ;;  %v1702_v24 = vld [vmem:[#allocation7 + $0x58] sm:$0xff]  ;;  %v1704_v49 = vld [vmem:[#allocation7 + $0x68] sm:$0xff]  ;;  %v8953_v45 = vld [vmem:[%s10910_s4] ss:$0 sm:$0xff] }
 0x478   : > { %v1136_v63 = vsel %vm512_vm0, %v8923_v17, -inf  ;;  %v8933_v32 = vsel %vm10967_vm1, -inf, %v11105_v8  ;;  %7285 = vmatprep.subr.bf16.mxu1 %v7284_v58  ;;  %6875 = vmatpush3.bf16.msra.mxu0 %v6872_v51  ;;  %v7288_v41 = vpack.c.bf16 %v4682_v35, %v4681_v15  ;;  %v4683_v8 = vld [vmem:[#allocation5 + $0x3c0] sm:$0xff]  ;;  %v3511_v5 = vld [vmem:[#allocation7 + $0x248] sm:$0xff] }
 0x479   : > { %1137 = vmax.xlane.f32.xlu1 %v1136_v63  ;;  %v1133_v39 = vsel %vm512_vm0, %v8933_v32, -inf  ;;  %6611 = vmatmul.mubr.f32.gmra.mrb[100].mxu1 %v8626_v48  ;;  %v6880_v63 = vpack.c.bf16 %v1702_v24, %v1701_v12  ;;  %v7292_v51 = vpack.c.bf16 %v4684_v36, %v4683_v8  ;;  %v1703_v48 = vld [vmem:[#allocation7 + $0x60] sm:$0xff]  ;;  %v4688_v24 = vld [vmem:[#allocation5 + $0x3e8] sm:$0xff] }
 0x47a   : > { %1134 = vmax.xlane.f32.xlu0 %v1133_v39  ;;  %7287 = vmatpush3.bf16.msra.mxu1 %v7284_v58  ;;  %v6884_v39 = vpack.c.bf16 %v1704_v49, %v1703_v48  ;;  %v4686_v58 = vld [vmem:[#allocation5 + $0x3d8] sm:$0xff]  ;;  %v4687_v12 = vld [vmem:[#allocation5 + $0x3e0] sm:$0xff] }
 0x47b   : > { %6877 = vmatprep.subr.bf16.mxu0 %v6876_v27  ;;  %6613 = vmatprep.mubr.f32.mxu1 %v8630_v11  ;;  %v4685_v11 = vld [vmem:[#allocation5 + $0x3d0] sm:$0xff] }
 0x47c   : > { %7289 = vmatprep.subr.bf16.mxu1 %v7288_v41  ;;  %6879 = vmatpush3.bf16.msra.mxu0 %v6876_v27  ;;  %v7296_v2 = vpack.c.bf16 %v4686_v58, %v4685_v11  ;;  %v1706_v27 = vld [vmem:[#allocation7 + $0x78] sm:$0xff]  ;;  %v4689_v58 = vld [vmem:[#allocation5 + $0x3f0] sm:$0xff] }
 0x47d   : > { %6614 = vmatmul.mubr.f32.gmra.mrb[102].mxu1 %v8634_v59  ;;  %6881 = vmatprep.subr.bf16.mxu0 %v6880_v63  ;;  %v5934_v59 = vpop.f32.mrb[0].mxu1 }
 0x47e   : > { %7291 = vmatpush3.bf16.msra.mxu1 %v7288_v41  ;;  %6616 = vmatprep.mubr.f32.mxu1 %v8638_v14  ;;  %v1705_v14 = vld [vmem:[#allocation7 + $0x70] sm:$0xff]  ;;  %v1602_v15 = vadd.f32 %v5934_v59, %v8953_v45  ;;  %v1596_v35 = vpop.f32.mrb[1].mxu1  ;;  %v4690_v59 = vld [vmem:[#allocation5 + $0x3f8] sm:$0xff] }
 0x47f   : > { %7293 = vmatprep.subr.bf16.mxu1 %v7292_v51  ;;  %v1597_v41 = vadd.f32 %v8953_v45, %v1596_v35  ;;  %v5937_v36 = vpop.f32.mrb[2].mxu1  ;;  %v2145_v35 = vld [vmem:[#allocation7 + $0x90] sm:$0xff] }
 0x480   : > { %6883 = vmatpush3.bf16.msra.mxu0 %v6880_v63  ;;  %v7300_v63 = vpack.c.bf16 %v4688_v24, %v4687_v12  ;;  %v1676_v48 = vmax.f32 %v1602_v15, 0.0  ;;  %v1612_v49 = vadd.f32 %v5937_v36, %v8953_v45  ;;  %v1606_v11 = vpop.f32.mrb[3].mxu1  ;;  %v2147_v36 = vld [vmem:[#allocation7 + $0xa0] sm:$0xff] }
 0x481   : > { %6617 = vmatmul.mubr.f32.gmra.mrb[104].mxu1 %v8642_v10  ;;  %6885 = vmatprep.subr.bf16.mxu0 %v6884_v39  ;;  %v6888_v10 = vpack.c.bf16 %v1706_v27, %v1705_v14  ;;  %v1675_v8 = vmax.f32 %v1597_v41, 0.0  ;;  %v7304_v14 = vpack.c.bf16 %v4690_v59, %v4689_v58  ;;  %v2146_v41 = vld [vmem:[#allocation7 + $0x98] sm:$0xff]  ;;  %v2149_v59 = vld [vmem:[#allocation7 + $0xb0] sm:$0xff] }
 0x482   : > { %7295 = vmatpush3.bf16.msra.mxu1 %v7292_v51  ;;  %6619 = vmatprep.mubr.f32.mxu1 %v8646_v54  ;;  %v2143_v54 = vld [vmem:[#allocation7 + $0x80] sm:$0xff]  ;;  %v2144_v51 = vld [vmem:[#allocation7 + $0x88] sm:$0xff]  ;;  %v1678_v12 = vmax.f32 %v1612_v49, 0.0  ;;  %v6928_v24 = vpack.c.bf16 %v2146_v41, %v2145_v35 }
 0x483   : > { %7297 = vmatprep.subr.bf16.mxu1 %v7296_v2  ;;  %5988 = vmatprep.mubr.f32.mxu0 %v1675_v8  ;;  %v2151_v35 = vld [vmem:[#allocation7 + $0xc0] sm:$0xff]  ;;  %v2152_v41 = vld [vmem:[#allocation7 + $0xc8] sm:$0xff] }
 0x484   : > { %6887 = vmatpush3.bf16.msra.mxu0 %v6884_v39  ;;  %v6924_v39 = vpack.c.bf16 %v2144_v51, %v2143_v54  ;;  %v2148_v54 = vld [vmem:[#allocation7 + $0xa8] sm:$0xff] }
 0x485   : > { %6620 = vmatmul.mubr.f32.gmra.mrb[106].mxu1 %v8650_v26  ;;  %6889 = vmatprep.subr.bf16.mxu0 %v6888_v10  ;;  %v1607_v26 = vadd.f32 %v8953_v45, %v1606_v11  ;;  %v6932_v49 = vpack.c.bf16 %v2148_v54, %v2147_v36  ;;  %v2154_v36 = vld [vmem:[#allocation7 + $0xd8] sm:$0xff] }
 0x486   : > { %7299 = vmatpush3.bf16.msra.mxu1 %v7296_v2  ;;  %6622 = vmatprep.mubr.f32.mxu1 %v8654_v60  ;;  %v5940_v2 = vpop.f32.mrb[4].mxu1 }
 0x487   : > { %7301 = vmatprep.subr.bf16.mxu1 %v7300_v63  ;;  %v1616_v60 = vpop.f32.mrb[5].mxu1  ;;  %v1677_v27 = vmax.f32 %v1607_v26, 0.0  ;;  %v2150_v26 = vld [vmem:[#allocation7 + $0xb8] sm:$0xff] }
 0x488   : > { %6891 = vmatpush3.bf16.msra.mxu0 %v6888_v10  ;;  %v1617_v15 = vadd.f32 %v8953_v45, %v1616_v60  ;;  %v1622_v10 = vadd.f32 %v5940_v2, %v8953_v45 }
 0x489   : > { %6623 = vmatmul.mubr.f32.gmra.mrb[108].mxu1 %v8658_v28  ;;  %6925 = vmatprep.subr.bf16.mxu0 %v6924_v39  ;;  %v5943_v28 = vpop.f32.mrb[6].mxu1 }
 0x48a   : > { %7303 = vmatpush3.bf16.msra.mxu1 %v7300_v63  ;;  %6625 = vmatprep.mubr.f32.mxu1 %v8662_v6  ;;  %v1626_v63 = vpop.f32.mrb[7].mxu1  ;;  %v1679_v8 = vmax.f32 %v1617_v15, 0.0  ;;  %v1680_v51 = vmax.f32 %v1622_v10, 0.0  ;;  %v6940_v10 = vpack.c.bf16 %v2152_v41, %v2151_v35 }
 0x48b   : > { %5989 = vmatmul.mubr.f32.vlgmr.msra.gmra.mrb[16].mxu0 %v1676_v48  ;;  %7305 = vmatprep.subr.bf16.mxu1 %v7304_v14  ;;  %v1627_v6 = vadd.f32 %v8953_v45, %v1626_v63  ;;  %v1632_v48 = vadd.f32 %v5943_v28, %v8953_v45  ;;  %v5946_v11 = vpop.f32.mrb[8].mxu1 }
 0x48c   : > { %6927 = vmatpush3.bf16.msra.mxu0 %v6924_v39  ;;  %5991 = vmatprep.mubr.f32.mxu0 %v1677_v27  ;;  %v1642_v2 = vadd.f32 %v5946_v11, %v8953_v45 }
 0x48d   : > { %6626 = vmatmul.mubr.f32.gmra.mrb[110].mxu1 %v8666_v16  ;;  %6929 = vmatprep.subr.bf16.mxu0 %v6928_v24  ;;  %v1681_v39 = vmax.f32 %v1627_v6, 0.0  ;;  %v1636_v16 = vpop.f32.mrb[9].mxu1  ;;  %v7544_v6 = vld [vmem:[%s7954_s13 + $0x28] sm:$0xff] }
 0x48e   : > { %7307 = vmatpush3.bf16.msra.mxu1 %v7304_v14  ;;  %6716 = vmatprep.mubr.f32.mxu1 %v8884_v31  ;;  %v1637_v58 = vadd.f32 %v8953_v45, %v1636_v16  ;;  %v1682_v31 = vmax.f32 %v1632_v48, 0.0  ;;  %v6936_v14 = vpack.c.bf16 %v2150_v26, %v2149_v59  ;;  %v5949_v60 = vpop.f32.mrb[10].mxu1  ;;  %v2155_v59 = vld [vmem:[#allocation7 + $0xe0] sm:$0xff]  ;;  %v2156_v26 = vld [vmem:[#allocation7 + $0xe8] sm:$0xff] }
 0x48f   : > { %5992 = vmatmul.mubr.f32.gmra.mrb[18].mxu0 %v1678_v12  ;;  %v1646_v15 = vpop.f32.mrb[11].mxu1  ;;  %v1652_v12 = vadd.f32 %v5949_v60, %v8953_v45  ;;  %v6948_v60 = vpack.c.bf16 %v2156_v26, %v2155_v59  ;;  %v2599_v59 = vld [vmem:[#allocation7 + $0x118] sm:$0xff] }
 0x490   : > { %6931 = vmatpush3.bf16.msra.mxu0 %v6928_v24  ;;  %5994 = vmatprep.mubr.f32.mxu0 %v1679_v8  ;;  %v1683_v27 = vmax.f32 %v1637_v58, 0.0  ;;  %v5952_v24 = vpop.f32.mrb[12].mxu1  ;;  %v7546_v58 = vld [vmem:[%s7954_s13 + $0x38] sm:$0xff] }
 0x491   : > { %6717 = vmatmul.mubr.f32.vlgmr.msra.gmra.mrb[112].mxu1 %v8906_v25  ;;  %6933 = vmatprep.subr.bf16.mxu0 %v6932_v49  ;;  %v1647_v25 = vadd.f32 %v8953_v45, %v1646_v15  ;;  %v1656_v63 = vpop.f32.mrb[13].mxu1  ;;  %v1686_v54 = vmax.f32 %v1652_v12, 0.0  ;;  %v8989_v15 = vld [vmem:[%s10910_s4 + $0x1] ss:$0 sm:$0xff]  ;;  %v2157_v12 = vld [vmem:[#allocation7 + $0xf0] sm:$0xff] }
 0x492   : > { %6719 = vmatprep.mubr.f32.mxu1 %v8916_v43  ;;  %v1684_v43 = vmax.f32 %v1642_v2, 0.0  ;;  %v1657_v8 = vadd.f32 %v8953_v45, %v1656_v63 }
 0x493   : > { %5995 = vmatmul.mubr.f32.gmra.mrb[20].mxu0 %v1680_v51  ;;  %v1685_v28 = vmax.f32 %v1647_v25, 0.0  ;;  %v1662_v51 = vadd.f32 %v5952_v24, %v8953_v45 }
 0x494   : > { %6935 = vmatpush3.bf16.msra.mxu0 %v6932_v49  ;;  %5997 = vmatprep.mubr.f32.mxu0 %v1681_v39  ;;  %v5955_v49 = vpop.f32.mrb[14].mxu1  ;;  %v1687_v11 = vmax.f32 %v1657_v8, 0.0 }
 0x495   : > { %6937 = vmatprep.subr.bf16.mxu0 %v6936_v14  ;;  %6720 = vmatmul.mubr.f32.gmra.mrb[114].mxu1 %v8936_v21  ;;  %v2153_v21 = vld [vmem:[#allocation7 + $0xd0] sm:$0xff]  ;;  %v1666_v39 = vpop.f32.mrb[15].mxu1  ;;  %v1688_v2 = vmax.f32 %v1662_v51, 0.0  ;;  %v2597_v51 = vld [vmem:[#allocation7 + $0x108] sm:$0xff] }
 0x496   : > { %6722 = vmatprep.mubr.f32.mxu1 %v8942_v23  ;;  %v7545_v23 = vld [vmem:[%s7954_s13 + $0x30] sm:$0xff]  ;;  %v6944_v48 = vpack.c.bf16 %v2154_v36, %v2153_v21  ;;  %v1667_v16 = vadd.f32 %v8953_v45, %v1666_v39 }
 0x497   : > { %5998 = vmatmul.mubr.f32.gmra.mrb[22].mxu0 %v1682_v31  ;;  %v7547_v31 = vld [vmem:[%s7954_s13 + $0x40] sm:$0xff] }
 0x498   : > { %6939 = vmatpush3.bf16.msra.mxu0 %v6936_v14  ;;  %6000 = vmatprep.mubr.f32.mxu0 %v1683_v27  ;;  %v1672_v14 = vadd.f32 %v5955_v49, %v8953_v45  ;;  %v6046_v27 = vpop.f32.mrb[16].mxu1  ;;  %v1689_v25 = vmax.f32 %v1667_v16, 0.0  ;;  %v7549_v45 = vld [vmem:[%s7954_s13 + $0x50] sm:$0xff] }
 0x499   : > { %6941 = vmatprep.subr.bf16.mxu0 %v6940_v10  ;;  %6723 = vmatmul.mubr.f32.gmra.mrb[116].mxu1 %v7544_v6  ;;  %v2047_v35 = vpop.f32.mrb[17].mxu1 }
 0x49a   : > { %6725 = vmatprep.mubr.f32.mxu1 %v7545_v23  ;;  %v2048_v41 = vadd.f32 %v8989_v15, %v2047_v35  ;;  %v1690_v24 = vmax.f32 %v1672_v14, 0.0  ;;  %v6049_v8 = vpop.f32.mrb[18].mxu1  ;;  %v7550_v23 = vld [vmem:[%s7954_s13 + $0x58] sm:$0xff]  ;;  %v2600_v35 = vld [vmem:[#allocation7 + $0x120] sm:$0xff] }
 0x49b   : > { %6001 = vmatmul.mubr.f32.gmra.mrb[24].mxu0 %v1684_v43  ;;  %v7548_v43 = vld [vmem:[%s7954_s13 + $0x48] sm:$0xff]  ;;  %v2057_v21 = vpop.f32.mrb[19].mxu1 }
 0x49c   : > { %6943 = vmatpush3.bf16.msra.mxu0 %v6940_v10  ;;  %6003 = vmatprep.mubr.f32.mxu0 %v1685_v28  ;;  %v2158_v10 = vld [vmem:[#allocation7 + $0xf8] sm:$0xff]  ;;  %v2053_v28 = vadd.f32 %v6046_v27, %v8989_v15  ;;  %v2126_v6 = vmax.f32 %v2048_v41, 0.0  ;;  %v2058_v36 = vadd.f32 %v8989_v15, %v2057_v21  ;;  %v6052_v16 = vpop.f32.mrb[20].mxu1  ;;  %v7552_v27 = vld [vmem:[%s7954_s13 + $0x68] sm:$0xff] }
 0x49d   : > { %6945 = vmatprep.subr.bf16.mxu0 %v6944_v48  ;;  %6726 = vmatmul.mubr.f32.gmra.mrb[118].mxu1 %v7546_v58  ;;  %v6952_v63 = vpack.c.bf16 %v2158_v10, %v2157_v12  ;;  %v2598_v58 = vld [vmem:[#allocation7 + $0x110] sm:$0xff]  ;;  %v2601_v41 = vld [vmem:[#allocation7 + $0x128] sm:$0xff]  ;;  %v2073_v10 = vadd.f32 %v6052_v16, %v8989_v15  ;;  %v7554_v21 = vld [vmem:[%s7954_s13 + $0x78] sm:$0xff] }
 0x49e   : > { %6728 = vmatprep.mubr.f32.mxu1 %v7547_v31  ;;  %v2127_v49 = vmax.f32 %v2053_v28, 0.0  ;;  %v2128_v26 = vmax.f32 %v2058_v36, 0.0  ;;  %v2067_v31 = vpop.f32.mrb[21].mxu1  ;;  %v6992_v14 = vpack.c.bf16 %v2599_v59, %v2598_v58  ;;  %v2602_v36 = vld [vmem:[#allocation7 + $0x130] sm:$0xff] }
 0x49f   : > { %6004 = vmatmul.mubr.f32.gmra.mrb[26].mxu0 %v1686_v54  ;;  %v2596_v54 = vld [vmem:[#allocation7 + $0x100] sm:$0xff] }
 0x4a0   : > { %6947 = vmatpush3.bf16.msra.mxu0 %v6944_v48  ;;  %6006 = vmatprep.mubr.f32.mxu0 %v1687_v11  ;;  %v7551_v48 = vld [vmem:[%s7954_s13 + $0x60] sm:$0xff]  ;;  %v2063_v11 = vadd.f32 %v6049_v8, %v8989_v15  ;;  %v6988_v39 = vpack.c.bf16 %v2597_v51, %v2596_v54  ;;  %v6996_v8 = vpack.c.bf16 %v2601_v41, %v2600_v35  ;;  %v2131_v51 = vmax.f32 %v2073_v10, 0.0  ;;  %v2606_v41 = vld [vmem:[#allocation7 + $0x150] sm:$0xff] }
 0x4a1   : > { %6949 = vmatprep.subr.bf16.mxu0 %v6948_v60  ;;  %6729 = vmatmul.mubr.f32.gmra.mrb[120].mxu1 %v7548_v43  ;;  %v7553_v43 = vld [vmem:[%s7954_s13 + $0x70] sm:$0xff]  ;;  %s7653_s13 = scalar_lea.vmem %s7652_s15, 4096 }
 0x4a2   : > { %6731 = vmatprep.mubr.f32.mxu1 %v7549_v45  ;;  %v2129_v12 = vmax.f32 %v2063_v11, 0.0  ;;  %p7655_p9 = scmp.lt.s32.totalorder %s7653_s13, %s7647_s10 }
 0x4a3   : > { %6007 = vmatmul.mubr.f32.gmra.mrb[28].mxu0 %v1688_v2  ;;  %v2068_v2 = vadd.f32 %v8989_v15, %v2067_v31  ;;  %v2605_v31 = vld [vmem:[#allocation7 + $0x148] sm:$0xff] }
 0x4a4   : > { %6951 = vmatpush3.bf16.msra.mxu0 %v6948_v60  ;;  %6009 = vmatprep.mubr.f32.mxu0 %v1689_v25  ;;  %v6055_v60 = vpop.f32.mrb[22].mxu1  ;;  %p7656_p12 = por %p7655_p9, %p7654_p7 }
 0x4a5   : > { %6953 = vmatprep.subr.bf16.mxu0 %v6952_v63  ;;  %6732 = vmatmul.mubr.f32.gmra.mrb[122].mxu1 %v7550_v23  ;;  %v2077_v25 = vpop.f32.mrb[23].mxu1  ;;  %v2603_v23 = vld [vmem:[#allocation7 + $0x138] sm:$0xff] }
 0x4a6   : > { %6734 = vmatprep.mubr.f32.mxu1 %v7551_v48  ;;  %v6058_v45 = vpop.f32.mrb[24].mxu1  ;;  %v2078_v28 = vadd.f32 %v8989_v15, %v2077_v25  ;;  %v2083_v48 = vadd.f32 %v6055_v60, %v8989_v15  ;;  %v7000_v58 = vpack.c.bf16 %v2603_v23, %v2602_v36  ;;  %p7657_p1 = pnand %p7656_p12, %p7650_p3 }
 0x4a7   : > { %6010 = vmatmul.mubr.f32.gmra.mrb[30].mxu0 %v1690_v24  ;;  %v2130_v24 = vmax.f32 %v2068_v2, 0.0  ;;  %v2093_v25 = vadd.f32 %v6058_v45, %v8989_v15 }
 0x4a8   : > { %6955 = vmatpush3.bf16.msra.mxu0 %v6952_v63  ;;  %6100 = vmatprep.mubr.f32.mxu0 %v2126_v6  ;;  %v2087_v63 = vpop.f32.mrb[25].mxu1  ;;  %v2132_v11 = vmax.f32 %v2078_v28, 0.0 }
 0x4a9   : > { %6989 = vmatprep.subr.bf16.mxu0 %v6988_v39  ;;  %6735 = vmatmul.mubr.f32.gmra.mrb[124].mxu1 %v7552_v27  ;;  %v6061_v6 = vpop.f32.mrb[26].mxu1  ;;  %v2133_v27 = vmax.f32 %v2083_v48, 0.0  ;;  %v2611_v48 = vld [vmem:[#allocation7 + $0x178] sm:$0xff] }
 0x4aa   : > { %6737 = vmatprep.mubr.f32.mxu1 %v7553_v43  ;;  %v2097_v54 = vpop.f32.mrb[27].mxu1  ;;  %v2607_v43 = vld [vmem:[#allocation7 + $0x158] sm:$0xff]  ;;  %v2103_v10 = vadd.f32 %v6061_v6, %v8989_v15 }
 0x4ab   : > { %6101 = vmatmul.mubr.f32.vlgmr.msra.gmra.mrb[32].mxu0 %v2127_v49  ;;  %v6064_v49 = vpop.f32.mrb[28].mxu1  ;;  %v7008_v45 = vpack.c.bf16 %v2607_v43, %v2606_v41  ;;  %v3051_v41 = vld [vmem:[#allocation7 + $0x190] sm:$0xff]  ;;  %v3052_v43 = vld [vmem:[#allocation7 + $0x198] sm:$0xff] }
 0x4ac   : > { %6991 = vmatpush3.bf16.msra.mxu0 %v6988_v39  ;;  %6103 = vmatprep.mubr.f32.mxu0 %v2128_v26  ;;  %v2088_v39 = vadd.f32 %v8989_v15, %v2087_v63  ;;  %v2107_v16 = vpop.f32.mrb[29].mxu1  ;;  %v2604_v26 = vld [vmem:[#allocation7 + $0x140] sm:$0xff]  ;;  %v2113_v36 = vadd.f32 %v6064_v49, %v8989_v15 }
 0x4ad   : > { %6993 = vmatprep.subr.bf16.mxu0 %v6992_v14  ;;  %6738 = vmatmul.mubr.f32.gmra.mrb[126].mxu1 %v7554_v21  ;;  %v6067_v59 = vpop.f32.mrb[30].mxu1  ;;  %v7004_v60 = vpack.c.bf16 %v2605_v31, %v2604_v26  ;;  %v2108_v28 = vadd.f32 %v8989_v15, %v2107_v16  ;;  %v2608_v63 = vld [vmem:[#allocation7 + $0x160] sm:$0xff]  ;;  %v2137_v21 = vmax.f32 %v2103_v10, 0.0 }
 0x4ae   : > { %v2117_v2 = vpop.f32.mrb[31].mxu1  ;;  %v2134_v35 = vmax.f32 %v2088_v39, 0.0  ;;  %v2123_v39 = vadd.f32 %v6067_v59, %v8989_v15  ;;  %v9017_v49 = vld [vmem:[%s10910_s4 + $0x2] ss:$0 sm:$0xff] }
 0x4af   : > { %6104 = vmatmul.mubr.f32.gmra.mrb[34].mxu0 %v2129_v12  ;;  %v2135_v12 = vmax.f32 %v2093_v25, 0.0  ;;  %v2138_v23 = vmax.f32 %v2108_v28, 0.0  ;;  %v3049_v31 = vld [vmem:[#allocation7 + $0x180] sm:$0xff] }
 0x4b0   : > { %6995 = vmatpush3.bf16.msra.mxu0 %v6992_v14  ;;  %6106 = vmatprep.mubr.f32.mxu0 %v2130_v24  ;;  %v2098_v14 = vadd.f32 %v8989_v15, %v2097_v54  ;;  %v2118_v54 = vadd.f32 %v8989_v15, %v2117_v2  ;;  %v3050_v2 = vld [vmem:[#allocation7 + $0x188] sm:$0xff] }
 0x4b1   : > { %6997 = vmatprep.subr.bf16.mxu0 %v6996_v8  ;;  %v7052_v59 = vpack.c.bf16 %v3050_v2, %v3049_v31 }
 0x4b2   : > { %v2136_v24 = vmax.f32 %v2098_v14, 0.0  ;;  %v2140_v16 = vmax.f32 %v2118_v54, 0.0 }
 0x4b3   : > { %6107 = vmatmul.mubr.f32.gmra.mrb[36].mxu0 %v2131_v51  ;;  %v2610_v51 = vld [vmem:[#allocation7 + $0x170] sm:$0xff] }
 0x4b4   : > { %6999 = vmatpush3.bf16.msra.mxu0 %v6996_v8  ;;  %6109 = vmatprep.mubr.f32.mxu0 %v2132_v11  ;;  %v2609_v8 = vld [vmem:[#allocation7 + $0x168] sm:$0xff]  ;;  %v2139_v11 = vmax.f32 %v2113_v36, 0.0 }
 0x4b5   : > { %7001 = vmatprep.subr.bf16.mxu0 %v7000_v58  ;;  %v7012_v6 = vpack.c.bf16 %v2609_v8, %v2608_v63  ;;  %v3054_v36 = vld [vmem:[#allocation7 + $0x1a8] sm:$0xff] }
 0x4b7   : > { %6110 = vmatmul.mubr.f32.gmra.mrb[38].mxu0 %v2133_v27  ;;  %v2141_v27 = vmax.f32 %v2123_v39, 0.0 }
 0x4b8   : > { %7003 = vmatpush3.bf16.msra.mxu0 %v7000_v58  ;;  %6112 = vmatprep.mubr.f32.mxu0 %v2134_v35  ;;  %v7016_v58 = vpack.c.bf16 %v2611_v48, %v2610_v51 }
 0x4b9   : > { %7005 = vmatprep.subr.bf16.mxu0 %v7004_v60 }
 0x4bb   : > { %6113 = vmatmul.mubr.f32.gmra.mrb[40].mxu0 %v2135_v12 }
 0x4bc   : > { %7007 = vmatpush3.bf16.msra.mxu0 %v7004_v60  ;;  %6115 = vmatprep.mubr.f32.mxu0 %v2136_v24 }
 0x4bd   : > { %7009 = vmatprep.subr.bf16.mxu0 %v7008_v45 }
 0x4bf   : > { %6116 = vmatmul.mubr.f32.gmra.mrb[42].mxu0 %v2137_v21  ;;  %v3053_v21 = vld [vmem:[#allocation7 + $0x1a0] sm:$0xff] }
 0x4c0   : > { %7011 = vmatpush3.bf16.msra.mxu0 %v7008_v45  ;;  %6118 = vmatprep.mubr.f32.mxu0 %v2138_v23  ;;  %v7056_v45 = vpack.c.bf16 %v3052_v43, %v3051_v41  ;;  %v7060_v48 = vpack.c.bf16 %v3054_v36, %v3053_v21 }
 0x4c1   : > { %7013 = vmatprep.subr.bf16.mxu0 %v7012_v6 }
 0x4c3   : > { %v6158_v26 = vpop.f32.mrb[32].mxu1  ;;  %6119 = vmatmul.mubr.f32.gmra.mrb[44].mxu0 %v2139_v11 }
 0x4c4   : > { %v2506_v25 = vadd.f32 %v6158_v26, %v9017_v49  ;;  %v2500_v35 = vpop.f32.mrb[33].mxu1  ;;  %7015 = vmatpush3.bf16.msra.mxu0 %v7012_v6  ;;  %6121 = vmatprep.mubr.f32.mxu0 %v2140_v16  ;;  %v3055_v16 = vld [vmem:[#allocation7 + $0x1b0] sm:$0xff] }
 0x4c5   : > { %v2501_v15 = vadd.f32 %v9017_v49, %v2500_v35  ;;  %7017 = vmatprep.subr.bf16.mxu0 %v7016_v58 }
 0x4c6   : > { %v2580_v12 = vmax.f32 %v2506_v25, 0.0 }
 0x4c7   : > { %v2579_v14 = vmax.f32 %v2501_v15, 0.0  ;;  %v6161_v60 = vpop.f32.mrb[34].mxu1  ;;  %6122 = vmatmul.mubr.f32.gmra.mrb[46].mxu0 %v2141_v27 }
 0x4c8   : > { %v2516_v10 = vadd.f32 %v6161_v60, %v9017_v49  ;;  %v2510_v24 = vpop.f32.mrb[35].mxu1  ;;  %7019 = vmatpush3.bf16.msra.mxu0 %v7016_v58  ;;  %v3056_v58 = vld [vmem:[#allocation7 + $0x1b8] sm:$0xff] }
 0x4c9   : > { %v2511_v28 = vadd.f32 %v9017_v49, %v2510_v24  ;;  %6212 = vmatprep.mubr.f32.mxu0 %v2579_v14  ;;  %7053 = vmatprep.subr.bf16.mxu0 %v7052_v59  ;;  %v7064_v25 = vpack.c.bf16 %v3056_v58, %v3055_v16  ;;  %v3058_v14 = vld [vmem:[#allocation7 + $0x1c8] sm:$0xff] }
 0x4ca   : > { %v2582_v23 = vmax.f32 %v2516_v10, 0.0 }
 0x4cb   : > { %v2581_v63 = vmax.f32 %v2511_v28, 0.0  ;;  %v6164_v8 = vpop.f32.mrb[36].mxu1  ;;  %6213 = vmatmul.mubr.f32.vlgmr.msra.gmra.mrb[48].mxu0 %v2580_v12 }
 0x4cc   : > { %v2526_v54 = vadd.f32 %v6164_v8, %v9017_v49  ;;  %v2520_v6 = vpop.f32.mrb[37].mxu1  ;;  %7055 = vmatpush3.bf16.msra.mxu0 %v7052_v59  ;;  %v3057_v59 = vld [vmem:[#allocation7 + $0x1c0] sm:$0xff] }
 0x4cd   : > { %v2521_v51 = vadd.f32 %v9017_v49, %v2520_v6  ;;  %6215 = vmatprep.mubr.f32.mxu0 %v2581_v63  ;;  %7057 = vmatprep.subr.bf16.mxu0 %v7056_v45  ;;  %v7068_v10 = vpack.c.bf16 %v3058_v14, %v3057_v59  ;;  %v3060_v63 = vld [vmem:[#allocation7 + $0x1d8] sm:$0xff] }
 0x4ce   : > { %v2584_v26 = vmax.f32 %v2526_v54, 0.0 }
 0x4cf   : > { %v2583_v11 = vmax.f32 %v2521_v51, 0.0  ;;  %v6167_v39 = vpop.f32.mrb[38].mxu1  ;;  %6216 = vmatmul.mubr.f32.gmra.mrb[50].mxu0 %v2582_v23 }
 0x4d0   : > { %v2536_v31 = vadd.f32 %v6167_v39, %v9017_v49  ;;  %v2530_v2 = vpop.f32.mrb[39].mxu1  ;;  %7059 = vmatpush3.bf16.msra.mxu0 %v7056_v45  ;;  %v3059_v45 = vld [vmem:[#allocation7 + $0x1d0] sm:$0xff] }
 0x4d1   : > { %v2531_v27 = vadd.f32 %v9017_v49, %v2530_v2  ;;  %6218 = vmatprep.mubr.f32.mxu0 %v2583_v11  ;;  %7061 = vmatprep.subr.bf16.mxu0 %v7060_v48  ;;  %v7072_v54 = vpack.c.bf16 %v3060_v63, %v3059_v45  ;;  %v3062_v11 = vld [vmem:[#allocation7 + $0x1e8] sm:$0xff] }
 0x4d2   : > { %v2586_v60 = vmax.f32 %v2536_v31, 0.0  ;;  %v3503_v45 = vld [vmem:[#allocation7 + $0x208] sm:$0xff] }
 0x4d3   : > { %v2585_v35 = vmax.f32 %v2531_v27, 0.0  ;;  %v6170_v15 = vpop.f32.mrb[40].mxu1  ;;  %6219 = vmatmul.mubr.f32.gmra.mrb[52].mxu0 %v2584_v26 }
 0x4d4   : > { %v2546_v41 = vadd.f32 %v6170_v15, %v9017_v49  ;;  %v2540_v43 = vpop.f32.mrb[41].mxu1  ;;  %7063 = vmatpush3.bf16.msra.mxu0 %v7060_v48  ;;  %v3061_v48 = vld [vmem:[#allocation7 + $0x1e0] sm:$0xff] }
 0x4d5   : > { %v2541_v12 = vadd.f32 %v9017_v49, %v2540_v43  ;;  %6221 = vmatprep.mubr.f32.mxu0 %v2585_v35  ;;  %7065 = vmatprep.subr.bf16.mxu0 %v7064_v25  ;;  %v7076_v31 = vpack.c.bf16 %v3062_v11, %v3061_v48  ;;  %v3064_v35 = vld [vmem:[#allocation7 + $0x1f8] sm:$0xff]  ;;  %v3504_v11 = vld [vmem:[#allocation7 + $0x210] sm:$0xff] }
 0x4d6   : > { %v2588_v8 = vmax.f32 %v2546_v41, 0.0  ;;  %v9038_v41 = vld [vmem:[%s10910_s4 + $0x3] ss:$0 sm:$0xff] }
 0x4d7   : > { %v2587_v24 = vmax.f32 %v2541_v12, 0.0  ;;  %v6173_v28 = vpop.f32.mrb[42].mxu1  ;;  %6222 = vmatmul.mubr.f32.gmra.mrb[54].mxu0 %v2586_v60 }
 0x4d8   : > { %v2556_v21 = vadd.f32 %v6173_v28, %v9017_v49  ;;  %v2550_v36 = vpop.f32.mrb[43].mxu1  ;;  %7067 = vmatpush3.bf16.msra.mxu0 %v7064_v25  ;;  %v3063_v25 = vld [vmem:[#allocation7 + $0x1f0] sm:$0xff]  ;;  %v3502_v28 = vld [vmem:[#allocation7 + $0x200] sm:$0xff] }
 0x4d9   : > { %v2551_v23 = vadd.f32 %v9017_v49, %v2550_v36  ;;  %6224 = vmatprep.mubr.f32.mxu0 %v2587_v24  ;;  %7069 = vmatprep.subr.bf16.mxu0 %v7068_v10  ;;  %v7080_v43 = vpack.c.bf16 %v3064_v35, %v3063_v25  ;;  %v3506_v35 = vld [vmem:[#allocation7 + $0x220] sm:$0xff] }
 0x4da   : > { %v2590_v39 = vmax.f32 %v2556_v21, 0.0 }
 0x4db   : > { %v2589_v6 = vmax.f32 %v2551_v23, 0.0  ;;  %v6176_v51 = vpop.f32.mrb[44].mxu1  ;;  %6225 = vmatmul.mubr.f32.gmra.mrb[56].mxu0 %v2588_v8 }
 0x4dc   : > { %v2566_v16 = vadd.f32 %v6176_v51, %v9017_v49  ;;  %v2560_v58 = vpop.f32.mrb[45].mxu1  ;;  %7071 = vmatpush3.bf16.msra.mxu0 %v7068_v10 }
 0x4dd   : > { %v2561_v26 = vadd.f32 %v9017_v49, %v2560_v58  ;;  %6227 = vmatprep.mubr.f32.mxu0 %v2589_v6  ;;  %7073 = vmatprep.subr.bf16.mxu0 %v7072_v54 }
 0x4de   : > { %v2592_v15 = vmax.f32 %v2566_v16, 0.0 }
 0x4df   : > { %v2591_v2 = vmax.f32 %v2561_v26, 0.0  ;;  %v6179_v27 = vpop.f32.mrb[46].mxu1  ;;  %6228 = vmatmul.mubr.f32.gmra.mrb[58].mxu0 %v2590_v39  ;;  %v3505_v39 = vld [vmem:[#allocation7 + $0x218] sm:$0xff] }
 0x4e0   : > { %v2576_v59 = vadd.f32 %v6179_v27, %v9017_v49  ;;  %v2570_v14 = vpop.f32.mrb[47].mxu1  ;;  %7075 = vmatpush3.bf16.msra.mxu0 %v7072_v54  ;;  %v7116_v54 = vpack.c.bf16 %v3503_v45, %v3502_v28 }
 0x4e1   : > { %v2571_v60 = vadd.f32 %v9017_v49, %v2570_v14  ;;  %6230 = vmatprep.mubr.f32.mxu0 %v2591_v2  ;;  %7077 = vmatprep.subr.bf16.mxu0 %v7076_v31 }
 0x4e2   : > { %v2594_v63 = vmax.f32 %v2576_v59, 0.0 }
 0x4e3   : > { %v2593_v10 = vmax.f32 %v2571_v60, 0.0  ;;  %v6270_v24 = vpop.f32.mrb[48].mxu1  ;;  %6231 = vmatmul.mubr.f32.gmra.mrb[60].mxu0 %v2592_v15  ;;  %v3507_v15 = vld [vmem:[#allocation7 + $0x228] sm:$0xff] }
 0x4e4   : > { %v2959_v49 = vadd.f32 %v6270_v24, %v9038_v41  ;;  %v2953_v8 = vpop.f32.mrb[49].mxu1  ;;  %7079 = vmatpush3.bf16.msra.mxu0 %v7076_v31 }
 0x4e5   : > { %v2954_v36 = vadd.f32 %v9038_v41, %v2953_v8  ;;  %6233 = vmatprep.mubr.f32.mxu0 %v2593_v10  ;;  %7081 = vmatprep.subr.bf16.mxu0 %v7080_v43 }
 0x4e6   : > { %v9040_v12 = vpop.xlane.xlu1 %1095  ;;  %v3033_v58 = vmax.f32 %v2959_v49, 0.0  ;;  %v7124_v49 = vpack.c.bf16 %v3507_v15, %v3506_v35 }
 0x4e7   : > { %11106 = vst [vmem:[#allocation26_spill] sm:$0xff] %v9040_v12  ;;  %vm1140_vm1 = vcmp.eq.f32.partialorder %v8716_v20, %v9040_v12  ;;  %v3032_v51 = vmax.f32 %v2954_v36, 0.0  ;;  %v6273_v48 = vpop.f32.mrb[50].mxu1  ;;  %6234 = vmatmul.mubr.f32.gmra.mrb[62].mxu0 %v2594_v63  ;;  %v4869_v12 = vld [vmem:[#allocation7 + $0x3c0] sm:$0xff] }
 0x4e8   : > { %v1156_v21 = vsel %vm1140_vm1, %v8300_v62, 8  ;;  %v2969_v26 = vadd.f32 %v6273_v48, %v9038_v41  ;;  %v2963_v31 = vpop.f32.mrb[51].mxu1  ;;  %7083 = vmatpush3.bf16.msra.mxu0 %v7080_v43 }
 0x4e9   : > { %v9048_v23 = vsel %vm512_vm0, %v1156_v21, 2147483647  ;;  %6324 = vmatprep.mubr.f32.mxu0 %v3032_v51  ;;  %7117 = vmatprep.subr.bf16.mxu0 %v7116_v54 }
 0x4ea   : > { %v9050_v6 = vpop.xlane.xlu1 %1101  ;;  %v1188_v20 = vshra.s32 %v9048_v23, 16  ;;  %v3035_v24 = vmax.f32 %v2969_v26, 0.0 }
 0x4eb   : > { %11107 = vst [vmem:[#allocation27_spill] sm:$0xff] %v9050_v6  ;;  %vm1142_vm1 = vcmp.eq.f32.partialorder %v8734_v50, %v9050_v6  ;;  %v9055_v16 = vpop.xlane.xlu0 %1092  ;;  %v7120_v50 = vpack.c.bf16 %v3505_v39, %v3504_v11  ;;  %v6276_v60 = vpop.f32.mrb[52].mxu1  ;;  %6325 = vmatmul.mubr.f32.vlgmr.msra.gmra.mrb[64].mxu0 %v3033_v58  ;;  %v3509_v39 = vld [vmem:[#allocation7 + $0x238] sm:$0xff] }
 0x4ec   : > { %11108 = vst [vmem:[#allocation47_spill] sm:$0xff] %v9055_v16  ;;  %vm1139_vm2 = vcmp.eq.f32.partialorder %v8745_v46, %v9055_v16  ;;  %v9060_v2 = vcvt.s32.f32 %v1188_v20  ;;  %v1158_v27 = vsel %vm1142_vm1, %v8300_v62, 8  ;;  %v2964_v46 = vadd.f32 %v9038_v41, %v2963_v31  ;;  %v2973_v45 = vpop.f32.mrb[53].mxu1  ;;  %7119 = vmatpush3.bf16.msra.mxu0 %v7116_v54  ;;  %v4867_v16 = vld [vmem:[#allocation7 + $0x3b0] sm:$0xff] }
 0x4ed   : > { %v1155_v25 = vsel %vm1139_vm2, %v8300_v62, 8  ;;  %v9069_v14 = vsel %vm512_vm0, %v1158_v27, 2147483647  ;;  %v2979_v28 = vadd.f32 %v6276_v60, %v9038_v41  ;;  %v2974_v20 = vadd.f32 %v9038_v41, %v2973_v45  ;;  %7121 = vmatprep.subr.bf16.mxu0 %v7120_v50 }
 0x4ee   : > { %1191 = vmin.xlane.f32.xlu0 %v9060_v2  ;;  %v9066_v59 = vsel %vm512_vm0, %v1155_v25, 2147483647  ;;  %v3034_v63 = vmax.f32 %v2964_v46, 0.0  ;;  %v1218_v21 = vshra.s32 %v9069_v14, 16 }
 0x4ef   : > { %v9072_v10 = vpop.xlane.xlu0 %1098  ;;  %v1173_v43 = vshra.s32 %v9066_v59, 16  ;;  %v6279_v11 = vpop.f32.mrb[54].mxu1  ;;  %v3037_v58 = vmax.f32 %v2979_v28, 0.0  ;;  %v3036_v26 = vmax.f32 %v2974_v20, 0.0 }
 0x4f0   : > { %11109 = vst [vmem:[#allocation48_spill] sm:$0xff] %v9072_v10  ;;  %vm1141_vm2 = vcmp.eq.f32.partialorder %v8763_v22, %v9072_v10  ;;  %6327 = vmatprep.mubr.f32.mxu0 %v3034_v63  ;;  %v3508_v22 = vld [vmem:[#allocation7 + $0x230] sm:$0xff]  ;;  %v2983_v31 = vpop.f32.mrb[55].mxu1  ;;  %7123 = vmatpush3.bf16.msra.mxu0 %v7120_v50  ;;  %v9096_v25 = vcvt.s32.f32 %v1218_v21 }
 0x4f1   : > { %v9078_v8 = vcvt.s32.f32 %v1173_v43  ;;  %v1157_v36 = vsel %vm1141_vm2, %v8300_v62, 8  ;;  %6328 = vmatmul.mubr.f32.gmra.mrb[66].mxu0 %v3035_v24  ;;  %7125 = vmatprep.subr.bf16.mxu0 %v7124_v49  ;;  %v7128_v15 = vpack.c.bf16 %v3509_v39, %v3508_v22  ;;  %v2984_v50 = vadd.f32 %v9038_v41, %v2983_v31 }
 0x4f2   : > { %v9083_v51 = vpop.xlane.xlu1 %1107  ;;  %v9086_v48 = vsel %vm512_vm0, %v1157_v36, 2147483647  ;;  %6330 = vmatprep.mubr.f32.mxu0 %v3036_v26 }
 0x4f3   : > { %11110 = vst [vmem:[#allocation49_spill] sm:$0xff] %v9083_v51  ;;  %vm1144_vm1 = vcmp.eq.f32.partialorder %v8778_v55, %v9083_v51  ;;  %1176 = vmin.xlane.f32.xlu0 %v9078_v8  ;;  %v9091_v54 = vpop.xlane.xlu0 %1104  ;;  %v1203_v35 = vshra.s32 %v9086_v48, 16  ;;  %v2989_v55 = vadd.f32 %v6279_v11, %v9038_v41  ;;  %v6282_v43 = vpop.f32.mrb[56].mxu1  ;;  %v3038_v20 = vmax.f32 %v2984_v50, 0.0 }
 0x4f4   : > { %11111 = vst [vmem:[#allocation50_spill] sm:$0xff] %v9091_v54  ;;  %vm1143_vm2 = vcmp.eq.f32.partialorder %v8791_v3, %v9091_v54  ;;  %v1160_v27 = vsel %vm1144_vm1, %v8300_v62, 8  ;;  %v2993_v24 = vpop.f32.mrb[57].mxu1  ;;  %7127 = vmatpush3.bf16.msra.mxu0 %v7124_v49  ;;  %v2999_v26 = vadd.f32 %v6282_v43, %v9038_v41 }
 0x4f5   : > { %v9103_v60 = vsel %vm512_vm0, %v1160_v27, 2147483647  ;;  %v1159_v3 = vsel %vm1143_vm2, %v8300_v62, 8  ;;  %6331 = vmatmul.mubr.f32.gmra.mrb[68].mxu0 %v3037_v58  ;;  %v9112_v45 = vcvt.s32.f32 %v1203_v35  ;;  %v3039_v21 = vmax.f32 %v2989_v55, 0.0  ;;  %7129 = vmatprep.subr.bf16.mxu0 %v7128_v15 }
 0x4f6   : > { %v9100_v46 = vpop.xlane.xlu1 %1113  ;;  %v1248_v63 = vshra.s32 %v9103_v60, 16  ;;  %v9116_v36 = vsel %vm512_vm0, %v1159_v3, 2147483647  ;;  %6333 = vmatprep.mubr.f32.mxu0 %v3038_v20  ;;  %v3041_v50 = vmax.f32 %v2999_v26, 0.0 }
 0x4f7   : > { %11112 = vst [vmem:[#allocation51_spill] sm:$0xff] %v9100_v46  ;;  %1221 = vmin.xlane.f32.xlu0 %v9096_v25  ;;  %vm1146_vm1 = vcmp.eq.f32.partialorder %v8806_v9, %v9100_v46  ;;  %v9110_v28 = vpop.xlane.xlu0 %1110  ;;  %v6285_v11 = vpop.f32.mrb[58].mxu1  ;;  %v1233_v58 = vshra.s32 %v9116_v36, 16 }
 0x4f8   : > { %11113 = vst [vmem:[#allocation52_spill] sm:$0xff] %v9110_v28  ;;  %v1162_v22 = vsel %vm1146_vm1, %v8300_v62, 8  ;;  %v3003_v39 = vpop.f32.mrb[59].mxu1  ;;  %vm1145_vm2 = vcmp.eq.f32.partialorder %v8820_v42, %v9110_v28  ;;  %7131 = vmatpush3.bf16.msra.mxu0 %v7128_v15  ;;  %v9124_v49 = vcvt.s32.f32 %v1248_v63  ;;  %v2994_v42 = vadd.f32 %v9038_v41, %v2993_v24 }
 0x4f9   : > { %6334 = vmatmul.mubr.f32.gmra.mrb[70].mxu0 %v3039_v21  ;;  %v9129_v31 = vsel %vm512_vm0, %v1162_v22, 2147483647  ;;  %v1161_v35 = vsel %vm1145_vm2, %v8300_v62, 8  ;;  %v9138_v3 = vcvt.s32.f32 %v1233_v58  ;;  %v3004_v52 = vadd.f32 %v9038_v41, %v3003_v39  ;;  %v3513_v39 = vld [vmem:[#allocation7 + $0x258] sm:$0xff] }
 0x4fa   : > { %v9122_v9 = vpop.xlane.xlu1 %1119  ;;  %v1278_v43 = vshra.s32 %v9129_v31, 16  ;;  %v9142_v63 = vsel %vm512_vm0, %v1161_v35, 2147483647  ;;  %v3040_v21 = vmax.f32 %v2994_v42, 0.0  ;;  %v3009_v35 = vadd.f32 %v6285_v11, %v9038_v41 }
 0x4fb   : > { %1206 = vmin.xlane.f32.xlu0 %v9112_v45  ;;  %11114 = vst [vmem:[#allocation53_spill] sm:$0xff] %v9122_v9  ;;  %v6288_v27 = vpop.f32.mrb[60].mxu1  ;;  %vm1148_vm1 = vcmp.eq.f32.partialorder %v8834_v47, %v9122_v9  ;;  %v9136_v15 = vpop.xlane.xlu0 %1116  ;;  %v1263_v26 = vshra.s32 %v9142_v63, 16  ;;  %v3042_v7 = vmax.f32 %v3004_v52, 0.0 }
 0x4fc   : > { %v3013_v55 = vpop.f32.mrb[61].mxu1  ;;  %11115 = vst [vmem:[#allocation54_spill] sm:$0xff] %v9136_v15  ;;  %vm1147_vm2 = vcmp.eq.f32.partialorder %v8847_v40, %v9136_v15  ;;  %v1164_v24 = vsel %vm1148_vm1, %v8300_v62, 8  ;;  %6336 = vmatprep.mubr.f32.mxu0 %v3040_v21  ;;  %v9150_v58 = vcvt.s32.f32 %v1278_v43  ;;  %v3510_v43 = vld [vmem:[#allocation7 + $0x240] sm:$0xff]  ;;  %v3043_v34 = vmax.f32 %v3009_v35, 0.0 }
 0x4fd   : > { %6337 = vmatmul.mubr.f32.gmra.mrb[72].mxu0 %v3041_v50  ;;  %v9155_v42 = vsel %vm512_vm0, %v1164_v24, 2147483647  ;;  %v1163_v40 = vsel %vm1147_vm2, %v8300_v62, 8  ;;  %v9166_v11 = vcvt.s32.f32 %v1263_v26  ;;  %v3019_v4 = vadd.f32 %v6288_v27, %v9038_v41  ;;  %v9179_v26 = vld [vmem:[%s10910_s4 + $0x4] ss:$0 sm:$0xff]  ;;  %v3515_v27 = vld [vmem:[#allocation7 + $0x268] sm:$0xff] }
 0x4fe   : > { %v9148_v22 = vpop.xlane.xlu1 %1125  ;;  %v1308_v50 = vshra.s32 %v9155_v42, 16  ;;  %v9170_v24 = vsel %vm512_vm0, %v1163_v40, 2147483647  ;;  %v3014_v15 = vadd.f32 %v9038_v41, %v3013_v55  ;;  %6339 = vmatprep.mubr.f32.mxu0 %v3042_v7  ;;  %v7136_v35 = vpack.c.bf16 %v3513_v39, %v3512_v56 }
 0x4ff   : > { %1251 = vmin.xlane.f32.xlu0 %v9124_v49  ;;  %v6291_v20 = vpop.f32.mrb[62].mxu1  ;;  %11116 = vst [vmem:[#allocation55_spill] sm:$0xff] %v9148_v22  ;;  %vm1150_vm1 = vcmp.eq.f32.partialorder %v8862_v0, %v9148_v22  ;;  %v9164_v18 = vpop.xlane.xlu0 %1122  ;;  %v7132_v22 = vpack.c.bf16 %v3511_v5, %v3510_v43  ;;  %v1293_v52 = vshra.s32 %v9170_v24, 16  ;;  %v3514_v43 = vld [vmem:[#allocation7 + $0x260] sm:$0xff]  ;;  %v3045_v29 = vmax.f32 %v3019_v4, 0.0 }
 0x500   : > { %v3023_v47 = vpop.f32.mrb[63].mxu1  ;;  %11117 = vst [vmem:[#allocation56_spill] sm:$0xff] %v9164_v18  ;;  %v1166_v0 = vsel %vm1150_vm1, %v8300_v62, 8  ;;  %vm1149_vm2 = vcmp.eq.f32.partialorder %v8875_v61, %v9164_v18  ;;  %v9189_v30 = vcvt.s32.f32 %v1308_v50  ;;  %v3044_v28 = vmax.f32 %v3014_v15, 0.0  ;;  %v3960_v18 = vld [vmem:[#allocation7 + $0x2a8] sm:$0xff] }
 0x501   : > { %v3024_v5 = vadd.f32 %v9038_v41, %v3023_v47  ;;  %7133 = vmatprep.subr.bf16.mxu0 %v7132_v22  ;;  %6340 = vmatmul.mubr.f32.gmra.mrb[74].mxu0 %v3043_v34  ;;  %v3029_v46 = vadd.f32 %v6291_v20, %v9038_v41  ;;  %v9193_v13 = vsel %vm512_vm0, %v1166_v0, 2147483647  ;;  %v1165_v47 = vsel %vm1149_vm2, %v8300_v62, 8  ;;  %v3516_v34 = vld [vmem:[#allocation7 + $0x270] sm:$0xff]  ;;  %v3517_v41 = vld [vmem:[#allocation7 + $0x278] sm:$0xff] }
 0x502   : > { %v9187_v55 = vpop.xlane.xlu1 %1131  ;;  %7135 = vmatpush3.bf16.msra.mxu0 %v7132_v22  ;;  %v7140_v4 = vpack.c.bf16 %v3515_v27, %v3514_v43  ;;  %6342 = vmatprep.mubr.f32.mxu0 %v3044_v28  ;;  %v1338_v50 = vshra.s32 %v9193_v13, 16  ;;  %v9211_v61 = vsel %vm512_vm0, %v1165_v47, 2147483647  ;;  %v7144_v28 = vpack.c.bf16 %v3517_v41, %v3516_v34 }
 0x503   : > { %1236 = vmin.xlane.f32.xlu0 %v9138_v3  ;;  %v9160_v21 = vpop.f32.mrb[64].mxu1  ;;  %11118 = vst [vmem:[#allocation57_spill] sm:$0xff] %v9187_v55  ;;  %v3046_v7 = vmax.f32 %v3024_v5, 0.0  ;;  %7137 = vmatprep.subr.bf16.mxu0 %v7136_v35  ;;  %vm1152_vm1 = vcmp.eq.f32.partialorder %v8891_v19, %v9187_v55  ;;  %v9205_v22 = vpop.xlane.xlu0 %1128  ;;  %v3047_v39 = vmax.f32 %v3029_v46, 0.0  ;;  %v3956_v46 = vld [vmem:[#allocation7 + $0x288] sm:$0xff] }
 0x504   : > { %v3406_v33 = vpop.f32.mrb[65].mxu1  ;;  %11119 = vst [vmem:[#allocation58_spill] sm:$0xff] %v9205_v22  ;;  %v1168_v19 = vsel %vm1152_vm1, %v8300_v62, 8  ;;  %vm1151_vm2 = vcmp.eq.f32.partialorder %v8903_v38, %v9205_v22  ;;  %v9221_v27 = vcvt.s32.f32 %v1338_v50  ;;  %v3957_v50 = vld [vmem:[#allocation7 + $0x290] sm:$0xff] }
 0x505   : > { %v3407_v56 = vadd.f32 %v9179_v26, %v3406_v33  ;;  %v9207_v33 = vcvt.s32.f32 %v1293_v52  ;;  %6343 = vmatmul.mubr.f32.gmra.mrb[76].mxu0 %v3045_v29  ;;  %v3955_v52 = vld [vmem:[#allocation7 + $0x280] sm:$0xff]  ;;  %v1167_v38 = vsel %vm1151_vm2, %v8300_v62, 8 }
 0x506   : > { %7139 = vmatpush3.bf16.msra.mxu0 %v7136_v35  ;;  %6345 = vmatprep.mubr.f32.mxu0 %v3046_v7  ;;  %v9219_v43 = vpop.xlane.xlu1 %1137  ;;  %v1323_v35 = vshra.s32 %v9211_v61, 16  ;;  %v3412_v7 = vadd.f32 %v9160_v21, %v9179_v26  ;;  %v7180_v34 = vpack.c.bf16 %v3956_v46, %v3955_v52  ;;  %v3958_v21 = vld [vmem:[#allocation7 + $0x298] sm:$0xff]  ;;  %v9242_v55 = vsel %vm512_vm0, %v1167_v38, 2147483647 }
 0x507   : > { %1281 = vmin.xlane.f32.xlu0 %v9150_v58  ;;  %v9181_v40 = vpop.f32.mrb[66].mxu1  ;;  %v3485_v0 = vmax.f32 %v3407_v56, 0.0  ;;  %7141 = vmatprep.subr.bf16.mxu0 %v7140_v4  ;;  %11120 = vst [vmem:[#allocation59_spill] sm:$0xff] %v9219_v43  ;;  %v9227_v56 = vsel %vm512_vm0, %v1168_v19, 2147483647  ;;  %vm1154_vm1 = vcmp.eq.f32.partialorder %v8923_v17, %v9219_v43  ;;  %v9234_v22 = vpop.xlane.xlu0 %1134 }
 0x508   : > { %v3416_v9 = vpop.f32.mrb[67].mxu1  ;;  %11121 = vst [vmem:[#allocation60_spill] sm:$0xff] %v9234_v22  ;;  %v9236_v19 = vcvt.s32.f32 %v1323_v35  ;;  %v1170_v46 = vsel %vm1154_vm1, %v8300_v62, 8  ;;  %v7184_v35 = vpack.c.bf16 %v3958_v21, %v3957_v50  ;;  %vm1153_vm2 = vcmp.eq.f32.partialorder %v8933_v32, %v9234_v22 }
 0x509   : > { %6346 = vmatmul.mubr.f32.gmra.mrb[78].mxu0 %v3047_v39  ;;  %v3417_v47 = vadd.f32 %v9179_v26, %v3416_v9  ;;  %v1368_v9 = vshra.s32 %v9227_v56, 16  ;;  %v9255_v38 = vsel %vm512_vm0, %v1170_v46, 2147483647  ;;  %v1169_v21 = vsel %vm1153_vm2, %v8300_v62, 8 }
 0x50a   : > { %7143 = vmatpush3.bf16.msra.mxu0 %v7140_v4  ;;  %6436 = vmatprep.mubr.f32.mxu0 %v3485_v0  ;;  %v3486_v4 = vmax.f32 %v3412_v7, 0.0  ;;  %v3422_v0 = vadd.f32 %v9181_v40, %v9179_v26  ;;  %v3959_v7 = vld [vmem:[#allocation7 + $0x2a0] sm:$0xff] }
 0x50b   : > { %1266 = vmin.xlane.f32.xlu0 %v9166_v11  ;;  %v9201_v15 = vpop.f32.mrb[68].mxu1  ;;  %7145 = vmatprep.subr.bf16.mxu0 %v7144_v28  ;;  %v3487_v52 = vmax.f32 %v3417_v47, 0.0  ;;  %v9249_v44 = vcvt.s32.f32 %v1368_v9  ;;  %v7188_v9 = vpack.c.bf16 %v3960_v18, %v3959_v7 }
 0x50c   : > { %v3426_v20 = vpop.f32.mrb[69].mxu1  ;;  %v3488_v47 = vmax.f32 %v3422_v0, 0.0  ;;  %v3961_v0 = vld [vmem:[#allocation7 + $0x2b0] sm:$0xff] }
 0x50d   : > { %v3427_v17 = vadd.f32 %v9179_v26, %v3426_v20  ;;  %v3432_v20 = vadd.f32 %v9201_v15, %v9179_v26  ;;  %v1398_v15 = vshra.s32 %v9255_v38, 16 }
 0x50e   : > { %7147 = vmatpush3.bf16.msra.mxu0 %v7144_v28  ;;  %v1353_v28 = vshra.s32 %v9242_v55, 16 }
 0x50f   : > { %1311 = vmin.xlane.f32.xlu0 %v9189_v30  ;;  %v9215_v5 = vpop.f32.mrb[70].mxu1  ;;  %7181 = vmatprep.subr.bf16.mxu0 %v7180_v34  ;;  %v3489_v50 = vmax.f32 %v3427_v17, 0.0  ;;  %v3490_v46 = vmax.f32 %v3432_v20, 0.0 }
 0x510   : > { %v3436_v29 = vpop.f32.mrb[71].mxu1  ;;  %v9260_v51 = vcvt.s32.f32 %v1353_v28  ;;  %v3963_v28 = vld [vmem:[#allocation7 + $0x2c0] sm:$0xff] }
 0x511   : > { %6437 = vmatmul.mubr.f32.vlgmr.msra.gmra.mrb[80].mxu0 %v3486_v4  ;;  %v3437_v32 = vadd.f32 %v9179_v26, %v3436_v29  ;;  %v3962_v4 = vld [vmem:[#allocation7 + $0x2b8] sm:$0xff]  ;;  %v9266_v29 = vsel %vm512_vm0, %v1169_v21, 2147483647 }
 0x512   : > { %7183 = vmatpush3.bf16.msra.mxu0 %v7180_v34  ;;  %6439 = vmatprep.mubr.f32.mxu0 %v3487_v52  ;;  %v3442_v34 = vadd.f32 %v9215_v5, %v9179_v26  ;;  %v7192_v17 = vpack.c.bf16 %v3962_v4, %v3961_v0  ;;  %v1383_v5 = vshra.s32 %v9266_v29, 16  ;;  %v3965_v0 = vld [vmem:[#allocation7 + $0x2d0] sm:$0xff]  ;;  %v3966_v4 = vld [vmem:[#allocation7 + $0x2d8] sm:$0xff] }
 0x513   : > { %1296 = vmin.xlane.f32.xlu0 %v9207_v33  ;;  %v6394_v41 = vpop.f32.mrb[72].mxu1  ;;  %7185 = vmatprep.subr.bf16.mxu0 %v7184_v35  ;;  %v3491_v52 = vmax.f32 %v3437_v32, 0.0  ;;  %v7196_v32 = vpack.c.bf16 %v3964_v37, %v3963_v28 }
 0x514   : > { %v3446_v39 = vpop.f32.mrb[73].mxu1  ;;  %v3492_v1 = vmax.f32 %v3442_v34, 0.0  ;;  %v9276_v10 = vcvt.s32.f32 %v1383_v5  ;;  %v3967_v34 = vld [vmem:[#allocation7 + $0x2e0] sm:$0xff] }
 0x515   : > { %6440 = vmatmul.mubr.f32.gmra.mrb[82].mxu0 %v3488_v47  ;;  %v3447_v18 = vadd.f32 %v9179_v26, %v3446_v39  ;;  %v9270_v47 = vcvt.s32.f32 %v1398_v15 }
 0x516   : > { %7187 = vmatpush3.bf16.msra.mxu0 %v7184_v35  ;;  %6442 = vmatprep.mubr.f32.mxu0 %v3489_v50  ;;  %v3452_v35 = vadd.f32 %v6394_v41, %v9179_v26  ;;  %11123 = vst [vmem:[#allocation62_spill] sm:$0xff] %v9276_v10 }
 0x517   : > { %1341 = vmin.xlane.f32.xlu0 %v9221_v27  ;;  %v6397_v43 = vpop.f32.mrb[74].mxu1  ;;  %7189 = vmatprep.subr.bf16.mxu0 %v7188_v9  ;;  %11122 = vst [vmem:[#allocation61_spill] sm:$0xff] %v9270_v47  ;;  %v3493_v50 = vmax.f32 %v3447_v18, 0.0 }
 0x518   : > { %v3456_v40 = vpop.f32.mrb[75].mxu1  ;;  %v3494_v6 = vmax.f32 %v3452_v35, 0.0 }
 0x519   : > { %6443 = vmatmul.mubr.f32.gmra.mrb[84].mxu0 %v3490_v46  ;;  %v3457_v39 = vadd.f32 %v9179_v26, %v3456_v40  ;;  %v3462_v46 = vadd.f32 %v6397_v43, %v9179_v26  ;;  %v7200_v40 = vpack.c.bf16 %v3966_v4, %v3965_v0 }
 0x51a   : > { %7191 = vmatpush3.bf16.msra.mxu0 %v7188_v9  ;;  %6445 = vmatprep.mubr.f32.mxu0 %v3491_v52  ;;  %v3968_v52 = vld [vmem:[#allocation7 + $0x2e8] sm:$0xff] }
 0x51b   : > { %1326 = vmin.xlane.f32.xlu0 %v9236_v19  ;;  %v6400_v22 = vpop.f32.mrb[76].mxu1  ;;  %7193 = vmatprep.subr.bf16.mxu0 %v7192_v17  ;;  %v3495_v41 = vmax.f32 %v3457_v39, 0.0  ;;  %v3496_v28 = vmax.f32 %v3462_v46, 0.0  ;;  %v3970_v39 = vld [vmem:[#allocation7 + $0x2f8] sm:$0xff] }
 0x51c   : > { %v3466_v54 = vpop.f32.mrb[77].mxu1  ;;  %v3472_v5 = vadd.f32 %v6400_v22, %v9179_v26 }
 0x51d   : > { %6446 = vmatmul.mubr.f32.gmra.mrb[86].mxu0 %v3492_v1  ;;  %v3467_v9 = vadd.f32 %v9179_v26, %v3466_v54  ;;  %v9286_v54 = vld [vmem:[%s10910_s4 + $0x5] ss:$0 sm:$0xff] }
 0x51e   : > { %7195 = vmatpush3.bf16.msra.mxu0 %v7192_v17  ;;  %6448 = vmatprep.mubr.f32.mxu0 %v3493_v50  ;;  %v7204_v17 = vpack.c.bf16 %v3968_v52, %v3967_v34  ;;  %v3969_v50 = vld [vmem:[#allocation7 + $0x2f0] sm:$0xff]  ;;  %v3498_v4 = vmax.f32 %v3472_v5, 0.0 }
 0x51f   : > { %1371 = vmin.xlane.f32.xlu0 %v9249_v44  ;;  %v6403_v7 = vpop.f32.mrb[78].mxu1  ;;  %7197 = vmatprep.subr.bf16.mxu0 %v7196_v32  ;;  %v3497_v1 = vmax.f32 %v3467_v9, 0.0  ;;  %v4409_v9 = vld [vmem:[#allocation7 + $0x308] sm:$0xff] }
 0x520   : > { %v3476_v20 = vpop.f32.mrb[79].mxu1 }
 0x521   : > { %6449 = vmatmul.mubr.f32.gmra.mrb[88].mxu0 %v3494_v6  ;;  %v3477_v43 = vadd.f32 %v9179_v26, %v3476_v20  ;;  %v3482_v6 = vadd.f32 %v6403_v7, %v9179_v26 }
 0x522   : > { %7199 = vmatpush3.bf16.msra.mxu0 %v7196_v32  ;;  %6451 = vmatprep.mubr.f32.mxu0 %v3495_v41  ;;  %v7208_v32 = vpack.c.bf16 %v3970_v39, %v3969_v50  ;;  %v4408_v41 = vld [vmem:[#allocation7 + $0x300] sm:$0xff] }
 0x523   : > { %1356 = vmin.xlane.f32.xlu0 %v9260_v51  ;;  %v6494_v21 = vpop.f32.mrb[80].mxu1  ;;  %7201 = vmatprep.subr.bf16.mxu0 %v7200_v40  ;;  %v3499_v22 = vmax.f32 %v3477_v43, 0.0  ;;  %v3500_v52 = vmax.f32 %v3482_v6, 0.0  ;;  %v7244_v7 = vpack.c.bf16 %v4409_v9, %v4408_v41  ;;  %v4412_v6 = vld [vmem:[#allocation7 + $0x320] sm:$0xff] }
 0x524   : > { %v3859_v15 = vpop.f32.mrb[81].mxu1  ;;  %v3865_v53 = vadd.f32 %v6494_v21, %v9286_v54  ;;  %v4861_v9 = vld [vmem:[#allocation7 + $0x380] sm:$0xff] }
 0x525   : > { %6452 = vmatmul.mubr.f32.gmra.mrb[90].mxu0 %v3496_v28  ;;  %v3860_v20 = vadd.f32 %v9286_v54, %v3859_v15  ;;  %v4410_v28 = vld [vmem:[#allocation7 + $0x310] sm:$0xff]  ;;  %v4411_v15 = vld [vmem:[#allocation7 + $0x318] sm:$0xff] }
 0x526   : > { %7203 = vmatpush3.bf16.msra.mxu0 %v7200_v40  ;;  %6454 = vmatprep.mubr.f32.mxu0 %v3497_v1  ;;  %v3939_v43 = vmax.f32 %v3865_v53, 0.0 }
 0x527   : > { %1401 = vmin.xlane.f32.xlu0 %v9270_v47  ;;  %v6497_v37 = vpop.f32.mrb[82].mxu1  ;;  %7205 = vmatprep.subr.bf16.mxu0 %v7204_v17  ;;  %v3938_v5 = vmax.f32 %v3860_v20, 0.0  ;;  %v4874_v47 = vld [vmem:[#allocation7 + $0x3e8] sm:$0xff] }
 0x528   : > { %v3869_v18 = vpop.f32.mrb[83].mxu1  ;;  %v3875_v50 = vadd.f32 %v6497_v37, %v9286_v54 }
 0x529   : > { %6455 = vmatmul.mubr.f32.gmra.mrb[92].mxu0 %v3498_v4  ;;  %v3870_v26 = vadd.f32 %v9286_v54, %v3869_v18  ;;  %v4413_v18 = vld [vmem:[#allocation7 + $0x328] sm:$0xff] }
 0x52a   : > { %7207 = vmatpush3.bf16.msra.mxu0 %v7204_v17  ;;  %6457 = vmatprep.mubr.f32.mxu0 %v3499_v22  ;;  %v7248_v17 = vpack.c.bf16 %v4411_v15, %v4410_v28  ;;  %v3941_v20 = vmax.f32 %v3875_v50, 0.0  ;;  %v4415_v28 = vld [vmem:[#allocation7 + $0x338] sm:$0xff]  ;;  %v4863_v15 = vld [vmem:[#allocation7 + $0x390] sm:$0xff] }
 0x52b   : > { %1386 = vmin.xlane.f32.xlu0 %v9276_v10  ;;  %v6500_v35 = vpop.f32.mrb[84].mxu1  ;;  %7209 = vmatprep.subr.bf16.mxu0 %v7208_v32  ;;  %v3940_v39 = vmax.f32 %v3870_v26, 0.0  ;;  %v4862_v26 = vld [vmem:[#allocation7 + $0x388] sm:$0xff]  ;;  %v9304_v62 = vpack.c.bf16 %v4864_v57, %v4863_v15  ;;  %v4873_v10 = vld [vmem:[#allocation7 + $0x3e0] sm:$0xff] }
 0x52c   : > { %v3879_v0 = vpop.f32.mrb[85].mxu1  ;;  %v3885_v41 = vadd.f32 %v6500_v35, %v9286_v54 }
 0x52d   : > { %6458 = vmatmul.mubr.f32.gmra.mrb[94].mxu0 %v3500_v52  ;;  %v3880_v21 = vadd.f32 %v9286_v54, %v3879_v0  ;;  %v7252_v0 = vpack.c.bf16 %v4413_v18, %v4412_v6  ;;  %v4414_v52 = vld [vmem:[#allocation7 + $0x330] sm:$0xff]  ;;  %v4416_v6 = vld [vmem:[#allocation7 + $0x340] sm:$0xff] }
 0x52e   : > { %7211 = vmatpush3.bf16.msra.mxu0 %v7208_v32  ;;  %6548 = vmatprep.mubr.f32.mxu0 %v3938_v5  ;;  %v3943_v50 = vmax.f32 %v3885_v41, 0.0  ;;  %v4865_v41 = vld [vmem:[#allocation7 + $0x3a0] sm:$0xff] }
 0x52f   : > { %v6503_v46 = vpop.f32.mrb[86].mxu1  ;;  %7245 = vmatprep.subr.bf16.mxu0 %v7244_v7  ;;  %v3942_v53 = vmax.f32 %v3880_v21, 0.0  ;;  %v7256_v21 = vpack.c.bf16 %v4415_v28, %v4414_v52  ;;  %v4419_v28 = vld [vmem:[#allocation7 + $0x358] sm:$0xff] }
 0x530   : > { %v3889_v34 = vpop.f32.mrb[87].mxu1  ;;  %v3895_v35 = vadd.f32 %v6503_v46, %v9286_v54  ;;  %v4866_v46 = vld [vmem:[#allocation7 + $0x3a8] sm:$0xff] }
 0x531   : > { %6549 = vmatmul.mubr.f32.vlgmr.msra.gmra.mrb[96].mxu0 %v3939_v43  ;;  %v3890_v37 = vadd.f32 %v9286_v54, %v3889_v34 }
 0x532   : > { %7247 = vmatpush3.bf16.msra.mxu0 %v7244_v7  ;;  %6551 = vmatprep.mubr.f32.mxu0 %v3940_v39  ;;  %v9299_v7 = vpack.c.bf16 %v4862_v26, %v4861_v9  ;;  %v4418_v9 = vld [vmem:[#allocation7 + $0x350] sm:$0xff]  ;;  %v9311_v26 = vpack.c.bf16 %v4866_v46, %v4865_v41  ;;  %v4421_v41 = vld [vmem:[#allocation7 + $0x368] sm:$0xff] }
 0x533   : > { %v6506_v40 = vpop.f32.mrb[88].mxu1  ;;  %7249 = vmatprep.subr.bf16.mxu0 %v7248_v17  ;;  %v3944_v43 = vmax.f32 %v3890_v37, 0.0 }
 0x534   : > { %v3899_v1 = vpop.f32.mrb[89].mxu1  ;;  %7340 = vmatprep.subr.bf16.mxu1 %v9299_v7 }
 0x535   : > { %6552 = vmatmul.mubr.f32.gmra.mrb[98].mxu0 %v3941_v20  ;;  %v3900_v34 = vadd.f32 %v9286_v54, %v3899_v1  ;;  %v4417_v20 = vld [vmem:[#allocation7 + $0x348] sm:$0xff]  ;;  %7348 = vmatpush3.bf16.msra.mxu1 %v9299_v7 }
 0x536   : > { %7251 = vmatpush3.bf16.msra.mxu0 %v7248_v17  ;;  %6554 = vmatprep.mubr.f32.mxu0 %v3942_v53  ;;  %v3945_v17 = vmax.f32 %v3895_v35, 0.0  ;;  %v3905_v53 = vadd.f32 %v6506_v40, %v9286_v54  ;;  %v7260_v57 = vpack.c.bf16 %v4417_v20, %v4416_v6  ;;  %v4868_v35 = vld [vmem:[#allocation7 + $0x3b8] sm:$0xff] }
 0x537   : > { %v6509_v4 = vpop.f32.mrb[90].mxu1  ;;  %7253 = vmatprep.subr.bf16.mxu0 %v7252_v0  ;;  %7341 = vmatprep.subr.bf16.mxu1 %v9304_v62  ;;  %v3946_v1 = vmax.f32 %v3900_v34, 0.0  ;;  %v4420_v34 = vld [vmem:[#allocation7 + $0x360] sm:$0xff]  ;;  %v9317_v20 = vpack.c.bf16 %v4868_v35, %v4867_v16  ;;  %v4423_v35 = vld [vmem:[#allocation7 + $0x378] sm:$0xff] }
 0x538   : > { %v3909_v22 = vpop.f32.mrb[91].mxu1  ;;  %v3947_v40 = vmax.f32 %v3905_v53, 0.0  ;;  %v4870_v53 = vld [vmem:[#allocation7 + $0x3c8] sm:$0xff]  ;;  %v7268_v16 = vpack.c.bf16 %v4421_v41, %v4420_v34 }
 0x539   : > { %6555 = vmatmul.mubr.f32.gmra.mrb[100].mxu0 %v3943_v50  ;;  %v3910_v37 = vadd.f32 %v9286_v54, %v3909_v22  ;;  %7349 = vmatpush3.bf16.msra.mxu1 %v9304_v62 }
 0x53a   : > { %7255 = vmatpush3.bf16.msra.mxu0 %v7252_v0  ;;  %6557 = vmatprep.mubr.f32.mxu0 %v3944_v43  ;;  %v3915_v0 = vadd.f32 %v6509_v4, %v9286_v54  ;;  %v7264_v43 = vpack.c.bf16 %v4419_v28, %v4418_v9  ;;  %v9329_v28 = vpack.c.bf16 %v4870_v53, %v4869_v12 }
 0x53b   : > { %v9296_v32 = vpop.f32.mrb[92].mxu1  ;;  %7257 = vmatprep.subr.bf16.mxu0 %v7256_v21  ;;  %7342 = vmatprep.subr.bf16.mxu1 %v9311_v26  ;;  %v3948_v22 = vmax.f32 %v3910_v37, 0.0  ;;  %v4422_v37 = vld [vmem:[#allocation7 + $0x370] sm:$0xff] }
 0x53c   : > { %v3919_v5 = vpop.f32.mrb[93].mxu1  ;;  %v3949_v4 = vmax.f32 %v3915_v0, 0.0  ;;  %v4872_v0 = vld [vmem:[#allocation7 + $0x3d8] sm:$0xff]  ;;  %v7272_v12 = vpack.c.bf16 %v4423_v35, %v4422_v37 }
 0x53d   : > { %6558 = vmatmul.mubr.f32.gmra.mrb[102].mxu0 %v3945_v17  ;;  %v3920_v50 = vadd.f32 %v9286_v54, %v3919_v5  ;;  %7350 = vmatpush3.bf16.msra.mxu1 %v9311_v26  ;;  %v4876_v37 = vld [vmem:[#allocation7 + $0x3f8] sm:$0xff] }
 0x53e   : > { %7259 = vmatpush3.bf16.msra.mxu0 %v7256_v21  ;;  %6560 = vmatprep.mubr.f32.mxu0 %v3946_v1  ;;  %v3925_v21 = vadd.f32 %v9296_v32, %v9286_v54  ;;  %v9327_v1 = vld [vmem:[%s10910_s4 + $0x6] ss:$0 sm:$0xff] }
 0x53f   : > { %v9302_v39 = vpop.f32.mrb[94].mxu1  ;;  %7261 = vmatprep.subr.bf16.mxu0 %v7260_v57  ;;  %7343 = vmatprep.subr.bf16.mxu1 %v9317_v20  ;;  %v3950_v5 = vmax.f32 %v3920_v50, 0.0 }
 0x540   : > { %v3929_v18 = vpop.f32.mrb[95].mxu1 }
 0x541   : > { %6561 = vmatmul.mubr.f32.gmra.mrb[104].mxu0 %v3947_v40  ;;  %v3930_v17 = vadd.f32 %v9286_v54, %v3929_v18  ;;  %v4871_v40 = vld [vmem:[#allocation7 + $0x3d0] sm:$0xff]  ;;  %7351 = vmatpush3.bf16.msra.mxu1 %v9317_v20  ;;  %v3935_v18 = vadd.f32 %v9302_v39, %v9286_v54 }
 0x542   : > { %7263 = vmatpush3.bf16.msra.mxu0 %v7260_v57  ;;  %6563 = vmatprep.mubr.f32.mxu0 %v3948_v22  ;;  %v3951_v57 = vmax.f32 %v3925_v21, 0.0  ;;  %v9336_v41 = vpack.c.bf16 %v4872_v0, %v4871_v40  ;;  %v9342_v21 = vpack.c.bf16 %v4874_v47, %v4873_v10 }
 0x543   : > { %v6606_v52 = vpop.f32.mrb[96].mxu1  ;;  %7265 = vmatprep.subr.bf16.mxu0 %v7264_v43  ;;  %7344 = vmatprep.subr.bf16.mxu1 %v9329_v28  ;;  %v3952_v22 = vmax.f32 %v3930_v17, 0.0  ;;  %v4875_v17 = vld [vmem:[#allocation7 + $0x3f0] sm:$0xff] }
 0x544   : > { %v4312_v15 = vpop.f32.mrb[97].mxu1  ;;  %v4318_v54 = vadd.f32 %v6606_v52, %v9327_v1  ;;  %v9349_v47 = vpack.c.bf16 %v4876_v37, %v4875_v17 }
 0x545   : > { %6564 = vmatmul.mubr.f32.gmra.mrb[106].mxu0 %v3949_v4  ;;  %v4313_v50 = vadd.f32 %v9327_v1, %v4312_v15  ;;  %7352 = vmatpush3.bf16.msra.mxu1 %v9329_v28  ;;  %v3953_v4 = vmax.f32 %v3935_v18, 0.0 }
 0x546   : > { %7267 = vmatpush3.bf16.msra.mxu0 %v7264_v43  ;;  %6566 = vmatprep.mubr.f32.mxu0 %v3950_v5  ;;  %v4392_v35 = vmax.f32 %v4318_v54, 0.0 }
 0x547   : > { %7269 = vmatprep.subr.bf16.mxu0 %v7268_v16  ;;  %7345 = vmatprep.subr.bf16.mxu1 %v9336_v41  ;;  %v4391_v39 = vmax.f32 %v4313_v50, 0.0 }
 0x548   : > { %v6609_v6 = vpop.f32.mrb[98].mxu1 }
 0x549   : > { %v4322_v46 = vpop.f32.mrb[99].mxu1  ;;  %6567 = vmatmul.mubr.f32.gmra.mrb[108].mxu0 %v3951_v57  ;;  %7353 = vmatpush3.bf16.msra.mxu1 %v9336_v41  ;;  %v4328_v52 = vadd.f32 %v6609_v6, %v9327_v1 }
 0x54a   : > { %7271 = vmatpush3.bf16.msra.mxu0 %v7268_v16  ;;  %6569 = vmatprep.mubr.f32.mxu0 %v3952_v22  ;;  %v4323_v15 = vadd.f32 %v9327_v1, %v4322_v46 }
 0x54b   : > { %7273 = vmatprep.subr.bf16.mxu0 %v7272_v12  ;;  %7346 = vmatprep.subr.bf16.mxu1 %v9342_v21  ;;  %v4394_v0 = vmax.f32 %v4328_v52, 0.0 }
 0x54c   : > { %v6612_v9 = vpop.f32.mrb[100].mxu1  ;;  %v4393_v16 = vmax.f32 %v4323_v15, 0.0 }
 0x54d   : > { %v4332_v32 = vpop.f32.mrb[101].mxu1  ;;  %6570 = vmatmul.mubr.f32.gmra.mrb[110].mxu0 %v3953_v4  ;;  %7354 = vmatpush3.bf16.msra.mxu1 %v9342_v21  ;;  %v4338_v57 = vadd.f32 %v6612_v9, %v9327_v1 }
 0x54e   : > { %7275 = vmatpush3.bf16.msra.mxu0 %v7272_v12  ;;  %6660 = vmatprep.mubr.f32.mxu0 %v4391_v39  ;;  %v4333_v46 = vadd.f32 %v9327_v1, %v4332_v32 }
 0x54f   : > { %7309 = vmatprep.subr.bf16.mxu0 %v9299_v7  ;;  %7347 = vmatprep.subr.bf16.mxu1 %v9349_v47  ;;  %v4396_v50 = vmax.f32 %v4338_v57, 0.0 }
 0x550   : > { %v6615_v34 = vpop.f32.mrb[102].mxu1  ;;  %v4395_v6 = vmax.f32 %v4333_v46, 0.0 }
 0x551   : > { %v4342_v53 = vpop.f32.mrb[103].mxu1  ;;  %6661 = vmatmul.mubr.f32.vlgmr.msra.gmra.mrb[112].mxu0 %v4392_v35  ;;  %7355 = vmatpush3.bf16.msra.mxu1 %v9349_v47  ;;  %v4348_v12 = vadd.f32 %v6615_v34, %v9327_v1 }
 0x552   : > { %7311 = vmatpush3.bf16.msra.mxu0 %v9299_v7  ;;  %6663 = vmatprep.mubr.f32.mxu0 %v4393_v16  ;;  %v4343_v32 = vadd.f32 %v9327_v1, %v4342_v53 }
 0x553   : > { %7313 = vmatprep.subr.bf16.mxu0 %v9304_v62  ;;  %v4398_v54 = vmax.f32 %v4348_v12, 0.0 }
 0x554   : > { %v6618_v43 = vpop.f32.mrb[104].mxu1  ;;  %v4397_v9 = vmax.f32 %v4343_v32, 0.0 }
 0x555   : > { %v4352_v5 = vpop.f32.mrb[105].mxu1  ;;  %6664 = vmatmul.mubr.f32.gmra.mrb[114].mxu0 %v4394_v0  ;;  %v4358_v39 = vadd.f32 %v6618_v43, %v9327_v1 }
 0x556   : > { %7315 = vmatpush3.bf16.msra.mxu0 %v9304_v62  ;;  %6666 = vmatprep.mubr.f32.mxu0 %v4395_v6  ;;  %v4353_v7 = vadd.f32 %v9327_v1, %v4352_v5 }
 0x557   : > { %7317 = vmatprep.subr.bf16.mxu0 %v9311_v26  ;;  %v4400_v37 = vmax.f32 %v4358_v39, 0.0 }
 0x558   : > { %v6621_v10 = vpop.f32.mrb[106].mxu1  ;;  %v4399_v15 = vmax.f32 %v4353_v7, 0.0 }
 0x559   : > { %v4362_v40 = vpop.f32.mrb[107].mxu1  ;;  %6667 = vmatmul.mubr.f32.gmra.mrb[116].mxu0 %v4396_v50  ;;  %v4368_v5 = vadd.f32 %v6621_v10, %v9327_v1 }
 0x55a   : > { %7319 = vmatpush3.bf16.msra.mxu0 %v9311_v26  ;;  %6669 = vmatprep.mubr.f32.mxu0 %v4397_v9  ;;  %v4363_v34 = vadd.f32 %v9327_v1, %v4362_v40 }
 0x55b   : > { %7321 = vmatprep.subr.bf16.mxu0 %v9317_v20  ;;  %v4402_v52 = vmax.f32 %v4368_v5, 0.0 }
 0x55c   : > { %v6624_v18 = vpop.f32.mrb[108].mxu1  ;;  %v4401_v35 = vmax.f32 %v4363_v34, 0.0 }
 0x55d   : > { %v4372_v22 = vpop.f32.mrb[109].mxu1  ;;  %6670 = vmatmul.mubr.f32.gmra.mrb[118].mxu0 %v4398_v54  ;;  %v4378_v16 = vadd.f32 %v6624_v18, %v9327_v1 }
 0x55e   : > { %7323 = vmatpush3.bf16.msra.mxu0 %v9317_v20  ;;  %6672 = vmatprep.mubr.f32.mxu0 %v4399_v15  ;;  %v4373_v43 = vadd.f32 %v9327_v1, %v4372_v22  ;;  %v9377_v20 = vld [vmem:[%s10910_s4 + $0x7] ss:$0 sm:$0xff] }
 0x55f   : > { %7325 = vmatprep.subr.bf16.mxu0 %v9329_v28  ;;  %v4404_v0 = vmax.f32 %v4378_v16, 0.0 }
 0x560   : > { %v6627_v4 = vpop.f32.mrb[110].mxu1  ;;  %v4403_v40 = vmax.f32 %v4373_v43, 0.0 }
 0x561   : > { %v4382_v53 = vpop.f32.mrb[111].mxu1  ;;  %6673 = vmatmul.mubr.f32.gmra.mrb[120].mxu0 %v4400_v37  ;;  %v4388_v57 = vadd.f32 %v6627_v4, %v9327_v1 }
 0x562   : > { %7327 = vmatpush3.bf16.msra.mxu0 %v9329_v28  ;;  %6675 = vmatprep.mubr.f32.mxu0 %v4401_v35  ;;  %v4383_v10 = vadd.f32 %v9327_v1, %v4382_v53  ;;  %v1187_v1 = vand.u32 65535, %v9048_v23 }
 0x563   : > { %7329 = vmatprep.subr.bf16.mxu0 %v9336_v41  ;;  %v4406_v32 = vmax.f32 %v4388_v57, 0.0 }
 0x564   : > { %v6718_v62 = vpop.f32.mrb[112].mxu1  ;;  %v4405_v6 = vmax.f32 %v4383_v10, 0.0  ;;  %v1189_v4 = vcvt.s32.f32 %v1187_v1 }
 0x565   : > { %v4765_v17 = vpop.f32.mrb[113].mxu1  ;;  %6676 = vmatmul.mubr.f32.gmra.mrb[122].mxu0 %v4402_v52  ;;  %v4771_v18 = vadd.f32 %v6718_v62, %v9377_v20 }
 0x566   : > { %7331 = vmatpush3.bf16.msra.mxu0 %v9336_v41  ;;  %6678 = vmatprep.mubr.f32.mxu0 %v4403_v40  ;;  %v4766_v28 = vadd.f32 %v9377_v20, %v4765_v17 }
 0x567   : > { %7333 = vmatprep.subr.bf16.mxu0 %v9342_v21  ;;  %v4845_v41 = vmax.f32 %v4771_v18, 0.0 }
 0x568   : > { %v6721_v26 = vpop.f32.mrb[114].mxu1  ;;  %v4844_v22 = vmax.f32 %v4766_v28, 0.0 }
 0x569   : > { %v4775_v46 = vpop.f32.mrb[115].mxu1  ;;  %6679 = vmatmul.mubr.f32.gmra.mrb[124].mxu0 %v4404_v0  ;;  %v4781_v12 = vadd.f32 %v6721_v26, %v9377_v20 }
 0x56a   : > { %7335 = vmatpush3.bf16.msra.mxu0 %v9342_v21  ;;  %6681 = vmatprep.mubr.f32.mxu0 %v4405_v6  ;;  %v4776_v50 = vadd.f32 %v9377_v20, %v4775_v46  ;;  %v1172_v21 = vand.u32 65535, %v9066_v59  ;;  %v1202_v59 = vand.u32 65535, %v9086_v48  ;;  %v1232_v48 = vand.u32 65535, %v9116_v36 }
 0x56b   : > { %7337 = vmatprep.subr.bf16.mxu0 %v9349_v47  ;;  %v4847_v23 = vmax.f32 %v4781_v12, 0.0  ;;  %v1262_v36 = vand.u32 65535, %v9142_v63  ;;  %v1292_v63 = vand.u32 65535, %v9170_v24  ;;  %v1322_v24 = vand.u32 65535, %v9211_v61 }
 0x56c   : > { %v4846_v9 = vmax.f32 %v4776_v50, 0.0  ;;  %v1174_v39 = vcvt.s32.f32 %v1172_v21  ;;  %v1204_v37 = vcvt.s32.f32 %v1202_v59  ;;  %v1234_v26 = vcvt.s32.f32 %v1232_v48 }
 0x56d   : > { %6682 = vmatmul.mubr.f32.gmra.mrb[126].mxu0 %v4406_v32  ;;  %v1264_v40 = vcvt.s32.f32 %v1262_v36  ;;  %v1294_v6 = vcvt.s32.f32 %v1292_v63  ;;  %v1352_v61 = vand.u32 65535, %v9242_v55  ;;  %v1397_v21 = vand.u32 65535, %v9255_v38 }
 0x56e   : > { %7339 = vmatpush3.bf16.msra.mxu0 %v9349_v47  ;;  %6772 = vmatprep.mubr.f32.mxu0 %v4844_v22  ;;  %v1217_v47 = vand.u32 65535, %v9069_v14  ;;  %v1247_v14 = vand.u32 65535, %v9103_v60  ;;  %v1277_v60 = vand.u32 65535, %v9129_v31  ;;  %v1307_v31 = vand.u32 65535, %v9155_v42 }
 0x56f   : > { %v1337_v42 = vand.u32 65535, %v9193_v13  ;;  %v1324_v22 = vcvt.s32.f32 %v1322_v24  ;;  %v1367_v13 = vand.u32 65535, %v9227_v56 }
 0x570   : > { %v1249_v35 = vcvt.s32.f32 %v1247_v14  ;;  %v1279_v16 = vcvt.s32.f32 %v1277_v60  ;;  %v1309_v0 = vcvt.s32.f32 %v1307_v31 }
 0x571   : > { %6773 = vmatmul.mubr.f32.vlgmr.msra.gmra.mrb[128].mxu0 %v4845_v41  ;;  %v1339_v32 = vcvt.s32.f32 %v1337_v42  ;;  %v1369_v1 = vcvt.s32.f32 %v1367_v13 }
 0x572   : > { %6775 = vmatprep.mubr.f32.mxu0 %v4846_v9 }
 0x575   : > { %6776 = vmatmul.mubr.f32.gmra.mrb[130].mxu0 %v4847_v23 }
 0x57b   : > { %v9390_v7 = vpop.xlane.xlu0 %1191 }
 0x57c   : > { %vm1193_vm1 = vcmp.eq.f32.partialorder %v9060_v2, %v9390_v7  ;;  %v1219_v2 = vcvt.s32.f32 %v1217_v47  ;;  %v1382_v47 = vand.u32 65535, %v9266_v29 }
 0x57d   : > { %v1194_v53 = vsel %vm1193_vm1, %v1189_v4, inf }
 0x57e   : > { %1195 = vmin.xlane.f32.xlu1 %v1194_v53  ;;  %v1384_v59 = vcvt.s32.f32 %v1382_v47 }
 0x580   : > { %v9395_v54 = vpop.xlane.xlu0 %1176 }
 0x581   : > { %vm1178_vm2 = vcmp.eq.f32.partialorder %v9078_v8, %v9395_v54 }
 0x582   : > { %v1179_v15 = vsel %vm1178_vm2, %v1174_v39, inf  ;;  %v1399_v39 = vcvt.s32.f32 %v1397_v21 }
 0x583   : > { %1180 = vmin.xlane.f32.xlu1 %v1179_v15  ;;  %v11127_v15 = vld [vmem:[#allocation61_spill] sm:$0xff] }
 0x584   : > { %v9400_v34 = vpop.xlane.xlu0 %1221 }
 0x585   : > { %vm1223_vm1 = vcmp.eq.f32.partialorder %v9096_v25, %v9400_v34 }
 0x586   : > { %v1224_v62 = vsel %vm1223_vm1, %v1219_v2, inf }
 0x587   : > { %1225 = vmin.xlane.f32.xlu1 %v1224_v62 }
 0x588   : > { %v9405_v17 = vpop.xlane.xlu0 %1206 }
 0x589   : > { %vm1208_vm15 = vcmp.eq.f32.partialorder %v9112_v45, %v9405_v17 }
 0x58a   : > { %v1209_v8 = vsel %vm1208_vm15, %v1204_v37, inf }
 0x58b   : > { %1210 = vmin.xlane.f32.xlu1 %v1209_v8 }
 0x58c   : > { %v9410_v5 = vpop.xlane.xlu0 %1251 }
 0x58d   : > { %vm1253_vm2 = vcmp.eq.f32.partialorder %v9124_v49, %v9410_v5 }
 0x58e   : > { %v1254_v25 = vsel %vm1253_vm2, %v1249_v35, inf }
 0x58f   : > { %1255 = vmin.xlane.f32.xlu1 %v1254_v25  ;;  %v9473_v25 = vpop.f32.mrb[16].mxu0 }
 0x590   : > { %v9415_v43 = vpop.xlane.xlu0 %1236 }
 0x591   : > { %vm1238_vm1 = vcmp.eq.f32.partialorder %v9138_v3, %v9415_v43 }
 0x592   : > { %v1239_v45 = vsel %vm1238_vm1, %v1234_v26, inf  ;;  %v9475_v26 = vpop.f32.mrb[17].mxu0 }
 0x593   : > { %1240 = vmin.xlane.f32.xlu1 %v1239_v45  ;;  %v9477_v60 = vpop.f32.mrb[18].mxu0 }
 0x594   : > { %v9420_v52 = vpop.xlane.xlu0 %1281  ;;  %11131 = vst [vmem:[#allocation66_spill] sm:$0xff] %v9477_v60  ;;  %v9479_v45 = vpop.f32.mrb[19].mxu0 }
 0x595   : > { %vm1283_vm15 = vcmp.eq.f32.partialorder %v9150_v58, %v9420_v52  ;;  %11132 = vst [vmem:[#allocation67_spill] sm:$0xff] %v9479_v45  ;;  %v5996_v36 = vpop.f32.mrb[20].mxu0 }
 0x596   : > { %v1284_v49 = vsel %vm1283_vm15, %v1279_v16, inf  ;;  %v5264_v16 = vld [vmem:[%s10912_s6] ss:$0 sm:$0xff] }
 0x597   : > { %1285 = vmin.xlane.f32.xlu1 %v1284_v49  ;;  %v9484_v49 = vadd.f32 %v5996_v36, %v5264_v16 }
 0x598   : > { %v9425_v46 = vpop.xlane.xlu0 %1266 }
 0x599   : > { %vm1268_vm2 = vcmp.eq.f32.partialorder %v9166_v11, %v9425_v46  ;;  %11133 = vst [vmem:[#allocation68_spill] sm:$0xff] %v9484_v49 }
 0x59a   : > { %v1269_v3 = vsel %vm1268_vm2, %v1264_v40, inf  ;;  %v1800_v40 = vpop.f32.mrb[21].mxu0 }
 0x59b   : > { %1270 = vmin.xlane.f32.xlu1 %v1269_v3  ;;  %v9486_v31 = vadd.f32 %v5264_v16, %v1800_v40  ;;  %v5999_v3 = vpop.f32.mrb[22].mxu0 }
 0x59c   : > { %v9430_v10 = vpop.xlane.xlu0 %1311  ;;  %v1810_v63 = vpop.f32.mrb[23].mxu0 }
 0x59d   : > { %vm1313_vm1 = vcmp.eq.f32.partialorder %v9189_v30, %v9430_v10  ;;  %11134 = vst [vmem:[#allocation69_spill] sm:$0xff] %v9486_v31  ;;  %v1213_v31 = vcvt.f32.s32 %v9405_v17 }
 0x59e   : > { %v1314_v58 = vsel %vm1313_vm1, %v1309_v0, inf  ;;  %v9488_v0 = vadd.f32 %v5999_v3, %v5264_v16 }
 0x59f   : > { %1315 = vmin.xlane.f32.xlu1 %v1314_v58  ;;  %v9490_v58 = vadd.f32 %v5264_v16, %v1810_v63 }
 0x5a0   : > { %v9435_v57 = vpop.xlane.xlu0 %1296  ;;  %11135 = vst [vmem:[#allocation70_spill] sm:$0xff] %v9488_v0 }
 0x5a1   : > { %vm1298_vm15 = vcmp.eq.f32.partialorder %v9207_v33, %v9435_v57  ;;  %11136 = vst [vmem:[#allocation71_spill] sm:$0xff] %v9490_v58 }
 0x5a2   : > { %v1299_v11 = vsel %vm1298_vm15, %v1294_v6, inf  ;;  %v6002_v6 = vpop.f32.mrb[24].mxu0 }
 0x5a3   : > { %1300 = vmin.xlane.f32.xlu1 %v1299_v11  ;;  %v9492_v42 = vadd.f32 %v6002_v6, %v5264_v16  ;;  %v1820_v11 = vpop.f32.mrb[25].mxu0 }
 0x5a4   : > { %v9440_v28 = vpop.xlane.xlu0 %1341  ;;  %v6005_v24 = vpop.f32.mrb[26].mxu0 }
 0x5a5   : > { %vm1343_vm2 = vcmp.eq.f32.partialorder %v9221_v27, %v9440_v28  ;;  %v6724_v27 = vpop.f32.mrb[116].mxu1  ;;  %11137 = vst [vmem:[#allocation72_spill] sm:$0xff] %v9492_v42 }
 0x5a6   : > { %v1344_v30 = vsel %vm1343_vm2, %v1339_v32, inf  ;;  %v4791_v12 = vadd.f32 %v6724_v27, %v9377_v20  ;;  %v4785_v9 = vpop.f32.mrb[117].mxu1  ;;  %v9494_v32 = vadd.f32 %v5264_v16, %v1820_v11 }
 0x5a7   : > { %1345 = vmin.xlane.f32.xlu1 %v1344_v30  ;;  %v4786_v56 = vadd.f32 %v9377_v20, %v4785_v9  ;;  %v6727_v37 = vpop.f32.mrb[118].mxu1  ;;  %v9496_v30 = vadd.f32 %v6005_v24, %v5264_v16 }
 0x5a8   : > { %v9445_v18 = vpop.xlane.xlu0 %1326  ;;  %v4849_v53 = vmax.f32 %v4791_v12, 0.0  ;;  %v4801_v14 = vadd.f32 %v6727_v37, %v9377_v20  ;;  %v4795_v8 = vpop.f32.mrb[119].mxu1  ;;  %11138 = vst [vmem:[#allocation73_spill] sm:$0xff] %v9494_v32 }
 0x5a9   : > { %vm1328_vm1 = vcmp.eq.f32.partialorder %v9236_v19, %v9445_v18  ;;  %v1354_v19 = vcvt.s32.f32 %v1352_v61  ;;  %v4848_v55 = vmax.f32 %v4786_v56, 0.0  ;;  %v4796_v29 = vadd.f32 %v9377_v20, %v4795_v8  ;;  %11139 = vst [vmem:[#allocation74_spill] sm:$0xff] %v9496_v30  ;;  %v6730_v47 = vpop.f32.mrb[120].mxu1 }
 0x5aa   : > { %v1329_v33 = vsel %vm1328_vm1, %v1324_v22, inf  ;;  %v4851_v35 = vmax.f32 %v4801_v14, 0.0  ;;  %v1830_v22 = vpop.f32.mrb[27].mxu0 }
 0x5ab   : > { %1330 = vmin.xlane.f32.xlu1 %v1329_v33  ;;  %6778 = vmatprep.mubr.f32.mxu0 %v4848_v55  ;;  %v4850_v48 = vmax.f32 %v4796_v29, 0.0  ;;  %v9498_v13 = vadd.f32 %v5264_v16, %v1830_v22  ;;  %v6008_v33 = vpop.f32.mrb[28].mxu0 }
 0x5ac   : > { %v9450_v50 = vpop.xlane.xlu0 %1371  ;;  %6779 = vmatmul.mubr.f32.gmra.mrb[132].mxu0 %v4849_v53  ;;  %v1840_v61 = vpop.f32.mrb[29].mxu0 }
 0x5ad   : > { %11124 = vst [vmem:[#allocation63_spill] sm:$0xff] %v9450_v50  ;;  %vm1373_vm15 = vcmp.eq.f32.partialorder %v9249_v44, %v9450_v50  ;;  %6781 = vmatprep.mubr.f32.mxu0 %v4850_v48  ;;  %11140 = vst [vmem:[#allocation75_spill] sm:$0xff] %v9498_v13  ;;  %v9502_v27 = vadd.f32 %v5264_v16, %v1840_v61  ;;  %v11216_v50 = vld [vmem:[#allocation33_spill] sm:$0xff] }
 0x5ae   : > { %v1374_v41 = vsel %vm1373_vm15, %v1369_v1, inf  ;;  %v9500_v1 = vadd.f32 %v6008_v33, %v5264_v16 }
 0x5af   : > { %1375 = vmin.xlane.f32.xlu1 %v1374_v41  ;;  %11142 = vst [vmem:[#allocation77_spill] sm:$0xff] %v9502_v27  ;;  %v6011_v41 = vpop.f32.mrb[30].mxu0 }
 0x5b0   : > { %v9457_v4 = vpop.xlane.xlu0 %1356  ;;  %6782 = vmatmul.mubr.f32.gmra.mrb[134].mxu0 %v4851_v35  ;;  %11141 = vst [vmem:[#allocation76_spill] sm:$0xff] %v9500_v1  ;;  %v9504_v12 = vadd.f32 %v6011_v41, %v5264_v16  ;;  %v1850_v9 = vpop.f32.mrb[31].mxu0 }
 0x5b1   : > { %11125 = vst [vmem:[#allocation64_spill] sm:$0xff] %v9457_v4  ;;  %vm1358_vm2 = vcmp.eq.f32.partialorder %v9260_v51, %v9457_v4  ;;  %v11129_v51 = vld [vmem:[#allocation62_spill] sm:$0xff]  ;;  %v9506_v56 = vadd.f32 %v5264_v16, %v1850_v9 }
 0x5b2   : > { %v1359_v23 = vsel %vm1358_vm2, %v1354_v19, inf  ;;  %11130 = vst [vmem:[#allocation62_spill] sm:$0xff] %v9475_v26  ;;  %11143 = vst [vmem:[#allocation78_spill] sm:$0xff] %v9504_v12  ;;  %v9508_v19 = vpop.f32.mrb[32].mxu0 }
 0x5b3   : > { %1360 = vmin.xlane.f32.xlu1 %v1359_v23  ;;  %11144 = vst [vmem:[#allocation79_spill] sm:$0xff] %v9506_v56  ;;  %v9510_v21 = vpop.f32.mrb[33].mxu0  ;;  %v5268_v23 = vld [vmem:[%s10912_s6 + $0x1] ss:$0 sm:$0xff] }
 0x5b4   : > { %v9462_v44 = vpop.xlane.xlu0 %1401  ;;  %11145 = vst [vmem:[#allocation80_spill] sm:$0xff] %v9510_v21  ;;  %v9512_v53 = vpop.f32.mrb[34].mxu0 }
 0x5b5   : > { %11126 = vst [vmem:[#allocation65_spill] sm:$0xff] %v9462_v44  ;;  %vm1403_vm1 = vcmp.eq.f32.partialorder %v11127_v15, %v9462_v44  ;;  %11146 = vst [vmem:[#allocation81_spill] sm:$0xff] %v9512_v53  ;;  %v9514_v55 = vpop.f32.mrb[35].mxu0  ;;  %v1214_v44 = vshll.u32 %v1213_v31, 16 }
 0x5b6   : > { %v1404_v2 = vsel %vm1403_vm1, %v1399_v39, inf  ;;  %11147 = vst [vmem:[#allocation82_spill] sm:$0xff] %v9514_v55  ;;  %v6108_v39 = vpop.f32.mrb[36].mxu0 }
 0x5b7   : > { %1405 = vmin.xlane.f32.xlu1 %v1404_v2  ;;  %v9519_v15 = vadd.f32 %v6108_v39, %v5268_v23  ;;  %v2253_v2 = vpop.f32.mrb[37].mxu0 }
 0x5b8   : > { %v9467_v38 = vpop.xlane.xlu0 %1386  ;;  %v6111_v37 = vpop.f32.mrb[38].mxu0 }
 0x5b9   : > { %11128 = vst [vmem:[#allocation61_spill] sm:$0xff] %v9467_v38  ;;  %vm1388_vm15 = vcmp.eq.f32.partialorder %v11129_v51, %v9467_v38  ;;  %11148 = vst [vmem:[#allocation83_spill] sm:$0xff] %v9519_v15  ;;  %v4805_v51 = vpop.f32.mrb[121].mxu1  ;;  %v9525_v8 = vadd.f32 %v6111_v37, %v5268_v23  ;;  %v2263_v35 = vpop.f32.mrb[39].mxu0 }
 0x5ba   : > { %v1389_v62 = vsel %vm1388_vm15, %v1384_v59, inf  ;;  %v4811_v59 = vadd.f32 %v6730_v47, %v9377_v20  ;;  %v4806_v14 = vadd.f32 %v9377_v20, %v4805_v51  ;;  %v9527_v48 = vadd.f32 %v5268_v23, %v2263_v35  ;;  %v6114_v36 = vpop.f32.mrb[40].mxu0  ;;  %v5272_v35 = vld [vmem:[%s10912_s6 + $0x2] ss:$0 sm:$0xff] }
 0x5bb   : > { %1390 = vmin.xlane.f32.xlu1 %v1389_v62  ;;  %v9522_v62 = vadd.f32 %v5268_v23, %v2253_v2  ;;  %11150 = vst [vmem:[#allocation85_spill] sm:$0xff] %v9525_v8  ;;  %v9529_v40 = vadd.f32 %v6114_v36, %v5268_v23  ;;  %v2273_v3 = vpop.f32.mrb[41].mxu0 }
 0x5bc   : > { %v4853_v29 = vmax.f32 %v4811_v59, 0.0  ;;  %11151 = vst [vmem:[#allocation86_spill] sm:$0xff] %v9527_v48  ;;  %v4852_v16 = vmax.f32 %v4806_v14, 0.0  ;;  %v9531_v63 = vadd.f32 %v5268_v23, %v2273_v3  ;;  %v6117_v6 = vpop.f32.mrb[42].mxu0  ;;  %v11186_v48 = vld [vmem:[#allocation47_spill] sm:$0xff] }
 0x5bd   : > { %11149 = vst [vmem:[#allocation84_spill] sm:$0xff] %v9522_v62  ;;  %11152 = vst [vmem:[#allocation87_spill] sm:$0xff] %v9529_v40  ;;  %v9533_v11 = vadd.f32 %v6117_v6, %v5268_v23  ;;  %v2283_v24 = vpop.f32.mrb[43].mxu0  ;;  %v11203_v62 = vld [vmem:[#allocation27_spill] sm:$0xff] }
 0x5be   : > { %11153 = vst [vmem:[#allocation88_spill] sm:$0xff] %v9531_v63  ;;  %6784 = vmatprep.mubr.f32.mxu1 %v4852_v16  ;;  %v9535_v22 = vadd.f32 %v5268_v23, %v2283_v24  ;;  %v6120_v33 = vpop.f32.mrb[44].mxu0 }
 0x5bf   : > { %11154 = vst [vmem:[#allocation89_spill] sm:$0xff] %v9533_v11  ;;  %6785 = vmatmul.mubr.f32.vlgmr.msra.gmra.mrb[128].mxu1 %v4853_v29  ;;  %v9537_v61 = vadd.f32 %v6120_v33, %v5268_v23  ;;  %v2293_v41 = vpop.f32.mrb[45].mxu0 }
 0x5c0   : > { %11155 = vst [vmem:[#allocation90_spill] sm:$0xff] %v9535_v22  ;;  %v9539_v9 = vadd.f32 %v5268_v23, %v2293_v41  ;;  %v6123_v39 = vpop.f32.mrb[46].mxu0 }
 0x5c1   : > { %11156 = vst [vmem:[#allocation91_spill] sm:$0xff] %v9537_v61  ;;  %v9541_v47 = vadd.f32 %v6123_v39, %v5268_v23  ;;  %v2303_v2 = vpop.f32.mrb[47].mxu0 }
 0x5c2   : > { %11157 = vst [vmem:[#allocation92_spill] sm:$0xff] %v9539_v9  ;;  %v9543_v59 = vadd.f32 %v5268_v23, %v2303_v2  ;;  %v9545_v51 = vpop.f32.mrb[48].mxu0 }
 0x5c3   : > { %11158 = vst [vmem:[#allocation93_spill] sm:$0xff] %v9541_v47  ;;  %v9547_v37 = vpop.f32.mrb[49].mxu0 }
 0x5c4   : > { %11159 = vst [vmem:[#allocation94_spill] sm:$0xff] %v9543_v59  ;;  %11160 = vst [vmem:[#allocation95_spill] sm:$0xff] %v9547_v37  ;;  %v9549_v14 = vpop.f32.mrb[50].mxu0 }
 0x5c5   : > { %11161 = vst [vmem:[#allocation96_spill] sm:$0xff] %v9549_v14  ;;  %v9551_v29 = vpop.f32.mrb[51].mxu0 }
 0x5c6   : > { %11162 = vst [vmem:[#allocation97_spill] sm:$0xff] %v9551_v29  ;;  %v6220_v16 = vpop.f32.mrb[52].mxu0 }
 0x5c7   : > { %v9556_v36 = vadd.f32 %v6220_v16, %v5272_v35  ;;  %v2706_v3 = vpop.f32.mrb[53].mxu0 }
 0x5c8   : > { %v9558_v6 = vadd.f32 %v5272_v35, %v2706_v3  ;;  %v6223_v23 = vpop.f32.mrb[54].mxu0 }
 0x5c9   : > { %11163 = vst [vmem:[#allocation98_spill] sm:$0xff] %v9556_v36  ;;  %v9560_v24 = vadd.f32 %v6223_v23, %v5272_v35  ;;  %v2716_v33 = vpop.f32.mrb[55].mxu0 }
 0x5ca   : > { %11164 = vst [vmem:[#allocation99_spill] sm:$0xff] %v9558_v6  ;;  %v9562_v41 = vadd.f32 %v5272_v35, %v2716_v33  ;;  %v6226_v39 = vpop.f32.mrb[56].mxu0 }
 0x5cb   : > { %11165 = vst [vmem:[#allocation100_spill] sm:$0xff] %v9560_v24  ;;  %v9564_v2 = vadd.f32 %v6226_v39, %v5272_v35  ;;  %v2726_v59 = vpop.f32.mrb[57].mxu0 }
 0x5cc   : > { %11166 = vst [vmem:[#allocation101_spill] sm:$0xff] %v9562_v41  ;;  %v9566_v56 = vadd.f32 %v5272_v35, %v2726_v59  ;;  %v6229_v47 = vpop.f32.mrb[58].mxu0  ;;  %v11185_v41 = vld [vmem:[#allocation31_spill] sm:$0xff] }
 0x5cd   : > { %11167 = vst [vmem:[#allocation102_spill] sm:$0xff] %v9564_v2  ;;  %v9568_v12 = vadd.f32 %v6229_v47, %v5272_v35  ;;  %v2736_v16 = vpop.f32.mrb[59].mxu0 }
 0x5ce   : > { %11168 = vst [vmem:[#allocation103_spill] sm:$0xff] %v9566_v56  ;;  %v9570_v9 = vadd.f32 %v5272_v35, %v2736_v16  ;;  %v6232_v3 = vpop.f32.mrb[60].mxu0  ;;  %v1198_v56 = vcvt.f32.s32 %v9390_v7 }
 0x5cf   : > { %11169 = vst [vmem:[#allocation104_spill] sm:$0xff] %v9568_v12  ;;  %v9572_v27 = vadd.f32 %v6232_v3, %v5272_v35  ;;  %v2746_v23 = vpop.f32.mrb[61].mxu0  ;;  %v11180_v3 = vld [vmem:[#allocation26_spill] sm:$0xff] }
 0x5d0   : > { %11170 = vst [vmem:[#allocation105_spill] sm:$0xff] %v9570_v9  ;;  %v9574_v61 = vadd.f32 %v5272_v35, %v2746_v23  ;;  %v6235_v33 = vpop.f32.mrb[62].mxu0  ;;  %v11179_v9 = vld [vmem:[#allocation29_spill] sm:$0xff]  ;;  %v5276_v23 = vld [vmem:[%s10912_s6 + $0x3] ss:$0 sm:$0xff]  ;;  %v1199_v7 = vshll.u32 %v1198_v56, 16 }
 0x5d1   : > { %11171 = vst [vmem:[#allocation106_spill] sm:$0xff] %v9572_v27  ;;  %v9576_v1 = vadd.f32 %v6235_v33, %v5272_v35  ;;  %v2756_v39 = vpop.f32.mrb[63].mxu0  ;;  %v1460_v27 = vadd.f32 %v11180_v3, %v11179_v9  ;;  %v11193_v56 = vld [vmem:[#allocation28_spill] sm:$0xff] }
 0x5d2   : > { %11172 = vst [vmem:[#allocation107_spill] sm:$0xff] %v9574_v61  ;;  %v9578_v22 = vadd.f32 %v5272_v35, %v2756_v39  ;;  %v9580_v59 = vpop.f32.mrb[64].mxu0  ;;  %vm2312_vm15 = vcmp.eq.s32.totalorder %v11193_v56, 1  ;;  %vm4124_vm14 = vcmp.eq.s32.totalorder %v11193_v56, 5  ;;  %vm4577_vm12 = vcmp.eq.s32.totalorder %v11193_v56, 6 }
 0x5d3   : > { %11173 = vst [vmem:[#allocation108_spill] sm:$0xff] %v9576_v1  ;;  %11175 = vst [vmem:[#allocation110_spill] sm:$0xff] %v9580_v59  ;;  %v9582_v13 = vpop.f32.mrb[65].mxu0  ;;  %v6733_v1 = vpop.f32.mrb[122].mxu1  ;;  %7491 = vrcp.f32 %v1460_v27 }
 0x5d4   : > { %11174 = vst [vmem:[#allocation109_spill] sm:$0xff] %v9578_v22  ;;  %11176 = vst [vmem:[#allocation111_spill] sm:$0xff] %v9582_v13  ;;  %v9584_v47 = vpop.f32.mrb[66].mxu0  ;;  %v4821_v39 = vadd.f32 %v6733_v1, %v9377_v20  ;;  %v4815_v22 = vpop.f32.mrb[123].mxu1  ;;  %v1459_v1 = vadd.f32 %v11186_v48, %v11185_v41 }
 0x5d5   : > { %11177 = vst [vmem:[#allocation112_spill] sm:$0xff] %v9584_v47  ;;  %v9586_v16 = vpop.f32.mrb[67].mxu0  ;;  %v4816_v30 = vadd.f32 %v9377_v20, %v4815_v22 }
 0x5d6   : > { %11178 = vst [vmem:[#allocation113_spill] sm:$0xff] %v9586_v16  ;;  %v6332_v33 = vpop.f32.mrb[68].mxu0  ;;  %v4855_v32 = vmax.f32 %v4821_v39, 0.0  ;;  %7493 = vrcp.f32 %v1459_v1 }
 0x5d7   : > { %v9593_v61 = vadd.f32 %v6332_v33, %v5276_v23  ;;  %v3159_v35 = vpop.f32.mrb[69].mxu0  ;;  %v4854_v33 = vmax.f32 %v4816_v30, 0.0  ;;  %v1183_v30 = vcvt.f32.s32 %v9395_v54 }
 0x5d8   : > { %v9596_v12 = vadd.f32 %v5276_v23, %v3159_v35  ;;  %v6335_v11 = vpop.f32.mrb[70].mxu0 }
 0x5d9   : > { %11181 = vst [vmem:[#allocation29_spill] sm:$0xff] %v9593_v61  ;;  %v9600_v63 = vadd.f32 %v6335_v11, %v5276_v23  ;;  %v3169_v2 = vpop.f32.mrb[71].mxu0  ;;  %6787 = vmatprep.mubr.f32.mxu1 %v4854_v33  ;;  %v1028_v33 = vsel %vm1012_vm3, %v11179_v9, 0.0  ;;  %vm1859_vm3 = vcmp.eq.s32.totalorder %v11193_v56, 0  ;;  %v11202_v61 = vld [vmem:[#allocation30_spill] sm:$0xff] }
 0x5da   : > { %11182 = vst [vmem:[#allocation26_spill] sm:$0xff] %v9596_v12  ;;  %v9602_v40 = vadd.f32 %v5276_v23, %v3169_v2  ;;  %v6338_v42 = vpop.f32.mrb[72].mxu0  ;;  %6788 = vmatmul.mubr.f32.gmra.mrb[130].mxu1 %v4855_v32 }
 0x5db   : > { %11183 = vst [vmem:[#allocation114_spill] sm:$0xff] %v9600_v63  ;;  %v9606_v58 = vadd.f32 %v6338_v42, %v5276_v23  ;;  %v3179_v35 = vpop.f32.mrb[73].mxu0 }
 0x5dc   : > { %11184 = vst [vmem:[#allocation115_spill] sm:$0xff] %v9602_v40  ;;  %v9608_v8 = vadd.f32 %v5276_v23, %v3179_v35  ;;  %v6341_v20 = vpop.f32.mrb[74].mxu0 }
 0x5dd   : > { %11187 = vst [vmem:[#allocation31_spill] sm:$0xff] %v9606_v58  ;;  %v9610_v22 = vadd.f32 %v6341_v20, %v5276_v23  ;;  %v3189_v27 = vpop.f32.mrb[75].mxu0 }
 0x5de   : > { %11188 = vst [vmem:[#allocation47_spill] sm:$0xff] %v9608_v8  ;;  %v9613_v2 = vadd.f32 %v5276_v23, %v3189_v27  ;;  %v6344_v39 = vpop.f32.mrb[76].mxu0  ;;  %v1184_v27 = vshll.u32 %v1183_v30, 16  ;;  %v1027_v30 = vsel %vm1011_vm5, %v11185_v41, 0.0  ;;  %vm2765_vm5 = vcmp.eq.s32.totalorder %v11193_v56, 2 }
 0x5df   : > { %11189 = vst [vmem:[#allocation116_spill] sm:$0xff] %v9610_v22  ;;  %v9615_v58 = vadd.f32 %v6344_v39, %v5276_v23  ;;  %v3199_v40 = vpop.f32.mrb[77].mxu0 }
 0x5e0   : > { %11190 = vst [vmem:[#allocation117_spill] sm:$0xff] %v9613_v2  ;;  %v9617_v35 = vadd.f32 %v5276_v23, %v3199_v40  ;;  %v6347_v8 = vpop.f32.mrb[78].mxu0 }
 0x5e1   : > { %11191 = vst [vmem:[#allocation118_spill] sm:$0xff] %v9615_v58  ;;  %v9624_v54 = vadd.f32 %v6347_v8, %v5276_v23  ;;  %v3209_v20 = vpop.f32.mrb[79].mxu0  ;;  %v7492_v58 = vpop.eup %7491 }
 0x5e2   : > { %11192 = vst [vmem:[#allocation119_spill] sm:$0xff] %v9617_v35 }
 0x5e3   : > { %11195 = vst [vmem:[#allocation28_spill] sm:$0xff] %v9624_v54 }
 0x5e4   : > { %v9629_v40 = vpop.f32.mrb[80].mxu0 }
 0x5e5   : > { %11197 = vst [vmem:[#allocation120_spill] sm:$0xff] %v9629_v40  ;;  %v9631_v35 = vpop.f32.mrb[81].mxu0 }
 0x5e6   : > { %11198 = vst [vmem:[#allocation121_spill] sm:$0xff] %v9631_v35  ;;  %v1243_v35 = vcvt.f32.s32 %v9415_v43 }
 0x5e8   : > { %v9634_v9 = vpop.f32.mrb[82].mxu0 }
 0x5e9   : > { %11199 = vst [vmem:[#allocation122_spill] sm:$0xff] %v9634_v9 }
 0x60b   : > { %v1196_v24 = vpop.xlane.xlu1 %1195 }
 0x60c   : > { %v1197_v11 = vcvt.f32.s32 %v1196_v24 }
 0x60e   : > { %v1200_v42 = vadd.s32 %v1199_v7, %v1197_v11  ;;  %v9627_v11 = vadd.f32 %v5276_v23, %v3209_v20 }
 0x610   : > { %vm1412_vm2 = vcmp.eq.s32.totalorder %v11193_v56, %v1200_v42  ;;  %v1181_v32 = vpop.xlane.xlu1 %1180  ;;  %11196 = vst [vmem:[#allocation45_spill] sm:$0xff] %v9627_v11  ;;  %v9638_v42 = vpop.f32.mrb[83].mxu0  ;;  %v1228_v11 = vcvt.f32.s32 %v9400_v34 }
 0x611   : > { %v1428_v1 = vsel %vm1412_vm2, %v11180_v3, 0.0  ;;  %v1182_v7 = vcvt.f32.s32 %v1181_v32  ;;  %11200 = vst [vmem:[#allocation123_spill] sm:$0xff] %v9638_v42  ;;  %v9642_v3 = vpop.f32.mrb[84].mxu0  ;;  %vm3218_vm2 = vcmp.eq.s32.totalorder %v11193_v56, 3 }
 0x612   : > { %v1444_v39 = vadd.f32 %v1428_v1, %v1028_v33  ;;  %v9652_v32 = vpop.f32.mrb[85].mxu0  ;;  %v1229_v63 = vshll.u32 %v1228_v11, 16 }
 0x613   : > { %v1185_v24 = vadd.s32 %v1184_v27, %v1182_v7  ;;  %v9655_v1 = vpop.f32.mrb[86].mxu0  ;;  %v7494_v7 = vpop.eup %7493 }
 0x614   : > { %v9636_v8 = vmul.f32 %v7492_v58, %v1444_v39  ;;  %v9660_v41 = vpop.f32.mrb[87].mxu0  ;;  %v1226_v23 = vpop.xlane.xlu1 %1225 }
 0x615   : > { %vm1411_vm1 = vcmp.eq.s32.totalorder %v11193_v56, %v1185_v24  ;;  %v9665_v24 = vpop.f32.mrb[88].mxu0  ;;  %v1227_v22 = vcvt.f32.s32 %v1226_v23  ;;  %v1462_v23 = vadd.f32 %v11203_v62, %v11202_v61 }
 0x616   : > { %v1427_v33 = vsel %vm1411_vm1, %v11186_v48, 0.0  ;;  %v1861_v58 = vsel %vm1859_vm3, %v9636_v8, 0.0  ;;  %v2314_v39 = vsel %vm2312_vm15, %v9636_v8, 0.0  ;;  %vm3671_vm1 = vcmp.eq.s32.totalorder %v11193_v56, 4 }
 0x617   : > { %v1443_v20 = vadd.f32 %v1427_v33, %v1027_v30  ;;  %v1879_v27 = vsel %vm512_vm0, %v1861_v58, 0.0  ;;  %v9667_v30 = vpop.f32.mrb[89].mxu0  ;;  %v2332_v58 = vsel %vm512_vm0, %v2314_v39, 0.0  ;;  %v3673_v17 = vsel %vm3671_vm1, %v9636_v8, 0.0 }
 0x618   : > { %1880 = vadd.xlane.f32.xlu1 %v1879_v27  ;;  %v9673_v27 = vpop.f32.mrb[90].mxu0  ;;  %v1211_v0 = vpop.xlane.xlu1 %1210  ;;  %7495 = vrcp.f32 %v1462_v23  ;;  %v3691_v31 = vsel %vm512_vm0, %v3673_v17, 0.0  ;;  %v4126_v16 = vsel %vm4124_vm14, %v9636_v8, 0.0 }
 0x619   : > { %v9662_v48 = vmul.f32 %v7494_v7, %v1443_v20  ;;  %v2767_v7 = vsel %vm2765_vm5, %v9636_v8, 0.0  ;;  %v9680_v54 = vpop.f32.mrb[91].mxu0  ;;  %v1212_v36 = vcvt.f32.s32 %v1211_v0 }
 0x61a   : > { %v9686_v39 = vpop.f32.mrb[92].mxu0 }
 0x61b   : > { %v1860_v33 = vsel %vm1859_vm3, %v9662_v48, 0.0  ;;  %v2313_v2 = vsel %vm2312_vm15, %v9662_v48, 0.0  ;;  %v9688_v34 = vpop.f32.mrb[93].mxu0  ;;  %v2766_v11 = vsel %vm2765_vm5, %v9662_v48, 0.0  ;;  %v3219_v0 = vsel %vm3218_vm2, %v9662_v48, 0.0 }
 0x61c   : > { %v1876_v20 = vsel %vm512_vm0, %v1860_v33, 0.0  ;;  %2333 = vadd.xlane.f32.xlu1 %v2332_v58  ;;  %v2785_v33 = vsel %vm512_vm0, %v2767_v7, 0.0  ;;  %v9691_v58 = vpop.f32.mrb[94].mxu0  ;;  %v2329_v12 = vsel %vm512_vm0, %v2313_v2, 0.0  ;;  %v1230_v7 = vadd.s32 %v1229_v63, %v1227_v22  ;;  %v9725_v22 = vpop.f32.mrb[124].mxu1 }
 0x61d   : > { %1877 = vadd.xlane.f32.xlu0 %v1876_v20  ;;  %v3220_v20 = vsel %vm3218_vm2, %v9636_v8, 0.0  ;;  %v9697_v6 = vpop.f32.mrb[95].mxu0  ;;  %v2782_v38 = vsel %vm512_vm0, %v2766_v11, 0.0  ;;  %v9732_v23 = vpop.f32.mrb[125].mxu1 }
 0x61e   : > { %v9706_v2 = vpop.f32.mrb[96].mxu0  ;;  %v3238_v15 = vsel %vm512_vm0, %v3220_v20, 0.0  ;;  %v11209_v20 = vld [vmem:[#allocation48_spill] sm:$0xff]  ;;  %vm1414_vm13 = vcmp.eq.s32.totalorder %v11193_v56, %v1230_v7 }
 0x61f   : > { %11204 = vst [vmem:[#allocation46_spill] sm:$0xff] %v9706_v2  ;;  %v1430_v7 = vsel %vm1414_vm13, %v11203_v62, 0.0  ;;  %v1244_v2 = vshll.u32 %v1243_v35, 16 }
 0x620   : > { %2786 = vadd.xlane.f32.xlu1 %v2785_v33  ;;  %v9708_v33 = vpop.f32.mrb[97].mxu0 }
 0x621   : > { %2330 = vadd.xlane.f32.xlu0 %v2329_v12  ;;  %11205 = vst [vmem:[#allocation30_spill] sm:$0xff] %v9708_v33  ;;  %v9711_v49 = vpop.f32.mrb[98].mxu0 }
 0x622   : > { %11206 = vst [vmem:[#allocation27_spill] sm:$0xff] %v9711_v49  ;;  %v9717_v12 = vpop.f32.mrb[99].mxu0  ;;  %v3235_v49 = vsel %vm512_vm0, %v3219_v0, 0.0 }
 0x623   : > { %11207 = vst [vmem:[#allocation124_spill] sm:$0xff] %v9717_v12  ;;  %v9723_v63 = vpop.f32.mrb[100].mxu0 }
 0x624   : > { %3239 = vadd.xlane.f32.xlu1 %v3238_v15  ;;  %v11208_v15 = vld [vmem:[#allocation32_spill] sm:$0xff]  ;;  %v9730_v42 = vpop.f32.mrb[101].mxu0 }
 0x625   : > { %2783 = vadd.xlane.f32.xlu0 %v2782_v38  ;;  %v1461_v11 = vadd.f32 %v11209_v20, %v11208_v15  ;;  %v1215_v38 = vadd.s32 %v1214_v44, %v1212_v36  ;;  %v9735_v12 = vpop.f32.mrb[102].mxu0  ;;  %v3672_v44 = vsel %vm3671_vm1, %v9662_v48, 0.0 }
 0x626   : > { %v9741_v9 = vpop.f32.mrb[103].mxu0  ;;  %v3688_v47 = vsel %vm512_vm0, %v3672_v44, 0.0  ;;  %v7496_v44 = vpop.eup %7495 }
 0x627   : > { %v9748_v36 = vpop.f32.mrb[104].mxu0  ;;  %7497 = vrcp.f32 %v1461_v11  ;;  %vm1413_vm11 = vcmp.eq.s32.totalorder %v11193_v56, %v1215_v38  ;;  %v4579_v11 = vsel %vm4577_vm12, %v9636_v8, 0.0 }
 0x628   : > { %3692 = vadd.xlane.f32.xlu1 %v3691_v31  ;;  %v9750_v17 = vpop.f32.mrb[105].mxu0  ;;  %v1030_v31 = vsel %vm1014_vm4, %v11202_v61, 0.0  ;;  %v4125_v61 = vsel %vm4124_vm14, %v9662_v48, 0.0  ;;  %vm5030_vm4 = vcmp.eq.s32.totalorder %v11193_v56, 7  ;;  %v1429_v38 = vsel %vm1413_vm11, %v11209_v20, 0.0 }
 0x629   : > { %3236 = vadd.xlane.f32.xlu0 %v3235_v49  ;;  %v4144_v49 = vsel %vm512_vm0, %v4126_v16, 0.0  ;;  %v9758_v62 = vpop.f32.mrb[106].mxu0  ;;  %v1446_v29 = vadd.f32 %v1430_v7, %v1030_v31  ;;  %v4597_v0 = vsel %vm512_vm0, %v4579_v11, 0.0  ;;  %v4141_v14 = vsel %vm512_vm0, %v4125_v61, 0.0 }
 0x62a   : > { %v9764_v55 = vpop.f32.mrb[107].mxu0  ;;  %v5032_v20 = vsel %vm5030_vm4, %v9636_v8, 0.0  ;;  %v4578_v11 = vsel %vm4577_vm12, %v9662_v48, 0.0 }
 0x62b   : > { %v9770_v16 = vpop.f32.mrb[108].mxu0  ;;  %v9782_v45 = vmul.f32 %v7496_v44, %v1446_v29  ;;  %v5050_v29 = vsel %vm512_vm0, %v5032_v20, 0.0  ;;  %v4594_v44 = vsel %vm512_vm0, %v4578_v11, 0.0  ;;  %v1256_v20 = vpop.xlane.xlu1 %1255 }
 0x62c   : > { %4145 = vadd.xlane.f32.xlu1 %v4144_v49  ;;  %v9773_v7 = vpop.f32.mrb[109].mxu0  ;;  %v1029_v49 = vsel %vm1013_vm6, %v11208_v15, 0.0 }
 0x62d   : > { %3689 = vadd.xlane.f32.xlu0 %v3688_v47  ;;  %v9776_v31 = vpop.f32.mrb[110].mxu0  ;;  %v1445_v60 = vadd.f32 %v1429_v38, %v1029_v49  ;;  %v3675_v43 = vsel %vm3671_vm1, %v9782_v45, 0.0 }
 0x62e   : > { %v9791_v53 = vpop.f32.mrb[111].mxu0  ;;  %v3697_v37 = vsel %vm512_vm0, %v3675_v43, 0.0 }
 0x62f   : > { %v9793_v4 = vpop.f32.mrb[112].mxu0  ;;  %v1241_v33 = vpop.xlane.xlu1 %1240 }
 0x630   : > { %4598 = vadd.xlane.f32.xlu1 %v4597_v0  ;;  %11212 = vst [vmem:[#allocation32_spill] sm:$0xff] %v9793_v4  ;;  %v9796_v15 = vpop.f32.mrb[113].mxu0  ;;  %v5031_v0 = vsel %vm5030_vm4, %v9662_v48, 0.0 }
 0x631   : > { %4142 = vadd.xlane.f32.xlu0 %v4141_v14  ;;  %11213 = vst [vmem:[#allocation48_spill] sm:$0xff] %v9796_v15  ;;  %v7498_v61 = vpop.eup %7497  ;;  %v1863_v14 = vsel %vm1859_vm3, %v9782_v45, 0.0  ;;  %v9802_v8 = vpop.f32.mrb[114].mxu0  ;;  %v5047_v11 = vsel %vm512_vm0, %v5031_v0, 0.0 }
 0x632   : > { %11214 = vst [vmem:[#allocation12_spill] sm:$0xff] %v9802_v8  ;;  %v9804_v38 = vmul.f32 %v7498_v61, %v1445_v60  ;;  %v9809_v47 = vpop.f32.mrb[115].mxu0  ;;  %v1885_v49 = vsel %vm512_vm0, %v1863_v14, 0.0  ;;  %v1258_v60 = vcvt.f32.s32 %v9410_v5 }
 0x633   : > { %11215 = vst [vmem:[#allocation13_spill] sm:$0xff] %v9809_v47  ;;  %v9816_v8 = vpop.f32.mrb[116].mxu0 }
 0x634   : > { %5051 = vadd.xlane.f32.xlu1 %v5050_v29  ;;  %v2316_v29 = vsel %vm2312_vm15, %v9782_v45, 0.0  ;;  %v1862_v48 = vsel %vm1859_vm3, %v9804_v38, 0.0  ;;  %v9822_v61 = vpop.f32.mrb[117].mxu0  ;;  %v1259_v5 = vshll.u32 %v1258_v60, 16  ;;  %v3222_v60 = vsel %vm3218_vm2, %v9782_v45, 0.0 }
 0x635   : > { %4595 = vadd.xlane.f32.xlu0 %v4594_v44  ;;  %v1257_v44 = vcvt.f32.s32 %v1256_v20  ;;  %v2338_v14 = vsel %vm512_vm0, %v2316_v29, 0.0  ;;  %v1882_v0 = vsel %vm512_vm0, %v1862_v48, 0.0  ;;  %v9829_v47 = vpop.f32.mrb[118].mxu0  ;;  %v11217_v48 = vld [vmem:[#allocation49_spill] sm:$0xff]  ;;  %v3221_v13 = vsel %vm3218_vm2, %v9804_v38, 0.0 }
 0x636   : > { %v9834_v15 = vpop.f32.mrb[119].mxu0  ;;  %v3674_v59 = vsel %vm3671_vm1, %v9804_v38, 0.0  ;;  %v3241_v21 = vsel %vm512_vm0, %v3221_v13, 0.0 }
 0x637   : > { %v1260_v20 = vadd.s32 %v1259_v5, %v1257_v44  ;;  %v2768_v44 = vsel %vm2765_vm5, %v9804_v38, 0.0  ;;  %v1242_v5 = vcvt.f32.s32 %v1241_v33  ;;  %v9865_v33 = vld [vmem:[%s10912_s6 + $0x4] ss:$0 sm:$0xff] }
 0x638   : > { %1886 = vadd.xlane.f32.xlu1 %v1885_v49  ;;  %v2769_v49 = vsel %vm2765_vm5, %v9782_v45, 0.0  ;;  %v9874_v35 = vadd.f32 %v9642_v3, %v9865_v33  ;;  %v9884_v26 = vadd.f32 %v9865_v33, %v9652_v32  ;;  %v4128_v3 = vsel %vm4124_vm14, %v9782_v45, 0.0 }
 0x639   : > { %5048 = vadd.xlane.f32.xlu0 %v5047_v11  ;;  %v2315_v11 = vsel %vm2312_vm15, %v9804_v38, 0.0  ;;  %v2791_v29 = vsel %vm512_vm0, %v2769_v49, 0.0  ;;  %vm1416_vm6 = vcmp.eq.s32.totalorder %v11193_v56, %v1260_v20  ;;  %v1245_v40 = vadd.s32 %v1244_v2, %v1242_v5 }
 0x63a   : > { %v2335_v4 = vsel %vm512_vm0, %v2315_v11, 0.0  ;;  %v3244_v11 = vsel %vm512_vm0, %v3222_v60, 0.0  ;;  %v11219_v60 = vld [vmem:[#allocation50_spill] sm:$0xff]  ;;  %v9892_v2 = vadd.f32 %v9655_v1, %v9865_v33  ;;  %v9908_v43 = vadd.f32 %v9665_v24, %v9865_v33 }
 0x63b   : > { %v9912_v1 = vadd.f32 %v9865_v33, %v9667_v30  ;;  %vm1415_vm11 = vcmp.eq.s32.totalorder %v11193_v56, %v1245_v40  ;;  %v9924_v24 = vadd.f32 %v9673_v27, %v9865_v33  ;;  %v9928_v30 = vadd.f32 %v9865_v33, %v9680_v54 }
 0x63c   : > { %2339 = vadd.xlane.f32.xlu1 %v2338_v14  ;;  %v1464_v14 = vadd.f32 %v11217_v48, %v11216_v50  ;;  %11220 = vst [vmem:[#allocation33_spill] sm:$0xff] %v9892_v2  ;;  %v1431_v54 = vsel %vm1415_vm11, %v11219_v60, 0.0 }
 0x63d   : > { %1883 = vadd.xlane.f32.xlu0 %v1882_v0  ;;  %v9843_v0 = vpop.f32.mrb[120].mxu0 }
 0x63e   : > { %v9849_v49 = vpop.f32.mrb[121].mxu0  ;;  %7499 = vrcp.f32 %v1464_v14  ;;  %v11218_v14 = vld [vmem:[#allocation34_spill] sm:$0xff] }
 0x63f   : > { %11223 = vst [vmem:[#allocation34_spill] sm:$0xff] %v9928_v30 }
 0x640   : > { %2792 = vadd.xlane.f32.xlu1 %v2791_v29  ;;  %v2788_v29 = vsel %vm512_vm0, %v2768_v44, 0.0  ;;  %v1463_v44 = vadd.f32 %v11219_v60, %v11218_v14  ;;  %v1031_v60 = vsel %vm1015_vm8, %v11218_v14, 0.0 }
 0x641   : > { %2336 = vadd.xlane.f32.xlu0 %v2335_v4  ;;  %v9857_v4 = vpop.f32.mrb[122].mxu0 }
 0x642   : > { %v9867_v20 = vpop.f32.mrb[123].mxu0  ;;  %7501 = vrcp.f32 %v1463_v44  ;;  %v4127_v44 = vsel %vm4124_vm14, %v9804_v38, 0.0 }
 0x643   : > { %v9898_v5 = vpop.f32.mrb[124].mxu0 }
 0x644   : > { %3245 = vadd.xlane.f32.xlu1 %v3244_v11  ;;  %v1432_v11 = vsel %vm1416_vm6, %v11217_v48, 0.0  ;;  %v9896_v48 = vadd.f32 %v9865_v33, %v9660_v41  ;;  %v9900_v32 = vpop.f32.mrb[125].mxu0 }
 0x645   : > { %2789 = vadd.xlane.f32.xlu0 %v2788_v29  ;;  %v9876_v29 = vpop.f32.mrb[126].mxu1  ;;  %v9934_v40 = vpop.f32.mrb[126].mxu0 }
 0x646   : > { %11221 = vst [vmem:[#allocation49_spill] sm:$0xff] %v9896_v48  ;;  %v4150_v48 = vsel %vm512_vm0, %v4128_v3, 0.0  ;;  %v9917_v2 = vpop.f32.mrb[127].mxu1  ;;  %v9943_v27 = vpop.f32.mrb[127].mxu0 }
 0x648   : > { %3698 = vadd.xlane.f32.xlu1 %v3697_v37  ;;  %v1032_v37 = vsel %vm1016_vm7, %v11216_v50, 0.0  ;;  %v4581_v50 = vsel %vm4577_vm12, %v9782_v45, 0.0  ;;  %v7500_v3 = vpop.eup %7499 }
 0x649   : > { %3242 = vadd.xlane.f32.xlu0 %v3241_v21  ;;  %v1448_v41 = vadd.f32 %v1432_v11, %v1032_v37  ;;  %v3694_v21 = vsel %vm512_vm0, %v3674_v59, 0.0  ;;  %v9932_v59 = vadd.f32 %v9686_v39, %v9865_v33  ;;  %v9941_v11 = vadd.f32 %v9865_v33, %v9688_v34 }
 0x64a   : > { %v9948_v39 = vadd.f32 %v9691_v58, %v9865_v33  ;;  %v4603_v13 = vsel %vm512_vm0, %v4581_v50, 0.0  ;;  %v4580_v37 = vsel %vm4577_vm12, %v9804_v38, 0.0  ;;  %v9958_v34 = vadd.f32 %v9865_v33, %v9697_v6  ;;  %v9968_v50 = vpop.f32.mrb[128].mxu0  ;;  %v9973_v6 = vld [vmem:[%s10912_s6 + $0x5] ss:$0 sm:$0xff] }
 0x64b   : > { %11224 = vst [vmem:[#allocation50_spill] sm:$0xff] %v9932_v59  ;;  %11225 = vst [vmem:[#allocation14_spill] sm:$0xff] %v9941_v11  ;;  %v4147_v58 = vsel %vm512_vm0, %v4127_v44, 0.0  ;;  %v4600_v14 = vsel %vm512_vm0, %v4580_v37, 0.0  ;;  %v9980_v44 = vadd.f32 %v9723_v63, %v9973_v6  ;;  %v9997_v37 = vld [vmem:[%s10910_s4 + $0x7] ss:$0 sm:$0xff] }
 0x64c   : > { %4151 = vadd.xlane.f32.xlu1 %v4150_v48  ;;  %11226 = vst [vmem:[#allocation125_spill] sm:$0xff] %v9948_v39  ;;  %v9950_v48 = vmul.f32 %v7500_v3, %v1448_v41  ;;  %11227 = vst [vmem:[#allocation126_spill] sm:$0xff] %v9958_v34  ;;  %v5034_v41 = vsel %vm5030_vm4, %v9782_v45, 0.0  ;;  %v1447_v3 = vadd.f32 %v1431_v54, %v1031_v60  ;;  %v9975_v34 = vpop.f32.mrb[129].mxu0 }
 0x64d   : > { %3695 = vadd.xlane.f32.xlu0 %v3694_v21  ;;  %v9984_v45 = vadd.f32 %v9973_v6, %v9730_v42  ;;  %v5056_v54 = vsel %vm512_vm0, %v5034_v41, 0.0  ;;  %v9992_v21 = vadd.f32 %v9735_v12, %v9973_v6  ;;  %v4831_v63 = vadd.f32 %v9997_v37, %v9725_v22  ;;  %v7502_v42 = vpop.eup %7501 }
 0x64e   : > { %v10003_v60 = vadd.f32 %v9973_v6, %v9741_v9  ;;  %v10009_v12 = vadd.f32 %v9748_v36, %v9973_v6  ;;  %v10013_v41 = vadd.f32 %v9973_v6, %v9750_v17  ;;  %v10015_v39 = vmul.f32 %v7502_v42, %v1447_v3 }
 0x64f   : > { %v5033_v22 = vsel %vm5030_vm4, %v9804_v38, 0.0  ;;  %v4857_v9 = vmax.f32 %v4831_v63, 0.0  ;;  %v10026_v36 = vadd.f32 %v9973_v6, %v9764_v55  ;;  %v10031_v3 = vadd.f32 %v9770_v16, %v9973_v6  ;;  %v10055_v63 = vld [vmem:[%s10912_s6 + $0x6] ss:$0 sm:$0xff] }
 0x650   : > { %4604 = vadd.xlane.f32.xlu1 %v4603_v13  ;;  %v1865_v13 = vsel %vm1859_vm3, %v9950_v48, 0.0  ;;  %v5053_v38 = vsel %vm512_vm0, %v5033_v22, 0.0  ;;  %v10043_v55 = vadd.f32 %v9776_v31, %v9973_v6  ;;  %v10047_v16 = vadd.f32 %v9973_v6, %v9791_v53 }
 0x651   : > { %4148 = vadd.xlane.f32.xlu0 %v4147_v58  ;;  %v4826_v58 = vadd.f32 %v9997_v37, %v9732_v23  ;;  %11230 = vst [vmem:[#allocation127_spill] sm:$0xff] %v10026_v36  ;;  %v1891_v17 = vsel %vm512_vm0, %v1865_v13, 0.0  ;;  %11231 = vst [vmem:[#allocation128_spill] sm:$0xff] %v10031_v3  ;;  %v1286_v13 = vpop.xlane.xlu1 %1285  ;;  %v1288_v42 = vcvt.f32.s32 %v9420_v52  ;;  %v10061_v53 = vadd.f32 %v9816_v8, %v10055_v63  ;;  %v11261_v3 = vld [vmem:[#allocation80_spill] sm:$0xff] }
 0x652   : > { %11233 = vst [vmem:[#allocation130_spill] sm:$0xff] %v10043_v55  ;;  %11234 = vst [vmem:[#allocation131_spill] sm:$0xff] %v10047_v16  ;;  %v10073_v52 = vadd.f32 %v9829_v47, %v10055_v63  ;;  %v2317_v8 = vsel %vm2312_vm15, %v10015_v39, 0.0  ;;  %v11236_v47 = vld [vmem:[#allocation51_spill] sm:$0xff]  ;;  %v10103_v16 = vadd.f32 %v9898_v5, %v10055_v63  ;;  %v10119_v5 = vadd.f32 %v10055_v63, %v9943_v27 }
 0x653   : > { %v4856_v23 = vmax.f32 %v4826_v58, 0.0  ;;  %v10065_v58 = vadd.f32 %v10055_v63, %v9822_v61  ;;  %v10084_v61 = vadd.f32 %v9843_v0, %v10055_v63  ;;  %v2341_v55 = vsel %vm512_vm0, %v2317_v8, 0.0 }
 0x654   : > { %5057 = vadd.xlane.f32.xlu1 %v5056_v54  ;;  %v10022_v54 = vadd.f32 %v9758_v62, %v9973_v6  ;;  %v2318_v62 = vsel %vm2312_vm15, %v9950_v48, 0.0  ;;  %11239 = vst [vmem:[#allocation132_spill] sm:$0xff] %v10103_v16  ;;  %11242 = vst [vmem:[#allocation135_spill] sm:$0xff] %v10119_v5  ;;  %v4836_v27 = vadd.f32 %v9997_v37, %v9917_v2 }
 0x655   : > { %4601 = vadd.xlane.f32.xlu0 %v4600_v14  ;;  %v10035_v14 = vadd.f32 %v9973_v6, %v9773_v7  ;;  %6790 = vmatprep.mubr.f32.mxu1 %v4856_v23  ;;  %v1864_v7 = vsel %vm1859_vm3, %v10015_v39, 0.0  ;;  %v2344_v31 = vsel %vm512_vm0, %v2318_v62, 0.0  ;;  %v10077_v23 = vadd.f32 %v10055_v63, %v9834_v15 }
 0x656   : > { %11229 = vst [vmem:[#allocation15_spill] sm:$0xff] %v10022_v54  ;;  %6791 = vmatmul.mubr.f32.gmra.mrb[132].mxu1 %v4857_v9  ;;  %v1888_v22 = vsel %vm512_vm0, %v1864_v7, 0.0  ;;  %v2771_v9 = vsel %vm2765_vm5, %v9950_v48, 0.0  ;;  %v1287_v7 = vcvt.f32.s32 %v1286_v13  ;;  %v10094_v15 = vadd.f32 %v9857_v4, %v10055_v63  ;;  %v1271_v13 = vpop.xlane.xlu1 %1270 }
 0x657   : > { %11232 = vst [vmem:[#allocation129_spill] sm:$0xff] %v10035_v14  ;;  %v2797_v0 = vsel %vm512_vm0, %v2771_v9, 0.0  ;;  %v3224_v4 = vsel %vm3218_vm2, %v9950_v48, 0.0  ;;  %v10125_v9 = vpop.f32.mrb[130].mxu0 }
 0x658   : > { %1892 = vadd.xlane.f32.xlu1 %v1891_v17  ;;  %v10088_v17 = vadd.f32 %v10055_v63, %v9849_v49  ;;  %v10107_v49 = vadd.f32 %v10055_v63, %v9900_v32  ;;  %v2770_v32 = vsel %vm2765_vm5, %v10015_v39, 0.0  ;;  %v10142_v2 = vpop.f32.mrb[131].mxu0 }
 0x659   : > { %5054 = vadd.xlane.f32.xlu0 %v5053_v38  ;;  %v11235_v38 = vld [vmem:[#allocation35_spill] sm:$0xff] }
 0x65a   : > { %v1466_v62 = vadd.f32 %v11236_v47, %v11235_v38  ;;  %11237 = vst [vmem:[#allocation35_spill] sm:$0xff] %v10094_v15  ;;  %11240 = vst [vmem:[#allocation133_spill] sm:$0xff] %v10107_v49  ;;  %v3250_v49 = vsel %vm512_vm0, %v3224_v4, 0.0  ;;  %v11244_v4 = vld [vmem:[#allocation52_spill] sm:$0xff] }
 0x65c   : > { %2345 = vadd.xlane.f32.xlu1 %v2344_v31  ;;  %v10098_v31 = vadd.f32 %v10055_v63, %v9867_v20  ;;  %v10115_v20 = vadd.f32 %v9934_v40, %v10055_v63  ;;  %v4841_v40 = vadd.f32 %v9997_v37, %v9876_v29  ;;  %7503 = vrcp.f32 %v1466_v62  ;;  %v11243_v29 = vld [vmem:[#allocation36_spill] sm:$0xff] }
 0x65d   : > { %1889 = vadd.xlane.f32.xlu0 %v1888_v22  ;;  %v1289_v22 = vshll.u32 %v1288_v42, 16  ;;  %v1273_v42 = vcvt.f32.s32 %v9425_v46  ;;  %v2794_v46 = vsel %vm512_vm0, %v2770_v32, 0.0 }
 0x65e   : > { %11238 = vst [vmem:[#allocation51_spill] sm:$0xff] %v10098_v31  ;;  %11241 = vst [vmem:[#allocation134_spill] sm:$0xff] %v10115_v20  ;;  %v1465_v20 = vadd.f32 %v11244_v4, %v11243_v29 }
 0x65f   : > { %v1290_v8 = vadd.s32 %v1289_v22, %v1287_v7  ;;  %v1274_v5 = vshll.u32 %v1273_v42, 16  ;;  %v3223_v7 = vsel %vm3218_vm2, %v10015_v39, 0.0  ;;  %v4859_v22 = vmax.f32 %v4841_v40, 0.0 }
 0x660   : > { %2798 = vadd.xlane.f32.xlu1 %v2797_v0  ;;  %v1272_v0 = vcvt.f32.s32 %v1271_v13  ;;  %v4858_v13 = vmax.f32 %v4836_v27, 0.0  ;;  %v4130_v42 = vsel %vm4124_vm14, %v9950_v48, 0.0  ;;  %7505 = vrcp.f32 %v1465_v20 }
 0x661   : > { %2342 = vadd.xlane.f32.xlu0 %v2341_v55  ;;  %v3677_v55 = vsel %vm3671_vm1, %v9950_v48, 0.0  ;;  %vm1418_vm7 = vcmp.eq.s32.totalorder %v11193_v56, %v1290_v8  ;;  %v3676_v8 = vsel %vm3671_vm1, %v10015_v39, 0.0  ;;  %v4156_v40 = vsel %vm512_vm0, %v4130_v42, 0.0 }
 0x662   : > { %v1275_v37 = vadd.s32 %v1274_v5, %v1272_v0  ;;  %v3703_v62 = vsel %vm512_vm0, %v3677_v55, 0.0  ;;  %6793 = vmatprep.mubr.f32.mxu1 %v4858_v13  ;;  %v1434_v32 = vsel %vm1418_vm7, %v11236_v47, 0.0  ;;  %v1034_v0 = vsel %vm1018_vm9, %v11235_v38, 0.0 }
 0x663   : > { %6794 = vmatmul.mubr.f32.gmra.mrb[134].mxu1 %v4859_v22  ;;  %v1450_v27 = vadd.f32 %v1434_v32, %v1034_v0  ;;  %v4583_v47 = vsel %vm4577_vm12, %v9950_v48, 0.0  ;;  %v4129_v20 = vsel %vm4124_vm14, %v10015_v39, 0.0  ;;  %v1033_v13 = vsel %vm1017_vm10, %v11243_v29, 0.0 }
 0x664   : > { %3251 = vadd.xlane.f32.xlu1 %v3250_v49  ;;  %v3247_v49 = vsel %vm512_vm0, %v3223_v7, 0.0  ;;  %vm1417_vm8 = vcmp.eq.s32.totalorder %v11193_v56, %v1275_v37  ;;  %v4609_v7 = vsel %vm512_vm0, %v4583_v47, 0.0 }
 0x665   : > { %2795 = vadd.xlane.f32.xlu0 %v2794_v46  ;;  %v3700_v46 = vsel %vm512_vm0, %v3676_v8, 0.0  ;;  %v1433_v38 = vsel %vm1417_vm8, %v11244_v4, 0.0  ;;  %v4582_v4 = vsel %vm4577_vm12, %v10015_v39, 0.0 }
 0x666   : > { %v7504_v55 = vpop.eup %7503  ;;  %v1449_v42 = vadd.f32 %v1433_v38, %v1033_v13  ;;  %v4606_v29 = vsel %vm512_vm0, %v4582_v4, 0.0  ;;  %v1318_v38 = vcvt.f32.s32 %v9430_v10 }
 0x667   : > { %v10172_v37 = vmul.f32 %v7504_v55, %v1450_v27 }
 0x668   : > { %3704 = vadd.xlane.f32.xlu1 %v3703_v62  ;;  %v4153_v62 = vsel %vm512_vm0, %v4129_v20, 0.0 }
 0x669   : > { %3248 = vadd.xlane.f32.xlu0 %v3247_v49  ;;  %v5036_v49 = vsel %vm5030_vm4, %v9950_v48, 0.0  ;;  %v1867_v5 = vsel %vm1859_vm3, %v10172_v37, 0.0  ;;  %v5035_v48 = vsel %vm5030_vm4, %v10015_v39, 0.0  ;;  %v2320_v47 = vsel %vm2312_vm15, %v10172_v37, 0.0 }
 0x66a   : > { %v5062_v32 = vsel %vm512_vm0, %v5036_v49, 0.0  ;;  %v7506_v8 = vpop.eup %7505  ;;  %v1897_v27 = vsel %vm512_vm0, %v1867_v5, 0.0  ;;  %v2350_v55 = vsel %vm512_vm0, %v2320_v47, 0.0  ;;  %v3226_v10 = vsel %vm3218_vm2, %v10172_v37, 0.0 }
 0x66b   : > { %v10186_v0 = vmul.f32 %v7506_v8, %v1449_v42  ;;  %v1319_v42 = vshll.u32 %v1318_v38, 16  ;;  %v11248_v8 = vld [vmem:[#allocation53_spill] sm:$0xff]  ;;  %v1303_v5 = vcvt.f32.s32 %v9435_v57  ;;  %v3256_v47 = vsel %vm512_vm0, %v3226_v10, 0.0 }
 0x66c   : > { %4157 = vadd.xlane.f32.xlu1 %v4156_v40  ;;  %v1316_v40 = vpop.xlane.xlu1 %1315 }
 0x66d   : > { %3701 = vadd.xlane.f32.xlu0 %v3700_v46  ;;  %v5059_v46 = vsel %vm512_vm0, %v5035_v48, 0.0  ;;  %v1866_v20 = vsel %vm1859_vm3, %v10186_v0, 0.0  ;;  %v2319_v13 = vsel %vm2312_vm15, %v10186_v0, 0.0  ;;  %v2772_v48 = vsel %vm2765_vm5, %v10186_v0, 0.0 }
 0x66e   : > { %v1894_v39 = vsel %vm512_vm0, %v1866_v20, 0.0  ;;  %v2347_v4 = vsel %vm512_vm0, %v2319_v13, 0.0  ;;  %v2800_v20 = vsel %vm512_vm0, %v2772_v48, 0.0  ;;  %v1304_v57 = vshll.u32 %v1303_v5, 16 }
 0x66f   : > { %v3225_v38 = vsel %vm3218_vm2, %v10186_v0, 0.0  ;;  %v3678_v48 = vsel %vm3671_vm1, %v10186_v0, 0.0 }
 0x670   : > { %4610 = vadd.xlane.f32.xlu1 %v4609_v7  ;;  %v2773_v7 = vsel %vm2765_vm5, %v10172_v37, 0.0  ;;  %v1301_v22 = vpop.xlane.xlu1 %1300 }
 0x671   : > { %4154 = vadd.xlane.f32.xlu0 %v4153_v62  ;;  %v1317_v62 = vcvt.f32.s32 %v1316_v40  ;;  %v2803_v49 = vsel %vm512_vm0, %v2773_v7, 0.0  ;;  %v11250_v7 = vld [vmem:[#allocation54_spill] sm:$0xff] }
 0x673   : > { %v1320_v40 = vadd.s32 %v1319_v42, %v1317_v62  ;;  %v3253_v42 = vsel %vm512_vm0, %v3225_v38, 0.0 }
 0x674   : > { %5063 = vadd.xlane.f32.xlu1 %v5062_v32  ;;  %v11247_v32 = vld [vmem:[#allocation37_spill] sm:$0xff] }
 0x675   : > { %4607 = vadd.xlane.f32.xlu0 %v4606_v29  ;;  %v1468_v29 = vadd.f32 %v11248_v8, %v11247_v32  ;;  %vm1420_vm9 = vcmp.eq.s32.totalorder %v11193_v56, %v1320_v40  ;;  %v11251_v40 = vld [vmem:[#allocation18_spill] sm:$0xff] }
 0x676   : > { %vm11252_vm10 = vcmp.eq.s32.totalorder %v11193_v56, %v11251_v40  ;;  %v4584_v40 = vsel %vm4577_vm12, %v10186_v0, 0.0 }
 0x677   : > { %7507 = vrcp.f32 %v1468_v29  ;;  %v1436_v29 = vsel %vm1420_vm9, %v11248_v8, 0.0  ;;  %v3706_v8 = vsel %vm512_vm0, %v3678_v48, 0.0  ;;  %v5038_v48 = vsel %vm5030_vm4, %v10172_v37, 0.0 }
 0x678   : > { %1898 = vadd.xlane.f32.xlu1 %v1897_v27  ;;  %v1302_v27 = vcvt.f32.s32 %v1301_v22 }
 0x679   : > { %5060 = vadd.xlane.f32.xlu0 %v5059_v46  ;;  %v10219_v46 = vpop.xlane.xlu1 %1345 }
 0x67a   : > { %v1305_v13 = vadd.s32 %v1304_v57, %v1302_v27  ;;  %v1036_v27 = vsel %vm11252_vm10, %v11247_v32, 0.0  ;;  %v4131_v57 = vsel %vm4124_vm14, %v10186_v0, 0.0 }
 0x67c   : > { %2351 = vadd.xlane.f32.xlu1 %v2350_v55  ;;  %v3679_v55 = vsel %vm3671_vm1, %v10172_v37, 0.0  ;;  %vm1419_vm13 = vcmp.eq.s32.totalorder %v11193_v56, %v1305_v13 }
 0x67d   : > { %1895 = vadd.xlane.f32.xlu0 %v1894_v39  ;;  %v11249_v39 = vld [vmem:[#allocation38_spill] sm:$0xff]  ;;  %v3709_v62 = vsel %vm512_vm0, %v3679_v55, 0.0  ;;  %v10242_v5 = vpop.xlane.xlu1 %1330  ;;  %v4585_v55 = vsel %vm4577_vm12, %v10172_v37, 0.0  ;;  %v1435_v38 = vsel %vm1419_vm13, %v11250_v7, 0.0 }
 0x67e   : > { %v1467_v22 = vadd.f32 %v11250_v7, %v11249_v39  ;;  %v4615_v13 = vsel %vm512_vm0, %v4585_v55, 0.0 }
 0x680   : > { %2804 = vadd.xlane.f32.xlu1 %v2803_v49  ;;  %v10233_v49 = vpop.f32.mrb[132].mxu0  ;;  %7509 = vrcp.f32 %v1467_v22 }
 0x681   : > { %2348 = vadd.xlane.f32.xlu0 %v2347_v4  ;;  %v4132_v4 = vsel %vm4124_vm14, %v10172_v37, 0.0  ;;  %v10239_v10 = vpop.f32.mrb[133].mxu0  ;;  %v7508_v32 = vpop.eup %7507  ;;  %v5037_v37 = vsel %vm5030_vm4, %v10186_v0, 0.0  ;;  %v1348_v0 = vcvt.f32.s32 %v9440_v28 }
 0x682   : > { %v10261_v22 = vpop.xlane.xlu1 %1375 }
 0x684   : > { %3257 = vadd.xlane.f32.xlu1 %v3256_v47  ;;  %v4162_v47 = vsel %vm512_vm0, %v4132_v4, 0.0 }
 0x685   : > { %2801 = vadd.xlane.f32.xlu0 %v2800_v20  ;;  %v1452_v20 = vadd.f32 %v1436_v29, %v1036_v27  ;;  %v4159_v29 = vsel %vm512_vm0, %v4131_v57, 0.0  ;;  %v5068_v27 = vsel %vm512_vm0, %v5038_v48, 0.0 }
 0x686   : > { %v10284_v55 = vpop.xlane.xlu1 %1360 }
 0x687   : > { %v10268_v4 = vmul.f32 %v7508_v32, %v1452_v20 }
 0x688   : > { %3710 = vadd.xlane.f32.xlu1 %v3709_v62  ;;  %v11253_v62 = vld [vmem:[#allocation19_spill] sm:$0xff] }
 0x689   : > { %3254 = vadd.xlane.f32.xlu0 %v3253_v42  ;;  %vm11254_vm6 = vcmp.eq.s32.totalorder %v11193_v56, %v11253_v62  ;;  %v1869_v20 = vsel %vm1859_vm3, %v10268_v4, 0.0  ;;  %v2322_v32 = vsel %vm2312_vm15, %v10268_v4, 0.0  ;;  %v2775_v48 = vsel %vm2765_vm5, %v10268_v4, 0.0 }
 0x68a   : > { %v1035_v42 = vsel %vm11254_vm6, %v11249_v39, 0.0  ;;  %v4612_v39 = vsel %vm512_vm0, %v4584_v40, 0.0  ;;  %v1903_v57 = vsel %vm512_vm0, %v1869_v20, 0.0  ;;  %v10297_v62 = vpop.xlane.xlu1 %1405  ;;  %v1347_v40 = vcvt.f32.s32 %v10219_v46  ;;  %v11255_v20 = vld [vmem:[#allocation39_spill] sm:$0xff] }
 0x68b   : > { %v1451_v7 = vadd.f32 %v1435_v38, %v1035_v42  ;;  %v5065_v38 = vsel %vm512_vm0, %v5037_v37, 0.0  ;;  %v2356_v42 = vsel %vm512_vm0, %v2322_v32, 0.0  ;;  %v3228_v28 = vsel %vm3218_vm2, %v10268_v4, 0.0  ;;  %v11256_v37 = vld [vmem:[#allocation55_spill] sm:$0xff] }
 0x68c   : > { %4163 = vadd.xlane.f32.xlu1 %v4162_v47  ;;  %v7510_v47 = vpop.eup %7509 }
 0x68d   : > { %3707 = vadd.xlane.f32.xlu0 %v3706_v8  ;;  %v10282_v8 = vmul.f32 %v7510_v47, %v1451_v7  ;;  %v1349_v47 = vshll.u32 %v1348_v0, 16  ;;  %v3262_v0 = vsel %vm512_vm0, %v3228_v28, 0.0 }
 0x68e   : > { %v10317_v32 = vpop.xlane.xlu1 %1390 }
 0x68f   : > { %v2321_v7 = vsel %vm2312_vm15, %v10282_v8, 0.0  ;;  %v2774_v46 = vsel %vm2765_vm5, %v10282_v8, 0.0 }
 0x690   : > { %4616 = vadd.xlane.f32.xlu1 %v4615_v13  ;;  %v1868_v13 = vsel %vm1859_vm3, %v10282_v8, 0.0 }
 0x691   : > { %4160 = vadd.xlane.f32.xlu0 %v4159_v29  ;;  %v1900_v29 = vsel %vm512_vm0, %v1868_v13, 0.0  ;;  %v1350_v13 = vadd.s32 %v1349_v47, %v1347_v40  ;;  %v11257_v40 = vld [vmem:[#allocation40_spill] sm:$0xff] }
 0x692   : > { %v11258_v47 = vld [vmem:[#allocation56_spill] sm:$0xff] }
 0x693   : > { %vm1422_vm11 = vcmp.eq.s32.totalorder %v11193_v56, %v1350_v13  ;;  %v10349_v13 = vpop.f32.mrb[134].mxu0 }
 0x694   : > { %5069 = vadd.xlane.f32.xlu1 %v5068_v27  ;;  %v2809_v27 = vsel %vm512_vm0, %v2775_v48, 0.0  ;;  %v3681_v48 = vsel %vm3671_vm1, %v10268_v4, 0.0  ;;  %v10355_v14 = vpop.f32.mrb[135].mxu0  ;;  %v1438_v16 = vsel %vm1422_vm11, %v11256_v37, 0.0 }
 0x695   : > { %4613 = vadd.xlane.f32.xlu0 %v4612_v39  ;;  %v2353_v39 = vsel %vm512_vm0, %v2321_v7, 0.0 }
 0x698   : > { %1904 = vadd.xlane.f32.xlu1 %v1903_v57  ;;  %v1470_v57 = vadd.f32 %v11256_v37, %v11255_v20  ;;  %v11259_v37 = vld [vmem:[#allocation20_spill] sm:$0xff] }
 0x699   : > { %5066 = vadd.xlane.f32.xlu0 %v5065_v38  ;;  %v1333_v38 = vcvt.f32.s32 %v9445_v18  ;;  %vm11260_vm7 = vcmp.eq.s32.totalorder %v11193_v56, %v11259_v37 }
 0x69a   : > { %7511 = vrcp.f32 %v1470_v57  ;;  %v10344_v57 = vld [vmem:[%s10912_s6 + $0x1] ss:$0 sm:$0xff] }
 0x69b   : > { %v1334_v18 = vshll.u32 %v1333_v38, 16  ;;  %v2239_v38 = vadd.f32 %v10344_v57, %v9508_v19  ;;  %v3680_v19 = vsel %vm3671_vm1, %v10282_v8, 0.0 }
 0x69c   : > { %2357 = vadd.xlane.f32.xlu1 %v2356_v42  ;;  %v1332_v42 = vcvt.f32.s32 %v10242_v5  ;;  %v1469_v5 = vadd.f32 %v11258_v47, %v11257_v40  ;;  %v3712_v15 = vsel %vm512_vm0, %v3680_v19, 0.0 }
 0x69d   : > { %1901 = vadd.xlane.f32.xlu0 %v1900_v29  ;;  %v2806_v29 = vsel %vm512_vm0, %v2774_v46, 0.0 }
 0x69e   : > { %v1335_v46 = vadd.s32 %v1334_v18, %v1332_v42  ;;  %7513 = vrcp.f32 %v1469_v5  ;;  %v10364_v42 = vld [vmem:[%s10912_s6 + $0x2] ss:$0 sm:$0xff]  ;;  %v2234_v5 = vadd.f32 %v10344_v57, %v11261_v3  ;;  %v4133_v3 = vsel %vm4124_vm14, %v10282_v8, 0.0 }
 0x69f   : > { %v4165_v30 = vsel %vm512_vm0, %v4133_v3, 0.0 }
 0x6a0   : > { %2810 = vadd.xlane.f32.xlu1 %v2809_v27  ;;  %v3227_v27 = vsel %vm3218_vm2, %v10282_v8, 0.0  ;;  %vm1421_vm8 = vcmp.eq.s32.totalorder %v11193_v56, %v1335_v46  ;;  %v11265_v46 = vld [vmem:[#allocation110_spill] sm:$0xff] }
 0x6a1   : > { %2354 = vadd.xlane.f32.xlu0 %v2353_v39  ;;  %v10337_v39 = vld [vmem:[%s10912_s6] ss:$0 sm:$0xff] }
 0x6a2   : > { %v1786_v28 = vadd.f32 %v10337_v39, %v9473_v25  ;;  %v4134_v25 = vsel %vm4124_vm14, %v10268_v4, 0.0 }
 0x6a3   : > { %v4168_v59 = vsel %vm512_vm0, %v4134_v25, 0.0 }
 0x6a4   : > { %3263 = vadd.xlane.f32.xlu1 %v3262_v0  ;;  %v3715_v0 = vsel %vm512_vm0, %v3681_v48, 0.0  ;;  %v2692_v48 = vadd.f32 %v10364_v42, %v9545_v51  ;;  %v4587_v51 = vsel %vm4577_vm12, %v10268_v4, 0.0 }
 0x6a5   : > { %2807 = vadd.xlane.f32.xlu0 %v2806_v29  ;;  %v1881_v7 = vpop.xlane.xlu1 %1880  ;;  %v3259_v29 = vsel %vm512_vm0, %v3227_v27, 0.0 }
 0x6a6   : > { %v1925_v18 = vmul.f32 %v1881_v7, %v1786_v28 }
 0x6a8   : > { %3716 = vadd.xlane.f32.xlu1 %v3715_v0 }
 0x6a9   : > { %3260 = vadd.xlane.f32.xlu0 %v3259_v29  ;;  %v2334_v11 = vpop.xlane.xlu1 %2333  ;;  %v1038_v29 = vsel %vm11260_vm7, %v11255_v20, 0.0 }
 0x6aa   : > { %v2378_v27 = vmul.f32 %v2334_v11, %v2239_v38  ;;  %v1878_v0 = vpop.xlane.xlu0 %1877  ;;  %v1454_v31 = vadd.f32 %v1438_v16, %v1038_v29  ;;  %v11262_v11 = vld [vmem:[#allocation62_spill] sm:$0xff]  ;;  %v11263_v16 = vld [vmem:[#allocation21_spill] sm:$0xff]  ;;  %v10393_v38 = vld [vmem:[%s10912_s6 + $0x3] ss:$0 sm:$0xff] }
 0x6ab   : > { %v1781_v7 = vadd.f32 %v10337_v39, %v11262_v11  ;;  %vm11264_vm9 = vcmp.eq.s32.totalorder %v11193_v56, %v11263_v16 }
 0x6ac   : > { %v2394_v36 = vadd.f32 %v2378_v27, %v1925_v18  ;;  %4169 = vadd.xlane.f32.xlu1 %v4168_v59  ;;  %v1037_v28 = vsel %vm11264_vm9, %v11257_v40, 0.0  ;;  %v1437_v59 = vsel %vm1421_vm8, %v11258_v47, 0.0  ;;  %v7512_v18 = vpop.eup %7511  ;;  %v11266_v27 = vld [vmem:[#allocation95_spill] sm:$0xff]  ;;  %v4621_v40 = vsel %vm512_vm0, %v4587_v51, 0.0 }
 0x6ad   : > { %3713 = vadd.xlane.f32.xlu0 %v3712_v15  ;;  %v2787_v20 = vpop.xlane.xlu1 %2786  ;;  %v3145_v15 = vadd.f32 %v10393_v38, %v11265_v46  ;;  %v2687_v37 = vadd.f32 %v10364_v42, %v11266_v27  ;;  %v1924_v29 = vmul.f32 %v1878_v0, %v1781_v7  ;;  %v10400_v16 = vmul.f32 %v7512_v18, %v1454_v31  ;;  %v11268_v7 = vld [vmem:[#allocation111_spill] sm:$0xff] }
 0x6ae   : > { %v2831_v25 = vmul.f32 %v2787_v20, %v2692_v48  ;;  %v2331_v19 = vpop.xlane.xlu0 %2330  ;;  %v5040_v46 = vsel %vm5030_vm4, %v10268_v4, 0.0  ;;  %v1453_v48 = vadd.f32 %v1437_v59, %v1037_v28  ;;  %v4586_v0 = vsel %vm4577_vm12, %v10282_v8, 0.0  ;;  %v7514_v4 = vpop.eup %7513 }
 0x6af   : > { %v2377_v11 = vmul.f32 %v2331_v19, %v2234_v5  ;;  %v11267_v5 = vld [vmem:[#allocation120_spill] sm:$0xff]  ;;  %v3140_v3 = vadd.f32 %v10393_v38, %v11268_v7  ;;  %v5074_v19 = vsel %vm512_vm0, %v5040_v46, 0.0  ;;  %v1871_v59 = vsel %vm1859_vm3, %v10400_v16, 0.0 }
 0x6b0   : > { %v2847_v47 = vadd.f32 %v2831_v25, %v2394_v36  ;;  %4622 = vadd.xlane.f32.xlu1 %v4621_v40  ;;  %v3598_v31 = vadd.f32 %v11267_v5, %v9865_v33  ;;  %v10418_v18 = vmul.f32 %v7514_v4, %v1453_v48  ;;  %v1909_v5 = vsel %vm512_vm0, %v1871_v59, 0.0  ;;  %v11271_v7 = vld [vmem:[#allocation32_spill] sm:$0xff]  ;;  %v11272_v4 = vld [vmem:[#allocation30_spill] sm:$0xff] }
 0x6b1   : > { %v2393_v20 = vadd.f32 %v2377_v11, %v1924_v29  ;;  %4166 = vadd.xlane.f32.xlu0 %v4165_v30  ;;  %v3240_v54 = vpop.xlane.xlu1 %3239  ;;  %v4618_v30 = vsel %vm512_vm0, %v4586_v0, 0.0 }
 0x6b2   : > { %v3284_v51 = vmul.f32 %v3240_v54, %v3145_v15  ;;  %v2784_v36 = vpop.xlane.xlu0 %2783  ;;  %v5039_v15 = vsel %vm5030_vm4, %v10282_v8, 0.0 }
 0x6b3   : > { %v2830_v25 = vmul.f32 %v2784_v36, %v2687_v37  ;;  %v11269_v37 = vld [vmem:[#allocation46_spill] sm:$0xff] }
 0x6b4   : > { %v3300_v28 = vadd.f32 %v3284_v51, %v2847_v47  ;;  %5075 = vadd.xlane.f32.xlu1 %v5074_v19  ;;  %v4051_v29 = vadd.f32 %v11269_v37, %v9973_v6  ;;  %v11270_v47 = vld [vmem:[#allocation121_spill] sm:$0xff]  ;;  %v2324_v51 = vsel %vm2312_vm15, %v10400_v16, 0.0 }
 0x6b5   : > { %v2846_v27 = vadd.f32 %v2830_v25, %v2393_v20  ;;  %4619 = vadd.xlane.f32.xlu0 %v4618_v30  ;;  %v3693_v54 = vpop.xlane.xlu1 %3692  ;;  %v3593_v46 = vadd.f32 %v9865_v33, %v11270_v47  ;;  %v5071_v20 = vsel %vm512_vm0, %v5039_v15, 0.0  ;;  %v2362_v59 = vsel %vm512_vm0, %v2324_v51, 0.0  ;;  %v11274_v51 = vld [vmem:[#allocation48_spill] sm:$0xff] }
 0x6b6   : > { %v3737_v11 = vmul.f32 %v3693_v54, %v3598_v31  ;;  %v3237_v40 = vpop.xlane.xlu0 %3236  ;;  %v1870_v31 = vsel %vm1859_vm3, %v10418_v18, 0.0  ;;  %v11273_v54 = vld [vmem:[#allocation63_spill] sm:$0xff] }
 0x6b7   : > { %v3283_v0 = vmul.f32 %v3237_v40, %v3140_v3  ;;  %v4504_v3 = vadd.f32 %v11271_v7, %v10055_v63  ;;  %v1378_v15 = vcvt.f32.s32 %v11273_v54 }
 0x6b8   : > { %v3753_v48 = vadd.f32 %v3737_v11, %v3300_v28  ;;  %1910 = vadd.xlane.f32.xlu1 %v1909_v5  ;;  %v4046_v28 = vadd.f32 %v9973_v6, %v11272_v4  ;;  %v1906_v11 = vsel %vm512_vm0, %v1870_v31, 0.0  ;;  %v11276_v4 = vld [vmem:[#allocation57_spill] sm:$0xff] }
 0x6b9   : > { %v3299_v8 = vadd.f32 %v3283_v0, %v2846_v27  ;;  %5072 = vadd.xlane.f32.xlu0 %v5071_v20  ;;  %v4146_v36 = vpop.xlane.xlu1 %4145  ;;  %v10443_v27 = vld [vmem:[%s10912_s6 + $0x7] ss:$0 sm:$0xff]  ;;  %v1377_v0 = vcvt.f32.s32 %v10261_v22  ;;  %v3230_v22 = vsel %vm3218_vm2, %v10400_v16, 0.0 }
 0x6ba   : > { %v4190_v25 = vmul.f32 %v4146_v36, %v4051_v29  ;;  %v3690_v19 = vpop.xlane.xlu0 %3689  ;;  %v2777_v29 = vsel %vm2765_vm5, %v10400_v16, 0.0  ;;  %v4499_v36 = vadd.f32 %v10055_v63, %v11274_v51 }
 0x6bb   : > { %v3736_v30 = vmul.f32 %v3690_v19, %v3593_v46  ;;  %v2323_v46 = vsel %vm2312_vm15, %v10418_v18, 0.0  ;;  %v2815_v7 = vsel %vm512_vm0, %v2777_v29, 0.0 }
 0x6bc   : > { %v4206_v37 = vadd.f32 %v4190_v25, %v3753_v48  ;;  %2363 = vadd.xlane.f32.xlu1 %v2362_v59  ;;  %v4957_v48 = vadd.f32 %v9968_v50, %v10443_v27  ;;  %v2359_v19 = vsel %vm512_vm0, %v2323_v46, 0.0  ;;  %v11277_v59 = vld [vmem:[#allocation64_spill] sm:$0xff]  ;;  %v1362_v46 = vcvt.f32.s32 %v10284_v55 }
 0x6bd   : > { %v3752_v40 = vadd.f32 %v3736_v30, %v3299_v8  ;;  %1907 = vadd.xlane.f32.xlu0 %v1906_v11  ;;  %v4599_v47 = vpop.xlane.xlu1 %4598  ;;  %v1379_v8 = vshll.u32 %v1378_v15, 16  ;;  %v1363_v50 = vcvt.f32.s32 %v11277_v59  ;;  %v10469_v15 = vpop.f32.mrb[128].mxu1 }
 0x6be   : > { %v4643_v5 = vmul.f32 %v4599_v47, %v4504_v3  ;;  %v4143_v20 = vpop.xlane.xlu0 %4142  ;;  %v11275_v3 = vld [vmem:[#allocation41_spill] sm:$0xff]  ;;  %v10492_v59 = vpop.f32.mrb[129].mxu1 }
 0x6bf   : > { %v4189_v31 = vmul.f32 %v4143_v20, %v4046_v28  ;;  %v1472_v30 = vadd.f32 %v11276_v4, %v11275_v3  ;;  %v2776_v28 = vsel %vm2765_vm5, %v10418_v18, 0.0  ;;  %v4952_v20 = vadd.f32 %v10443_v27, %v9975_v34  ;;  %v11278_v34 = vld [vmem:[#allocation42_spill] sm:$0xff] }
 0x6c0   : > { %v4659_v25 = vadd.f32 %v4643_v5, %v4206_v37  ;;  %2816 = vadd.xlane.f32.xlu1 %v2815_v7  ;;  %v1380_v37 = vadd.s32 %v1379_v8, %v1377_v0  ;;  %v3683_v7 = vsel %vm3671_vm1, %v10400_v16, 0.0  ;;  %v1364_v0 = vshll.u32 %v1363_v50, 16  ;;  %v11279_v8 = vld [vmem:[#allocation58_spill] sm:$0xff] }
 0x6c1   : > { %v4205_v54 = vadd.f32 %v4189_v31, %v3752_v40  ;;  %2360 = vadd.xlane.f32.xlu0 %v2359_v19  ;;  %v5052_v11 = vpop.xlane.xlu1 %5051  ;;  %v3268_v40 = vsel %vm512_vm0, %v3230_v22, 0.0  ;;  %v2812_v31 = vsel %vm512_vm0, %v2776_v28, 0.0  ;;  %7515 = vrcp.f32 %v1472_v30  ;;  %v11281_v28 = vld [vmem:[#allocation66_spill] sm:$0xff] }
 0x6c2   : > { %v5096_v29 = vmul.f32 %v5052_v11, %v4957_v48  ;;  %v4596_v47 = vpop.xlane.xlu0 %4595  ;;  %v1471_v19 = vadd.f32 %v11279_v8, %v11278_v34  ;;  %vm1424_vm10 = vcmp.eq.s32.totalorder %v11193_v56, %v1380_v37  ;;  %v1365_v50 = vadd.s32 %v1364_v0, %v1362_v46 }
 0x6c3   : > { %v4642_v5 = vmul.f32 %v4596_v47, %v4499_v36  ;;  %v3229_v36 = vsel %vm3218_vm2, %v10418_v18, 0.0  ;;  %v3721_v11 = vsel %vm512_vm0, %v3683_v7, 0.0  ;;  %v4136_v47 = vsel %vm4124_vm14, %v10400_v16, 0.0 }
 0x6c4   : > { %v5112_v51 = vadd.f32 %v5096_v29, %v4659_v25  ;;  %3269 = vadd.xlane.f32.xlu1 %v3268_v40  ;;  %v11280_v25 = vld [vmem:[#allocation81_spill] sm:$0xff]  ;;  %v1796_v29 = vadd.f32 %v10337_v39, %v11281_v28  ;;  %v3265_v37 = vsel %vm512_vm0, %v3229_v36, 0.0  ;;  %v3682_v46 = vsel %vm3671_vm1, %v10418_v18, 0.0  ;;  %v11286_v28 = vld [vmem:[#allocation82_spill] sm:$0xff] }
 0x6c5   : > { %v4658_v48 = vadd.f32 %v4642_v5, %v4205_v54  ;;  %2813 = vadd.xlane.f32.xlu0 %v2812_v31  ;;  %v1887_v55 = vpop.xlane.xlu1 %1886  ;;  %v2249_v22 = vadd.f32 %v10344_v57, %v11280_v25  ;;  %v1440_v5 = vsel %vm1424_vm10, %v11276_v4, 0.0  ;;  %7517 = vrcp.f32 %v1471_v19  ;;  %v11283_v25 = vld [vmem:[#allocation22_spill] sm:$0xff] }
 0x6c6   : > { %5128 = vst [vmem:[%s10489_s30 + $0x8] sm:$0xff] %v5112_v51  ;;  %v5049_v30 = vpop.xlane.xlu0 %5048  ;;  %v1927_v7 = vmul.f32 %v1887_v55, %v1796_v29  ;;  %vm11284_vm13 = vcmp.eq.s32.totalorder %v11193_v56, %v11283_v25  ;;  %vm1423_vm6 = vcmp.eq.s32.totalorder %v11193_v56, %v1365_v50  ;;  %v4174_v4 = vsel %vm512_vm0, %v4136_v47, 0.0 }
 0x6c7   : > { %v5095_v54 = vmul.f32 %v5049_v30, %v4952_v20  ;;  %v11282_v20 = vld [vmem:[#allocation96_spill] sm:$0xff]  ;;  %v1040_v30 = vsel %vm11284_vm13, %v11275_v3, 0.0  ;;  %v3718_v19 = vsel %vm512_vm0, %v3682_v46, 0.0  ;;  %v4589_v55 = vsel %vm4577_vm12, %v10400_v16, 0.0 }
 0x6c8   : > { %3722 = vadd.xlane.f32.xlu1 %v3721_v11  ;;  %v2702_v31 = vadd.f32 %v10364_v42, %v11282_v20  ;;  %v2244_v3 = vadd.f32 %v10344_v57, %v11286_v28  ;;  %v4135_v29 = vsel %vm4124_vm14, %v10418_v18, 0.0  ;;  %v11290_v57 = vld [vmem:[#allocation97_spill] sm:$0xff] }
 0x6c9   : > { %v5111_v40 = vadd.f32 %v5095_v54, %v4658_v48  ;;  %3266 = vadd.xlane.f32.xlu0 %v3265_v37  ;;  %v2340_v51 = vpop.xlane.xlu1 %2339  ;;  %v1456_v48 = vadd.f32 %v1440_v5, %v1040_v30  ;;  %v11287_v37 = vld [vmem:[#allocation23_spill] sm:$0xff]  ;;  %v1439_v5 = vsel %vm1423_vm6, %v11279_v8, 0.0  ;;  %v4627_v30 = vsel %vm512_vm0, %v4589_v55, 0.0 }
 0x6ca   : > { %v2380_v0 = vmul.f32 %v2340_v51, %v2249_v22  ;;  %v1884_v36 = vpop.xlane.xlu0 %1883  ;;  %v11285_v22 = vld [vmem:[#allocation67_spill] sm:$0xff]  ;;  %vm11288_vm11 = vcmp.eq.s32.totalorder %v11193_v56, %v11287_v37  ;;  %v5042_v8 = vsel %vm5030_vm4, %v10400_v16, 0.0 }
 0x6cb   : > { %5127 = vst [vmem:[%s10489_s30] sm:$0xff] %v5111_v40  ;;  %v1791_v11 = vadd.f32 %v10337_v39, %v11285_v22  ;;  %v1039_v47 = vsel %vm11288_vm11, %v11278_v34, 0.0  ;;  %v11289_v40 = vld [vmem:[#allocation112_spill] sm:$0xff]  ;;  %v7516_v20 = vpop.eup %7515  ;;  %v4171_v34 = vsel %vm512_vm0, %v4135_v29, 0.0  ;;  %v5080_v29 = vsel %vm512_vm0, %v5042_v8, 0.0 }
 0x6cc   : > { %v2396_v54 = vadd.f32 %v2380_v0, %v1927_v7  ;;  %4175 = vadd.xlane.f32.xlu1 %v4174_v4  ;;  %v3155_v51 = vadd.f32 %v10393_v38, %v11289_v40  ;;  %v2697_v7 = vadd.f32 %v10364_v42, %v11290_v57  ;;  %v10535_v4 = vmul.f32 %v7516_v20, %v1456_v48 }
 0x6cd   : > { %3719 = vadd.xlane.f32.xlu0 %v3718_v19  ;;  %v2793_v50 = vpop.xlane.xlu1 %2792  ;;  %v1926_v0 = vmul.f32 %v1884_v36, %v1791_v11  ;;  %v4588_v42 = vsel %vm4577_vm12, %v10418_v18, 0.0  ;;  %v11291_v36 = vld [vmem:[#allocation122_spill] sm:$0xff]  ;;  %v11292_v11 = vld [vmem:[#allocation113_spill] sm:$0xff] }
 0x6ce   : > { %v2833_v39 = vmul.f32 %v2793_v50, %v2702_v31  ;;  %v2337_v46 = vpop.xlane.xlu0 %2336  ;;  %v1455_v31 = vadd.f32 %v1439_v5, %v1039_v47  ;;  %v3608_v48 = vadd.f32 %v11291_v36, %v9865_v33  ;;  %v4624_v47 = vsel %vm512_vm0, %v4588_v42, 0.0 }
 0x6cf   : > { %v2379_v25 = vmul.f32 %v2337_v46, %v2244_v3  ;;  %v3150_v3 = vadd.f32 %v10393_v38, %v11292_v11  ;;  %v7518_v16 = vpop.eup %7517  ;;  %v1873_v5 = vsel %vm1859_vm3, %v10535_v4, 0.0  ;;  %v5041_v38 = vsel %vm5030_vm4, %v10418_v18, 0.0  ;;  %v11293_v46 = vld [vmem:[#allocation27_spill] sm:$0xff] }
 0x6d0   : > { %v2849_v19 = vadd.f32 %v2833_v39, %v2396_v54  ;;  %4628 = vadd.xlane.f32.xlu1 %v4627_v30  ;;  %v10553_v40 = vmul.f32 %v7518_v16, %v1455_v31  ;;  %v4061_v20 = vadd.f32 %v11293_v46, %v9973_v6  ;;  %v5077_v8 = vsel %vm512_vm0, %v5041_v38, 0.0 }
 0x6d1   : > { %v2395_v22 = vadd.f32 %v2379_v25, %v1926_v0  ;;  %4172 = vadd.xlane.f32.xlu0 %v4171_v34  ;;  %v3246_v28 = vpop.xlane.xlu1 %3245  ;;  %v11294_v0 = vld [vmem:[#allocation123_spill] sm:$0xff]  ;;  %v2326_v31 = vsel %vm2312_vm15, %v10535_v4, 0.0 }
 0x6d2   : > { %v3286_v55 = vmul.f32 %v3246_v28, %v3155_v51  ;;  %v2790_v54 = vpop.xlane.xlu0 %2789  ;;  %v3603_v25 = vadd.f32 %v9865_v33, %v11294_v0  ;;  %v1872_v28 = vsel %vm1859_vm3, %v10553_v40, 0.0  ;;  %v11295_v33 = vld [vmem:[#allocation12_spill] sm:$0xff] }
 0x6d3   : > { %v2832_v50 = vmul.f32 %v2790_v54, %v2697_v7  ;;  %v4514_v42 = vadd.f32 %v11295_v33, %v10055_v63  ;;  %v2778_v33 = vsel %vm2765_vm5, %v10553_v40, 0.0 }
 0x6d4   : > { %v3302_v37 = vadd.f32 %v3286_v55, %v2849_v19  ;;  %5081 = vadd.xlane.f32.xlu1 %v5080_v29  ;;  %v1915_v19 = vsel %vm512_vm0, %v1873_v5, 0.0  ;;  %v11296_v55 = vld [vmem:[#allocation124_spill] sm:$0xff] }
 0x6d5   : > { %v2848_v39 = vadd.f32 %v2832_v50, %v2395_v22  ;;  %4625 = vadd.xlane.f32.xlu0 %v4624_v47  ;;  %v3699_v51 = vpop.xlane.xlu1 %3698  ;;  %v4056_v54 = vadd.f32 %v9973_v6, %v11296_v55  ;;  %v11297_v50 = vld [vmem:[#allocation65_spill] sm:$0xff]  ;;  %v2779_v47 = vsel %vm2765_vm5, %v10535_v4, 0.0  ;;  %v2325_v6 = vsel %vm2312_vm15, %v10553_v40, 0.0 }
 0x6d6   : > { %v3739_v57 = vmul.f32 %v3699_v51, %v3608_v48  ;;  %v3243_v7 = vpop.xlane.xlu0 %3242  ;;  %v1408_v29 = vcvt.f32.s32 %v11297_v50  ;;  %v1407_v51 = vcvt.f32.s32 %v10297_v62  ;;  %v3232_v62 = vsel %vm3218_vm2, %v10535_v4, 0.0 }
 0x6d7   : > { %v3285_v30 = vmul.f32 %v3243_v7, %v3150_v3  ;;  %v2368_v3 = vsel %vm512_vm0, %v2326_v31, 0.0  ;;  %v11300_v31 = vld [vmem:[#allocation59_spill] sm:$0xff]  ;;  %v3274_v50 = vsel %vm512_vm0, %v3232_v62, 0.0  ;;  %v3684_v62 = vsel %vm3671_vm1, %v10553_v40, 0.0 }
 0x6d8   : > { %v3755_v34 = vadd.f32 %v3739_v57, %v3302_v37  ;;  %1916 = vadd.xlane.f32.xlu1 %v1915_v19  ;;  %v1912_v37 = vsel %vm512_vm0, %v1872_v28, 0.0  ;;  %v11298_v57 = vld [vmem:[#allocation13_spill] sm:$0xff] }
 0x6d9   : > { %v3301_v18 = vadd.f32 %v3285_v30, %v2848_v39  ;;  %5078 = vadd.xlane.f32.xlu0 %v5077_v8  ;;  %v4152_v22 = vpop.xlane.xlu1 %4151  ;;  %v4509_v7 = vadd.f32 %v10055_v63, %v11298_v57  ;;  %v1409_v30 = vshll.u32 %v1408_v29, 16  ;;  %v11299_v8 = vld [vmem:[#allocation43_spill] sm:$0xff] }
 0x6da   : > { %v4192_v36 = vmul.f32 %v4152_v22, %v4061_v20  ;;  %v3696_v48 = vpop.xlane.xlu0 %3695  ;;  %v4967_v20 = vadd.f32 %v10125_v9, %v10443_v27  ;;  %v11301_v22 = vld [vmem:[#allocation61_spill] sm:$0xff] }
 0x6db   : > { %v3738_v11 = vmul.f32 %v3696_v48, %v3603_v25  ;;  %v2821_v25 = vsel %vm512_vm0, %v2779_v47, 0.0  ;;  %v1393_v9 = vcvt.f32.s32 %v11301_v22 }
 0x6dc   : > { %v4208_v16 = vadd.f32 %v4192_v36, %v3755_v34  ;;  %2369 = vadd.xlane.f32.xlu1 %v2368_v3  ;;  %v2365_v34 = vsel %vm512_vm0, %v2325_v6, 0.0  ;;  %v1410_v36 = vadd.s32 %v1409_v30, %v1407_v51  ;;  %v4962_v3 = vadd.f32 %v10443_v27, %v10142_v2  ;;  %v11302_v2 = vld [vmem:[#allocation44_spill] sm:$0xff] }
 0x6dd   : > { %v3754_v5 = vadd.f32 %v3738_v11, %v3301_v18  ;;  %1913 = vadd.xlane.f32.xlu0 %v1912_v37  ;;  %v4605_v39 = vpop.xlane.xlu1 %4604  ;;  %v1474_v18 = vadd.f32 %v11300_v31, %v11299_v8  ;;  %v3685_v37 = vsel %vm3671_vm1, %v10535_v4, 0.0  ;;  %v1394_v47 = vshll.u32 %v1393_v9, 16  ;;  %v11303_v6 = vld [vmem:[#allocation60_spill] sm:$0xff]  ;;  %v11305_v9 = vld [vmem:[#allocation83_spill] sm:$0xff] }
 0x6de   : > { %v4645_v38 = vmul.f32 %v4605_v39, %v4514_v42  ;;  %v4149_v46 = vpop.xlane.xlu0 %4148  ;;  %v10599_v42 = vpop.f32.mrb[130].mxu1  ;;  %v3231_v39 = vsel %vm3218_vm2, %v10553_v40, 0.0  ;;  %v1473_v51 = vadd.f32 %v11303_v6, %v11302_v2  ;;  %vm1426_vm7 = vcmp.eq.s32.totalorder %v11193_v56, %v1410_v36 }
 0x6df   : > { %v4191_v0 = vmul.f32 %v4149_v46, %v4056_v54  ;;  %v1392_v54 = vcvt.f32.s32 %v10317_v32  ;;  %7519 = vrcp.f32 %v1474_v18  ;;  %v10616_v46 = vpop.f32.mrb[131].mxu1  ;;  %v1442_v30 = vsel %vm1426_vm7, %v11300_v31, 0.0  ;;  %v11304_v18 = vld [vmem:[#allocation68_spill] sm:$0xff] }
 0x6e0   : > { %v4661_v19 = vadd.f32 %v4645_v38, %v4208_v16  ;;  %2822 = vadd.xlane.f32.xlu1 %v2821_v25  ;;  %v2818_v16 = vsel %vm512_vm0, %v2778_v33, 0.0  ;;  %v4138_v25 = vsel %vm4124_vm14, %v10535_v4, 0.0  ;;  %7521 = vrcp.f32 %v1473_v51  ;;  %v11306_v33 = vld [vmem:[#allocation24_spill] sm:$0xff] }
 0x6e1   : > { %v4207_v28 = vadd.f32 %v4191_v0, %v3754_v5  ;;  %2366 = vadd.xlane.f32.xlu0 %v2365_v34  ;;  %v5058_v63 = vpop.xlane.xlu1 %5057  ;;  %v3271_v0 = vsel %vm512_vm0, %v3231_v39, 0.0  ;;  %vm11307_vm8 = vcmp.eq.s32.totalorder %v11193_v56, %v11306_v33  ;;  %v4180_v31 = vsel %vm512_vm0, %v4138_v25, 0.0  ;;  %v11311_v39 = vld [vmem:[#allocation69_spill] sm:$0xff] }
 0x6e2   : > { %v5098_v48 = vmul.f32 %v5058_v63, %v4967_v20  ;;  %v4602_v55 = vpop.xlane.xlu0 %4601  ;;  %v1395_v20 = vadd.s32 %v1394_v47, %v1392_v54  ;;  %v1042_v36 = vsel %vm11307_vm8, %v11299_v8, 0.0  ;;  %v3724_v54 = vsel %vm512_vm0, %v3684_v62, 0.0  ;;  %v11313_v62 = vld [vmem:[#allocation29_spill] sm:$0xff] }
 0x6e3   : > { %v4644_v11 = vmul.f32 %v4602_v55, %v4509_v7  ;;  %v3727_v7 = vsel %vm512_vm0, %v3685_v37, 0.0  ;;  %v4137_v8 = vsel %vm4124_vm14, %v10553_v40, 0.0  ;;  %v5044_v25 = vsel %vm5030_vm4, %v10535_v4, 0.0 }
 0x6e4   : > { %v5114_v29 = vadd.f32 %v5098_v48, %v4661_v19  ;;  %3275 = vadd.xlane.f32.xlu1 %v3274_v50  ;;  %vm1425_vm9 = vcmp.eq.s32.totalorder %v11193_v56, %v1395_v20  ;;  %v1458_v48 = vadd.f32 %v1442_v30, %v1042_v36 }
 0x6e5   : > { %v4660_v5 = vadd.f32 %v4644_v11, %v4207_v28  ;;  %2819 = vadd.xlane.f32.xlu0 %v2818_v16  ;;  %v1893_v32 = vpop.xlane.xlu1 %1892  ;;  %v4591_v11 = vsel %vm4577_vm12, %v10535_v4, 0.0  ;;  %v1441_v50 = vsel %vm1425_vm9, %v11303_v6, 0.0  ;;  %v4177_v6 = vsel %vm512_vm0, %v4137_v8, 0.0 }
 0x6e6   : > { %5130 = vst [vmem:[%s10489_s30 + $0x18] sm:$0xff] %v5114_v29  ;;  %v5055_v38 = vpop.xlane.xlu0 %5054  ;;  %v1929_v22 = vmul.f32 %v1893_v32, %v11304_v18  ;;  %v11308_v29 = vld [vmem:[#allocation98_spill] sm:$0xff] }
 0x6e7   : > { %v5097_v57 = vmul.f32 %v5055_v38, %v4962_v3  ;;  %v11312_v38 = vld [vmem:[#allocation84_spill] sm:$0xff] }
 0x6e8   : > { %3728 = vadd.xlane.f32.xlu1 %v3727_v7 }
 0x6e9   : > { %v5113_v19 = vadd.f32 %v5097_v57, %v4660_v5  ;;  %3272 = vadd.xlane.f32.xlu0 %v3271_v0  ;;  %v2346_v34 = vpop.xlane.xlu1 %2345  ;;  %v7520_v47 = vpop.eup %7519  ;;  %v11309_v5 = vld [vmem:[#allocation25_spill] sm:$0xff]  ;;  %v4633_v57 = vsel %vm512_vm0, %v4591_v11, 0.0  ;;  %v5043_v11 = vsel %vm5030_vm4, %v10553_v40, 0.0 }
 0x6ea   : > { %v2382_v28 = vmul.f32 %v2346_v34, %v11305_v9  ;;  %v1890_v63 = vpop.xlane.xlu0 %1889  ;;  %vm11310_vm10 = vcmp.eq.s32.totalorder %v11193_v56, %v11309_v5  ;;  %v10652_v7 = vmul.f32 %v7520_v47, %v1458_v48  ;;  %v4590_v34 = vsel %vm4577_vm12, %v10553_v40, 0.0  ;;  %v11314_v9 = vld [vmem:[#allocation99_spill] sm:$0xff]  ;;  %v7522_v33 = vpop.eup %7521 }
 0x6eb   : > { %5129 = vst [vmem:[%s10489_s30 + $0x10] sm:$0xff] %v5113_v19  ;;  %v1041_v32 = vsel %vm11310_vm10, %v11302_v2, 0.0  ;;  %v1928_v51 = vmul.f32 %v1890_v63, %v11311_v39  ;;  %v5086_v63 = vsel %vm512_vm0, %v5044_v25, 0.0  ;;  %v4630_v4 = vsel %vm512_vm0, %v4590_v34, 0.0 }
 0x6ec   : > { %v2398_v55 = vadd.f32 %v2382_v28, %v1929_v22  ;;  %4181 = vadd.xlane.f32.xlu1 %v4180_v31  ;;  %v1457_v30 = vadd.f32 %v1441_v50, %v1041_v32  ;;  %v1875_v31 = vsel %vm1859_vm3, %v10652_v7, 0.0  ;;  %v11315_v50 = vld [vmem:[#allocation26_spill] sm:$0xff]  ;;  %v5083_v47 = vsel %vm512_vm0, %v5043_v11, 0.0 }
 0x6ed   : > { %3725 = vadd.xlane.f32.xlu0 %v3724_v54  ;;  %v2799_v3 = vpop.xlane.xlu1 %2798  ;;  %v2328_v5 = vsel %vm2312_vm15, %v10652_v7, 0.0 }
 0x6ee   : > { %v2835_v16 = vmul.f32 %v2799_v3, %v11308_v29  ;;  %v2343_v37 = vpop.xlane.xlu0 %2342  ;;  %v10668_v48 = vmul.f32 %v7522_v33, %v1457_v30 }
 0x6ef   : > { %v2381_v20 = vmul.f32 %v2343_v37, %v11312_v38 }
 0x6f0   : > { %v2851_v0 = vadd.f32 %v2835_v16, %v2398_v55  ;;  %4634 = vadd.xlane.f32.xlu1 %v4633_v57  ;;  %v1921_v16 = vsel %vm512_vm0, %v1875_v31, 0.0 }
 0x6f1   : > { %v2397_v19 = vadd.f32 %v2381_v20, %v1928_v51  ;;  %4178 = vadd.xlane.f32.xlu0 %v4177_v6  ;;  %v3252_v2 = vpop.xlane.xlu1 %3251  ;;  %v2374_v20 = vsel %vm512_vm0, %v2328_v5, 0.0  ;;  %v2781_v6 = vsel %vm2765_vm5, %v10652_v7, 0.0  ;;  %v3686_v5 = vsel %vm3671_vm1, %v10668_v48, 0.0 }
 0x6f2   : > { %v3288_v18 = vmul.f32 %v3252_v2, %v11313_v62  ;;  %v2796_v22 = vpop.xlane.xlu0 %2795  ;;  %v4977_v2 = vadd.f32 %v10233_v49, %v10443_v27  ;;  %v2827_v62 = vsel %vm512_vm0, %v2781_v6, 0.0  ;;  %v2780_v49 = vsel %vm2765_vm5, %v10668_v48, 0.0 }
 0x6f3   : > { %v2834_v28 = vmul.f32 %v2796_v22, %v11314_v9  ;;  %v3234_v9 = vsel %vm3218_vm2, %v10652_v7, 0.0 }
 0x6f4   : > { %v3304_v36 = vadd.f32 %v3288_v18, %v2851_v0  ;;  %5087 = vadd.xlane.f32.xlu1 %v5086_v63 }
 0x6f5   : > { %v2850_v55 = vadd.f32 %v2834_v28, %v2397_v19  ;;  %4631 = vadd.xlane.f32.xlu0 %v4630_v4  ;;  %v3705_v54 = vpop.xlane.xlu1 %3704  ;;  %v3280_v4 = vsel %vm512_vm0, %v3234_v9, 0.0 }
 0x6f6   : > { %v3741_v3 = vmul.f32 %v3705_v54, %v9874_v35  ;;  %v3249_v8 = vpop.xlane.xlu0 %3248  ;;  %v1874_v35 = vsel %vm1859_vm3, %v10668_v48, 0.0  ;;  %v3687_v54 = vsel %vm3671_vm1, %v10652_v7, 0.0 }
 0x6f7   : > { %v3287_v29 = vmul.f32 %v3249_v8, %v11315_v50  ;;  %v1918_v0 = vsel %vm512_vm0, %v1874_v35, 0.0  ;;  %v3733_v50 = vsel %vm512_vm0, %v3687_v54, 0.0  ;;  %v11317_v35 = vld [vmem:[#allocation85_spill] sm:$0xff] }
 0x6f8   : > { %v3757_v37 = vadd.f32 %v3741_v3, %v3304_v36  ;;  %1922 = vadd.xlane.f32.xlu1 %v1921_v16  ;;  %v4972_v36 = vadd.f32 %v10443_v27, %v10239_v10  ;;  %v4140_v16 = vsel %vm4124_vm14, %v10652_v7, 0.0 }
 0x6f9   : > { %v3303_v32 = vadd.f32 %v3287_v29, %v2850_v55  ;;  %5084 = vadd.xlane.f32.xlu0 %v5083_v47  ;;  %v4158_v39 = vpop.xlane.xlu1 %4157  ;;  %v2824_v55 = vsel %vm512_vm0, %v2780_v49, 0.0 }
 0x6fa   : > { %v4194_v40 = vmul.f32 %v4158_v39, %v9980_v44  ;;  %v3702_v51 = vpop.xlane.xlu0 %3701  ;;  %v2327_v44 = vsel %vm2312_vm15, %v10668_v48, 0.0 }
 0x6fb   : > { %v3740_v38 = vmul.f32 %v3702_v51, %v9884_v26  ;;  %v2371_v22 = vsel %vm512_vm0, %v2327_v44, 0.0 }
 0x6fc   : > { %v4210_v57 = vadd.f32 %v4194_v40, %v3757_v37  ;;  %2375 = vadd.xlane.f32.xlu1 %v2374_v20 }
 0x6fd   : > { %v3756_v25 = vadd.f32 %v3740_v38, %v3303_v32  ;;  %1919 = vadd.xlane.f32.xlu0 %v1918_v0  ;;  %v4611_v30 = vpop.xlane.xlu1 %4610  ;;  %v11316_v32 = vld [vmem:[#allocation70_spill] sm:$0xff]  ;;  %v4186_v38 = vsel %vm512_vm0, %v4140_v16, 0.0  ;;  %v4593_v0 = vsel %vm4577_vm12, %v10652_v7, 0.0 }
 0x6fe   : > { %v4647_v19 = vmul.f32 %v4611_v30, %v10061_v53  ;;  %v4155_v26 = vpop.xlane.xlu0 %4154  ;;  %v11318_v30 = vld [vmem:[#allocation100_spill] sm:$0xff] }
 0x6ff   : > { %v4193_v34 = vmul.f32 %v4155_v26, %v9984_v45  ;;  %v11319_v26 = vld [vmem:[#allocation71_spill] sm:$0xff] }
 0x700   : > { %v4663_v18 = vadd.f32 %v4647_v19, %v4210_v57  ;;  %2828 = vadd.xlane.f32.xlu1 %v2827_v62  ;;  %v3730_v57 = vsel %vm512_vm0, %v3686_v5, 0.0 }
 0x701   : > { %v4209_v28 = vadd.f32 %v4193_v34, %v3756_v25  ;;  %2372 = vadd.xlane.f32.xlu0 %v2371_v22  ;;  %v5064_v53 = vpop.xlane.xlu1 %5063  ;;  %v4139_v25 = vsel %vm4124_vm14, %v10668_v48, 0.0  ;;  %v11320_v34 = vld [vmem:[#allocation86_spill] sm:$0xff] }
 0x702   : > { %v5100_v63 = vmul.f32 %v5064_v53, %v4977_v2  ;;  %v4608_v45 = vpop.xlane.xlu0 %4607  ;;  %v4183_v9 = vsel %vm512_vm0, %v4139_v25, 0.0 }
 0x703   : > { %v4646_v33 = vmul.f32 %v4608_v45, %v10065_v58  ;;  %v3233_v58 = vsel %vm3218_vm2, %v10668_v48, 0.0  ;;  %v11321_v45 = vld [vmem:[#allocation114_spill] sm:$0xff] }
 0x704   : > { %v5116_v31 = vadd.f32 %v5100_v63, %v4663_v18  ;;  %3281 = vadd.xlane.f32.xlu1 %v3280_v4  ;;  %v3277_v29 = vsel %vm512_vm0, %v3233_v58, 0.0  ;;  %v4639_v18 = vsel %vm512_vm0, %v4593_v0, 0.0  ;;  %v4592_v63 = vsel %vm4577_vm12, %v10668_v48, 0.0  ;;  %v11322_v4 = vld [vmem:[#allocation101_spill] sm:$0xff] }
 0x705   : > { %v4662_v11 = vadd.f32 %v4646_v33, %v4209_v28  ;;  %2825 = vadd.xlane.f32.xlu0 %v2824_v55  ;;  %v1899_v3 = vpop.xlane.xlu1 %1898  ;;  %v5046_v28 = vsel %vm5030_vm4, %v10652_v7, 0.0  ;;  %v5045_v58 = vsel %vm5030_vm4, %v10668_v48, 0.0  ;;  %v4987_v0 = vadd.f32 %v10349_v13, %v10443_v27 }
 0x706   : > { %5132 = vst [vmem:[%s10489_s30 + $0x28] sm:$0xff] %v5116_v31  ;;  %v5061_v10 = vpop.xlane.xlu0 %5060  ;;  %v1931_v39 = vmul.f32 %v1899_v3, %v11316_v32  ;;  %v5092_v55 = vsel %vm512_vm0, %v5046_v28, 0.0 }
 0x707   : > { %v5099_v8 = vmul.f32 %v5061_v10, %v4972_v36  ;;  %v11323_v10 = vld [vmem:[#allocation33_spill] sm:$0xff] }
 0x708   : > { %3734 = vadd.xlane.f32.xlu1 %v3733_v50 }
 0x709   : > { %v5115_v37 = vadd.f32 %v5099_v8, %v4662_v11  ;;  %3278 = vadd.xlane.f32.xlu0 %v3277_v29  ;;  %v2352_v47 = vpop.xlane.xlu1 %2351  ;;  %v4636_v11 = vsel %vm512_vm0, %v4592_v63, 0.0  ;;  %v11324_v29 = vld [vmem:[#allocation115_spill] sm:$0xff] }
 0x70a   : > { %v2384_v40 = vmul.f32 %v2352_v47, %v11317_v35  ;;  %v1896_v51 = vpop.xlane.xlu0 %1895  ;;  %v5089_v47 = vsel %vm512_vm0, %v5045_v58, 0.0 }
 0x70b   : > { %5131 = vst [vmem:[%s10489_s30 + $0x20] sm:$0xff] %v5115_v37  ;;  %v1930_v2 = vmul.f32 %v1896_v51, %v11319_v26 }
 0x70c   : > { %v2400_v20 = vadd.f32 %v2384_v40, %v1931_v39  ;;  %4187 = vadd.xlane.f32.xlu1 %v4186_v38  ;;  %v11325_v40 = vld [vmem:[#allocation49_spill] sm:$0xff] }
 0x70d   : > { %3731 = vadd.xlane.f32.xlu0 %v3730_v57  ;;  %v2805_v6 = vpop.xlane.xlu1 %2804 }
 0x70e   : > { %v2837_v44 = vmul.f32 %v2805_v6, %v11318_v30  ;;  %v2349_v19 = vpop.xlane.xlu0 %2348 }
 0x70f   : > { %v2383_v62 = vmul.f32 %v2349_v19, %v11320_v34 }
 0x710   : > { %v2853_v22 = vadd.f32 %v2837_v44, %v2400_v20  ;;  %4640 = vadd.xlane.f32.xlu1 %v4639_v18 }
 0x711   : > { %v2399_v53 = vadd.f32 %v2383_v62, %v1930_v2  ;;  %4184 = vadd.xlane.f32.xlu0 %v4183_v9  ;;  %v3258_v49 = vpop.xlane.xlu1 %3257  ;;  %v4982_v2 = vadd.f32 %v10443_v27, %v10355_v14  ;;  %v11328_v14 = vld [vmem:[#allocation102_spill] sm:$0xff] }
 0x712   : > { %v3290_v33 = vmul.f32 %v3258_v49, %v11321_v45  ;;  %v2802_v36 = vpop.xlane.xlu0 %2801 }
 0x713   : > { %v2836_v31 = vmul.f32 %v2802_v36, %v11322_v4 }
 0x714   : > { %v3306_v54 = vadd.f32 %v3290_v33, %v2853_v22  ;;  %5093 = vadd.xlane.f32.xlu1 %v5092_v55  ;;  %v11329_v55 = vld [vmem:[#allocation73_spill] sm:$0xff] }
 0x715   : > { %v2852_v3 = vadd.f32 %v2836_v31, %v2399_v53  ;;  %4637 = vadd.xlane.f32.xlu0 %v4636_v11  ;;  %v3711_v7 = vpop.xlane.xlu1 %3710  ;;  %v11327_v53 = vld [vmem:[#allocation87_spill] sm:$0xff]  ;;  %v11330_v11 = vld [vmem:[#allocation88_spill] sm:$0xff] }
 0x716   : > { %v3743_v8 = vmul.f32 %v3711_v7, %v11323_v10  ;;  %v3255_v50 = vpop.xlane.xlu0 %3254 }
 0x717   : > { %v3289_v16 = vmul.f32 %v3255_v50, %v11324_v29 }
 0x718   : > { %v3759_v37 = vadd.f32 %v3743_v8, %v3306_v54  ;;  %v11331_v8 = vld [vmem:[#allocation31_spill] sm:$0xff] }
 0x719   : > { %v3305_v5 = vadd.f32 %v3289_v16, %v2852_v3  ;;  %5090 = vadd.xlane.f32.xlu0 %v5089_v47  ;;  %v4164_v32 = vpop.xlane.xlu1 %4163  ;;  %v11332_v16 = vld [vmem:[#allocation103_spill] sm:$0xff] }
 0x71a   : > { %v4196_v39 = vmul.f32 %v4164_v32, %v9992_v21  ;;  %v3708_v35 = vpop.xlane.xlu0 %3707 }
 0x71b   : > { %v3742_v51 = vmul.f32 %v3708_v35, %v11325_v40  ;;  %v11333_v40 = vld [vmem:[#allocation47_spill] sm:$0xff] }
 0x71c   : > { %v4212_v38 = vadd.f32 %v4196_v39, %v3759_v37 }
 0x71d   : > { %v3758_v20 = vadd.f32 %v3742_v51, %v3305_v5  ;;  %v4617_v56 = vpop.xlane.xlu1 %4616 }
 0x71e   : > { %v4649_v48 = vmul.f32 %v4617_v56, %v10073_v52  ;;  %v4161_v57 = vpop.xlane.xlu0 %4160 }
 0x71f   : > { %v4195_v6 = vmul.f32 %v4161_v57, %v10003_v60  ;;  %v11326_v60 = vld [vmem:[#allocation72_spill] sm:$0xff] }
 0x720   : > { %v4665_v25 = vadd.f32 %v4649_v48, %v4212_v38 }
 0x721   : > { %v4211_v30 = vadd.f32 %v4195_v6, %v3758_v20  ;;  %v5070_v44 = vpop.xlane.xlu1 %5069 }
 0x722   : > { %v5102_v21 = vmul.f32 %v5070_v44, %v4987_v0  ;;  %v4614_v19 = vpop.xlane.xlu0 %4613 }
 0x723   : > { %v4648_v26 = vmul.f32 %v4614_v19, %v10077_v23 }
 0x724   : > { %v5118_v34 = vadd.f32 %v5102_v21, %v4665_v25 }
 0x725   : > { %v4664_v62 = vadd.f32 %v4648_v26, %v4211_v30  ;;  %v1905_v52 = vpop.xlane.xlu1 %1904  ;;  %v4997_v26 = vadd.f32 %v10469_v15, %v10443_v27 }
 0x726   : > { %5134 = vst [vmem:[%s10489_s30 + $0x38] sm:$0xff] %v5118_v34  ;;  %v5067_v18 = vpop.xlane.xlu0 %5066  ;;  %v1933_v28 = vmul.f32 %v1905_v52, %v11326_v60 }
 0x727   : > { %v5101_v22 = vmul.f32 %v5067_v18, %v4982_v2 }
 0x729   : > { %v5117_v13 = vadd.f32 %v5101_v22, %v4664_v62  ;;  %v2358_v9 = vpop.xlane.xlu1 %2357  ;;  %v10770_v33 = vpop.f32.mrb[132].mxu1  ;;  %v4992_v22 = vadd.f32 %v10443_v27, %v10492_v59  ;;  %v11337_v59 = vld [vmem:[#allocation75_spill] sm:$0xff] }
 0x72a   : > { %v2386_v49 = vmul.f32 %v2358_v9, %v11327_v53  ;;  %v1902_v63 = vpop.xlane.xlu0 %1901  ;;  %v10772_v36 = vpop.f32.mrb[133].mxu1 }
 0x72b   : > { %5133 = vst [vmem:[%s10489_s30 + $0x30] sm:$0xff] %v5117_v13  ;;  %v1932_v54 = vmul.f32 %v1902_v63, %v11329_v55  ;;  %v11335_v63 = vld [vmem:[#allocation89_spill] sm:$0xff] }
 0x72c   : > { %v2402_v45 = vadd.f32 %v2386_v49, %v1933_v28 }
 0x72d   : > { %v2811_v23 = vpop.xlane.xlu1 %2810 }
 0x72e   : > { %v2839_v4 = vmul.f32 %v2811_v23, %v11328_v14  ;;  %v2355_v31 = vpop.xlane.xlu0 %2354 }
 0x72f   : > { %v2385_v3 = vmul.f32 %v2355_v31, %v11330_v11  ;;  %v11338_v11 = vld [vmem:[#allocation90_spill] sm:$0xff] }
 0x730   : > { %v2855_v7 = vadd.f32 %v2839_v4, %v2402_v45 }
 0x731   : > { %v2401_v58 = vadd.f32 %v2385_v3, %v1932_v54  ;;  %v3264_v10 = vpop.xlane.xlu1 %3263 }
 0x732   : > { %v3292_v50 = vmul.f32 %v3264_v10, %v11331_v8  ;;  %v2808_v29 = vpop.xlane.xlu0 %2807  ;;  %v11339_v8 = vld [vmem:[#allocation116_spill] sm:$0xff] }
 0x733   : > { %v2838_v37 = vmul.f32 %v2808_v29, %v11332_v16  ;;  %v11340_v16 = vld [vmem:[#allocation105_spill] sm:$0xff] }
 0x734   : > { %v3308_v47 = vadd.f32 %v3292_v50, %v2855_v7 }
 0x735   : > { %v2854_v5 = vadd.f32 %v2838_v37, %v2401_v58  ;;  %v3717_v32 = vpop.xlane.xlu1 %3716 }
 0x736   : > { %v3745_v39 = vmul.f32 %v3717_v32, %v9908_v43  ;;  %v3261_v35 = vpop.xlane.xlu0 %3260  ;;  %v10783_v6 = vpop.f32.mrb[134].mxu1 }
 0x737   : > { %v3291_v51 = vmul.f32 %v3261_v35, %v11333_v40  ;;  %v10785_v30 = vpop.f32.mrb[135].mxu1  ;;  %v11341_v40 = vld [vmem:[#allocation117_spill] sm:$0xff] }
 0x738   : > { %v3761_v38 = vadd.f32 %v3745_v39, %v3308_v47 }
 0x739   : > { %v3307_v20 = vadd.f32 %v3291_v51, %v2854_v5  ;;  %v4170_v56 = vpop.xlane.xlu1 %4169 }
 0x73a   : > { %v4198_v48 = vmul.f32 %v4170_v56, %v10009_v12  ;;  %v3714_v57 = vpop.xlane.xlu0 %3713 }
 0x73b   : > { %v3744_v0 = vmul.f32 %v3714_v57, %v9912_v1 }
 0x73c   : > { %v4214_v25 = vadd.f32 %v4198_v48, %v3761_v38  ;;  %v11342_v48 = vld [vmem:[#allocation15_spill] sm:$0xff] }
 0x73d   : > { %v3760_v44 = vadd.f32 %v3744_v0, %v3307_v20  ;;  %v4623_v21 = vpop.xlane.xlu1 %4622 }
 0x73e   : > { %v4651_v43 = vmul.f32 %v4623_v21, %v10084_v61  ;;  %v4167_v19 = vpop.xlane.xlu0 %4166 }
 0x73f   : > { %v4197_v2 = vmul.f32 %v4167_v19, %v10013_v41  ;;  %v11334_v41 = vld [vmem:[#allocation74_spill] sm:$0xff] }
 0x740   : > { %v4667_v12 = vadd.f32 %v4651_v43, %v4214_v25  ;;  %v11343_v25 = vld [vmem:[#allocation34_spill] sm:$0xff] }
 0x741   : > { %v4213_v34 = vadd.f32 %v4197_v2, %v3760_v44  ;;  %v5076_v62 = vpop.xlane.xlu1 %5075 }
 0x742   : > { %v5104_v1 = vmul.f32 %v5076_v62, %v4997_v26  ;;  %v4620_v52 = vpop.xlane.xlu0 %4619  ;;  %v11344_v26 = vld [vmem:[#allocation35_spill] sm:$0xff] }
 0x743   : > { %v4650_v18 = vmul.f32 %v4620_v52, %v10088_v17  ;;  %v11336_v17 = vld [vmem:[#allocation104_spill] sm:$0xff] }
 0x744   : > { %v5120_v13 = vadd.f32 %v5104_v1, %v4667_v12 }
 0x745   : > { %v4666_v9 = vadd.f32 %v4650_v18, %v4213_v34  ;;  %v1911_v61 = vpop.xlane.xlu1 %1910  ;;  %v11345_v34 = vld [vmem:[#allocation127_spill] sm:$0xff] }
 0x746   : > { %5136 = vst [vmem:[%s10489_s30 + $0x48] sm:$0xff] %v5120_v13  ;;  %v5073_v60 = vpop.xlane.xlu0 %5072  ;;  %v1935_v49 = vmul.f32 %v1911_v61, %v11334_v41 }
 0x747   : > { %v5103_v28 = vmul.f32 %v5073_v60, %v4992_v22  ;;  %v5002_v60 = vadd.f32 %v10443_v27, %v10616_v46 }
 0x749   : > { %v5119_v15 = vadd.f32 %v5103_v28, %v4666_v9  ;;  %v2364_v53 = vpop.xlane.xlu1 %2363  ;;  %v11346_v9 = vld [vmem:[#allocation51_spill] sm:$0xff] }
 0x74a   : > { %v2388_v45 = vmul.f32 %v2364_v53, %v11335_v63  ;;  %v1908_v23 = vpop.xlane.xlu0 %1907 }
 0x74b   : > { %5135 = vst [vmem:[%s10489_s30 + $0x40] sm:$0xff] %v5119_v15  ;;  %v1934_v54 = vmul.f32 %v1908_v23, %v11337_v59  ;;  %v11349_v59 = vld [vmem:[#allocation106_spill] sm:$0xff] }
 0x74c   : > { %v2404_v14 = vadd.f32 %v2388_v45, %v1935_v49  ;;  %v11347_v45 = vld [vmem:[#allocation76_spill] sm:$0xff] }
 0x74d   : > { %v2817_v4 = vpop.xlane.xlu1 %2816 }
 0x74e   : > { %v2841_v31 = vmul.f32 %v2817_v4, %v11336_v17  ;;  %v2361_v55 = vpop.xlane.xlu0 %2360 }
 0x74f   : > { %v2387_v3 = vmul.f32 %v2361_v55, %v11338_v11 }
 0x750   : > { %v2857_v7 = vadd.f32 %v2841_v31, %v2404_v14  ;;  %v11348_v14 = vld [vmem:[#allocation91_spill] sm:$0xff] }
 0x751   : > { %v2403_v58 = vadd.f32 %v2387_v3, %v1934_v54  ;;  %v3270_v10 = vpop.xlane.xlu1 %3269  ;;  %v11351_v3 = vld [vmem:[#allocation92_spill] sm:$0xff] }
 0x752   : > { %v3294_v50 = vmul.f32 %v3270_v10, %v11339_v8  ;;  %v2814_v29 = vpop.xlane.xlu0 %2813 }
 0x753   : > { %v2840_v37 = vmul.f32 %v2814_v29, %v11340_v16 }
 0x754   : > { %v3310_v47 = vadd.f32 %v3294_v50, %v2857_v7  ;;  %v11352_v50 = vld [vmem:[#allocation118_spill] sm:$0xff] }
 0x755   : > { %v2856_v5 = vadd.f32 %v2840_v37, %v2403_v58  ;;  %v3723_v32 = vpop.xlane.xlu1 %3722  ;;  %v11353_v37 = vld [vmem:[#allocation107_spill] sm:$0xff] }
 0x756   : > { %v3747_v39 = vmul.f32 %v3723_v32, %v9924_v24  ;;  %v3267_v35 = vpop.xlane.xlu0 %3266  ;;  %v5007_v24 = vadd.f32 %v10599_v42, %v10443_v27  ;;  %v11350_v27 = vld [vmem:[#allocation77_spill] sm:$0xff] }
 0x757   : > { %v3293_v51 = vmul.f32 %v3267_v35, %v11341_v40  ;;  %v11354_v35 = vld [vmem:[#allocation50_spill] sm:$0xff] }
 0x758   : > { %v3763_v38 = vadd.f32 %v3747_v39, %v3310_v47 }
 0x759   : > { %v3309_v20 = vadd.f32 %v3293_v51, %v2856_v5  ;;  %v4176_v56 = vpop.xlane.xlu1 %4175 }
 0x75a   : > { %v4200_v57 = vmul.f32 %v4176_v56, %v11342_v48  ;;  %v3720_v0 = vpop.xlane.xlu0 %3719 }
 0x75b   : > { %v3746_v44 = vmul.f32 %v3720_v0, %v11343_v25  ;;  %v11356_v0 = vld [vmem:[#allocation128_spill] sm:$0xff] }
 0x75c   : > { %v4216_v21 = vadd.f32 %v4200_v57, %v3763_v38  ;;  %v11355_v38 = vld [vmem:[#allocation119_spill] sm:$0xff] }
 0x75d   : > { %v3762_v43 = vadd.f32 %v3746_v44, %v3309_v20  ;;  %v4629_v19 = vpop.xlane.xlu1 %4628 }
 0x75e   : > { %v4653_v2 = vmul.f32 %v4629_v19, %v11344_v26  ;;  %v4173_v12 = vpop.xlane.xlu0 %4172 }
 0x75f   : > { %v4199_v62 = vmul.f32 %v4173_v12, %v11345_v34  ;;  %v11358_v12 = vld [vmem:[#allocation132_spill] sm:$0xff] }
 0x760   : > { %v4669_v1 = vadd.f32 %v4653_v2, %v4216_v21  ;;  %v11357_v21 = vld [vmem:[#allocation14_spill] sm:$0xff] }
 0x761   : > { %v4215_v52 = vadd.f32 %v4199_v62, %v3762_v43  ;;  %v5082_v18 = vpop.xlane.xlu1 %5081  ;;  %v7560_v62 = vld [vmem:[%s10912_s6 + $0x7] ss:$0 sm:$0xff] }
 0x762   : > { %v5106_v22 = vmul.f32 %v5082_v18, %v5007_v24  ;;  %v4626_v13 = vpop.xlane.xlu0 %4625 }
 0x763   : > { %v4652_v61 = vmul.f32 %v4626_v13, %v11346_v9 }
 0x764   : > { %v5122_v28 = vadd.f32 %v5106_v22, %v4669_v1  ;;  %v5017_v1 = vadd.f32 %v7560_v62, %v10770_v33 }
 0x765   : > { %v4668_v15 = vadd.f32 %v4652_v61, %v4215_v52  ;;  %v1917_v53 = vpop.xlane.xlu1 %1916  ;;  %v11359_v52 = vld [vmem:[#allocation129_spill] sm:$0xff] }
 0x766   : > { %5138 = vst [vmem:[%s10489_s30 + $0x58] sm:$0xff] %v5122_v28  ;;  %v5079_v41 = vpop.xlane.xlu0 %5078  ;;  %v1937_v23 = vmul.f32 %v1917_v53, %v11347_v45  ;;  %v11360_v28 = vld [vmem:[#allocation133_spill] sm:$0xff]  ;;  %v5012_v53 = vadd.f32 %v7560_v62, %v10772_v36  ;;  %v11364_v36 = vld [vmem:[#allocation79_spill] sm:$0xff] }
 0x767   : > { %v5105_v49 = vmul.f32 %v5079_v41, %v5002_v60 }
 0x769   : > { %v5121_v42 = vadd.f32 %v5105_v49, %v4668_v15  ;;  %v2370_v63 = vpop.xlane.xlu1 %2369 }
 0x76a   : > { %v2390_v4 = vmul.f32 %v2370_v63, %v11348_v14  ;;  %v1914_v17 = vpop.xlane.xlu0 %1913  ;;  %v11361_v14 = vld [vmem:[#allocation78_spill] sm:$0xff] }
 0x76b   : > { %5137 = vst [vmem:[%s10489_s30 + $0x50] sm:$0xff] %v5121_v42  ;;  %v1936_v46 = vmul.f32 %v1914_v17, %v11350_v27  ;;  %v11362_v17 = vld [vmem:[#allocation93_spill] sm:$0xff] }
 0x76c   : > { %v2406_v31 = vadd.f32 %v2390_v4, %v1937_v23 }
 0x76d   : > { %v2823_v55 = vpop.xlane.xlu1 %2822 }
 0x76e   : > { %v2843_v54 = vmul.f32 %v2823_v55, %v11349_v59  ;;  %v2367_v11 = vpop.xlane.xlu0 %2366 }
 0x76f   : > { %v2389_v7 = vmul.f32 %v2367_v11, %v11351_v3  ;;  %v11363_v11 = vld [vmem:[#allocation108_spill] sm:$0xff] }
 0x770   : > { %v2859_v58 = vadd.f32 %v2843_v54, %v2406_v31 }
 0x771   : > { %v2405_v10 = vadd.f32 %v2389_v7, %v1936_v46  ;;  %v3276_v8 = vpop.xlane.xlu1 %3275  ;;  %v11365_v7 = vld [vmem:[#allocation94_spill] sm:$0xff] }
 0x772   : > { %v3296_v29 = vmul.f32 %v3276_v8, %v11352_v50  ;;  %v2820_v16 = vpop.xlane.xlu0 %2819 }
 0x773   : > { %v2842_v47 = vmul.f32 %v2820_v16, %v11353_v37 }
 0x774   : > { %v3312_v5 = vadd.f32 %v3296_v29, %v2859_v58  ;;  %v11366_v29 = vld [vmem:[#allocation28_spill] sm:$0xff] }
 0x775   : > { %v2858_v32 = vadd.f32 %v2842_v47, %v2405_v10  ;;  %v3729_v39 = vpop.xlane.xlu1 %3728  ;;  %v11367_v47 = vld [vmem:[#allocation109_spill] sm:$0xff] }
 0x776   : > { %v3749_v40 = vmul.f32 %v3729_v39, %v11354_v35  ;;  %v3273_v51 = vpop.xlane.xlu0 %3272 }
 0x777   : > { %v3295_v20 = vmul.f32 %v3273_v51, %v11355_v38 }
 0x778   : > { %v3765_v56 = vadd.f32 %v3749_v40, %v3312_v5  ;;  %v11368_v40 = vld [vmem:[#allocation125_spill] sm:$0xff] }
 0x779   : > { %v3311_v48 = vadd.f32 %v3295_v20, %v2858_v32  ;;  %v4182_v57 = vpop.xlane.xlu1 %4181  ;;  %v11369_v20 = vld [vmem:[#allocation45_spill] sm:$0xff] }
 0x77a   : > { %v4202_v25 = vmul.f32 %v4182_v57, %v11356_v0  ;;  %v3726_v44 = vpop.xlane.xlu0 %3725 }
 0x77b   : > { %v3748_v43 = vmul.f32 %v3726_v44, %v11357_v21 }
 0x77c   : > { %v4218_v19 = vadd.f32 %v4202_v25, %v3765_v56  ;;  %v11370_v25 = vld [vmem:[#allocation130_spill] sm:$0xff] }
 0x77d   : > { %v3764_v26 = vadd.f32 %v3748_v43, %v3311_v48  ;;  %v4635_v2 = vpop.xlane.xlu1 %4634  ;;  %v11371_v43 = vld [vmem:[#allocation126_spill] sm:$0xff] }
 0x77e   : > { %v4655_v24 = vmul.f32 %v4635_v2, %v11358_v12  ;;  %v4179_v34 = vpop.xlane.xlu0 %4178 }
 0x77f   : > { %v4201_v18 = vmul.f32 %v4179_v34, %v11359_v52  ;;  %v5027_v52 = vadd.f32 %v7560_v62, %v10783_v6 }
 0x780   : > { %v4671_v22 = vadd.f32 %v4655_v24, %v4218_v19  ;;  %v11372_v24 = vld [vmem:[#allocation134_spill] sm:$0xff] }
 0x781   : > { %v4217_v13 = vadd.f32 %v4201_v18, %v3764_v26  ;;  %v5088_v9 = vpop.xlane.xlu1 %5087  ;;  %v11373_v18 = vld [vmem:[#allocation131_spill] sm:$0xff] }
 0x782   : > { %v5108_v61 = vmul.f32 %v5088_v9, %v5017_v1  ;;  %v4632_v60 = vpop.xlane.xlu0 %4631 }
 0x783   : > { %v4654_v15 = vmul.f32 %v4632_v60, %v11360_v28 }
 0x784   : > { %v5124_v41 = vadd.f32 %v5108_v61, %v4671_v22 }
 0x785   : > { %v4670_v49 = vadd.f32 %v4654_v15, %v4217_v13  ;;  %v1923_v42 = vpop.xlane.xlu1 %1922  ;;  %v11374_v15 = vld [vmem:[#allocation135_spill] sm:$0xff] }
 0x786   : > { %5140 = vst [vmem:[%s10489_s30 + $0x68] sm:$0xff] %v5124_v41  ;;  %v5085_v63 = vpop.xlane.xlu0 %5084  ;;  %v1939_v4 = vmul.f32 %v1923_v42, %v11361_v14 }
 0x787   : > { %v5107_v45 = vmul.f32 %v5085_v63, %v5012_v53 }
 0x789   : > { %v5123_v23 = vadd.f32 %v5107_v45, %v4670_v49  ;;  %v2376_v33 = vpop.xlane.xlu1 %2375  ;;  %v5022_v49 = vadd.f32 %v7560_v62, %v10785_v30 }
 0x78a   : > { %v2392_v31 = vmul.f32 %v2376_v33, %v11362_v17  ;;  %v1920_v55 = vpop.xlane.xlu0 %1919 }
 0x78b   : > { %5139 = vst [vmem:[%s10489_s30 + $0x60] sm:$0xff] %v5123_v23  ;;  %v1938_v3 = vmul.f32 %v1920_v55, %v11364_v36 }
 0x78c   : > { %v2408_v59 = vadd.f32 %v2392_v31, %v1939_v4 }
 0x78d   : > { %v2829_v54 = vpop.xlane.xlu1 %2828 }
 0x78e   : > { %v2845_v27 = vmul.f32 %v2829_v54, %v11363_v11  ;;  %v2373_v46 = vpop.xlane.xlu0 %2372 }
 0x78f   : > { %v2391_v58 = vmul.f32 %v2373_v46, %v11365_v7 }
 0x790   : > { %v2861_v10 = vadd.f32 %v2845_v27, %v2408_v59 }
 0x791   : > { %v2407_v8 = vadd.f32 %v2391_v58, %v1938_v3  ;;  %v3282_v50 = vpop.xlane.xlu1 %3281 }
 0x792   : > { %v3298_v16 = vmul.f32 %v3282_v50, %v11366_v29  ;;  %v2826_v37 = vpop.xlane.xlu0 %2825 }
 0x793   : > { %v2844_v5 = vmul.f32 %v2826_v37, %v11367_v47 }
 0x794   : > { %v3314_v32 = vadd.f32 %v3298_v16, %v2861_v10 }
 0x795   : > { %v2860_v39 = vadd.f32 %v2844_v5, %v2407_v8  ;;  %v3735_v35 = vpop.xlane.xlu1 %3734 }
 0x796   : > { %v3751_v51 = vmul.f32 %v3735_v35, %v11368_v40  ;;  %v3279_v38 = vpop.xlane.xlu0 %3278 }
 0x797   : > { %v3297_v56 = vmul.f32 %v3279_v38, %v11369_v20 }
 0x798   : > { %v3767_v48 = vadd.f32 %v3751_v51, %v3314_v32 }
 0x799   : > { %v3313_v57 = vadd.f32 %v3297_v56, %v2860_v39  ;;  %v4188_v0 = vpop.xlane.xlu1 %4187 }
 0x79a   : > { %v4204_v44 = vmul.f32 %v4188_v0, %v11370_v25  ;;  %v3732_v21 = vpop.xlane.xlu0 %3731 }
 0x79b   : > { %v3750_v19 = vmul.f32 %v3732_v21, %v11371_v43 }
 0x79c   : > { %v4220_v26 = vadd.f32 %v4204_v44, %v3767_v48 }
 0x79d   : > { %v3766_v2 = vadd.f32 %v3750_v19, %v3313_v57  ;;  %v4641_v12 = vpop.xlane.xlu1 %4640 }
 0x79e   : > { %v4657_v34 = vmul.f32 %v4641_v12, %v11372_v24  ;;  %v4185_v1 = vpop.xlane.xlu0 %4184 }
 0x79f   : > { %v4203_v22 = vmul.f32 %v4185_v1, %v11373_v18 }
 0x7a0   : > { %v4673_v13 = vadd.f32 %v4657_v34, %v4220_v26 }
 0x7a1   : > { %v4219_v9 = vadd.f32 %v4203_v22, %v3766_v2  ;;  %v5094_v61 = vpop.xlane.xlu1 %5093 }
 0x7a2   : > { %v5110_v60 = vmul.f32 %v5094_v61, %v5027_v52  ;;  %v4638_v28 = vpop.xlane.xlu0 %4637 }
 0x7a3   : > { %v4656_v53 = vmul.f32 %v4638_v28, %v11374_v15 }
 0x7a4   : > { %v5126_v41 = vadd.f32 %v5110_v60, %v4673_v13 }
 0x7a5   : > { %v4672_v42 = vadd.f32 %v4656_v53, %v4219_v9 }
 0x7a6   : > { %5142 = vst [vmem:[%s10489_s30 + $0x78] sm:$0xff] %v5126_v41  ;;  %v5091_v6 = vpop.xlane.xlu0 %5090 }
 0x7a7   : > { %v5109_v63 = vmul.f32 %v5091_v6, %v5022_v49 }
 0x7a9   : > { %v5125_v45 = vadd.f32 %v5109_v63, %v4672_v42 }
 0x7ab   : > { %5141 = vst [vmem:[%s10489_s30 + $0x70] sm:$0xff] %v5125_v45 }
 0x7ac   : > { %7660 = shalt.err (!%p7657_p1)
}
 0x7ad   : > { %s7661_s19 = scalar_lea.hbm %s10859_s29, 2048  ;;  %s7665_s14 = scalar_lea.hbm %s10913_s7, 4096 }
 0x7ae   : > { %p7662_p13 = scmp.ne.s32.totalorder %s10859_s29, %s7661_s19  ;;  %p7666_p4 = scmp.lt.u32.totalorder %s10859_s29, %s10913_s7 }
 0x7af   : > { %p7667_p5 = scmp.lt.u32.totalorder %s7665_s14, %s7661_s19  ;;  %p7669_p11 = scmp.lt.u32.totalorder %s7661_s19, %s10859_s29 }
 0x7b0   : > { %p7663_p6 = pnand %p7662_p13, %p11375_p0 }
 0x7b1   : > { %p7668_p8 = por %p7667_p5, %p7666_p4 }
 0x7b2   : > { %p7664_p10 = pneg %p7663_p6 }
 0x7b3   : > { %p7670_p2 = por %p7669_p11, %p7668_p8 }
 0x7b5   : > { %p7671_p3 = pnand %p7670_p2, %p7664_p10 }
 0x7b7   : > { %7674 = shalt.err (!%p7671_p3)
}
 0x7b8   : > { %s7725_s9 = smov 128   ;;  %s7726_s10 = smov 8  }
 0x7b9   : > { %7366 = dma.vmem_to_hbm [thread:$0]  (%p11375_p0), %s10861_s23, 2048, %s10859_s29, %s5144_s11, %s7725_s9, %s7725_s9, %s7726_s10  }
 0x7ba PF: > { %s5172_s28 = sand.u32 1, %s7705_s24   ;;  %p11376_p7 = scmp.ne.s32.totalorder %s11031_s8, 0 }
 0x7bb   : > { %p11377_p9 = scmp.ge.s32.totalorder %s7717_s27, 2  ;;  %s5173_s15 = scalar_lea.sflag [#allocation4], %s5172_s28 }
 0x7bd   : > { %p7380_p12 = pnand %p11377_p9, %p11376_p7 }
 0x7bf   : > { %7700 = dma.done.wait (!%p7380_p12), %s5173_s15, 2048  }
 0x7c0   : > { %7702 = vsyncadd (!%p7380_p12), %s5173_s15, 4294965248  ;;  %p21_p1 = scmp.ge.s32.totalorder %s7883_s12, 4   ;;  %s11378_s24 = smov %s7709_s25 }
 0x7c1   : > { %s11379_s25 = smov %s7713_s26  ;;  %s11380_s26 = smov %s7899_s17 }
 0x7c2   : > { %s11381_s27 = smov %s7883_s12  ;;  %23 = sbr.rel (!%p21_p1) target bundleno = 6 (0x6), region = 129 }
 0x7c9   :  { %5178 = vsyncpa [#allocation3], 1 }
 0x7ca   :  { %5180 = vsyncpa [#allocation3 + $0x1], 1 }
 0x7cb   :  { %5181 = vsyncpa [#allocation6], 1 }
 0x7cc   :  { %5182 = vsyncpa [#allocation4], 1 }
 0x7cd   :  { %5184 = vsyncpa [#allocation4 + $0x1], 1 }

</bundles_post_ra>
